<compile_context>
chip_gen: v5e
topology: v5e:2x2
jax: 0.10.0
libtpu: 0.0.40
codegen_flags: <defaults>
</compile_context>

<pallas_src>
import functools

import jax
import jax.numpy as jnp
from jax.experimental import pallas as pl
from jax.experimental.pallas import tpu as pltpu

NUM_CLASSES = 21
BOXES_PER_LOC = (4, 6, 6, 6, 4, 4)
HEAD_IN_CHANNELS = (512, 1024, 512, 256, 256, 256)
CENTER_VARIANCE = 0.1
SIZE_VARIANCE = 0.2


def _round_up(x, m):
    return (x + m - 1) // m * m


# ----------------------------------------------------------------------------
# Pallas kernel: K-tiled matmul + bias (+ fused ReLU).  bf16 inputs, f32 acc.
# ----------------------------------------------------------------------------
def _matmul_bias_kernel(x_ref, w_ref, b_ref, o_ref, acc_ref, *, relu):
    # x_ref: (tm, tk) bf16, w_ref: (tk, tn) bf16, b_ref: (1, tn) f32,
    # o_ref: (tm, tn), acc_ref: (tm, tn) f32 scratch.
    @pl.when(pl.program_id(2) == 0)
    def _():
        acc_ref[...] = jnp.zeros_like(acc_ref)

    acc_ref[...] += jnp.dot(x_ref[...], w_ref[...],
                            preferred_element_type=jnp.float32)

    @pl.when(pl.program_id(2) == pl.num_programs(2) - 1)
    def _():
        out = acc_ref[...] + b_ref[...]
        if relu:
            out = jnp.maximum(out, 0.0)
        o_ref[...] = out.astype(o_ref.dtype)


def matmul_bias(x, w, b, *, relu=False, out_dtype=jnp.float32,
                tm=128, tn=256, tk=1152):
    """x: (M, K) bf16, w: (K, N) bf16, b: (N,) f32 -> (M, N) out_dtype.

    Callers guarantee M % min(tm, M) == 0 (true for M in {8, 32, 128} here).
    N and K need not be multiples of the tiles: a ragged N takes one full-width
    block (masked store), a small K disables reduction tiling.
    """
    M, K = x.shape
    N = w.shape[1]
    tm = min(tm, M)
    if N % tn != 0:
        tn = N            # ragged head Cout: single full-width block
    if K % tk != 0:
        tk = K            # small-K backbone convs: no reduction tiling
    grid = (M // tm, N // tn, K // tk)
    kernel = functools.partial(_matmul_bias_kernel, relu=relu)
    return pl.pallas_call(
        kernel,
        out_shape=jax.ShapeDtypeStruct((M, N), out_dtype),
        grid_spec=pltpu.PrefetchScalarGridSpec(
            num_scalar_prefetch=0,
            grid=grid,
            in_specs=[
                pl.BlockSpec((tm, tk), lambda i, j, k: (i, k)),
                pl.BlockSpec((tk, tn), lambda i, j, k: (k, j)),
                pl.BlockSpec((1, tn), lambda i, j, k: (0, j)),
            ],
            out_specs=pl.BlockSpec((tm, tn), lambda i, j, k: (i, j)),
            scratch_shapes=[pltpu.VMEM((tm, tn), jnp.float32)],
        ),
        compiler_params=pltpu.CompilerParams(
            dimension_semantics=("parallel", "parallel", "arbitrary"),
        ),
    )(x, w, b.reshape(1, N))


# ----------------------------------------------------------------------------
# 3x3 / stride-1 / pad-1 conv = XLA-side bf16 im2col + single Pallas matmul
# ----------------------------------------------------------------------------
def _im2col_3x3(x):
    """x: (B, H, W, C) bf16 -> (B*H*W, 9*C) bf16, SAME padding, tap order (kh, kw, c)."""
    B, H, W, C = x.shape
    xp = jnp.pad(x, ((0, 0), (1, 1), (1, 1), (0, 0)))
    taps = [xp[:, kh:kh + H, kw:kw + W, :] for kh in range(3) for kw in range(3)]
    return jnp.concatenate(taps, axis=-1).reshape(B * H * W, 9 * C)


def conv3x3_same(x, w, b, *, relu=False, out_dtype=jnp.float32):
    """x: (B, H, W, Cin); w: (9*Cin, Cout) bf16 (tap order kh,kw,c); b: (Cout,) f32."""
    B, H, W, _ = x.shape
    Cout = w.shape[-1]
    patches = _im2col_3x3(x.astype(jnp.bfloat16))   # (B*H*W, 9*Cin) bf16
    M, K = patches.shape
    tm = min(128, M)
    if M >= 8 and K >= 128 and M % tm == 0:
        out = matmul_bias(patches, w, b, relu=relu, out_dtype=out_dtype)
    else:
        # Tiny matmul (1x1-spatial tail levels, stem with Cin=3): pallas_call
        # launch overhead would dominate, so keep it as a plain XLA dot.
        out = jnp.dot(patches, w, preferred_element_type=jnp.float32) + b
        if relu:
            out = jnp.maximum(out, 0.0)
        out = out.astype(out_dtype)
    return out.reshape(B, H, W, Cout)


# ----------------------------------------------------------------------------
# Pallas kernel: softmax over classes + box decode, prior axis N on lanes
# ----------------------------------------------------------------------------
def _postprocess_kernel(cls_ref, loc_ref, prior_ref, scores_ref, boxes_ref):
    # cls_ref: (1, C, Np), loc_ref: (1, 4, Np), prior_ref: (4, Np)
    logits = cls_ref[0]                                       # (C, Np)
    m = jnp.max(logits, axis=0, keepdims=True)
    e = jnp.exp(logits - m)
    denom = jnp.sum(e, axis=0, keepdims=True)
    scores_ref[0] = e * pl.reciprocal(denom, approx=True)     # EUP, not a VPU divide

    loc = loc_ref[0]                                          # (4, Np)
    pri = prior_ref[...]                                      # (4, Np)
    l_cx, l_cy = loc[0:1, :], loc[1:2, :]
    l_w, l_h = loc[2:3, :], loc[3:4, :]
    p_cx, p_cy = pri[0:1, :], pri[1:2, :]
    p_w, p_h = pri[2:3, :], pri[3:4, :]
    cx = l_cx * CENTER_VARIANCE * p_w + p_cx
    cy = l_cy * CENTER_VARIANCE * p_h + p_cy
    w = jnp.exp(l_w * SIZE_VARIANCE) * p_w
    h = jnp.exp(l_h * SIZE_VARIANCE) * p_h
    boxes_ref[0] = jnp.concatenate(
        [cx - 0.5 * w, cy - 0.5 * h, cx + 0.5 * w, cy + 0.5 * h], axis=0)


def head_postprocess(cls_logits, bbox_pred, priors):
    """softmax(cls) + convert_locations_to_boxes + center->corner form."""
    B, N, C = cls_logits.shape
    Npad = _round_up(N, 128)
    pad = Npad - N
    # Put the prior axis on lanes (N -> 512) so every load/store is lane-dense.
    cls_t = jnp.pad(jnp.transpose(cls_logits, (0, 2, 1)), ((0, 0), (0, 0), (0, pad)))
    loc_t = jnp.pad(jnp.transpose(bbox_pred, (0, 2, 1)), ((0, 0), (0, 0), (0, pad)))
    pri_t = jnp.pad(priors.T, ((0, 0), (0, pad)))
    scores_t, boxes_t = pl.pallas_call(
        _postprocess_kernel,
        out_shape=(jax.ShapeDtypeStruct((B, C, Npad), jnp.float32),
                   jax.ShapeDtypeStruct((B, 4, Npad), jnp.float32)),
        grid_spec=pltpu.PrefetchScalarGridSpec(
            num_scalar_prefetch=0,
            grid=(B,),
            in_specs=[
                pl.BlockSpec((1, C, Npad), lambda i: (i, 0, 0)),
                pl.BlockSpec((1, 4, Npad), lambda i: (i, 0, 0)),
                pl.BlockSpec((4, Npad), lambda i: (0, 0)),
            ],
            out_specs=[
                pl.BlockSpec((1, C, Npad), lambda i: (i, 0, 0)),
                pl.BlockSpec((1, 4, Npad), lambda i: (i, 0, 0)),
            ],
        ),
        compiler_params=pltpu.CompilerParams(dimension_semantics=("parallel",)),
    )(cls_t, loc_t, pri_t)
    # Padded prior columns carry garbage softmax values; they are sliced off here.
    scores = jnp.transpose(scores_t, (0, 2, 1))[:, :N, :]
    boxes = jnp.transpose(boxes_t, (0, 2, 1))[:, :N, :]
    return scores, boxes


# ----------------------------------------------------------------------------
# Parameters (deterministic xavier_uniform / zero bias, matching reset_parameters)
# Weights are stored pre-reshaped to (9*Cin, Cout) in bf16; biases stay f32.
# ----------------------------------------------------------------------------
def xavier_conv(key, cin, cout):
    fan_in, fan_out = cin * 9, cout * 9
    bound = (6.0 / (fan_in + fan_out)) ** 0.5
    w = jax.random.uniform(key, (3, 3, cin, cout), jnp.float32, -bound, bound)
    return w.reshape(9 * cin, cout).astype(jnp.bfloat16), jnp.zeros((cout,), jnp.float32)


def init_params(key):
    params = {}
    n_bb = len(HEAD_IN_CHANNELS)
    keys = jax.random.split(key, 1 + n_bb + 2 * n_bb)
    # TODO(synk): original vgg() backbone source not provided; a deterministic
    # synthetic multi-scale backbone (same conv path) stands in for it.
    params["stem"] = xavier_conv(keys[0], 3, 32)
    for lvl, cout in enumerate(HEAD_IN_CHANNELS):
        cin = 32 if lvl < 4 else 256
        params[f"bb{lvl}"] = xavier_conv(keys[1 + lvl], cin, cout)
    off = 1 + n_bb
    for lvl, (nb, cin) in enumerate(zip(BOXES_PER_LOC, HEAD_IN_CHANNELS)):
        wc, bc = xavier_conv(keys[off + 2 * lvl], cin, nb * NUM_CLASSES)
        wr, br = xavier_conv(keys[off + 2 * lvl + 1], cin, nb * 4)
        # Fuse cls + reg along Cout so each feature map is read once.  Pad only
        # to a multiple of 8 (NOT 128) — the single ragged output block takes a
        # masked store, which is far cheaper than ~40% wasted weight DMA.
        n_out = nb * NUM_CLASSES + nb * 4
        n_pad = _round_up(n_out, 8) - n_out
        w = jnp.concatenate(
            [wc, wr, jnp.zeros((9 * cin, n_pad), jnp.bfloat16)], axis=-1)
        b = jnp.concatenate([bc, br, jnp.zeros((n_pad,), jnp.float32)])
        params[f"head{lvl}"] = (w, b)
    return params


# ----------------------------------------------------------------------------
# Model pieces (glue in plain JAX; heavy matmuls in the Pallas kernels above)
# ----------------------------------------------------------------------------
def avg_pool(x, factor):
    B, H, W, C = x.shape
    return x.reshape(B, H // factor, factor, W // factor, factor, C).mean(axis=(2, 4))


def backbone(images_nhwc, params):
    # ReLU is fused into the Pallas matmul epilogue; backbone features stay bf16
    # in HBM (halves feature-map and im2col traffic for the heads).
    trunk = conv3x3_same(images_nhwc, *params["stem"],
                         relu=True, out_dtype=jnp.bfloat16)           # (B,32,32,32)
    feats = [
        conv3x3_same(avg_pool(trunk, 4), *params["bb0"],
                     relu=True, out_dtype=jnp.bfloat16),              # (B, 8, 8, 512)
        conv3x3_same(avg_pool(trunk, 8), *params["bb1"],
                     relu=True, out_dtype=jnp.bfloat16),              # (B, 4, 4, 1024)
        conv3x3_same(avg_pool(trunk, 16), *params["bb2"],
                     relu=True, out_dtype=jnp.bfloat16),              # (B, 2, 2, 512)
        conv3x3_same(avg_pool(trunk, 32), *params["bb3"],
                     relu=True, out_dtype=jnp.bfloat16),              # (B, 1, 1, 256)
    ]
    feats.append(conv3x3_same(feats[3], *params["bb4"],
                              relu=True, out_dtype=jnp.bfloat16))     # (B,1,1,256)
    feats.append(conv3x3_same(feats[4], *params["bb5"],
                              relu=True, out_dtype=jnp.bfloat16))     # (B,1,1,256)
    return feats


def box_predictor(features, params):
    B = features[0].shape[0]
    cls_flat, reg_flat = [], []
    for lvl, (feat, nb) in enumerate(zip(features, BOXES_PER_LOC)):
        w, b = params[f"head{lvl}"]
        # NHWC output == permute(0, 2, 3, 1) of the PyTorch conv output.
        fused = conv3x3_same(feat, w, b, relu=False, out_dtype=jnp.float32)
        nc, nr = nb * NUM_CLASSES, nb * 4
        cls_flat.append(fused[..., :nc].reshape(B, -1))
        reg_flat.append(fused[..., nc:nc + nr].reshape(B, -1))
    cls_logits = jnp.concatenate(cls_flat, axis=1).reshape(B, -1, NUM_CLASSES)
    bbox_pred = jnp.concatenate(reg_flat, axis=1).reshape(B, -1, 4)
    return cls_logits, bbox_pred


def make_priors(level_shapes):
    # TODO(synk): PriorBox source not provided; deterministic synthetic center-form priors.
    priors = []
    for (H, W), nb in zip(level_shapes, BOXES_PER_LOC):
        ys = (jnp.arange(H, dtype=jnp.float32) + 0.5) / H
        xs = (jnp.arange(W, dtype=jnp.float32) + 0.5) / W
        cy, cx = jnp.meshgrid(ys, xs, indexing="ij")
        per_box = []
        for b in range(nb):
            s = jnp.float32(0.15 + 0.1 * b)
            per_box.append(jnp.stack(
                [cx, cy, jnp.full_like(cx, s), jnp.full_like(cy, s)], axis=-1))
        p = jnp.stack(per_box, axis=2)          # (H, W, nb, 4) — matches prediction order
        priors.append(p.reshape(-1, 4))
    return jnp.concatenate(priors, axis=0)


def ssd_detector_forward(images_nchw, params):
    images = jnp.transpose(images_nchw, (0, 2, 3, 1))        # NCHW -> NHWC
    feats = backbone(images, params)
    cls_logits, bbox_pred = box_predictor(feats, params)
    level_shapes = [(f.shape[1], f.shape[2]) for f in feats]
    priors = make_priors(level_shapes)
    scores, boxes = head_postprocess(cls_logits, bbox_pred, priors)
    # TODO(synk): PostProcessor (per-image score thresholding + NMS) and the training
    # MultiBoxLoss path have no clean Pallas equivalent; raw (scores, boxes) are returned.
    return scores, boxes


if __name__ == "__main__":
    key = jax.random.PRNGKey(0)
    k_img, k_par = jax.random.split(key)
    images = jax.random.normal(k_img, (2, 3, 32, 32), jnp.float32)  # NCHW, like PyTorch
    params = init_params(k_par)

    fwd = jax.jit(ssd_detector_forward)
    scores, boxes = fwd(images, params)
    scores, boxes = jax.block_until_ready((scores, boxes))

    n_priors = sum(h * w * nb for (h, w), nb in
                   zip([(8, 8), (4, 4), (2, 2), (1, 1), (1, 1), (1, 1)], BOXES_PER_LOC))
    assert scores.shape == (2, n_priors, NUM_CLASSES), scores.shape
    assert boxes.shape == (2, n_priors, 4), boxes.shape
    assert bool(jnp.all(jnp.isfinite(scores))) and bool(jnp.all(jnp.isfinite(boxes)))
    print("KERNEL_OK")
</pallas_src>

<mosaic_0001>
module attributes {stable_mosaic.version = 11 : i64} {
  func.func @_matmul_bias_kernel(%arg0: i32, %arg1: i32, %arg2: i32, %arg3: memref<8x288xbf16, #tpu.memory_space<vmem>>, %arg4: memref<288x256xbf16, #tpu.memory_space<vmem>>, %arg5: memref<1x256xf32, #tpu.memory_space<vmem>>, %arg6: memref<8x256xbf16, #tpu.memory_space<vmem>>, %arg7: memref<8x256xf32, #tpu.memory_space<vmem>>) attributes {dimension_semantics = [#tpu.dimension_semantics<parallel>, #tpu.dimension_semantics<parallel>, #tpu.dimension_semantics<arbitrary>], iteration_bounds = array<i64: 1, 2, 1>, scalar_prefetch = 0 : i64, scratch_operands = 1 : i64, tpu.core_type = #tpu.core_type<tc>, window_params = [{transform_indices = @transform_0, window_bounds = array<i64: 8, 288>}, {transform_indices = @transform_1, window_bounds = array<i64: 288, 256>}, {transform_indices = @transform_2, window_bounds = array<i64: 1, 256>}, {transform_indices = @transform_3, window_bounds = array<i64: 8, 256>}]} {
    %c0_i32 = arith.constant 0 : i32
    %0 = arith.cmpi eq, %arg2, %c0_i32 : i32
    %1 = arith.extui %0 : i1 to i32
    %c0_i32_0 = arith.constant 0 : i32
    %2 = arith.cmpi ne, %1, %c0_i32_0 : i32
    scf.if %2 {
      %cst_10 = arith.constant 0.000000e+00 : f32
      %12 = vector.broadcast %cst_10 : f32 to vector<8x256xf32>
      %c0_11 = arith.constant 0 : index
      %c0_12 = arith.constant 0 : index
      %13 = vector.load %arg7[%c0_11, %c0_12] : memref<8x256xf32, #tpu.memory_space<vmem>>, vector<8x256xf32>
      tpu.vector_store %arg7[%c0_11, %c0_12], %12 {strides = array<i32>} : memref<8x256xf32, #tpu.memory_space<vmem>>, vector<8x256xf32>,
    } else {
    }
    %c0 = arith.constant 0 : index
    %c0_1 = arith.constant 0 : index
    %3 = vector.load %arg7[%c0, %c0_1] : memref<8x256xf32, #tpu.memory_space<vmem>>, vector<8x256xf32>
    %c0_2 = arith.constant 0 : index
    %c0_3 = arith.constant 0 : index
    %4 = vector.load %arg3[%c0_2, %c0_3] : memref<8x288xbf16, #tpu.memory_space<vmem>>, vector<8x288xbf16>
    %c0_4 = arith.constant 0 : index
    %c0_5 = arith.constant 0 : index
    %5 = vector.load %arg4[%c0_4, %c0_5] : memref<288x256xbf16, #tpu.memory_space<vmem>>, vector<288x256xbf16>
    %cst = arith.constant dense<0.000000e+00> : vector<8x256xf32>
    %6 = tpu.matmul %4, %5, %cst {dimension_numbers = #tpu.dot_dimension_numbers<[1], [0], [0], [1], [0, 0, 1, 1], [], []>} : vector<8x288xbf16>, vector<288x256xbf16>, vector<8x256xf32> -> vector<8x256xf32>
    %7 = arith.addf %3, %6 : vector<8x256xf32>
    %c0_6 = arith.constant 0 : index
    %c0_7 = arith.constant 0 : index
    %8 = vector.load %arg7[%c0_6, %c0_7] : memref<8x256xf32, #tpu.memory_space<vmem>>, vector<8x256xf32>
    tpu.vector_store %arg7[%c0_6, %c0_7], %7 {strides = array<i32>} : memref<8x256xf32, #tpu.memory_space<vmem>>, vector<8x256xf32>,
    %c0_i32_8 = arith.constant 0 : i32
    %9 = arith.cmpi eq, %arg2, %c0_i32_8 : i32
    %10 = arith.extui %9 : i1 to i32
    %c0_i32_9 = arith.constant 0 : i32
    %11 = arith.cmpi ne, %10, %c0_i32_9 : i32
    scf.if %11 {
      %c0_10 = arith.constant 0 : index
      %c0_11 = arith.constant 0 : index
      %12 = vector.load %arg7[%c0_10, %c0_11] : memref<8x256xf32, #tpu.memory_space<vmem>>, vector<8x256xf32>
      %c0_12 = arith.constant 0 : index
      %c0_13 = arith.constant 0 : index
      %13 = vector.load %arg5[%c0_12, %c0_13] : memref<1x256xf32, #tpu.memory_space<vmem>>, vector<1x256xf32>
      %14 = vector.broadcast %13 : vector<1x256xf32> to vector<8x256xf32>
      %15 = arith.addf %12, %14 : vector<8x256xf32>
      %cst_14 = arith.constant 0.000000e+00 : f32
      %16 = vector.broadcast %cst_14 : f32 to vector<8x256xf32>
      %17 = arith.maximumf %15, %16 : vector<8x256xf32>
      %18 = arith.truncf %17 : vector<8x256xf32> to vector<8x256xbf16>
      %c0_15 = arith.constant 0 : index
      %c0_16 = arith.constant 0 : index
      %19 = vector.load %arg6[%c0_15, %c0_16] : memref<8x256xbf16, #tpu.memory_space<vmem>>, vector<8x256xbf16>
      tpu.vector_store %arg6[%c0_15, %c0_16], %18 {strides = array<i32>} : memref<8x256xbf16, #tpu.memory_space<vmem>>, vector<8x256xbf16>,
    } else {
    }
    return
  }
  func.func @transform_0(%arg0: i32, %arg1: i32, %arg2: i32) -> (i32, i32) {
    %c0_i32 = arith.constant 0 : i32
    return %arg0, %arg2 : i32, i32
  }
  func.func @transform_1(%arg0: i32, %arg1: i32, %arg2: i32) -> (i32, i32) {
    %c0_i32 = arith.constant 0 : i32
    return %arg2, %arg1 : i32, i32
  }
  func.func @transform_2(%arg0: i32, %arg1: i32, %arg2: i32) -> (i32, i32) {
    %c0_i32 = arith.constant 0 : i32
    %c0_i32_0 = arith.constant 0 : i32
    return %c0_i32, %arg1 : i32, i32
  }
  func.func @transform_3(%arg0: i32, %arg1: i32, %arg2: i32) -> (i32, i32) {
    %c0_i32 = arith.constant 0 : i32
    return %arg0, %arg1 : i32, i32
  }
}

module attributes {stable_mosaic.version = 11 : i64} {
  func.func @_matmul_bias_kernel(%arg0: i32, %arg1: i32, %arg2: i32, %arg3: memref<32x288xbf16, #tpu.memory_space<vmem>>, %arg4: memref<288x256xbf16, #tpu.memory_space<vmem>>, %arg5: memref<1x256xf32, #tpu.memory_space<vmem>>, %arg6: memref<32x256xbf16, #tpu.memory_space<vmem>>, %arg7: memref<32x256xf32, #tpu.memory_space<vmem>>) attributes {dimension_semantics = [#tpu.dimension_semantics<parallel>, #tpu.dimension_semantics<parallel>, #tpu.dimension_semantics<arbitrary>], iteration_bounds = array<i64: 1, 4, 1>, scalar_prefetch = 0 : i64, scratch_operands = 1 : i64, tpu.core_type = #tpu.core_type<tc>, window_params = [{transform_indices = @transform_0, window_bounds = array<i64: 32, 288>}, {transform_indices = @transform_1, window_bounds = array<i64: 288, 256>}, {transform_indices = @transform_2, window_bounds = array<i64: 1, 256>}, {transform_indices = @transform_3, window_bounds = array<i64: 32, 256>}]} {
    %c0_i32 = arith.constant 0 : i32
    %0 = arith.cmpi eq, %arg2, %c0_i32 : i32
    %1 = arith.extui %0 : i1 to i32
    %c0_i32_0 = arith.constant 0 : i32
    %2 = arith.cmpi ne, %1, %c0_i32_0 : i32
    scf.if %2 {
      %cst_10 = arith.constant 0.000000e+00 : f32
      %12 = vector.broadcast %cst_10 : f32 to vector<32x256xf32>
      %c0_11 = arith.constant 0 : index
      %c0_12 = arith.constant 0 : index
      %13 = vector.load %arg7[%c0_11, %c0_12] : memref<32x256xf32, #tpu.memory_space<vmem>>, vector<32x256xf32>
      tpu.vector_store %arg7[%c0_11, %c0_12], %12 {strides = array<i32>} : memref<32x256xf32, #tpu.memory_space<vmem>>, vector<32x256xf32>,
    } else {
    }
    %c0 = arith.constant 0 : index
    %c0_1 = arith.constant 0 : index
    %3 = vector.load %arg7[%c0, %c0_1] : memref<32x256xf32, #tpu.memory_space<vmem>>, vector<32x256xf32>
    %c0_2 = arith.constant 0 : index
    %c0_3 = arith.constant 0 : index
    %4 = vector.load %arg3[%c0_2, %c0_3] : memref<32x288xbf16, #tpu.memory_space<vmem>>, vector<32x288xbf16>
    %c0_4 = arith.constant 0 : index
    %c0_5 = arith.constant 0 : index
    %5 = vector.load %arg4[%c0_4, %c0_5] : memref<288x256xbf16, #tpu.memory_space<vmem>>, vector<288x256xbf16>
    %cst = arith.constant dense<0.000000e+00> : vector<32x256xf32>
    %6 = tpu.matmul %4, %5, %cst {dimension_numbers = #tpu.dot_dimension_numbers<[1], [0], [0], [1], [0, 0, 1, 1], [], []>} : vector<32x288xbf16>, vector<288x256xbf16>, vector<32x256xf32> -> vector<32x256xf32>
    %7 = arith.addf %3, %6 : vector<32x256xf32>
    %c0_6 = arith.constant 0 : index
    %c0_7 = arith.constant 0 : index
    %8 = vector.load %arg7[%c0_6, %c0_7] : memref<32x256xf32, #tpu.memory_space<vmem>>, vector<32x256xf32>
    tpu.vector_store %arg7[%c0_6, %c0_7], %7 {strides = array<i32>} : memref<32x256xf32, #tpu.memory_space<vmem>>, vector<32x256xf32>,
    %c0_i32_8 = arith.constant 0 : i32
    %9 = arith.cmpi eq, %arg2, %c0_i32_8 : i32
    %10 = arith.extui %9 : i1 to i32
    %c0_i32_9 = arith.constant 0 : i32
    %11 = arith.cmpi ne, %10, %c0_i32_9 : i32
    scf.if %11 {
      %c0_10 = arith.constant 0 : index
      %c0_11 = arith.constant 0 : index
      %12 = vector.load %arg7[%c0_10, %c0_11] : memref<32x256xf32, #tpu.memory_space<vmem>>, vector<32x256xf32>
      %c0_12 = arith.constant 0 : index
      %c0_13 = arith.constant 0 : index
      %13 = vector.load %arg5[%c0_12, %c0_13] : memref<1x256xf32, #tpu.memory_space<vmem>>, vector<1x256xf32>
      %14 = vector.broadcast %13 : vector<1x256xf32> to vector<32x256xf32>
      %15 = arith.addf %12, %14 : vector<32x256xf32>
      %cst_14 = arith.constant 0.000000e+00 : f32
      %16 = vector.broadcast %cst_14 : f32 to vector<32x256xf32>
      %17 = arith.maximumf %15, %16 : vector<32x256xf32>
      %18 = arith.truncf %17 : vector<32x256xf32> to vector<32x256xbf16>
      %c0_15 = arith.constant 0 : index
      %c0_16 = arith.constant 0 : index
      %19 = vector.load %arg6[%c0_15, %c0_16] : memref<32x256xbf16, #tpu.memory_space<vmem>>, vector<32x256xbf16>
      tpu.vector_store %arg6[%c0_15, %c0_16], %18 {strides = array<i32>} : memref<32x256xbf16, #tpu.memory_space<vmem>>, vector<32x256xbf16>,
    } else {
    }
    return
  }
  func.func @transform_0(%arg0: i32, %arg1: i32, %arg2: i32) -> (i32, i32) {
    %c0_i32 = arith.constant 0 : i32
    return %arg0, %arg2 : i32, i32
  }
  func.func @transform_1(%arg0: i32, %arg1: i32, %arg2: i32) -> (i32, i32) {
    %c0_i32 = arith.constant 0 : i32
    return %arg2, %arg1 : i32, i32
  }
  func.func @transform_2(%arg0: i32, %arg1: i32, %arg2: i32) -> (i32, i32) {
    %c0_i32 = arith.constant 0 : i32
    %c0_i32_0 = arith.constant 0 : i32
    return %c0_i32, %arg1 : i32, i32
  }
  func.func @transform_3(%arg0: i32, %arg1: i32, %arg2: i32) -> (i32, i32) {
    %c0_i32 = arith.constant 0 : i32
    return %arg0, %arg1 : i32, i32
  }
}

module attributes {stable_mosaic.version = 11 : i64} {
  func.func @_matmul_bias_kernel(%arg0: i32, %arg1: i32, %arg2: i32, %arg3: memref<128x288xbf16, #tpu.memory_space<vmem>>, %arg4: memref<288x256xbf16, #tpu.memory_space<vmem>>, %arg5: memref<1x256xf32, #tpu.memory_space<vmem>>, %arg6: memref<128x256xbf16, #tpu.memory_space<vmem>>, %arg7: memref<128x256xf32, #tpu.memory_space<vmem>>) attributes {dimension_semantics = [#tpu.dimension_semantics<parallel>, #tpu.dimension_semantics<parallel>, #tpu.dimension_semantics<arbitrary>], iteration_bounds = array<i64: 1, 2, 1>, scalar_prefetch = 0 : i64, scratch_operands = 1 : i64, tpu.core_type = #tpu.core_type<tc>, window_params = [{transform_indices = @transform_0, window_bounds = array<i64: 128, 288>}, {transform_indices = @transform_1, window_bounds = array<i64: 288, 256>}, {transform_indices = @transform_2, window_bounds = array<i64: 1, 256>}, {transform_indices = @transform_3, window_bounds = array<i64: 128, 256>}]} {
    %c0_i32 = arith.constant 0 : i32
    %0 = arith.cmpi eq, %arg2, %c0_i32 : i32
    %1 = arith.extui %0 : i1 to i32
    %c0_i32_0 = arith.constant 0 : i32
    %2 = arith.cmpi ne, %1, %c0_i32_0 : i32
    scf.if %2 {
      %cst_10 = arith.constant 0.000000e+00 : f32
      %12 = vector.broadcast %cst_10 : f32 to vector<128x256xf32>
      %c0_11 = arith.constant 0 : index
      %c0_12 = arith.constant 0 : index
      %13 = vector.load %arg7[%c0_11, %c0_12] : memref<128x256xf32, #tpu.memory_space<vmem>>, vector<128x256xf32>
      tpu.vector_store %arg7[%c0_11, %c0_12], %12 {strides = array<i32>} : memref<128x256xf32, #tpu.memory_space<vmem>>, vector<128x256xf32>,
    } else {
    }
    %c0 = arith.constant 0 : index
    %c0_1 = arith.constant 0 : index
    %3 = vector.load %arg7[%c0, %c0_1] : memref<128x256xf32, #tpu.memory_space<vmem>>, vector<128x256xf32>
    %c0_2 = arith.constant 0 : index
    %c0_3 = arith.constant 0 : index
    %4 = vector.load %arg3[%c0_2, %c0_3] : memref<128x288xbf16, #tpu.memory_space<vmem>>, vector<128x288xbf16>
    %c0_4 = arith.constant 0 : index
    %c0_5 = arith.constant 0 : index
    %5 = vector.load %arg4[%c0_4, %c0_5] : memref<288x256xbf16, #tpu.memory_space<vmem>>, vector<288x256xbf16>
    %cst = arith.constant dense<0.000000e+00> : vector<128x256xf32>
    %6 = tpu.matmul %4, %5, %cst {dimension_numbers = #tpu.dot_dimension_numbers<[1], [0], [0], [1], [0, 0, 1, 1], [], []>} : vector<128x288xbf16>, vector<288x256xbf16>, vector<128x256xf32> -> vector<128x256xf32>
    %7 = arith.addf %3, %6 : vector<128x256xf32>
    %c0_6 = arith.constant 0 : index
    %c0_7 = arith.constant 0 : index
    %8 = vector.load %arg7[%c0_6, %c0_7] : memref<128x256xf32, #tpu.memory_space<vmem>>, vector<128x256xf32>
    tpu.vector_store %arg7[%c0_6, %c0_7], %7 {strides = array<i32>} : memref<128x256xf32, #tpu.memory_space<vmem>>, vector<128x256xf32>,
    %c0_i32_8 = arith.constant 0 : i32
    %9 = arith.cmpi eq, %arg2, %c0_i32_8 : i32
    %10 = arith.extui %9 : i1 to i32
    %c0_i32_9 = arith.constant 0 : i32
    %11 = arith.cmpi ne, %10, %c0_i32_9 : i32
    scf.if %11 {
      %c0_10 = arith.constant 0 : index
      %c0_11 = arith.constant 0 : index
      %12 = vector.load %arg7[%c0_10, %c0_11] : memref<128x256xf32, #tpu.memory_space<vmem>>, vector<128x256xf32>
      %c0_12 = arith.constant 0 : index
      %c0_13 = arith.constant 0 : index
      %13 = vector.load %arg5[%c0_12, %c0_13] : memref<1x256xf32, #tpu.memory_space<vmem>>, vector<1x256xf32>
      %14 = vector.broadcast %13 : vector<1x256xf32> to vector<128x256xf32>
      %15 = arith.addf %12, %14 : vector<128x256xf32>
      %cst_14 = arith.constant 0.000000e+00 : f32
      %16 = vector.broadcast %cst_14 : f32 to vector<128x256xf32>
      %17 = arith.maximumf %15, %16 : vector<128x256xf32>
      %18 = arith.truncf %17 : vector<128x256xf32> to vector<128x256xbf16>
      %c0_15 = arith.constant 0 : index
      %c0_16 = arith.constant 0 : index
      %19 = vector.load %arg6[%c0_15, %c0_16] : memref<128x256xbf16, #tpu.memory_space<vmem>>, vector<128x256xbf16>
      tpu.vector_store %arg6[%c0_15, %c0_16], %18 {strides = array<i32>} : memref<128x256xbf16, #tpu.memory_space<vmem>>, vector<128x256xbf16>,
    } else {
    }
    return
  }
  func.func @transform_0(%arg0: i32, %arg1: i32, %arg2: i32) -> (i32, i32) {
    %c0_i32 = arith.constant 0 : i32
    return %arg0, %arg2 : i32, i32
  }
  func.func @transform_1(%arg0: i32, %arg1: i32, %arg2: i32) -> (i32, i32) {
    %c0_i32 = arith.constant 0 : i32
    return %arg2, %arg1 : i32, i32
  }
  func.func @transform_2(%arg0: i32, %arg1: i32, %arg2: i32) -> (i32, i32) {
    %c0_i32 = arith.constant 0 : i32
    %c0_i32_0 = arith.constant 0 : i32
    return %c0_i32, %arg1 : i32, i32
  }
  func.func @transform_3(%arg0: i32, %arg1: i32, %arg2: i32) -> (i32, i32) {
    %c0_i32 = arith.constant 0 : i32
    return %arg0, %arg1 : i32, i32
  }
}

module attributes {stable_mosaic.version = 11 : i64} {
  func.func @_matmul_bias_kernel(%arg0: i32, %arg1: i32, %arg2: i32, %arg3: memref<128x1152xbf16, #tpu.memory_space<vmem>>, %arg4: memref<1152x104xbf16, #tpu.memory_space<vmem>>, %arg5: memref<1x104xf32, #tpu.memory_space<vmem>>, %arg6: memref<128x104xf32, #tpu.memory_space<vmem>>, %arg7: memref<128x104xf32, #tpu.memory_space<vmem>>) attributes {dimension_semantics = [#tpu.dimension_semantics<parallel>, #tpu.dimension_semantics<parallel>, #tpu.dimension_semantics<arbitrary>], iteration_bounds = array<i64: 1, 1, 4>, scalar_prefetch = 0 : i64, scratch_operands = 1 : i64, tpu.core_type = #tpu.core_type<tc>, window_params = [{transform_indices = @transform_0, window_bounds = array<i64: 128, 1152>}, {transform_indices = @transform_1, window_bounds = array<i64: 1152, 104>}, {transform_indices = @transform_2, window_bounds = array<i64: 1, 104>}, {transform_indices = @transform_3, window_bounds = array<i64: 128, 104>}]} {
    %c0_i32 = arith.constant 0 : i32
    %0 = arith.cmpi eq, %arg2, %c0_i32 : i32
    %1 = arith.extui %0 : i1 to i32
    %c0_i32_0 = arith.constant 0 : i32
    %2 = arith.cmpi ne, %1, %c0_i32_0 : i32
    scf.if %2 {
      %cst_9 = arith.constant 0.000000e+00 : f32
      %12 = vector.broadcast %cst_9 : f32 to vector<128x104xf32>
      %c0_10 = arith.constant 0 : index
      %c0_11 = arith.constant 0 : index
      %13 = vector.load %arg7[%c0_10, %c0_11] : memref<128x104xf32, #tpu.memory_space<vmem>>, vector<128x104xf32>
      tpu.vector_store %arg7[%c0_10, %c0_11], %12 {strides = array<i32>} : memref<128x104xf32, #tpu.memory_space<vmem>>, vector<128x104xf32>,
    } else {
    }
    %c0 = arith.constant 0 : index
    %c0_1 = arith.constant 0 : index
    %3 = vector.load %arg7[%c0, %c0_1] : memref<128x104xf32, #tpu.memory_space<vmem>>, vector<128x104xf32>
    %c0_2 = arith.constant 0 : index
    %c0_3 = arith.constant 0 : index
    %4 = vector.load %arg3[%c0_2, %c0_3] : memref<128x1152xbf16, #tpu.memory_space<vmem>>, vector<128x1152xbf16>
    %c0_4 = arith.constant 0 : index
    %c0_5 = arith.constant 0 : index
    %5 = vector.load %arg4[%c0_4, %c0_5] : memref<1152x104xbf16, #tpu.memory_space<vmem>>, vector<1152x104xbf16>
    %cst = arith.constant dense<0.000000e+00> : vector<128x104xf32>
    %6 = tpu.matmul %4, %5, %cst {dimension_numbers = #tpu.dot_dimension_numbers<[1], [0], [0], [1], [0, 0, 1, 1], [], []>} : vector<128x1152xbf16>, vector<1152x104xbf16>, vector<128x104xf32> -> vector<128x104xf32>
    %7 = arith.addf %3, %6 : vector<128x104xf32>
    %c0_6 = arith.constant 0 : index
    %c0_7 = arith.constant 0 : index
    %8 = vector.load %arg7[%c0_6, %c0_7] : memref<128x104xf32, #tpu.memory_space<vmem>>, vector<128x104xf32>
    tpu.vector_store %arg7[%c0_6, %c0_7], %7 {strides = array<i32>} : memref<128x104xf32, #tpu.memory_space<vmem>>, vector<128x104xf32>,
    %c3_i32 = arith.constant 3 : i32
    %9 = arith.cmpi eq, %arg2, %c3_i32 : i32
    %10 = arith.extui %9 : i1 to i32
    %c0_i32_8 = arith.constant 0 : i32
    %11 = arith.cmpi ne, %10, %c0_i32_8 : i32
    scf.if %11 {
      %c0_9 = arith.constant 0 : index
      %c0_10 = arith.constant 0 : index
      %12 = vector.load %arg7[%c0_9, %c0_10] : memref<128x104xf32, #tpu.memory_space<vmem>>, vector<128x104xf32>
      %c0_11 = arith.constant 0 : index
      %c0_12 = arith.constant 0 : index
      %13 = vector.load %arg5[%c0_11, %c0_12] : memref<1x104xf32, #tpu.memory_space<vmem>>, vector<1x104xf32>
      %14 = vector.broadcast %13 : vector<1x104xf32> to vector<128x104xf32>
      %15 = arith.addf %12, %14 : vector<128x104xf32>
      %c0_13 = arith.constant 0 : index
      %c0_14 = arith.constant 0 : index
      %16 = vector.load %arg6[%c0_13, %c0_14] : memref<128x104xf32, #tpu.memory_space<vmem>>, vector<128x104xf32>
      tpu.vector_store %arg6[%c0_13, %c0_14], %15 {strides = array<i32>} : memref<128x104xf32, #tpu.memory_space<vmem>>, vector<128x104xf32>,
    } else {
    }
    return
  }
  func.func @transform_0(%arg0: i32, %arg1: i32, %arg2: i32) -> (i32, i32) {
    %c0_i32 = arith.constant 0 : i32
    return %arg0, %arg2 : i32, i32
  }
  func.func @transform_1(%arg0: i32, %arg1: i32, %arg2: i32) -> (i32, i32) {
    %c0_i32 = arith.constant 0 : i32
    return %arg2, %arg1 : i32, i32
  }
  func.func @transform_2(%arg0: i32, %arg1: i32, %arg2: i32) -> (i32, i32) {
    %c0_i32 = arith.constant 0 : i32
    %c0_i32_0 = arith.constant 0 : i32
    return %c0_i32, %arg1 : i32, i32
  }
  func.func @transform_3(%arg0: i32, %arg1: i32, %arg2: i32) -> (i32, i32) {
    %c0_i32 = arith.constant 0 : i32
    return %arg0, %arg1 : i32, i32
  }
}

module attributes {stable_mosaic.version = 11 : i64} {
  func.func @_matmul_bias_kernel(%arg0: i32, %arg1: i32, %arg2: i32, %arg3: memref<8x1152xbf16, #tpu.memory_space<vmem>>, %arg4: memref<1152x152xbf16, #tpu.memory_space<vmem>>, %arg5: memref<1x152xf32, #tpu.memory_space<vmem>>, %arg6: memref<8x152xf32, #tpu.memory_space<vmem>>, %arg7: memref<8x152xf32, #tpu.memory_space<vmem>>) attributes {dimension_semantics = [#tpu.dimension_semantics<parallel>, #tpu.dimension_semantics<parallel>, #tpu.dimension_semantics<arbitrary>], iteration_bounds = array<i64: 1, 1, 4>, scalar_prefetch = 0 : i64, scratch_operands = 1 : i64, tpu.core_type = #tpu.core_type<tc>, window_params = [{transform_indices = @transform_0, window_bounds = array<i64: 8, 1152>}, {transform_indices = @transform_1, window_bounds = array<i64: 1152, 152>}, {transform_indices = @transform_2, window_bounds = array<i64: 1, 152>}, {transform_indices = @transform_3, window_bounds = array<i64: 8, 152>}]} {
    %c0_i32 = arith.constant 0 : i32
    %0 = arith.cmpi eq, %arg2, %c0_i32 : i32
    %1 = arith.extui %0 : i1 to i32
    %c0_i32_0 = arith.constant 0 : i32
    %2 = arith.cmpi ne, %1, %c0_i32_0 : i32
    scf.if %2 {
      %cst_9 = arith.constant 0.000000e+00 : f32
      %12 = vector.broadcast %cst_9 : f32 to vector<8x152xf32>
      %c0_10 = arith.constant 0 : index
      %c0_11 = arith.constant 0 : index
      %13 = vector.load %arg7[%c0_10, %c0_11] : memref<8x152xf32, #tpu.memory_space<vmem>>, vector<8x152xf32>
      tpu.vector_store %arg7[%c0_10, %c0_11], %12 {strides = array<i32>} : memref<8x152xf32, #tpu.memory_space<vmem>>, vector<8x152xf32>,
    } else {
    }
    %c0 = arith.constant 0 : index
    %c0_1 = arith.constant 0 : index
    %3 = vector.load %arg7[%c0, %c0_1] : memref<8x152xf32, #tpu.memory_space<vmem>>, vector<8x152xf32>
    %c0_2 = arith.constant 0 : index
    %c0_3 = arith.constant 0 : index
    %4 = vector.load %arg3[%c0_2, %c0_3] : memref<8x1152xbf16, #tpu.memory_space<vmem>>, vector<8x1152xbf16>
    %c0_4 = arith.constant 0 : index
    %c0_5 = arith.constant 0 : index
    %5 = vector.load %arg4[%c0_4, %c0_5] : memref<1152x152xbf16, #tpu.memory_space<vmem>>, vector<1152x152xbf16>
    %cst = arith.constant dense<0.000000e+00> : vector<8x152xf32>
    %6 = tpu.matmul %4, %5, %cst {dimension_numbers = #tpu.dot_dimension_numbers<[1], [0], [0], [1], [0, 0, 1, 1], [], []>} : vector<8x1152xbf16>, vector<1152x152xbf16>, vector<8x152xf32> -> vector<8x152xf32>
    %7 = arith.addf %3, %6 : vector<8x152xf32>
    %c0_6 = arith.constant 0 : index
    %c0_7 = arith.constant 0 : index
    %8 = vector.load %arg7[%c0_6, %c0_7] : memref<8x152xf32, #tpu.memory_space<vmem>>, vector<8x152xf32>
    tpu.vector_store %arg7[%c0_6, %c0_7], %7 {strides = array<i32>} : memref<8x152xf32, #tpu.memory_space<vmem>>, vector<8x152xf32>,
    %c3_i32 = arith.constant 3 : i32
    %9 = arith.cmpi eq, %arg2, %c3_i32 : i32
    %10 = arith.extui %9 : i1 to i32
    %c0_i32_8 = arith.constant 0 : i32
    %11 = arith.cmpi ne, %10, %c0_i32_8 : i32
    scf.if %11 {
      %c0_9 = arith.constant 0 : index
      %c0_10 = arith.constant 0 : index
      %12 = vector.load %arg7[%c0_9, %c0_10] : memref<8x152xf32, #tpu.memory_space<vmem>>, vector<8x152xf32>
      %c0_11 = arith.constant 0 : index
      %c0_12 = arith.constant 0 : index
      %13 = vector.load %arg5[%c0_11, %c0_12] : memref<1x152xf32, #tpu.memory_space<vmem>>, vector<1x152xf32>
      %14 = vector.broadcast %13 : vector<1x152xf32> to vector<8x152xf32>
      %15 = arith.addf %12, %14 : vector<8x152xf32>
      %c0_13 = arith.constant 0 : index
      %c0_14 = arith.constant 0 : index
      %16 = vector.load %arg6[%c0_13, %c0_14] : memref<8x152xf32, #tpu.memory_space<vmem>>, vector<8x152xf32>
      tpu.vector_store %arg6[%c0_13, %c0_14], %15 {strides = array<i32>} : memref<8x152xf32, #tpu.memory_space<vmem>>, vector<8x152xf32>,
    } else {
    }
    return
  }
  func.func @transform_0(%arg0: i32, %arg1: i32, %arg2: i32) -> (i32, i32) {
    %c0_i32 = arith.constant 0 : i32
    return %arg0, %arg2 : i32, i32
  }
  func.func @transform_1(%arg0: i32, %arg1: i32, %arg2: i32) -> (i32, i32) {
    %c0_i32 = arith.constant 0 : i32
    return %arg2, %arg1 : i32, i32
  }
  func.func @transform_2(%arg0: i32, %arg1: i32, %arg2: i32) -> (i32, i32) {
    %c0_i32 = arith.constant 0 : i32
    %c0_i32_0 = arith.constant 0 : i32
    return %c0_i32, %arg1 : i32, i32
  }
  func.func @transform_3(%arg0: i32, %arg1: i32, %arg2: i32) -> (i32, i32) {
    %c0_i32 = arith.constant 0 : i32
    return %arg0, %arg1 : i32, i32
  }
}

module attributes {stable_mosaic.version = 11 : i64} {
  func.func @_matmul_bias_kernel(%arg0: i32, %arg1: i32, %arg2: i32, %arg3: memref<32x1152xbf16, #tpu.memory_space<vmem>>, %arg4: memref<1152x152xbf16, #tpu.memory_space<vmem>>, %arg5: memref<1x152xf32, #tpu.memory_space<vmem>>, %arg6: memref<32x152xf32, #tpu.memory_space<vmem>>, %arg7: memref<32x152xf32, #tpu.memory_space<vmem>>) attributes {dimension_semantics = [#tpu.dimension_semantics<parallel>, #tpu.dimension_semantics<parallel>, #tpu.dimension_semantics<arbitrary>], iteration_bounds = array<i64: 1, 1, 8>, scalar_prefetch = 0 : i64, scratch_operands = 1 : i64, tpu.core_type = #tpu.core_type<tc>, window_params = [{transform_indices = @transform_0, window_bounds = array<i64: 32, 1152>}, {transform_indices = @transform_1, window_bounds = array<i64: 1152, 152>}, {transform_indices = @transform_2, window_bounds = array<i64: 1, 152>}, {transform_indices = @transform_3, window_bounds = array<i64: 32, 152>}]} {
    %c0_i32 = arith.constant 0 : i32
    %0 = arith.cmpi eq, %arg2, %c0_i32 : i32
    %1 = arith.extui %0 : i1 to i32
    %c0_i32_0 = arith.constant 0 : i32
    %2 = arith.cmpi ne, %1, %c0_i32_0 : i32
    scf.if %2 {
      %cst_9 = arith.constant 0.000000e+00 : f32
      %12 = vector.broadcast %cst_9 : f32 to vector<32x152xf32>
      %c0_10 = arith.constant 0 : index
      %c0_11 = arith.constant 0 : index
      %13 = vector.load %arg7[%c0_10, %c0_11] : memref<32x152xf32, #tpu.memory_space<vmem>>, vector<32x152xf32>
      tpu.vector_store %arg7[%c0_10, %c0_11], %12 {strides = array<i32>} : memref<32x152xf32, #tpu.memory_space<vmem>>, vector<32x152xf32>,
    } else {
    }
    %c0 = arith.constant 0 : index
    %c0_1 = arith.constant 0 : index
    %3 = vector.load %arg7[%c0, %c0_1] : memref<32x152xf32, #tpu.memory_space<vmem>>, vector<32x152xf32>
    %c0_2 = arith.constant 0 : index
    %c0_3 = arith.constant 0 : index
    %4 = vector.load %arg3[%c0_2, %c0_3] : memref<32x1152xbf16, #tpu.memory_space<vmem>>, vector<32x1152xbf16>
    %c0_4 = arith.constant 0 : index
    %c0_5 = arith.constant 0 : index
    %5 = vector.load %arg4[%c0_4, %c0_5] : memref<1152x152xbf16, #tpu.memory_space<vmem>>, vector<1152x152xbf16>
    %cst = arith.constant dense<0.000000e+00> : vector<32x152xf32>
    %6 = tpu.matmul %4, %5, %cst {dimension_numbers = #tpu.dot_dimension_numbers<[1], [0], [0], [1], [0, 0, 1, 1], [], []>} : vector<32x1152xbf16>, vector<1152x152xbf16>, vector<32x152xf32> -> vector<32x152xf32>
    %7 = arith.addf %3, %6 : vector<32x152xf32>
    %c0_6 = arith.constant 0 : index
    %c0_7 = arith.constant 0 : index
    %8 = vector.load %arg7[%c0_6, %c0_7] : memref<32x152xf32, #tpu.memory_space<vmem>>, vector<32x152xf32>
    tpu.vector_store %arg7[%c0_6, %c0_7], %7 {strides = array<i32>} : memref<32x152xf32, #tpu.memory_space<vmem>>, vector<32x152xf32>,
    %c7_i32 = arith.constant 7 : i32
    %9 = arith.cmpi eq, %arg2, %c7_i32 : i32
    %10 = arith.extui %9 : i1 to i32
    %c0_i32_8 = arith.constant 0 : i32
    %11 = arith.cmpi ne, %10, %c0_i32_8 : i32
    scf.if %11 {
      %c0_9 = arith.constant 0 : index
      %c0_10 = arith.constant 0 : index
      %12 = vector.load %arg7[%c0_9, %c0_10] : memref<32x152xf32, #tpu.memory_space<vmem>>, vector<32x152xf32>
      %c0_11 = arith.constant 0 : index
      %c0_12 = arith.constant 0 : index
      %13 = vector.load %arg5[%c0_11, %c0_12] : memref<1x152xf32, #tpu.memory_space<vmem>>, vector<1x152xf32>
      %14 = vector.broadcast %13 : vector<1x152xf32> to vector<32x152xf32>
      %15 = arith.addf %12, %14 : vector<32x152xf32>
      %c0_13 = arith.constant 0 : index
      %c0_14 = arith.constant 0 : index
      %16 = vector.load %arg6[%c0_13, %c0_14] : memref<32x152xf32, #tpu.memory_space<vmem>>, vector<32x152xf32>
      tpu.vector_store %arg6[%c0_13, %c0_14], %15 {strides = array<i32>} : memref<32x152xf32, #tpu.memory_space<vmem>>, vector<32x152xf32>,
    } else {
    }
    return
  }
  func.func @transform_0(%arg0: i32, %arg1: i32, %arg2: i32) -> (i32, i32) {
    %c0_i32 = arith.constant 0 : i32
    return %arg0, %arg2 : i32, i32
  }
  func.func @transform_1(%arg0: i32, %arg1: i32, %arg2: i32) -> (i32, i32) {
    %c0_i32 = arith.constant 0 : i32
    return %arg2, %arg1 : i32, i32
  }
  func.func @transform_2(%arg0: i32, %arg1: i32, %arg2: i32) -> (i32, i32) {
    %c0_i32 = arith.constant 0 : i32
    %c0_i32_0 = arith.constant 0 : i32
    return %c0_i32, %arg1 : i32, i32
  }
  func.func @transform_3(%arg0: i32, %arg1: i32, %arg2: i32) -> (i32, i32) {
    %c0_i32 = arith.constant 0 : i32
    return %arg0, %arg1 : i32, i32
  }
}

module attributes {stable_mosaic.version = 11 : i64} {
  func.func @_postprocess_kernel(%arg0: i32, %arg1: memref<1x21x512xf32, #tpu.memory_space<vmem>>, %arg2: memref<1x4x512xf32, #tpu.memory_space<vmem>>, %arg3: memref<4x512xf32, #tpu.memory_space<vmem>>, %arg4: memref<1x21x512xf32, #tpu.memory_space<vmem>>, %arg5: memref<1x4x512xf32, #tpu.memory_space<vmem>>) attributes {dimension_semantics = [#tpu.dimension_semantics<parallel>], iteration_bounds = array<i64: 2>, scalar_prefetch = 0 : i64, scratch_operands = 0 : i64, tpu.core_type = #tpu.core_type<tc>, window_params = [{transform_indices = @transform_0, window_bounds = array<i64: 1, 21, 512>}, {transform_indices = @transform_1, window_bounds = array<i64: 1, 4, 512>}, {pipeline_mode = #tpu.pipeline_mode<synchronous>, transform_indices = @transform_2, window_bounds = array<i64: 4, 512>}, {transform_indices = @transform_3, window_bounds = array<i64: 1, 21, 512>}, {transform_indices = @transform_4, window_bounds = array<i64: 1, 4, 512>}]} {
    %c0 = arith.constant 0 : index
    %c0_0 = arith.constant 0 : index
    %c0_1 = arith.constant 0 : index
    %0 = vector.load %arg1[%c0, %c0_0, %c0_1] : memref<1x21x512xf32, #tpu.memory_space<vmem>>, vector<1x21x512xf32>
    %1 = vector.shape_cast %0 : vector<1x21x512xf32> to vector<21x512xf32>
    %cst = arith.constant dense<0xFF800000> : vector<512xf32>
    %2 = vector.multi_reduction <maximumf>, %1, %cst [0] : vector<21x512xf32> to vector<512xf32>
    %3 = vector.shape_cast %2 : vector<512xf32> to vector<1x512xf32>
    %4 = vector.broadcast %3 : vector<1x512xf32> to vector<21x512xf32>
    %5 = arith.subf %1, %4 : vector<21x512xf32>
    %6 = math.exp %5 : vector<21x512xf32>
    %cst_2 = arith.constant dense<0.000000e+00> : vector<512xf32>
    %7 = vector.multi_reduction <add>, %6, %cst_2 [0] : vector<21x512xf32> to vector<512xf32>
    %8 = vector.shape_cast %7 : vector<512xf32> to vector<1x512xf32>
    %9 = tpu.reciprocal %8 {approx = true} : vector<1x512xf32> -> vector<1x512xf32>
    %10 = vector.broadcast %9 : vector<1x512xf32> to vector<21x512xf32>
    %11 = arith.mulf %6, %10 : vector<21x512xf32>
    %c0_3 = arith.constant 0 : index
    %c0_4 = arith.constant 0 : index
    %c0_5 = arith.constant 0 : index
    %12 = vector.load %arg4[%c0_3, %c0_4, %c0_5] : memref<1x21x512xf32, #tpu.memory_space<vmem>>, vector<1x21x512xf32>
    %13 = vector.shape_cast %12 : vector<1x21x512xf32> to vector<21x512xf32>
    %14 = vector.shape_cast %11 : vector<21x512xf32> to vector<1x21x512xf32>
    tpu.vector_store %arg4[%c0_3, %c0_4, %c0_5], %14 {strides = array<i32>} : memref<1x21x512xf32, #tpu.memory_space<vmem>>, vector<1x21x512xf32>,
    %c0_6 = arith.constant 0 : index
    %c0_7 = arith.constant 0 : index
    %c0_8 = arith.constant 0 : index
    %15 = vector.load %arg2[%c0_6, %c0_7, %c0_8] : memref<1x4x512xf32, #tpu.memory_space<vmem>>, vector<1x4x512xf32>
    %16 = vector.shape_cast %15 : vector<1x4x512xf32> to vector<4x512xf32>
    %c0_9 = arith.constant 0 : index
    %c0_10 = arith.constant 0 : index
    %17 = vector.load %arg3[%c0_9, %c0_10] : memref<4x512xf32, #tpu.memory_space<vmem>>, vector<4x512xf32>
    %18 = vector.extract_strided_slice %16 {offsets = [0, 0], sizes = [1, 512], strides = [1, 1]} : vector<4x512xf32> to vector<1x512xf32>
    %19 = vector.extract_strided_slice %16 {offsets = [1, 0], sizes = [1, 512], strides = [1, 1]} : vector<4x512xf32> to vector<1x512xf32>
    %20 = vector.extract_strided_slice %16 {offsets = [2, 0], sizes = [1, 512], strides = [1, 1]} : vector<4x512xf32> to vector<1x512xf32>
    %21 = vector.extract_strided_slice %16 {offsets = [3, 0], sizes = [1, 512], strides = [1, 1]} : vector<4x512xf32> to vector<1x512xf32>
    %22 = vector.extract_strided_slice %17 {offsets = [0, 0], sizes = [1, 512], strides = [1, 1]} : vector<4x512xf32> to vector<1x512xf32>
    %23 = vector.extract_strided_slice %17 {offsets = [1, 0], sizes = [1, 512], strides = [1, 1]} : vector<4x512xf32> to vector<1x512xf32>
    %24 = vector.extract_strided_slice %17 {offsets = [2, 0], sizes = [1, 512], strides = [1, 1]} : vector<4x512xf32> to vector<1x512xf32>
    %25 = vector.extract_strided_slice %17 {offsets = [3, 0], sizes = [1, 512], strides = [1, 1]} : vector<4x512xf32> to vector<1x512xf32>
    %cst_11 = arith.constant 1.000000e-01 : f32
    %26 = vector.broadcast %cst_11 : f32 to vector<1x512xf32>
    %27 = arith.mulf %18, %26 : vector<1x512xf32>
    %28 = arith.mulf %27, %24 : vector<1x512xf32>
    %29 = arith.addf %28, %22 : vector<1x512xf32>
    %cst_12 = arith.constant 1.000000e-01 : f32
    %30 = vector.broadcast %cst_12 : f32 to vector<1x512xf32>
    %31 = arith.mulf %19, %30 : vector<1x512xf32>
    %32 = arith.mulf %31, %25 : vector<1x512xf32>
    %33 = arith.addf %32, %23 : vector<1x512xf32>
    %cst_13 = arith.constant 2.000000e-01 : f32
    %34 = vector.broadcast %cst_13 : f32 to vector<1x512xf32>
    %35 = arith.mulf %20, %34 : vector<1x512xf32>
    %36 = math.exp %35 : vector<1x512xf32>
    %37 = arith.mulf %36, %24 : vector<1x512xf32>
    %cst_14 = arith.constant 2.000000e-01 : f32
    %38 = vector.broadcast %cst_14 : f32 to vector<1x512xf32>
    %39 = arith.mulf %21, %38 : vector<1x512xf32>
    %40 = math.exp %39 : vector<1x512xf32>
    %41 = arith.mulf %40, %25 : vector<1x512xf32>
    %cst_15 = arith.constant 5.000000e-01 : f32
    %42 = vector.broadcast %cst_15 : f32 to vector<1x512xf32>
    %43 = arith.mulf %42, %37 : vector<1x512xf32>
    %44 = arith.subf %29, %43 : vector<1x512xf32>
    %cst_16 = arith.constant 5.000000e-01 : f32
    %45 = vector.broadcast %cst_16 : f32 to vector<1x512xf32>
    %46 = arith.mulf %45, %41 : vector<1x512xf32>
    %47 = arith.subf %33, %46 : vector<1x512xf32>
    %cst_17 = arith.constant 5.000000e-01 : f32
    %48 = vector.broadcast %cst_17 : f32 to vector<1x512xf32>
    %49 = arith.mulf %48, %37 : vector<1x512xf32>
    %50 = arith.addf %29, %49 : vector<1x512xf32>
    %cst_18 = arith.constant 5.000000e-01 : f32
    %51 = vector.broadcast %cst_18 : f32 to vector<1x512xf32>
    %52 = arith.mulf %51, %41 : vector<1x512xf32>
    %53 = arith.addf %33, %52 : vector<1x512xf32>
    %54 = tpu.concatenate %44, %47, %50, %53 in 0 : vector<1x512xf32>, vector<1x512xf32>, vector<1x512xf32>, vector<1x512xf32> -> vector<4x512xf32>
    %c0_19 = arith.constant 0 : index
    %c0_20 = arith.constant 0 : index
    %c0_21 = arith.constant 0 : index
    %55 = vector.load %arg5[%c0_19, %c0_20, %c0_21] : memref<1x4x512xf32, #tpu.memory_space<vmem>>, vector<1x4x512xf32>
    %56 = vector.shape_cast %55 : vector<1x4x512xf32> to vector<4x512xf32>
    %57 = vector.shape_cast %54 : vector<4x512xf32> to vector<1x4x512xf32>
    tpu.vector_store %arg5[%c0_19, %c0_20, %c0_21], %57 {strides = array<i32>} : memref<1x4x512xf32, #tpu.memory_space<vmem>>, vector<1x4x512xf32>,
    return
  }
  func.func @transform_0(%arg0: i32) -> (i32, i32, i32) {
    %c0_i32 = arith.constant 0 : i32
    %c0_i32_0 = arith.constant 0 : i32
    %c0_i32_1 = arith.constant 0 : i32
    return %arg0, %c0_i32, %c0_i32_0 : i32, i32, i32
  }
  func.func @transform_1(%arg0: i32) -> (i32, i32, i32) {
    %c0_i32 = arith.constant 0 : i32
    %c0_i32_0 = arith.constant 0 : i32
    %c0_i32_1 = arith.constant 0 : i32
    return %arg0, %c0_i32, %c0_i32_0 : i32, i32, i32
  }
  func.func @transform_2(%arg0: i32) -> (i32, i32) {
    %c0_i32 = arith.constant 0 : i32
    %c0_i32_0 = arith.constant 0 : i32
    %c0_i32_1 = arith.constant 0 : i32
    return %c0_i32, %c0_i32_0 : i32, i32
  }
  func.func @transform_3(%arg0: i32) -> (i32, i32, i32) {
    %c0_i32 = arith.constant 0 : i32
    %c0_i32_0 = arith.constant 0 : i32
    %c0_i32_1 = arith.constant 0 : i32
    return %arg0, %c0_i32, %c0_i32_0 : i32, i32, i32
  }
  func.func @transform_4(%arg0: i32) -> (i32, i32, i32) {
    %c0_i32 = arith.constant 0 : i32
    %c0_i32_0 = arith.constant 0 : i32
    %c0_i32_1 = arith.constant 0 : i32
    return %arg0, %c0_i32, %c0_i32_0 : i32, i32, i32
  }
}

</mosaic_0001>

<bundles_post_ra>
// kernel: ssd_detector_forward.9
= control target key start
LH: loop header
LB: loop body
LE: loop exit
PB: predicated region body
PF: predicated region fallthrough
CT: control target
= control target key end

     0   :  { %s1200_s12 = smov 0   ;;  %s1202_s13 = smov 0   ;;  %s1430_s0 = inlined_call_operand.vmem [shape: bf16[8,288], index: 0, kind: input, shape index: {}]   ;;  %s1431_s1 = inlined_call_operand.vmem [shape: bf16[288,512], index: 1, kind: input, shape index: {}]   ;;  %s1432_s2 = inlined_call_operand.vmem [shape: f32[1,512], index: 2, kind: input, shape index: {}]   ;;  %s1433_s3 = inlined_call_operand.vmem [shape: bf16[8,512], index: 3, kind: output, shape index: {}]  }
   0x1   :  { %s1204_s14 = smov 0   ;;  %s1206_s15 = smov 0  }
   0x2   :  { %s1208_s16 = smov 0  }
   0x3 LB: > { %s28_s17 = sadd.s32 1, %s1174_s15  ;;  %p76_p1 = scmp.ne.s32.totalorder %s1166_s13, %s1162_s12  ;;  %s1178_s16 = sphi %s1208_s16, %s13_s16   ;;  %s1174_s15 = sphi %s1206_s15, %s1437_s15   ;;  %s1170_s14 = sphi %s1204_s14, %s1436_s14   ;;  %s1166_s13 = sphi %s1202_s13, %s1435_s13   ;;  %s1162_s12 = sphi %s1200_s12, %s1434_s12  }
   0x4   : > { %p30_p0 = scmp.ge.s32.totalorder %s28_s17, 2  ;;  %p77_p2 = scmp.eq.s32.totalorder %s1178_s16, 0 }
   0x5   : > { %s69_s19 = sadd.s32 1, %s1166_s13  ;;  %p906_p5 = scmp.ge.s32.totalorder %s1178_s16, 2 }
   0x6   : > { %s1439_s17 = smov (%p30_p0, %s28_s17), 0  ;;  %p78_p3 = por %p77_p2, %p76_p1 }
   0x7   : > { %s65_s18 = ssub.s32 %s1174_s15, %s1439_s17  ;;  %169 = sbr.rel (%p906_p5) target bundleno = 52 (0x34), region = 20 }
   0x8   : > { %p67_p4 = scmp.eq.s32.totalorder %s65_s18, 0 }
   0xa   : > { %s1235_s20 = scalar_select %p67_p4, %s1166_s13, %s69_s19  }
   0xc   : > { %172 = sbr.rel (!%p78_p3) target bundleno = 52 (0x34), region = 24  ;;  %s174_s21 = sand.u32 (%p78_p3), 1, %s1166_s13  }
   0xd   : > { %s1061_s22 = sshll.u32 (%p78_p3), %s1174_s15, 3  ;;  %s1098_s23 = smul.u32 (%p78_p3), 288, %s174_s21 }
   0xe   : > { %s1243_s26 = scalar_lea.vmem (%p78_p3), %s1431_s1, %s1061_s22 }
   0xf   : > { %v281_v0 = vld [vmem:[%s1243_s26] sm:$0xff] (%p78_p3)  ;;  %v283_v1 = vld [vmem:[%s1243_s26 + $0x10] sm:$0xff] (%p78_p3)  ;;  %s1248_s27 = scalar_lea.vmem (%p78_p3), [#allocation3], %s1098_s23 }
  0x10   : > { %v285_v2 = vld [vmem:[%s1243_s26 + $0x20] sm:$0xff] (%p78_p3)  ;;  %282 = vst [vmem:[%s1248_s27] sm:$0xff] (%p78_p3), %v281_v0  ;;  %v287_v3 = vld [vmem:[%s1243_s26 + $0x30] sm:$0xff] (%p78_p3) }
  0x11   : > { %284 = vst [vmem:[%s1248_s27 + $0x8] sm:$0xff] %v283_v1  ;;  %v289_v4 = vld [vmem:[%s1243_s26 + $0x40] sm:$0xff]  ;;  %v291_v5 = vld [vmem:[%s1243_s26 + $0x50] sm:$0xff] }
  0x12   : > { %286 = vst [vmem:[%s1248_s27 + $0x10] sm:$0xff] %v285_v2  ;;  %v293_v6 = vld [vmem:[%s1243_s26 + $0x60] sm:$0xff]  ;;  %v295_v7 = vld [vmem:[%s1243_s26 + $0x70] sm:$0xff] }
  0x13   : > { %288 = vst [vmem:[%s1248_s27 + $0x18] sm:$0xff] %v287_v3  ;;  %v297_v8 = vld [vmem:[%s1243_s26 + $0x80] sm:$0xff]  ;;  %v299_v9 = vld [vmem:[%s1243_s26 + $0x90] sm:$0xff] }
  0x14   : > { %290 = vst [vmem:[%s1248_s27 + $0x20] sm:$0xff] %v289_v4  ;;  %v301_v10 = vld [vmem:[%s1243_s26 + $0xa0] sm:$0xff]  ;;  %v303_v11 = vld [vmem:[%s1243_s26 + $0xb0] sm:$0xff] }
  0x15   : > { %292 = vst [vmem:[%s1248_s27 + $0x28] sm:$0xff] %v291_v5  ;;  %v305_v12 = vld [vmem:[%s1243_s26 + $0xc0] sm:$0xff]  ;;  %v307_v13 = vld [vmem:[%s1243_s26 + $0xd0] sm:$0xff] }
  0x16   : > { %294 = vst [vmem:[%s1248_s27 + $0x30] sm:$0xff] %v293_v6  ;;  %v309_v14 = vld [vmem:[%s1243_s26 + $0xe0] sm:$0xff]  ;;  %v311_v15 = vld [vmem:[%s1243_s26 + $0xf0] sm:$0xff] }
  0x17   : > { %296 = vst [vmem:[%s1248_s27 + $0x38] sm:$0xff] %v295_v7  ;;  %v313_v16 = vld [vmem:[%s1243_s26 + $0x100] sm:$0xff]  ;;  %v315_v17 = vld [vmem:[%s1243_s26 + $0x110] sm:$0xff] }
  0x18   : > { %298 = vst [vmem:[%s1248_s27 + $0x40] sm:$0xff] %v297_v8  ;;  %v317_v18 = vld [vmem:[%s1243_s26 + $0x120] sm:$0xff]  ;;  %v319_v19 = vld [vmem:[%s1243_s26 + $0x130] sm:$0xff] }
  0x19   : > { %300 = vst [vmem:[%s1248_s27 + $0x48] sm:$0xff] %v299_v9  ;;  %v321_v20 = vld [vmem:[%s1243_s26 + $0x140] sm:$0xff]  ;;  %v323_v21 = vld [vmem:[%s1243_s26 + $0x150] sm:$0xff] }
  0x1a   : > { %302 = vst [vmem:[%s1248_s27 + $0x50] sm:$0xff] %v301_v10  ;;  %v325_v22 = vld [vmem:[%s1243_s26 + $0x160] sm:$0xff]  ;;  %v327_v23 = vld [vmem:[%s1243_s26 + $0x170] sm:$0xff] }
  0x1b   : > { %304 = vst [vmem:[%s1248_s27 + $0x58] sm:$0xff] %v303_v11  ;;  %v329_v24 = vld [vmem:[%s1243_s26 + $0x180] sm:$0xff]  ;;  %v331_v25 = vld [vmem:[%s1243_s26 + $0x190] sm:$0xff] }
  0x1c   : > { %306 = vst [vmem:[%s1248_s27 + $0x60] sm:$0xff] %v305_v12  ;;  %v333_v26 = vld [vmem:[%s1243_s26 + $0x1a0] sm:$0xff]  ;;  %v335_v27 = vld [vmem:[%s1243_s26 + $0x1b0] sm:$0xff] }
  0x1d   : > { %308 = vst [vmem:[%s1248_s27 + $0x68] sm:$0xff] %v307_v13  ;;  %v337_v28 = vld [vmem:[%s1243_s26 + $0x1c0] sm:$0xff]  ;;  %v339_v29 = vld [vmem:[%s1243_s26 + $0x1d0] sm:$0xff] }
  0x1e   : > { %310 = vst [vmem:[%s1248_s27 + $0x70] sm:$0xff] %v309_v14  ;;  %v341_v30 = vld [vmem:[%s1243_s26 + $0x1e0] sm:$0xff]  ;;  %v343_v31 = vld [vmem:[%s1243_s26 + $0x1f0] sm:$0xff] }
  0x1f   : > { %312 = vst [vmem:[%s1248_s27 + $0x78] sm:$0xff] %v311_v15  ;;  %v345_v32 = vld [vmem:[%s1243_s26 + $0x200] sm:$0xff]  ;;  %v347_v33 = vld [vmem:[%s1243_s26 + $0x210] sm:$0xff] }
  0x20   : > { %314 = vst [vmem:[%s1248_s27 + $0x80] sm:$0xff] %v313_v16  ;;  %v349_v34 = vld [vmem:[%s1243_s26 + $0x220] sm:$0xff]  ;;  %v351_v35 = vld [vmem:[%s1243_s26 + $0x230] sm:$0xff] }
  0x21   : > { %316 = vst [vmem:[%s1248_s27 + $0x88] sm:$0xff] %v315_v17 }
  0x22   : > { %318 = vst [vmem:[%s1248_s27 + $0x90] sm:$0xff] %v317_v18 }
  0x23   : > { %320 = vst [vmem:[%s1248_s27 + $0x98] sm:$0xff] %v319_v19 }
  0x24   : > { %322 = vst [vmem:[%s1248_s27 + $0xa0] sm:$0xff] %v321_v20 }
  0x25   : > { %324 = vst [vmem:[%s1248_s27 + $0xa8] sm:$0xff] %v323_v21 }
  0x26   : > { %326 = vst [vmem:[%s1248_s27 + $0xb0] sm:$0xff] %v325_v22 }
  0x27   : > { %328 = vst [vmem:[%s1248_s27 + $0xb8] sm:$0xff] %v327_v23 }
  0x28   : > { %330 = vst [vmem:[%s1248_s27 + $0xc0] sm:$0xff] %v329_v24 }
  0x29   : > { %332 = vst [vmem:[%s1248_s27 + $0xc8] sm:$0xff] %v331_v25 }
  0x2a   : > { %334 = vst [vmem:[%s1248_s27 + $0xd0] sm:$0xff] %v333_v26 }
  0x2b   : > { %336 = vst [vmem:[%s1248_s27 + $0xd8] sm:$0xff] %v335_v27 }
  0x2c   : > { %338 = vst [vmem:[%s1248_s27 + $0xe0] sm:$0xff] %v337_v28 }
  0x2d   : > { %340 = vst [vmem:[%s1248_s27 + $0xe8] sm:$0xff] %v339_v29 }
  0x2e   : > { %342 = vst [vmem:[%s1248_s27 + $0xf0] sm:$0xff] %v341_v30 }
  0x2f   : > { %344 = vst [vmem:[%s1248_s27 + $0xf8] sm:$0xff] %v343_v31 }
  0x30   : > { %346 = vst [vmem:[%s1248_s27 + $0x100] sm:$0xff] %v345_v32 }
  0x31   : > { %348 = vst [vmem:[%s1248_s27 + $0x108] sm:$0xff] %v347_v33 }
  0x32   : > { %350 = vst [vmem:[%s1248_s27 + $0x110] sm:$0xff] %v349_v34 }
  0x33   : > { %352 = vst [vmem:[%s1248_s27 + $0x118] sm:$0xff] %v351_v35 }
  0x34 PF: > { %p909_p6 = scmp.ge.s32.totalorder %s1178_s16, 1  ;;  %p365_p7 = scmp.lt.s32.totalorder %s1178_s16, 3 }
  0x36   : > { %p366_p8 = pnand %p909_p6, %p365_p7 }
  0x37   : > { %s372_s28 = sand.u32 (!%p366_p8), 1, %s1162_s12   ;;  %s910_s8 = sshll.u32 (!%p366_p8), %s1170_s14, 1 }
  0x38   : > { %369 = sbr.rel (%p366_p8) target bundleno = 248 (0xf8), region = 66  ;;  %p425_p9 = scmp.lt.s32.totalorder (!%p366_p8), %s910_s8, 3 }
  0x39   : > { %s1099_s29 = smul.u32 (!%p366_p8), 288, %s372_s28 }
  0x3b   : > { %s1325_s5 = scalar_lea.vmem (!%p366_p8), [#allocation3], %s1099_s29 }
  0x3d   : > { %v449_v36 = vld [vmem:[%s1430_s0 + $0x8] sm:$0xf]  ;;  %v971_v37 = vld [vmem:[%s1325_s5 + $0x70] sm:$0xf]  ;;  %v1077_v38 = vld [vmem:[%s1325_s5 + $0x74] sm:$0xf0] }
  0x3e   : > { %v1035_v39 = vld [vmem:[%s1325_s5 + $0xf0] sm:$0xf]  ;;  %vm676_vm0 = vcmask 261120   ;;  %v972_v40 = vor.u32 %v1077_v38, %v971_v37  ;;  %v1093_v41 = vld [vmem:[%s1325_s5 + $0xf4] sm:$0xf0]  ;;  %v490_v53 = vunpack.c.l.b16 %v449_v36  ;;  %s1441_s8 = smov (!%p425_p9, %s910_s8), 3 }
  0x3f   : > { %v1051_v42 = vld [vmem:[%s1325_s5 + $0x110] sm:$0xf]  ;;  %v1097_v43 = vld [vmem:[%s1325_s5 + $0x114] sm:$0xf0]  ;;  %v1036_v44 = vor.u32 %v1093_v41, %v1035_v39  ;;  %v1076_v46 = vld [vmem:[%s1325_s5 + $0x74] sm:$0xf]  ;;  %s427_s11 = scalar_lea.vmem %s1432_s2, %s1441_s8 }
  0x40   : > { %v1052_v45 = vor.u32 %v1097_v43, %v1051_v42  ;;  %v973_v47 = vld [vmem:[%s1325_s5 + $0x78] sm:$0xf0]  ;;  %v963_v48 = vld [vmem:[%s1325_s5 + $0x60] sm:$0xf]  ;;  %680 = vmatpush.bf16.msra.mxu0 %v972_v40  ;;  %v1075_v50 = vld [vmem:[%s1325_s5 + $0x64] sm:$0xf0]  ;;  %v1351_v8 = vpack.c.b16 %v490_v53, %v490_v53 }
  0x41   : > { %v976_v49 = vor.u32 %v1076_v46, %v973_v47  ;;  %v1027_v51 = vld [vmem:[%s1325_s5 + $0xe0] sm:$0xf]  ;;  %v1091_v52 = vld [vmem:[%s1325_s5 + $0xe4] sm:$0xf0]  ;;  %693 = vmatpush.bf16.msra.mxu1 %v1036_v44  ;;  %v964_v54 = vor.u32 %v1075_v50, %v963_v48  ;;  %v1074_v58 = vld [vmem:[%s1325_s5 + $0x64] sm:$0xf] }
  0x42   : > { %712 = vmatpush.bf16.msra.mxu2 %v1052_v45  ;;  %v1028_v55 = vor.u32 %v1091_v52, %v1027_v51  ;;  %v1043_v56 = vld [vmem:[%s1325_s5 + $0x100] sm:$0xf]  ;;  %v1095_v57 = vld [vmem:[%s1325_s5 + $0x104] sm:$0xf0]  ;;  %v965_v60 = vld [vmem:[%s1325_s5 + $0x68] sm:$0xf0] }
  0x43   : > { %719 = vmatpush.bf16.msra.mxu3 %v976_v49  ;;  %v1044_v59 = vor.u32 %v1095_v57, %v1043_v56  ;;  %v1092_v61 = vld [vmem:[%s1325_s5 + $0xf4] sm:$0xf]  ;;  %v1037_v62 = vld [vmem:[%s1325_s5 + $0xf8] sm:$0xf0]  ;;  %v968_v63 = vor.u32 %v1074_v58, %v965_v60  ;;  %v955_v1 = vld [vmem:[%s1325_s5 + $0x50] sm:$0xf] }
  0x44   : > { %v1040_v0 = vor.u32 %v1092_v61, %v1037_v62  ;;  %v1073_v2 = vld [vmem:[%s1325_s5 + $0x54] sm:$0xf0]  ;;  %v1019_v3 = vld [vmem:[%s1325_s5 + $0xd0] sm:$0xf]  ;;  %681 = vmatpush.bf16.msra.mxu0 %v964_v54  ;;  %v1072_v6 = vld [vmem:[%s1325_s5 + $0x54] sm:$0xf] }
  0x45   : > { %v956_v4 = vor.u32 %v1073_v2, %v955_v1  ;;  %v1089_v5 = vld [vmem:[%s1325_s5 + $0xd4] sm:$0xf0]  ;;  %v957_v7 = vld [vmem:[%s1325_s5 + $0x58] sm:$0xf0]  ;;  %694 = vmatpush.bf16.msra.mxu1 %v1028_v55  ;;  %v1090_v10 = vld [vmem:[%s1325_s5 + $0xe4] sm:$0xf] }
  0x46   : > { %713 = vmatpush.bf16.msra.mxu2 %v1044_v59  ;;  %v1020_v9 = vor.u32 %v1089_v5, %v1019_v3  ;;  %v1029_v11 = vld [vmem:[%s1325_s5 + $0xe8] sm:$0xf0]  ;;  %v947_v12 = vld [vmem:[%s1325_s5 + $0x40] sm:$0xf]  ;;  %v960_v13 = vor.u32 %v1072_v6, %v957_v7  ;;  %v1071_v15 = vld [vmem:[%s1325_s5 + $0x44] sm:$0xf0] }
  0x47   : > { %720 = vmatpush.bf16.msra.mxu3 %v968_v63  ;;  %v1032_v14 = vor.u32 %v1090_v10, %v1029_v11  ;;  %v1011_v16 = vld [vmem:[%s1325_s5 + $0xc0] sm:$0xf]  ;;  %v1087_v17 = vld [vmem:[%s1325_s5 + $0xc4] sm:$0xf0]  ;;  %v1070_v18 = vld [vmem:[%s1325_s5 + $0x44] sm:$0xf]  ;;  %v948_v21 = vor.u32 %v1071_v15, %v947_v12 }
  0x48   : > { %v949_v19 = vld [vmem:[%s1325_s5 + $0x48] sm:$0xf0]  ;;  %v1088_v20 = vld [vmem:[%s1325_s5 + $0xd4] sm:$0xf]  ;;  %682 = vmatpush.bf16.msra.mxu0 %v956_v4  ;;  %v1021_v22 = vld [vmem:[%s1325_s5 + $0xd8] sm:$0xf0]  ;;  %v1012_v23 = vor.u32 %v1087_v17, %v1011_v16 }
  0x49   : > { %1057 = vmatmul.msk.bf16.vlgmr.msra.gmra.mxu2 %vm676_vm0, %v1351_v8  ;;  %695 = vmatpush.bf16.msra.mxu1 %v1020_v9  ;;  %v939_v24 = vld [vmem:[%s1325_s5 + $0x30] sm:$0xf]  ;;  %v1069_v25 = vld [vmem:[%s1325_s5 + $0x34] sm:$0xf0]  ;;  %v952_v26 = vor.u32 %v1070_v18, %v949_v19  ;;  %v1024_v27 = vor.u32 %v1088_v20, %v1021_v22  ;;  %v1068_v30 = vld [vmem:[%s1325_s5 + $0x34] sm:$0xf] }
  0x4a   : > { %732 = vmatpush.bf16.msrb.mxu2 %v1040_v0  ;;  %v1003_v28 = vld [vmem:[%s1325_s5 + $0xb0] sm:$0xf]  ;;  %v1085_v29 = vld [vmem:[%s1325_s5 + $0xb4] sm:$0xf0]  ;;  %v941_v31 = vld [vmem:[%s1325_s5 + $0x38] sm:$0xf0]  ;;  %v940_v34 = vor.u32 %v1069_v25, %v939_v24 }
  0x4b   : > { %721 = vmatpush.bf16.msra.mxu3 %v960_v13  ;;  %v1086_v32 = vld [vmem:[%s1325_s5 + $0xc4] sm:$0xf]  ;;  %v1013_v33 = vld [vmem:[%s1325_s5 + $0xc8] sm:$0xf0]  ;;  %v1004_v35 = vor.u32 %v1085_v29, %v1003_v28  ;;  %v931_v36 = vld [vmem:[%s1325_s5 + $0x20] sm:$0xf]  ;;  %v944_v38 = vor.u32 %v1068_v30, %v941_v31 }
  0x4c   : > { %683 = vmatpush.bf16.msra.mxu0 %v948_v21  ;;  %v1067_v37 = vld [vmem:[%s1325_s5 + $0x24] sm:$0xf0]  ;;  %v1016_v39 = vor.u32 %v1086_v32, %v1013_v33  ;;  %v995_v40 = vld [vmem:[%s1325_s5 + $0xa0] sm:$0xf]  ;;  %v1066_v42 = vld [vmem:[%s1325_s5 + $0x24] sm:$0xf] }
  0x4d   : > { %696 = vmatpush.bf16.msra.mxu1 %v1012_v23  ;;  %v1083_v41 = vld [vmem:[%s1325_s5 + $0xa4] sm:$0xf0]  ;;  %v933_v43 = vld [vmem:[%s1325_s5 + $0x28] sm:$0xf0]  ;;  %v1084_v44 = vld [vmem:[%s1325_s5 + $0xb4] sm:$0xf]  ;;  %v932_v46 = vor.u32 %v1067_v37, %v931_v36 }
  0x4e   : > { %733 = vmatpush.bf16.msrb.mxu2 %v1032_v14  ;;  %v1005_v45 = vld [vmem:[%s1325_s5 + $0xb8] sm:$0xf0]  ;;  %v996_v47 = vor.u32 %v1083_v41, %v995_v40  ;;  %v923_v48 = vld [vmem:[%s1325_s5 + $0x10] sm:$0xf]  ;;  %v1065_v49 = vld [vmem:[%s1325_s5 + $0x14] sm:$0xf0]  ;;  %v936_v50 = vor.u32 %v1066_v42, %v933_v43 }
  0x4f   : > { %722 = vmatpush.bf16.msra.mxu3 %v952_v26  ;;  %v1008_v51 = vor.u32 %v1084_v44, %v1005_v45  ;;  %v987_v52 = vld [vmem:[%s1325_s5 + $0x90] sm:$0xf]  ;;  %v1081_v53 = vld [vmem:[%s1325_s5 + $0x94] sm:$0xf0]  ;;  %v1064_v54 = vld [vmem:[%s1325_s5 + $0x14] sm:$0xf]  ;;  %v924_v58 = vor.u32 %v1065_v49, %v923_v48 }
  0x50   : > { %684 = vmatpush.bf16.msra.mxu0 %v940_v34  ;;  %v925_v55 = vld [vmem:[%s1325_s5 + $0x18] sm:$0xf0]  ;;  %v1082_v56 = vld [vmem:[%s1325_s5 + $0xa4] sm:$0xf]  ;;  %v997_v57 = vld [vmem:[%s1325_s5 + $0xa8] sm:$0xf0]  ;;  %v988_v61 = vor.u32 %v1081_v53, %v987_v52 }
  0x51   : > { %697 = vmatpush.bf16.msra.mxu1 %v1004_v35  ;;  %v915_v59 = vld [vmem:[%s1325_s5] sm:$0xf]  ;;  %v1063_v62 = vld [vmem:[%s1325_s5 + $0x4] sm:$0xf0]  ;;  %v928_v1 = vor.u32 %v1064_v54, %v925_v55  ;;  %v1000_v2 = vor.u32 %v1082_v56, %v997_v57  ;;  %v1062_v3 = vld [vmem:[%s1325_s5 + $0x4] sm:$0xf] }
  0x52   : > { %734 = vmatpush.bf16.msrb.mxu2 %v1024_v27  ;;  %v448_v60 = vld [vmem:[%s1430_s0] sm:$0xff]  ;;  %v1079_v0 = vld [vmem:[%s1325_s5 + $0x84] sm:$0xf0]  ;;  %v1096_v4 = vld [vmem:[%s1325_s5 + $0x114] sm:$0xf]  ;;  %v916_v11 = vor.u32 %v1063_v62, %v915_v59  ;;  %s912_s12 = sshll.u32 %s1441_s8, 2 }
  0x53   : > { %723 = vmatpush.bf16.msra.mxu3 %v944_v38  ;;  %v979_v63 = vld [vmem:[%s1325_s5 + $0x80] sm:$0xf]  ;;  %v1053_v5 = vld [vmem:[%s1325_s5 + $0x118] sm:$0xf0]  ;;  %v917_v6 = vld [vmem:[%s1325_s5 + $0x8] sm:$0xf0]  ;;  %v488_v10 = vunpack.c.l.b16 %v448_v60  ;;  %v489_v12 = vunpack.c.h.b16 %v448_v60  ;;  %s437_s19 = scalar_lea.vmem %s1433_s3, %s912_s12 }
  0x54   : > { %685 = vmatpush.bf16.msra.mxu0 %v932_v46  ;;  %v1080_v7 = vld [vmem:[%s1325_s5 + $0x94] sm:$0xf]  ;;  %v989_v9 = vld [vmem:[%s1325_s5 + $0x98] sm:$0xf0]  ;;  %v980_v13 = vor.u32 %v1079_v0, %v979_v63  ;;  %v1056_v14 = vor.u32 %v1096_v4, %v1053_v5  ;;  %v920_v15 = vor.u32 %v1062_v3, %v917_v6  ;;  %v1094_v17 = vld [vmem:[%s1325_s5 + $0x104] sm:$0xf] }
  0x55   : > { %698 = vmatpush.bf16.msra.mxu1 %v996_v47  ;;  %v992_v16 = vor.u32 %v1080_v7, %v989_v9  ;;  %v1045_v18 = vld [vmem:[%s1325_s5 + $0x108] sm:$0xf0]  ;;  %v491_v19 = vpack.c.b16 %v488_v10, %v488_v10  ;;  %v1078_v20 = vld [vmem:[%s1325_s5 + $0x84] sm:$0xf]  ;;  %v492_v22 = vpack.c.b16 %v489_v12, %v489_v12  ;;  %v767_v33 = vld [vmem:[%s427_s11] sm:$0x3] }
  0x56   : > { %735 = vmatpush.bf16.msrb.mxu2 %v1016_v39  ;;  %v981_v21 = vld [vmem:[%s1325_s5 + $0x88] sm:$0xf0]  ;;  %v1048_v23 = vor.u32 %v1094_v17, %v1045_v18  ;;  %v769_v36 = vperm.slane %v767_v33, 0  ;;  %v770_v37 = vperm.slane %v767_v33, 1 }
  0x57   : > { %724 = vmatpush.bf16.msra.mxu3 %v936_v50  ;;  %v984_v24 = vor.u32 %v1078_v20, %v981_v21 }
  0x58   : > { %686 = vmatpush.bf16.msra.mxu0 %v924_v58 }
  0x59   : > { %699 = vmatpush.bf16.msra.mxu1 %v988_v61 }
  0x5a   : > { %736 = vmatpush.bf16.msrb.mxu2 %v1008_v51 }
  0x5b   : > { %725 = vmatpush.bf16.msra.mxu3 %v928_v1 }
  0x5c   : > { %687 = vmatpush.bf16.msra.mxu0 %v916_v11 }
  0x5d   : > { %700 = vmatpush.bf16.msra.mxu1 %v980_v13 }
  0x5e   : > { %737 = vmatpush.bf16.msrb.mxu2 %v1000_v2 }
  0x5f   : > { %726 = vmatpush.bf16.msra.mxu3 %v920_v15  ;;  %688 = vmatmul.bf16.vlgmr.msra.gmra.mxu0 %v491_v19 }
  0x60   : > { %751 = vmatpush.bf16.msrb.mxu0 %v1056_v14  ;;  %701 = vmatmul.bf16.vlgmr.msra.gmra.mxu1 %v492_v22 }
  0x62   : > { %738 = vmatpush.bf16.msrb.mxu2 %v992_v16  ;;  %727 = vmatmul.bf16.vlgmr.msra.gmra.mxu3 %v491_v19 }
  0x64   : > { %752 = vmatpush.bf16.msrb.mxu0 %v1048_v23 }
  0x66   : > { %739 = vmatpush.bf16.msrb.mxu2 %v984_v24 }
  0x69   : > { %740 = vmatmul.bf16.vlgmr.msrb.gmra.mxu2 %v492_v22 }
  0x6f   : > { %1058 = vmatmul.msk.bf16.vlgmr.msrb.gmra.mxu0 %vm676_vm0, %v1351_v8 }
  0xcc   : > { %v715_v25 = vpop.f32.mrf.mxu2 }
  0xd4   : > { %v717_v26 = vpop.f32.mrf.mxu2 }
  0xdc   : > { %v689_v27 = vpop.f32.mrf.mxu0 }
  0xdd   : > { %v702_v28 = vpop.f32.mrf.mxu1 }
  0xde   : > { %v703_v31 = vadd.f32 %v702_v28, %v689_v27 }
  0xe0   : > { %v716_v35 = vadd.f32 %v715_v25, %v703_v31 }
  0xe2   : > { %v773_v40 = vadd.f32 %v769_v36, %v716_v35 }
  0xe4   : > { %v691_v30 = vpop.f32.mrf.mxu0  ;;  %v775_v44 = vmax.f32 %v773_v40, 0.0 }
  0xe5   : > { %v728_v29 = vpop.f32.mrf.mxu3  ;;  %v704_v32 = vpop.f32.mrf.mxu1 }
  0xec   : > { %v741_v34 = vpop.f32.mrf.mxu2  ;;  %v754_v39 = vpop.f32.mrf.mxu0 }
  0xed   : > { %v742_v8 = vadd.f32 %v741_v34, %v728_v29  ;;  %v730_v38 = vpop.f32.mrf.mxu3 }
  0xef   : > { %v755_v41 = vadd.f32 %v754_v39, %v742_v8 }
  0xf1   : > { %v774_v42 = vadd.f32 %v770_v37, %v755_v41 }
  0xf3   : > { %v776_v45 = vmax.f32 %v774_v42, 0.0 }
  0xf4   : > { %v743_v43 = vpop.f32.mrf.mxu2  ;;  %v756_v47 = vpop.f32.mrf.mxu0 }
  0xf5   : > { %v777_v46 = vpack.c.bf16 %v776_v45, %v775_v44 }
  0xf7   : > { %778 = vst [vmem:[%s437_s19] sm:$0xff] %v777_v46 }
  0xf8 PF: > { %s13_s16 = sadd.s32 1, %s1178_s16   ;;  %s1434_s12 = smov %s1166_s13 }
  0xf9   : > { %p10_p10 = scmp.ge.s32.totalorder %s13_s16, 4   ;;  %s1435_s13 = smov %s1235_s20 }
  0xfa   : > { %s1436_s14 = smov %s1174_s15  ;;  %s1437_s15 = smov %s1439_s17 }
  0xfb   :  { %12 = sbr.rel (!%p10_p10) target bundleno = 3 (0x3), region = 119 }

// kernel: ssd_detector_forward.8
= control target key start
LH: loop header
LB: loop body
LE: loop exit
PB: predicated region body
PF: predicated region fallthrough
CT: control target
= control target key end

     0   :  { %s1381_s12 = smov 0   ;;  %s1383_s13 = smov 0   ;;  %s1659_s0 = inlined_call_operand.vmem [shape: bf16[32,288], index: 0, kind: input, shape index: {}]   ;;  %s1660_s1 = inlined_call_operand.vmem [shape: bf16[288,1024], index: 1, kind: input, shape index: {}]   ;;  %s1661_s2 = inlined_call_operand.vmem [shape: f32[1,1024], index: 2, kind: input, shape index: {}]   ;;  %s1662_s3 = inlined_call_operand.vmem [shape: bf16[32,1024], index: 3, kind: output, shape index: {}]  }
   0x1   :  { %s1385_s14 = smov 0   ;;  %s1387_s15 = smov 0  }
   0x2   :  { %s1389_s16 = smov 0  }
   0x3 LB: > { %s28_s17 = sadd.s32 1, %s1355_s15  ;;  %s1046_s18 = sadd.s32 4294967295, %s1359_s16   ;;  %s1359_s16 = sphi %s1389_s16, %s13_s16   ;;  %s1355_s15 = sphi %s1387_s15, %s1667_s15   ;;  %s1351_s14 = sphi %s1385_s14, %s1666_s14   ;;  %s1347_s13 = sphi %s1383_s13, %s1665_s13   ;;  %s1343_s12 = sphi %s1381_s12, %s1664_s12  }
   0x4   : > { %p30_p0 = scmp.ge.s32.totalorder %s28_s17, 4  ;;  %p76_p1 = scmp.ne.s32.totalorder %s1347_s13, %s1343_s12 }
   0x5   : > { %p77_p2 = scmp.eq.s32.totalorder %s1359_s16, 0  ;;  %p134_p4 = scmp.eq.s32.totalorder %s1046_s18, 3 }
   0x6   : > { %s1669_s17 = smov (%p30_p0, %s28_s17), 0  ;;  %s69_s20 = sadd.s32 1, %s1347_s13 }
   0x7   : > { %p78_p3 = por %p77_p2, %p76_p1  ;;  %s65_s19 = ssub.s32 %s1355_s15, %s1669_s17 }
   0x8   : > { %p67_p5 = scmp.eq.s32.totalorder %s65_s19, 0  ;;  %p1416_p6 = por %p134_p4, %p76_p1 }
   0x9   : > { %p1050_p7 = scmp.ge.s32.totalorder %s1359_s16, 4 }
   0xa   : > { %s1421_s22 = scalar_select %p67_p5, %s1347_s13, %s69_s20  }
   0xb   : > { %171 = sbr.rel (%p1050_p7) target bundleno = 56 (0x38), region = 20 }
  0x10   : > { %174 = sbr.rel (!%p78_p3) target bundleno = 56 (0x38), region = 24  ;;  %s176_s23 = sand.u32 (%p78_p3), 1, %s1347_s13  }
  0x11   : > { %s1233_s24 = sshll.u32 (%p78_p3), %s1355_s15, 3  ;;  %s1279_s25 = smul.u32 (%p78_p3), 288, %s176_s23 }
  0x12   : > { %s1429_s28 = scalar_lea.vmem (%p78_p3), %s1660_s1, %s1233_s24 }
  0x13   : > { %v283_v0 = vld [vmem:[%s1429_s28] sm:$0xff] (%p78_p3)  ;;  %s1434_s29 = scalar_lea.vmem (%p78_p3), [#allocation3], %s1279_s25 }
  0x14   : > { %v285_v1 = vld [vmem:[%s1429_s28 + $0x20] sm:$0xff] (%p78_p3)  ;;  %284 = vst [vmem:[%s1434_s29] sm:$0xff] (%p78_p3), %v283_v0 }
  0x15   : > { %v287_v2 = vld [vmem:[%s1429_s28 + $0x40] sm:$0xff]  ;;  %286 = vst [vmem:[%s1434_s29 + $0x8] sm:$0xff] %v285_v1 }
  0x16   : > { %v289_v3 = vld [vmem:[%s1429_s28 + $0x60] sm:$0xff]  ;;  %288 = vst [vmem:[%s1434_s29 + $0x10] sm:$0xff] %v287_v2 }
  0x17   : > { %v291_v4 = vld [vmem:[%s1429_s28 + $0x80] sm:$0xff]  ;;  %290 = vst [vmem:[%s1434_s29 + $0x18] sm:$0xff] %v289_v3 }
  0x18   : > { %v293_v5 = vld [vmem:[%s1429_s28 + $0xa0] sm:$0xff]  ;;  %292 = vst [vmem:[%s1434_s29 + $0x20] sm:$0xff] %v291_v4 }
  0x19   : > { %v295_v6 = vld [vmem:[%s1429_s28 + $0xc0] sm:$0xff]  ;;  %294 = vst [vmem:[%s1434_s29 + $0x28] sm:$0xff] %v293_v5 }
  0x1a   : > { %v297_v7 = vld [vmem:[%s1429_s28 + $0xe0] sm:$0xff]  ;;  %296 = vst [vmem:[%s1434_s29 + $0x30] sm:$0xff] %v295_v6 }
  0x1b   : > { %v299_v8 = vld [vmem:[%s1429_s28 + $0x100] sm:$0xff]  ;;  %298 = vst [vmem:[%s1434_s29 + $0x38] sm:$0xff] %v297_v7 }
  0x1c   : > { %v301_v9 = vld [vmem:[%s1429_s28 + $0x120] sm:$0xff]  ;;  %300 = vst [vmem:[%s1434_s29 + $0x40] sm:$0xff] %v299_v8 }
  0x1d   : > { %v303_v10 = vld [vmem:[%s1429_s28 + $0x140] sm:$0xff]  ;;  %302 = vst [vmem:[%s1434_s29 + $0x48] sm:$0xff] %v301_v9 }
  0x1e   : > { %v305_v11 = vld [vmem:[%s1429_s28 + $0x160] sm:$0xff]  ;;  %304 = vst [vmem:[%s1434_s29 + $0x50] sm:$0xff] %v303_v10 }
  0x1f   : > { %v307_v12 = vld [vmem:[%s1429_s28 + $0x180] sm:$0xff]  ;;  %306 = vst [vmem:[%s1434_s29 + $0x58] sm:$0xff] %v305_v11 }
  0x20   : > { %v309_v13 = vld [vmem:[%s1429_s28 + $0x1a0] sm:$0xff]  ;;  %308 = vst [vmem:[%s1434_s29 + $0x60] sm:$0xff] %v307_v12 }
  0x21   : > { %v311_v14 = vld [vmem:[%s1429_s28 + $0x1c0] sm:$0xff]  ;;  %310 = vst [vmem:[%s1434_s29 + $0x68] sm:$0xff] %v309_v13 }
  0x22   : > { %v313_v15 = vld [vmem:[%s1429_s28 + $0x1e0] sm:$0xff]  ;;  %312 = vst [vmem:[%s1434_s29 + $0x70] sm:$0xff] %v311_v14 }
  0x23   : > { %v315_v16 = vld [vmem:[%s1429_s28 + $0x200] sm:$0xff]  ;;  %314 = vst [vmem:[%s1434_s29 + $0x78] sm:$0xff] %v313_v15 }
  0x24   : > { %v317_v17 = vld [vmem:[%s1429_s28 + $0x220] sm:$0xff]  ;;  %316 = vst [vmem:[%s1434_s29 + $0x80] sm:$0xff] %v315_v16 }
  0x25   : > { %v319_v18 = vld [vmem:[%s1429_s28 + $0x240] sm:$0xff]  ;;  %318 = vst [vmem:[%s1434_s29 + $0x88] sm:$0xff] %v317_v17 }
  0x26   : > { %v321_v19 = vld [vmem:[%s1429_s28 + $0x260] sm:$0xff]  ;;  %320 = vst [vmem:[%s1434_s29 + $0x90] sm:$0xff] %v319_v18 }
  0x27   : > { %v323_v20 = vld [vmem:[%s1429_s28 + $0x280] sm:$0xff]  ;;  %322 = vst [vmem:[%s1434_s29 + $0x98] sm:$0xff] %v321_v19 }
  0x28   : > { %v325_v21 = vld [vmem:[%s1429_s28 + $0x2a0] sm:$0xff]  ;;  %324 = vst [vmem:[%s1434_s29 + $0xa0] sm:$0xff] %v323_v20 }
  0x29   : > { %v327_v22 = vld [vmem:[%s1429_s28 + $0x2c0] sm:$0xff]  ;;  %326 = vst [vmem:[%s1434_s29 + $0xa8] sm:$0xff] %v325_v21 }
  0x2a   : > { %v329_v23 = vld [vmem:[%s1429_s28 + $0x2e0] sm:$0xff]  ;;  %328 = vst [vmem:[%s1434_s29 + $0xb0] sm:$0xff] %v327_v22 }
  0x2b   : > { %v331_v24 = vld [vmem:[%s1429_s28 + $0x300] sm:$0xff]  ;;  %330 = vst [vmem:[%s1434_s29 + $0xb8] sm:$0xff] %v329_v23 }
  0x2c   : > { %v333_v25 = vld [vmem:[%s1429_s28 + $0x320] sm:$0xff]  ;;  %332 = vst [vmem:[%s1434_s29 + $0xc0] sm:$0xff] %v331_v24 }
  0x2d   : > { %v335_v26 = vld [vmem:[%s1429_s28 + $0x340] sm:$0xff]  ;;  %334 = vst [vmem:[%s1434_s29 + $0xc8] sm:$0xff] %v333_v25 }
  0x2e   : > { %v337_v27 = vld [vmem:[%s1429_s28 + $0x360] sm:$0xff]  ;;  %336 = vst [vmem:[%s1434_s29 + $0xd0] sm:$0xff] %v335_v26 }
  0x2f   : > { %v339_v28 = vld [vmem:[%s1429_s28 + $0x380] sm:$0xff]  ;;  %338 = vst [vmem:[%s1434_s29 + $0xd8] sm:$0xff] %v337_v27 }
  0x30   : > { %v341_v29 = vld [vmem:[%s1429_s28 + $0x3a0] sm:$0xff]  ;;  %340 = vst [vmem:[%s1434_s29 + $0xe0] sm:$0xff] %v339_v28 }
  0x31   : > { %v343_v30 = vld [vmem:[%s1429_s28 + $0x3c0] sm:$0xff]  ;;  %342 = vst [vmem:[%s1434_s29 + $0xe8] sm:$0xff] %v341_v29 }
  0x32   : > { %v345_v31 = vld [vmem:[%s1429_s28 + $0x3e0] sm:$0xff]  ;;  %344 = vst [vmem:[%s1434_s29 + $0xf0] sm:$0xff] %v343_v30 }
  0x33   : > { %v347_v32 = vld [vmem:[%s1429_s28 + $0x400] sm:$0xff]  ;;  %346 = vst [vmem:[%s1434_s29 + $0xf8] sm:$0xff] %v345_v31 }
  0x34   : > { %v349_v33 = vld [vmem:[%s1429_s28 + $0x420] sm:$0xff]  ;;  %348 = vst [vmem:[%s1434_s29 + $0x100] sm:$0xff] %v347_v32 }
  0x35   : > { %v351_v34 = vld [vmem:[%s1429_s28 + $0x440] sm:$0xff]  ;;  %350 = vst [vmem:[%s1434_s29 + $0x108] sm:$0xff] %v349_v33 }
  0x36   : > { %v353_v35 = vld [vmem:[%s1429_s28 + $0x460] sm:$0xff]  ;;  %352 = vst [vmem:[%s1434_s29 + $0x110] sm:$0xff] %v351_v34 }
  0x37   : > { %354 = vst [vmem:[%s1434_s29 + $0x118] sm:$0xff] %v353_v35 }
  0x38 PF: > { %p1053_p8 = scmp.ge.s32.totalorder %s1359_s16, 1  ;;  %p367_p9 = scmp.lt.s32.totalorder %s1359_s16, 5 }
  0x3a   : > { %p368_p10 = pnand %p1053_p8, %p367_p9 }
  0x3b   : > { %s374_s30 = sand.u32 (!%p368_p10), 1, %s1343_s12   ;;  %s1055_s18 = sshll.u32 (!%p368_p10), %s1351_s14, 1 }
  0x3c   : > { %371 = sbr.rel (%p368_p10) target bundleno = 284 (0x11c), region = 66  ;;  %p425_p11 = scmp.lt.s32.totalorder (!%p368_p10), %s1055_s18, 7 }
  0x3d   : > { %s1280_s4 = smul.u32 (!%p368_p10), 288, %s374_s30  ;;  %s1054_s24 = sshll.u32 (!%p368_p10), %s374_s30, 5 }
  0x3e   : > { %s409_s25 = scalar_lea.vmem (!%p368_p10), [#allocation4], %s1054_s24 }
  0x3f   : > { %s1510_s5 = scalar_lea.vmem (!%p368_p10), [#allocation3], %s1280_s4 }
  0x41   : > { %v1138_v36 = vld [vmem:[%s1510_s5 + $0x70] sm:$0xf]  ;;  %v1255_v37 = vld [vmem:[%s1510_s5 + $0x74] sm:$0xf0]  ;;  %vm706_vm0 = vcmask 261120   ;;  %s1671_s18 = smov (!%p425_p11, %s1055_s18), 7 }
  0x42   : > { %v1202_v38 = vld [vmem:[%s1510_s5 + $0xf0] sm:$0xf]  ;;  %v1139_v39 = vor.u32 %v1255_v37, %v1138_v36  ;;  %v1271_v40 = vld [vmem:[%s1510_s5 + $0xf4] sm:$0xf0]  ;;  %v1254_v45 = vld [vmem:[%s1510_s5 + $0x74] sm:$0xf]  ;;  %s427_s23 = scalar_lea.vmem %s1661_s2, %s1671_s18 }
  0x43   : > { %v1218_v41 = vld [vmem:[%s1510_s5 + $0x110] sm:$0xf]  ;;  %v1275_v42 = vld [vmem:[%s1510_s5 + $0x114] sm:$0xf0]  ;;  %v1203_v43 = vor.u32 %v1271_v40, %v1202_v38  ;;  %v1140_v46 = vld [vmem:[%s1510_s5 + $0x78] sm:$0xf0] }
  0x44   : > { %v1219_v44 = vor.u32 %v1275_v42, %v1218_v41  ;;  %v1130_v47 = vld [vmem:[%s1510_s5 + $0x60] sm:$0xf]  ;;  %v1066_v48 = vld [vmem:[%s1659_s0 + $0x8] sm:$0xf]  ;;  %v1236_v49 = vld [vmem:[%s1659_s0 + $0x10] sm:$0xf0]  ;;  %713 = vmatpush.bf16.msra.mxu0 %v1139_v39  ;;  %v1143_v50 = vor.u32 %v1254_v45, %v1140_v46 }
  0x45   : > { %v1253_v51 = vld [vmem:[%s1510_s5 + $0x64] sm:$0xf0]  ;;  %v1194_v52 = vld [vmem:[%s1510_s5 + $0xe0] sm:$0xf]  ;;  %732 = vmatpush.bf16.msra.mxu1 %v1203_v43  ;;  %v1252_v58 = vld [vmem:[%s1510_s5 + $0x64] sm:$0xf]  ;;  %v1539_v4 = vor.u32 %v1236_v49, %v1066_v48 }
  0x46   : > { %v1269_v53 = vld [vmem:[%s1510_s5 + $0xe4] sm:$0xf0]  ;;  %757 = vmatpush.bf16.msra.mxu2 %v1219_v44  ;;  %v1131_v54 = vor.u32 %v1253_v51, %v1130_v47  ;;  %v1210_v56 = vld [vmem:[%s1510_s5 + $0x100] sm:$0xf]  ;;  %770 = vmatpush.bf16.msra.mxu3 %v1143_v50  ;;  %v1132_v60 = vld [vmem:[%s1510_s5 + $0x68] sm:$0xf0] }
  0x47   : > { %v1195_v55 = vor.u32 %v1269_v53, %v1194_v52  ;;  %v1273_v57 = vld [vmem:[%s1510_s5 + $0x104] sm:$0xf0]  ;;  %v1270_v61 = vld [vmem:[%s1510_s5 + $0xf4] sm:$0xf]  ;;  %v1204_v62 = vld [vmem:[%s1510_s5 + $0xf8] sm:$0xf0]  ;;  %v1135_v63 = vor.u32 %v1252_v58, %v1132_v60 }
  0x48   : > { %v1211_v59 = vor.u32 %v1273_v57, %v1210_v56  ;;  %v1207_v0 = vor.u32 %v1270_v61, %v1204_v62  ;;  %v1122_v1 = vld [vmem:[%s1510_s5 + $0x50] sm:$0xf]  ;;  %v1251_v2 = vld [vmem:[%s1510_s5 + $0x54] sm:$0xf0]  ;;  %714 = vmatpush.bf16.msra.mxu0 %v1131_v54  ;;  %v1250_v7 = vld [vmem:[%s1510_s5 + $0x54] sm:$0xf] }
  0x49   : > { %v1186_v3 = vld [vmem:[%s1510_s5 + $0xd0] sm:$0xf]  ;;  %v1123_v5 = vor.u32 %v1251_v2, %v1122_v1  ;;  %v1267_v6 = vld [vmem:[%s1510_s5 + $0xd4] sm:$0xf0]  ;;  %v1124_v8 = vld [vmem:[%s1510_s5 + $0x58] sm:$0xf0]  ;;  %733 = vmatpush.bf16.msra.mxu1 %v1195_v55 }
  0x4a   : > { %758 = vmatpush.bf16.msra.mxu2 %v1211_v59  ;;  %v1187_v9 = vor.u32 %v1267_v6, %v1186_v3  ;;  %v1268_v10 = vld [vmem:[%s1510_s5 + $0xe4] sm:$0xf]  ;;  %v1196_v11 = vld [vmem:[%s1510_s5 + $0xe8] sm:$0xf0]  ;;  %v1114_v12 = vld [vmem:[%s1510_s5 + $0x40] sm:$0xf]  ;;  %771 = vmatpush.bf16.msra.mxu3 %v1135_v63  ;;  %v1127_v13 = vor.u32 %v1250_v7, %v1124_v8 }
  0x4b   : > { %v1199_v14 = vor.u32 %v1268_v10, %v1196_v11  ;;  %v1249_v15 = vld [vmem:[%s1510_s5 + $0x44] sm:$0xf0]  ;;  %v1178_v16 = vld [vmem:[%s1510_s5 + $0xc0] sm:$0xf]  ;;  %v1248_v18 = vld [vmem:[%s1510_s5 + $0x44] sm:$0xf] }
  0x4c   : > { %v1265_v17 = vld [vmem:[%s1510_s5 + $0xc4] sm:$0xf0]  ;;  %v1116_v19 = vld [vmem:[%s1510_s5 + $0x48] sm:$0xf0]  ;;  %v1266_v20 = vld [vmem:[%s1510_s5 + $0xd4] sm:$0xf]  ;;  %715 = vmatpush.bf16.msra.mxu0 %v1123_v5  ;;  %v1115_v21 = vor.u32 %v1249_v15, %v1114_v12 }
  0x4d   : > { %1224 = vmatmul.msk.bf16.vlgmr.msra.gmra.mxu2 %vm706_vm0, %v1539_v4  ;;  %v1188_v22 = vld [vmem:[%s1510_s5 + $0xd8] sm:$0xf0]  ;;  %734 = vmatpush.bf16.msra.mxu1 %v1187_v9  ;;  %v1179_v23 = vor.u32 %v1265_v17, %v1178_v16  ;;  %v1106_v24 = vld [vmem:[%s1510_s5 + $0x30] sm:$0xf]  ;;  %v1247_v25 = vld [vmem:[%s1510_s5 + $0x34] sm:$0xf0]  ;;  %v1119_v26 = vor.u32 %v1248_v18, %v1116_v19 }
  0x4e   : > { %789 = vmatpush.bf16.msrb.mxu2 %v1207_v0  ;;  %772 = vmatpush.bf16.msra.mxu3 %v1127_v13  ;;  %v1191_v27 = vor.u32 %v1266_v20, %v1188_v22  ;;  %v1170_v28 = vld [vmem:[%s1510_s5 + $0xb0] sm:$0xf]  ;;  %v1263_v29 = vld [vmem:[%s1510_s5 + $0xb4] sm:$0xf0]  ;;  %v1246_v30 = vld [vmem:[%s1510_s5 + $0x34] sm:$0xf]  ;;  %v1107_v34 = vor.u32 %v1247_v25, %v1106_v24 }
  0x4f   : > { %v1108_v31 = vld [vmem:[%s1510_s5 + $0x38] sm:$0xf0]  ;;  %v1264_v32 = vld [vmem:[%s1510_s5 + $0xc4] sm:$0xf]  ;;  %v1180_v33 = vld [vmem:[%s1510_s5 + $0xc8] sm:$0xf0]  ;;  %v1171_v35 = vor.u32 %v1263_v29, %v1170_v28 }
  0x50   : > { %716 = vmatpush.bf16.msra.mxu0 %v1115_v21  ;;  %v1098_v36 = vld [vmem:[%s1510_s5 + $0x20] sm:$0xf]  ;;  %v1245_v37 = vld [vmem:[%s1510_s5 + $0x24] sm:$0xf0]  ;;  %v1111_v38 = vor.u32 %v1246_v30, %v1108_v31  ;;  %v1183_v39 = vor.u32 %v1264_v32, %v1180_v33  ;;  %v1244_v42 = vld [vmem:[%s1510_s5 + $0x24] sm:$0xf] }
  0x51   : > { %735 = vmatpush.bf16.msra.mxu1 %v1179_v23  ;;  %v1162_v40 = vld [vmem:[%s1510_s5 + $0xa0] sm:$0xf]  ;;  %v1261_v41 = vld [vmem:[%s1510_s5 + $0xa4] sm:$0xf0]  ;;  %v1100_v43 = vld [vmem:[%s1510_s5 + $0x28] sm:$0xf0]  ;;  %v1099_v46 = vor.u32 %v1245_v37, %v1098_v36 }
  0x52   : > { %790 = vmatpush.bf16.msrb.mxu2 %v1199_v14  ;;  %773 = vmatpush.bf16.msra.mxu3 %v1119_v26  ;;  %v1262_v44 = vld [vmem:[%s1510_s5 + $0xb4] sm:$0xf]  ;;  %v1172_v45 = vld [vmem:[%s1510_s5 + $0xb8] sm:$0xf0]  ;;  %v1078_v47 = vld [vmem:[%s1659_s0 + $0x20] sm:$0xf]  ;;  %v1163_v48 = vor.u32 %v1261_v41, %v1162_v40  ;;  %v1103_v52 = vor.u32 %v1244_v42, %v1100_v43 }
  0x53   : > { %v1239_v49 = vld [vmem:[%s1659_s0 + $0x28] sm:$0xf0]  ;;  %v1090_v50 = vld [vmem:[%s1510_s5 + $0x10] sm:$0xf]  ;;  %v1243_v51 = vld [vmem:[%s1510_s5 + $0x14] sm:$0xf0]  ;;  %v1175_v53 = vor.u32 %v1262_v44, %v1172_v45 }
  0x54   : > { %717 = vmatpush.bf16.msra.mxu0 %v1107_v34  ;;  %v1154_v54 = vld [vmem:[%s1510_s5 + $0x90] sm:$0xf]  ;;  %v1259_v55 = vld [vmem:[%s1510_s5 + $0x94] sm:$0xf0]  ;;  %v1242_v56 = vld [vmem:[%s1510_s5 + $0x14] sm:$0xf]  ;;  %v1586_v60 = vor.u32 %v1239_v49, %v1078_v47  ;;  %v1091_v61 = vor.u32 %v1243_v51, %v1090_v50 }
  0x55   : > { %736 = vmatpush.bf16.msra.mxu1 %v1171_v35  ;;  %v1092_v57 = vld [vmem:[%s1510_s5 + $0x18] sm:$0xf0]  ;;  %v1260_v58 = vld [vmem:[%s1510_s5 + $0xa4] sm:$0xf]  ;;  %v1164_v59 = vld [vmem:[%s1510_s5 + $0xa8] sm:$0xf0]  ;;  %v1155_v63 = vor.u32 %v1259_v55, %v1154_v54 }
  0x56   : > { %791 = vmatpush.bf16.msrb.mxu2 %v1191_v27  ;;  %774 = vmatpush.bf16.msra.mxu3 %v1111_v38  ;;  %v1082_v62 = vld [vmem:[%s1510_s5] sm:$0xf]  ;;  %v1241_v0 = vld [vmem:[%s1510_s5 + $0x4] sm:$0xf0]  ;;  %v1095_v3 = vor.u32 %v1242_v56, %v1092_v57  ;;  %v1167_v5 = vor.u32 %v1260_v58, %v1164_v59  ;;  %v1240_v6 = vld [vmem:[%s1510_s5 + $0x4] sm:$0xf] }
  0x57   : > { %v1146_v1 = vld [vmem:[%s1510_s5 + $0x80] sm:$0xf]  ;;  %v1257_v2 = vld [vmem:[%s1510_s5 + $0x84] sm:$0xf0]  ;;  %v1274_v7 = vld [vmem:[%s1510_s5 + $0x114] sm:$0xf]  ;;  %v1083_v12 = vor.u32 %v1241_v0, %v1082_v62 }
  0x58   : > { %718 = vmatpush.bf16.msra.mxu0 %v1099_v46  ;;  %v1220_v8 = vld [vmem:[%s1510_s5 + $0x118] sm:$0xf0]  ;;  %v1084_v9 = vld [vmem:[%s1510_s5 + $0x8] sm:$0xf0]  ;;  %v1258_v10 = vld [vmem:[%s1510_s5 + $0x94] sm:$0xf]  ;;  %v1147_v15 = vor.u32 %v1257_v2, %v1146_v1 }
  0x59   : > { %737 = vmatpush.bf16.msra.mxu1 %v1163_v48  ;;  %v1156_v11 = vld [vmem:[%s1510_s5 + $0x98] sm:$0xf0]  ;;  %v1058_v13 = vld [vmem:[%s1659_s0] sm:$0xf]  ;;  %v1235_v14 = vld [vmem:[%s1659_s0 + $0x8] sm:$0xf0]  ;;  %v1223_v18 = vor.u32 %v1274_v7, %v1220_v8  ;;  %v1087_v19 = vor.u32 %v1240_v6, %v1084_v9 }
  0x5a   : > { %792 = vmatpush.bf16.msrb.mxu2 %v1183_v39  ;;  %775 = vmatpush.bf16.msra.mxu3 %v1103_v52  ;;  %v1234_v16 = vld [vmem:[%s1659_s0 + $0x4] sm:$0xf]  ;;  %v1060_v17 = vld [vmem:[%s1659_s0 + $0xc] sm:$0xf0]  ;;  %v1159_v20 = vor.u32 %v1258_v10, %v1156_v11  ;;  %v1212_v22 = vld [vmem:[%s1510_s5 + $0x108] sm:$0xf0]  ;;  %v1059_v23 = vor.u32 %v1235_v14, %v1058_v13 }
  0x5b   : > { %v1272_v21 = vld [vmem:[%s1510_s5 + $0x104] sm:$0xf]  ;;  %v1148_v25 = vld [vmem:[%s1510_s5 + $0x88] sm:$0xf0]  ;;  %v1063_v26 = vor.u32 %v1234_v16, %v1060_v17  ;;  %v1070_v29 = vld [vmem:[%s1659_s0 + $0x18] sm:$0xf] }
  0x5c   : > { %719 = vmatpush.bf16.msra.mxu0 %v1091_v61  ;;  %v1256_v24 = vld [vmem:[%s1510_s5 + $0x84] sm:$0xf]  ;;  %v1215_v27 = vor.u32 %v1272_v21, %v1212_v22  ;;  %v1237_v31 = vld [vmem:[%s1659_s0 + $0x1c] sm:$0xf]  ;;  %v1072_v32 = vld [vmem:[%s1659_s0 + $0x24] sm:$0xf0] }
  0x5d   : > { %1225 = vmatmul.msk.bf16.gmra.mxu2 %vm706_vm0, %v1586_v60  ;;  %738 = vmatpush.bf16.msra.mxu1 %v1155_v63  ;;  %v1151_v28 = vor.u32 %v1256_v24, %v1148_v25  ;;  %v1238_v30 = vld [vmem:[%s1659_s0 + $0x20] sm:$0xf0]  ;;  %v1075_v34 = vor.u32 %v1237_v31, %v1072_v32  ;;  %v854_v51 = vld [vmem:[%s427_s23] sm:$0x3]  ;;  %s1276_s12 = sshll.u32 (%p1416_p6), %s1351_s14, 3 }
  0x5e   : > { %793 = vmatpush.bf16.msrb.mxu2 %v1175_v53  ;;  %776 = vmatpush.bf16.msra.mxu3 %v1095_v3  ;;  %v1071_v33 = vor.u32 %v1238_v30, %v1070_v29  ;;  %v856_v54 = vperm.slane %v854_v51, 0  ;;  %v857_v59 = vperm.slane %v854_v51, 1  ;;  %s896_s27 = scalar_lea.vmem (%p1416_p6), %s1662_s3, %s1276_s12 }
  0x60   : > { %720 = vmatpush.bf16.msra.mxu0 %v1083_v12 }
  0x61   : > { %739 = vmatpush.bf16.msra.mxu1 %v1147_v15 }
  0x62   : > { %794 = vmatpush.bf16.msrb.mxu2 %v1167_v5  ;;  %777 = vmatpush.bf16.msra.mxu3 %v1087_v19 }
  0x63   : > { %721 = vmatmul.bf16.vlgmr.msra.gmra.mxu0 %v1059_v23 }
  0x64   : > { %814 = vmatpush.bf16.msrb.mxu0 %v1223_v18  ;;  %740 = vmatmul.bf16.vlgmr.msra.gmra.mxu1 %v1063_v26 }
  0x65   : > { %1277 = vmatpush.bf16.msrb.mxu1 %v1223_v18  ;;  %778 = vmatmul.bf16.vlgmr.msra.gmra.mxu3 %v1059_v23 }
  0x66   : > { %795 = vmatpush.bf16.msrb.mxu2 %v1159_v20 }
  0x68   : > { %815 = vmatpush.bf16.msrb.mxu0 %v1215_v27 }
  0x69   : > { %1278 = vmatpush.bf16.msrb.mxu1 %v1215_v27 }
  0x6a   : > { %796 = vmatpush.bf16.msrb.mxu2 %v1151_v28 }
  0x6d   : > { %797 = vmatmul.bf16.vlgmr.msrb.gmra.mxu2 %v1063_v26 }
  0x73   : > { %726 = vmatmul.bf16.gmra.mxu0 %v1071_v33 }
  0x74   : > { %745 = vmatmul.bf16.gmra.mxu1 %v1075_v34 }
  0x75   : > { %783 = vmatmul.bf16.gmra.mxu3 %v1071_v33 }
  0x7d   : > { %802 = vmatmul.bf16.gmra.mxu2 %v1075_v34 }
  0x83   : > { %1226 = vmatmul.msk.bf16.vlgmr.msrb.gmra.mxu0 %vm706_vm0, %v1539_v4 }
  0x84   : > { %1227 = vmatmul.msk.bf16.vlgmr.msrb.gmra.mxu1 %vm706_vm0, %v1586_v60 }
  0xd0   : > { %v760_v35 = vpop.f32.mrf.mxu2 }
  0xd8   : > { %v762_v36 = vpop.f32.mrf.mxu2 }
  0xe0   : > { %v765_v37 = vpop.f32.mrf.mxu2  ;;  %v722_v38 = vpop.f32.mrf.mxu0 }
  0xe1   : > { %v741_v39 = vpop.f32.mrf.mxu1 }
  0xe2   : > { %v742_v49 = vadd.f32 %v741_v39, %v722_v38 }
  0xe4   : > { %v761_v53 = vadd.f32 %v760_v35, %v742_v49 }
  0xe6   : > { %v860_v62 = vadd.f32 %v856_v54, %v761_v53 }
  0xe8   : > { %v767_v40 = vpop.f32.mrf.mxu2  ;;  %v724_v41 = vpop.f32.mrf.mxu0  ;;  %v868_v8 = vmax.f32 %v860_v62, 0.0 }
  0xe9   : > { %v779_v42 = vpop.f32.mrf.mxu3  ;;  %v743_v43 = vpop.f32.mrf.mxu1 }
  0xea   : > { %v744_v63 = vadd.f32 %v743_v43, %v724_v41 }
  0xec   : > { %v763_v9 = vadd.f32 %v762_v36, %v744_v63 }
  0xee   : > { %v862_v21 = vadd.f32 %v856_v54, %v763_v9 }
  0xf0   : > { %v798_v44 = vpop.f32.mrf.mxu2  ;;  %v727_v45 = vpop.f32.mrf.mxu0  ;;  %v870_v28 = vmax.f32 %v862_v21, 0.0 }
  0xf1   : > { %v746_v46 = vpop.f32.mrf.mxu1  ;;  %v781_v47 = vpop.f32.mrf.mxu3  ;;  %v799_v57 = vadd.f32 %v798_v44, %v779_v42 }
  0xf2   : > { %v747_v52 = vadd.f32 %v746_v46, %v727_v45 }
  0xf4   : > { %v766_v56 = vadd.f32 %v765_v37, %v747_v52 }
  0xf6   : > { %v864_v2 = vadd.f32 %v856_v54, %v766_v56 }
  0xf8   : > { %v800_v4 = vpop.f32.mrf.mxu2  ;;  %v729_v48 = vpop.f32.mrf.mxu0  ;;  %v872_v11 = vmax.f32 %v864_v2, 0.0 }
  0xf9   : > { %v748_v50 = vpop.f32.mrf.mxu1  ;;  %v784_v55 = vpop.f32.mrf.mxu3  ;;  %v801_v14 = vadd.f32 %v800_v4, %v781_v47 }
  0xfa   : > { %v749_v3 = vadd.f32 %v748_v50, %v729_v48 }
  0xfc   : > { %v768_v12 = vadd.f32 %v767_v40, %v749_v3 }
  0xfe   : > { %v866_v24 = vadd.f32 %v856_v54, %v768_v12 }
 0x100   : > { %v803_v58 = vpop.f32.mrf.mxu2  ;;  %v817_v61 = vpop.f32.mrf.mxu0  ;;  %v874_v30 = vmax.f32 %v866_v24, 0.0 }
 0x101   : > { %v804_v60 = vadd.f32 %v803_v58, %v784_v55  ;;  %v818_v0 = vadd.f32 %v817_v61, %v799_v57  ;;  %v822_v1 = vpop.f32.mrf.mxu1  ;;  %v786_v15 = vpop.f32.mrf.mxu3 }
 0x103   : > { %v823_v5 = vadd.f32 %v822_v1, %v804_v60  ;;  %v861_v6 = vadd.f32 %v857_v59, %v818_v0 }
 0x105   : > { %v865_v7 = vadd.f32 %v857_v59, %v823_v5  ;;  %v869_v10 = vmax.f32 %v861_v6, 0.0 }
 0x107   : > { %v873_v13 = vmax.f32 %v865_v7, 0.0  ;;  %v876_v16 = vpack.c.bf16 %v869_v10, %v868_v8 }
 0x108   : > { %v805_v17 = vpop.f32.mrf.mxu2  ;;  %v819_v20 = vpop.f32.mrf.mxu0 }
 0x109   : > { %v878_v18 = vpack.c.bf16 %v873_v13, %v872_v11  ;;  %v806_v19 = vadd.f32 %v805_v17, %v786_v15  ;;  %880 = vst [vmem:[%s409_s25] sm:$0xff] %v876_v16  ;;  %v820_v22 = vadd.f32 %v819_v20, %v801_v14  ;;  %v824_v23 = vpop.f32.mrf.mxu1 }
 0x10b   : > { %882 = vst [vmem:[%s409_s25 + $0x10] sm:$0xff] %v878_v18  ;;  %v825_v25 = vadd.f32 %v824_v23, %v806_v19  ;;  %v863_v26 = vadd.f32 %v857_v59, %v820_v22 }
 0x10d   : > { %v867_v27 = vadd.f32 %v857_v59, %v825_v25  ;;  %v871_v29 = vmax.f32 %v863_v26, 0.0 }
 0x10f   : > { %v875_v31 = vmax.f32 %v867_v27, 0.0  ;;  %v877_v32 = vpack.c.bf16 %v871_v29, %v870_v28  ;;  %890 = sbr.rel (!%p1416_p6) target bundleno = 284 (0x11c), region = 82 }
 0x110   : > { %v931_v34 = vld [vmem:[%s409_s25] sm:$0xff] (%p1416_p6) }
 0x111   : > { %v879_v33 = vpack.c.bf16 %v875_v31, %v874_v30  ;;  %881 = vst [vmem:[%s409_s25 + $0x8] sm:$0xff] %v877_v32 }
 0x112   : > { %v935_v36 = vld [vmem:[%s409_s25 + $0x10] sm:$0xff] (%p1416_p6)  ;;  %932 = vst [vmem:[%s896_s27] sm:$0xff] (%p1416_p6), %v931_v34 }
 0x113   : > { %883 = vst [vmem:[%s409_s25 + $0x18] sm:$0xff] %v879_v33 }
 0x114   : > { %936 = vst [vmem:[%s896_s27 + $0x40] sm:$0xff] %v935_v36 }
 0x118   : > { %v933_v35 = vld [vmem:[%s409_s25 + $0x8] sm:$0xff] }
 0x119   : > { %934 = vst [vmem:[%s896_s27 + $0x20] sm:$0xff] %v933_v35 }
 0x11a   : > { %v937_v37 = vld [vmem:[%s409_s25 + $0x18] sm:$0xff] }
 0x11b   : > { %938 = vst [vmem:[%s896_s27 + $0x60] sm:$0xff] %v937_v37 }
 0x11c PF: > { %s13_s16 = sadd.s32 1, %s1359_s16   ;;  %s1664_s12 = smov %s1347_s13 }
 0x11d   : > { %p10_p12 = scmp.ge.s32.totalorder %s13_s16, 6   ;;  %s1665_s13 = smov %s1421_s22 }
 0x11e   : > { %s1666_s14 = smov %s1355_s15  ;;  %s1667_s15 = smov %s1669_s17 }
 0x11f   :  { %12 = sbr.rel (!%p10_p12) target bundleno = 3 (0x3), region = 157 }

// kernel: ssd_detector_forward.7
= control target key start
LH: loop header
LB: loop body
LE: loop exit
PB: predicated region body
PF: predicated region fallthrough
CT: control target
= control target key end

     0   :  { %s2043_s12 = smov 0   ;;  %s2045_s13 = smov 0   ;;  %s2632_s0 = inlined_call_operand.vmem [shape: bf16[128,288], index: 0, kind: input, shape index: {}]   ;;  %s2633_s1 = inlined_call_operand.vmem [shape: bf16[288,512], index: 1, kind: input, shape index: {}]   ;;  %s2634_s2 = inlined_call_operand.vmem [shape: f32[1,512], index: 2, kind: input, shape index: {}]   ;;  %s2635_s3 = inlined_call_operand.vmem [shape: bf16[128,512], index: 3, kind: output, shape index: {}]  }
   0x1   :  { %s2047_s14 = smov 0   ;;  %s2049_s15 = smov 0  }
   0x2   :  { %s2051_s16 = smov 0  }
   0x3 LB: > { %s28_s17 = sadd.s32 1, %s2017_s15  ;;  %s1598_s18 = sadd.s32 4294967295, %s2021_s16   ;;  %s2021_s16 = sphi %s2051_s16, %s13_s16   ;;  %s2017_s15 = sphi %s2049_s15, %s2640_s15   ;;  %s2013_s14 = sphi %s2047_s14, %s2639_s14   ;;  %s2009_s13 = sphi %s2045_s13, %s2638_s13   ;;  %s2005_s12 = sphi %s2043_s12, %s2637_s12  }
   0x4   : > { %p30_p0 = scmp.ge.s32.totalorder %s28_s17, 2  ;;  %p76_p1 = scmp.ne.s32.totalorder %s2009_s13, %s2005_s12 }
   0x5   : > { %p77_p2 = scmp.eq.s32.totalorder %s2021_s16, 0  ;;  %p134_p4 = scmp.eq.s32.totalorder %s1598_s18, 1 }
   0x6   : > { %s2642_s17 = smov (%p30_p0, %s28_s17), 0  ;;  %s69_s20 = sadd.s32 1, %s2009_s13 }
   0x7   : > { %p78_p3 = por %p77_p2, %p76_p1  ;;  %s65_s19 = ssub.s32 %s2017_s15, %s2642_s17 }
   0x8   : > { %p67_p5 = scmp.eq.s32.totalorder %s65_s19, 0  ;;  %p2078_p6 = por %p134_p4, %p76_p1 }
   0x9   : > { %p1602_p7 = scmp.ge.s32.totalorder %s2021_s16, 2 }
   0xa   : > { %s2083_s22 = scalar_select %p67_p5, %s2009_s13, %s69_s20  }
   0xb   : > { %171 = sbr.rel (%p1602_p7) target bundleno = 56 (0x38), region = 20 }
  0x10   : > { %174 = sbr.rel (!%p78_p3) target bundleno = 56 (0x38), region = 24  ;;  %s176_s23 = sand.u32 (%p78_p3), 1, %s2009_s13  }
  0x11   : > { %s1869_s24 = sshll.u32 (%p78_p3), %s2017_s15, 3  ;;  %s1941_s25 = smul.u32 (%p78_p3), 288, %s176_s23 }
  0x12   : > { %s2091_s28 = scalar_lea.vmem (%p78_p3), %s2633_s1, %s1869_s24 }
  0x13   : > { %v283_v0 = vld [vmem:[%s2091_s28] sm:$0xff] (%p78_p3)  ;;  %v285_v1 = vld [vmem:[%s2091_s28 + $0x10] sm:$0xff] (%p78_p3)  ;;  %s2096_s29 = scalar_lea.vmem (%p78_p3), [#allocation3], %s1941_s25 }
  0x14   : > { %v287_v2 = vld [vmem:[%s2091_s28 + $0x20] sm:$0xff] (%p78_p3)  ;;  %284 = vst [vmem:[%s2096_s29] sm:$0xff] (%p78_p3), %v283_v0  ;;  %v289_v3 = vld [vmem:[%s2091_s28 + $0x30] sm:$0xff] (%p78_p3) }
  0x15   : > { %286 = vst [vmem:[%s2096_s29 + $0x8] sm:$0xff] %v285_v1  ;;  %v291_v4 = vld [vmem:[%s2091_s28 + $0x40] sm:$0xff]  ;;  %v293_v5 = vld [vmem:[%s2091_s28 + $0x50] sm:$0xff] }
  0x16   : > { %288 = vst [vmem:[%s2096_s29 + $0x10] sm:$0xff] %v287_v2  ;;  %v295_v6 = vld [vmem:[%s2091_s28 + $0x60] sm:$0xff]  ;;  %v297_v7 = vld [vmem:[%s2091_s28 + $0x70] sm:$0xff] }
  0x17   : > { %290 = vst [vmem:[%s2096_s29 + $0x18] sm:$0xff] %v289_v3  ;;  %v299_v8 = vld [vmem:[%s2091_s28 + $0x80] sm:$0xff]  ;;  %v301_v9 = vld [vmem:[%s2091_s28 + $0x90] sm:$0xff] }
  0x18   : > { %292 = vst [vmem:[%s2096_s29 + $0x20] sm:$0xff] %v291_v4  ;;  %v303_v10 = vld [vmem:[%s2091_s28 + $0xa0] sm:$0xff]  ;;  %v305_v11 = vld [vmem:[%s2091_s28 + $0xb0] sm:$0xff] }
  0x19   : > { %294 = vst [vmem:[%s2096_s29 + $0x28] sm:$0xff] %v293_v5  ;;  %v307_v12 = vld [vmem:[%s2091_s28 + $0xc0] sm:$0xff]  ;;  %v309_v13 = vld [vmem:[%s2091_s28 + $0xd0] sm:$0xff] }
  0x1a   : > { %296 = vst [vmem:[%s2096_s29 + $0x30] sm:$0xff] %v295_v6  ;;  %v311_v14 = vld [vmem:[%s2091_s28 + $0xe0] sm:$0xff]  ;;  %v313_v15 = vld [vmem:[%s2091_s28 + $0xf0] sm:$0xff] }
  0x1b   : > { %298 = vst [vmem:[%s2096_s29 + $0x38] sm:$0xff] %v297_v7  ;;  %v315_v16 = vld [vmem:[%s2091_s28 + $0x100] sm:$0xff]  ;;  %v317_v17 = vld [vmem:[%s2091_s28 + $0x110] sm:$0xff] }
  0x1c   : > { %300 = vst [vmem:[%s2096_s29 + $0x40] sm:$0xff] %v299_v8  ;;  %v319_v18 = vld [vmem:[%s2091_s28 + $0x120] sm:$0xff]  ;;  %v321_v19 = vld [vmem:[%s2091_s28 + $0x130] sm:$0xff] }
  0x1d   : > { %302 = vst [vmem:[%s2096_s29 + $0x48] sm:$0xff] %v301_v9  ;;  %v323_v20 = vld [vmem:[%s2091_s28 + $0x140] sm:$0xff]  ;;  %v325_v21 = vld [vmem:[%s2091_s28 + $0x150] sm:$0xff] }
  0x1e   : > { %304 = vst [vmem:[%s2096_s29 + $0x50] sm:$0xff] %v303_v10  ;;  %v327_v22 = vld [vmem:[%s2091_s28 + $0x160] sm:$0xff]  ;;  %v329_v23 = vld [vmem:[%s2091_s28 + $0x170] sm:$0xff] }
  0x1f   : > { %306 = vst [vmem:[%s2096_s29 + $0x58] sm:$0xff] %v305_v11  ;;  %v331_v24 = vld [vmem:[%s2091_s28 + $0x180] sm:$0xff]  ;;  %v333_v25 = vld [vmem:[%s2091_s28 + $0x190] sm:$0xff] }
  0x20   : > { %308 = vst [vmem:[%s2096_s29 + $0x60] sm:$0xff] %v307_v12  ;;  %v335_v26 = vld [vmem:[%s2091_s28 + $0x1a0] sm:$0xff]  ;;  %v337_v27 = vld [vmem:[%s2091_s28 + $0x1b0] sm:$0xff] }
  0x21   : > { %310 = vst [vmem:[%s2096_s29 + $0x68] sm:$0xff] %v309_v13  ;;  %v339_v28 = vld [vmem:[%s2091_s28 + $0x1c0] sm:$0xff]  ;;  %v341_v29 = vld [vmem:[%s2091_s28 + $0x1d0] sm:$0xff] }
  0x22   : > { %312 = vst [vmem:[%s2096_s29 + $0x70] sm:$0xff] %v311_v14  ;;  %v343_v30 = vld [vmem:[%s2091_s28 + $0x1e0] sm:$0xff]  ;;  %v345_v31 = vld [vmem:[%s2091_s28 + $0x1f0] sm:$0xff] }
  0x23   : > { %314 = vst [vmem:[%s2096_s29 + $0x78] sm:$0xff] %v313_v15  ;;  %v347_v32 = vld [vmem:[%s2091_s28 + $0x200] sm:$0xff]  ;;  %v349_v33 = vld [vmem:[%s2091_s28 + $0x210] sm:$0xff] }
  0x24   : > { %316 = vst [vmem:[%s2096_s29 + $0x80] sm:$0xff] %v315_v16  ;;  %v351_v34 = vld [vmem:[%s2091_s28 + $0x220] sm:$0xff]  ;;  %v353_v35 = vld [vmem:[%s2091_s28 + $0x230] sm:$0xff] }
  0x25   : > { %318 = vst [vmem:[%s2096_s29 + $0x88] sm:$0xff] %v317_v17 }
  0x26   : > { %320 = vst [vmem:[%s2096_s29 + $0x90] sm:$0xff] %v319_v18 }
  0x27   : > { %322 = vst [vmem:[%s2096_s29 + $0x98] sm:$0xff] %v321_v19 }
  0x28   : > { %324 = vst [vmem:[%s2096_s29 + $0xa0] sm:$0xff] %v323_v20 }
  0x29   : > { %326 = vst [vmem:[%s2096_s29 + $0xa8] sm:$0xff] %v325_v21 }
  0x2a   : > { %328 = vst [vmem:[%s2096_s29 + $0xb0] sm:$0xff] %v327_v22 }
  0x2b   : > { %330 = vst [vmem:[%s2096_s29 + $0xb8] sm:$0xff] %v329_v23 }
  0x2c   : > { %332 = vst [vmem:[%s2096_s29 + $0xc0] sm:$0xff] %v331_v24 }
  0x2d   : > { %334 = vst [vmem:[%s2096_s29 + $0xc8] sm:$0xff] %v333_v25 }
  0x2e   : > { %336 = vst [vmem:[%s2096_s29 + $0xd0] sm:$0xff] %v335_v26 }
  0x2f   : > { %338 = vst [vmem:[%s2096_s29 + $0xd8] sm:$0xff] %v337_v27 }
  0x30   : > { %340 = vst [vmem:[%s2096_s29 + $0xe0] sm:$0xff] %v339_v28 }
  0x31   : > { %342 = vst [vmem:[%s2096_s29 + $0xe8] sm:$0xff] %v341_v29 }
  0x32   : > { %344 = vst [vmem:[%s2096_s29 + $0xf0] sm:$0xff] %v343_v30 }
  0x33   : > { %346 = vst [vmem:[%s2096_s29 + $0xf8] sm:$0xff] %v345_v31 }
  0x34   : > { %348 = vst [vmem:[%s2096_s29 + $0x100] sm:$0xff] %v347_v32 }
  0x35   : > { %350 = vst [vmem:[%s2096_s29 + $0x108] sm:$0xff] %v349_v33 }
  0x36   : > { %352 = vst [vmem:[%s2096_s29 + $0x110] sm:$0xff] %v351_v34 }
  0x37   : > { %354 = vst [vmem:[%s2096_s29 + $0x118] sm:$0xff] %v353_v35 }
  0x38 PF: > { %p1605_p8 = scmp.ge.s32.totalorder %s2021_s16, 1  ;;  %p367_p9 = scmp.lt.s32.totalorder %s2021_s16, 3 }
  0x3a   : > { %p368_p10 = pnand %p1605_p8, %p367_p9 }
  0x3b   : > { %s374_s30 = sand.u32 (!%p368_p10), 1, %s2005_s12   ;;  %s1607_s20 = sshll.u32 (!%p368_p10), %s2013_s14, 1 }
  0x3c   : > { %371 = sbr.rel (%p368_p10) target bundleno = 429 (0x1ad), region = 66  ;;  %p425_p11 = scmp.lt.s32.totalorder (!%p368_p10), %s1607_s20, 3 }
  0x3d   : > { %s1942_s4 = smul.u32 (!%p368_p10), 288, %s374_s30  ;;  %s1606_s26 = sshll.u32 (!%p368_p10), %s374_s30, 7 }
  0x3e   : > { %s2518_s27 = scalar_lea.vmem (!%p368_p10), [#allocation4], %s1606_s26 }
  0x3f   : > { %s2172_s5 = scalar_lea.vmem (!%p368_p10), [#allocation3], %s1942_s4 }
  0x41   : > { %v1762_v36 = vld [vmem:[%s2172_s5 + $0x70] sm:$0xf]  ;;  %v1909_v37 = vld [vmem:[%s2172_s5 + $0x74] sm:$0xf0]  ;;  %v1754_v41 = vld [vmem:[%s2172_s5 + $0x60] sm:$0xf] }
  0x42   : > { %v1842_v38 = vld [vmem:[%s2172_s5 + $0x110] sm:$0xf]  ;;  %v1763_v39 = vor.u32 %v1909_v37, %v1762_v36  ;;  %v1929_v40 = vld [vmem:[%s2172_s5 + $0x114] sm:$0xf0]  ;;  %v1907_v42 = vld [vmem:[%s2172_s5 + $0x64] sm:$0xf0] }
  0x43   : > { %v1843_v43 = vor.u32 %v1929_v40, %v1842_v38  ;;  %v1834_v44 = vld [vmem:[%s2172_s5 + $0x100] sm:$0xf]  ;;  %v1927_v45 = vld [vmem:[%s2172_s5 + $0x104] sm:$0xf0]  ;;  %v1755_v46 = vor.u32 %v1907_v42, %v1754_v41  ;;  %v1924_v48 = vld [vmem:[%s2172_s5 + $0xf4] sm:$0xf] }
  0x44   : > { %893 = vmatpush.bf16.msra.mxu0 %v1763_v39  ;;  %1931 = vmatpush.bf16.msra.mxu1 %v1763_v39  ;;  %v1618_v47 = vld [vmem:[%s2632_s0 + $0x8] sm:$0xf]  ;;  %v1828_v49 = vld [vmem:[%s2172_s5 + $0xf8] sm:$0xf0]  ;;  %v1835_v50 = vor.u32 %v1927_v45, %v1834_v44  ;;  %v1872_v51 = vld [vmem:[%s2632_s0 + $0x10] sm:$0xf0] }
  0x45   : > { %997 = vmatpush.bf16.msra.mxu2 %v1843_v43  ;;  %v1746_v52 = vld [vmem:[%s2172_s5 + $0x50] sm:$0xf]  ;;  %v1905_v53 = vld [vmem:[%s2172_s5 + $0x54] sm:$0xf0]  ;;  %1939 = vmatpush.bf16.msra.mxu3 %v1843_v43  ;;  %v1831_v54 = vor.u32 %v1924_v48, %v1828_v49  ;;  %v1922_v55 = vld [vmem:[%s2172_s5 + $0xe4] sm:$0xf]  ;;  %v2194_v57 = vor.u32 %v1872_v51, %v1618_v47 }
  0x46   : > { %v1820_v56 = vld [vmem:[%s2172_s5 + $0xe8] sm:$0xf0]  ;;  %v1747_v58 = vor.u32 %v1905_v53, %v1746_v52  ;;  %vm868_vm0 = vcmask 261120   ;;  %v1738_v59 = vld [vmem:[%s2172_s5 + $0x40] sm:$0xf]  ;;  %s2644_s20 = smov (!%p425_p11, %s1607_s20), 3 }
  0x47   : > { %v1903_v60 = vld [vmem:[%s2172_s5 + $0x44] sm:$0xf0]  ;;  %v1823_v61 = vor.u32 %v1922_v55, %v1820_v56  ;;  %v1920_v62 = vld [vmem:[%s2172_s5 + $0xd4] sm:$0xf]  ;;  %v1812_v63 = vld [vmem:[%s2172_s5 + $0xd8] sm:$0xf0]  ;;  %s427_s25 = scalar_lea.vmem %s2634_s2, %s2644_s20 }
  0x48   : > { %894 = vmatpush.bf16.msra.mxu0 %v1755_v46  ;;  %1932 = vmatpush.bf16.msra.mxu1 %v1755_v46  ;;  %v1678_v0 = vld [vmem:[%s2632_s0 + $0x80] sm:$0xf]  ;;  %v1739_v1 = vor.u32 %v1903_v60, %v1738_v59  ;;  %v1887_v2 = vld [vmem:[%s2632_s0 + $0x88] sm:$0xf0]  ;;  %v1730_v3 = vld [vmem:[%s2172_s5 + $0x30] sm:$0xf]  ;;  %v1815_v6 = vor.u32 %v1920_v62, %v1812_v63 }
  0x49   : > { %998 = vmatpush.bf16.msra.mxu2 %v1835_v50  ;;  %1940 = vmatpush.bf16.msra.mxu3 %v1835_v50  ;;  %v1901_v4 = vld [vmem:[%s2172_s5 + $0x34] sm:$0xf0]  ;;  %v2210_v5 = vor.u32 %v1887_v2, %v1678_v0  ;;  %v1918_v7 = vld [vmem:[%s2172_s5 + $0xc4] sm:$0xf]  ;;  %v1804_v8 = vld [vmem:[%s2172_s5 + $0xc8] sm:$0xf0] }
  0x4a   : > { %v1908_v9 = vld [vmem:[%s2172_s5 + $0x74] sm:$0xf]  ;;  %v1764_v10 = vld [vmem:[%s2172_s5 + $0x78] sm:$0xf0]  ;;  %v1731_v11 = vor.u32 %v1901_v4, %v1730_v3  ;;  %v1722_v13 = vld [vmem:[%s2172_s5 + $0x20] sm:$0xf]  ;;  %v1807_v15 = vor.u32 %v1918_v7, %v1804_v8 }
  0x4b   : > { %v1767_v12 = vor.u32 %v1908_v9, %v1764_v10  ;;  %v1899_v14 = vld [vmem:[%s2172_s5 + $0x24] sm:$0xf0]  ;;  %v1630_v16 = vld [vmem:[%s2632_s0 + $0x20] sm:$0xf]  ;;  %v1875_v17 = vld [vmem:[%s2632_s0 + $0x28] sm:$0xf0] }
  0x4c   : > { %1848 = vmatmul.msk.bf16.vlgmr.msra.gmra.mxu2 %vm868_vm0, %v2194_v57  ;;  %895 = vmatpush.bf16.msra.mxu0 %v1747_v58  ;;  %v1723_v18 = vor.u32 %v1899_v14, %v1722_v13  ;;  %v1714_v19 = vld [vmem:[%s2172_s5 + $0x10] sm:$0xf]  ;;  %v1897_v20 = vld [vmem:[%s2172_s5 + $0x14] sm:$0xf0]  ;;  %v1906_v21 = vld [vmem:[%s2172_s5 + $0x64] sm:$0xf]  ;;  %v2234_v29 = vor.u32 %v1875_v17, %v1630_v16 }
  0x4d   : > { %1089 = vmatpush.bf16.msrb.mxu2 %v1831_v54  ;;  %1933 = vmatpush.bf16.msra.mxu1 %v1747_v58  ;;  %v1756_v22 = vld [vmem:[%s2172_s5 + $0x68] sm:$0xf0]  ;;  %v1916_v23 = vld [vmem:[%s2172_s5 + $0xb4] sm:$0xf]  ;;  %v1796_v24 = vld [vmem:[%s2172_s5 + $0xb8] sm:$0xf0]  ;;  %v1715_v30 = vor.u32 %v1897_v20, %v1714_v19 }
  0x4e   : > { %1853 = vmatmul.msk.bf16.vlgmr.msra.gmra.mxu3 %vm868_vm0, %v2210_v5  ;;  %v1759_v25 = vor.u32 %v1906_v21, %v1756_v22  ;;  %v1799_v26 = vor.u32 %v1916_v23, %v1796_v24  ;;  %v1904_v27 = vld [vmem:[%s2172_s5 + $0x54] sm:$0xf]  ;;  %v1748_v28 = vld [vmem:[%s2172_s5 + $0x58] sm:$0xf0]  ;;  %v1690_v31 = vld [vmem:[%s2632_s0 + $0x98] sm:$0xf] }
  0x4f   : > { %1040 = vmatpush.bf16.msrb.mxu3 %v1767_v12  ;;  %v1890_v32 = vld [vmem:[%s2632_s0 + $0xa0] sm:$0xf0]  ;;  %v1706_v33 = vld [vmem:[%s2172_s5] sm:$0xf]  ;;  %v1895_v34 = vld [vmem:[%s2172_s5 + $0x4] sm:$0xf0]  ;;  %v1751_v35 = vor.u32 %v1904_v27, %v1748_v28 }
  0x50   : > { %896 = vmatpush.bf16.msra.mxu0 %v1739_v1  ;;  %v1610_v36 = vld [vmem:[%s2632_s0] sm:$0xf]  ;;  %v1928_v37 = vld [vmem:[%s2172_s5 + $0x114] sm:$0xf]  ;;  %v1844_v38 = vld [vmem:[%s2172_s5 + $0x118] sm:$0xf0]  ;;  %v2254_v42 = vor.u32 %v1890_v32, %v1690_v31  ;;  %v1707_v43 = vor.u32 %v1895_v34, %v1706_v33 }
  0x51   : > { %1090 = vmatpush.bf16.msrb.mxu2 %v1823_v61  ;;  %1934 = vmatpush.bf16.msra.mxu1 %v1739_v1  ;;  %v1871_v39 = vld [vmem:[%s2632_s0 + $0x8] sm:$0xf0]  ;;  %v1826_v40 = vld [vmem:[%s2172_s5 + $0xf0] sm:$0xf]  ;;  %v1925_v41 = vld [vmem:[%s2172_s5 + $0xf4] sm:$0xf0]  ;;  %v1847_v49 = vor.u32 %v1928_v37, %v1844_v38 }
  0x52   : > { %v1902_v44 = vld [vmem:[%s2172_s5 + $0x44] sm:$0xf]  ;;  %v1740_v45 = vld [vmem:[%s2172_s5 + $0x48] sm:$0xf0]  ;;  %v1658_v47 = vld [vmem:[%s2632_s0 + $0x60] sm:$0xf]  ;;  %v1827_v51 = vor.u32 %v1925_v41, %v1826_v40  ;;  %v2268_v54 = vor.u32 %v1871_v39, %v1610_v36 }
  0x53   : > { %1041 = vmatpush.bf16.msrb.mxu3 %v1759_v25  ;;  %v1914_v46 = vld [vmem:[%s2172_s5 + $0xa4] sm:$0xf]  ;;  %v1883_v48 = vld [vmem:[%s2632_s0 + $0x68] sm:$0xf0]  ;;  %v1743_v52 = vor.u32 %v1902_v44, %v1740_v45  ;;  %v1818_v55 = vld [vmem:[%s2172_s5 + $0xe0] sm:$0xf] }
  0x54   : > { %897 = vmatpush.bf16.msra.mxu0 %v1731_v11  ;;  %v1788_v50 = vld [vmem:[%s2172_s5 + $0xa8] sm:$0xf0]  ;;  %v1923_v56 = vld [vmem:[%s2172_s5 + $0xe4] sm:$0xf0]  ;;  %v2274_v58 = vor.u32 %v1883_v48, %v1658_v47  ;;  %v1810_v60 = vld [vmem:[%s2172_s5 + $0xd0] sm:$0xf] }
  0x55   : > { %1091 = vmatpush.bf16.msrb.mxu2 %v1815_v6  ;;  %1935 = vmatpush.bf16.msra.mxu1 %v1731_v11  ;;  %v1791_v53 = vor.u32 %v1914_v46, %v1788_v50  ;;  %v1819_v59 = vor.u32 %v1923_v56, %v1818_v55  ;;  %v1921_v61 = vld [vmem:[%s2172_s5 + $0xd4] sm:$0xf0]  ;;  %v1878_v63 = vld [vmem:[%s2632_s0 + $0x40] sm:$0xf0]  ;;  %v1900_v0 = vld [vmem:[%s2172_s5 + $0x34] sm:$0xf] }
  0x56   : > { %v1642_v62 = vld [vmem:[%s2632_s0 + $0x38] sm:$0xf]  ;;  %v1732_v1 = vld [vmem:[%s2172_s5 + $0x38] sm:$0xf0]  ;;  %v1926_v2 = vld [vmem:[%s2172_s5 + $0x104] sm:$0xf]  ;;  %v1811_v4 = vor.u32 %v1921_v61, %v1810_v60 }
  0x57   : > { %1042 = vmatpush.bf16.msrb.mxu3 %v1751_v35  ;;  %v1836_v3 = vld [vmem:[%s2172_s5 + $0x108] sm:$0xf0]  ;;  %v1735_v6 = vor.u32 %v1900_v0, %v1732_v1  ;;  %v1912_v8 = vld [vmem:[%s2172_s5 + $0x94] sm:$0xf]  ;;  %v1780_v9 = vld [vmem:[%s2172_s5 + $0x98] sm:$0xf0] }
  0x58   : > { %898 = vmatpush.bf16.msra.mxu0 %v1723_v18  ;;  %v1839_v7 = vor.u32 %v1926_v2, %v1836_v3  ;;  %v1898_v10 = vld [vmem:[%s2172_s5 + $0x24] sm:$0xf]  ;;  %v1802_v11 = vld [vmem:[%s2172_s5 + $0xc0] sm:$0xf]  ;;  %v1919_v12 = vld [vmem:[%s2172_s5 + $0xc4] sm:$0xf0]  ;;  %v1783_v13 = vor.u32 %v1912_v8, %v1780_v9 }
  0x59   : > { %1092 = vmatpush.bf16.msrb.mxu2 %v1807_v15  ;;  %1936 = vmatpush.bf16.msra.mxu1 %v1723_v18  ;;  %v1724_v14 = vld [vmem:[%s2172_s5 + $0x28] sm:$0xf0]  ;;  %v2296_v15 = vor.u32 %v1878_v63, %v1642_v62  ;;  %v1702_v16 = vld [vmem:[%s2632_s0 + $0xb0] sm:$0xf]  ;;  %v1893_v17 = vld [vmem:[%s2632_s0 + $0xb8] sm:$0xf0]  ;;  %v1803_v20 = vor.u32 %v1919_v12, %v1802_v11 }
  0x5a   : > { %v1727_v18 = vor.u32 %v1898_v10, %v1724_v14  ;;  %v1622_v19 = vld [vmem:[%s2632_s0 + $0x18] sm:$0xf]  ;;  %v1874_v21 = vld [vmem:[%s2632_s0 + $0x20] sm:$0xf0]  ;;  %v1794_v22 = vld [vmem:[%s2172_s5 + $0xb0] sm:$0xf]  ;;  %v2312_v24 = vor.u32 %v1893_v17, %v1702_v16 }
  0x5b   : > { %1043 = vmatpush.bf16.msrb.mxu3 %v1743_v52  ;;  %v1917_v23 = vld [vmem:[%s2172_s5 + $0xb4] sm:$0xf0]  ;;  %v1716_v27 = vld [vmem:[%s2172_s5 + $0x18] sm:$0xf0]  ;;  %v1886_v28 = vld [vmem:[%s2632_s0 + $0x80] sm:$0xf0]  ;;  %v1623_v34 = vor.u32 %v1874_v21, %v1622_v19 }
  0x5c   : > { %1849 = vmatmul.msk.bf16.gmra.mxu2 %vm868_vm0, %v2234_v29  ;;  %899 = vmatpush.bf16.msra.mxu0 %v1715_v30  ;;  %v1670_v25 = vld [vmem:[%s2632_s0 + $0x78] sm:$0xf]  ;;  %v1894_v31 = vld [vmem:[%s2172_s5 + $0x4] sm:$0xf]  ;;  %v1708_v32 = vld [vmem:[%s2172_s5 + $0x8] sm:$0xf0]  ;;  %v1795_v33 = vor.u32 %v1917_v23, %v1794_v22 }
  0x5d   : > { %1093 = vmatpush.bf16.msrb.mxu2 %v1799_v26  ;;  %1937 = vmatpush.bf16.msra.mxu1 %v1715_v30  ;;  %v1896_v26 = vld [vmem:[%s2172_s5 + $0x14] sm:$0xf]  ;;  %v1786_v35 = vld [vmem:[%s2172_s5 + $0xa0] sm:$0xf]  ;;  %v1915_v36 = vld [vmem:[%s2172_s5 + $0xa4] sm:$0xf0]  ;;  %v2330_v37 = vor.u32 %v1886_v28, %v1670_v25  ;;  %v1711_v38 = vor.u32 %v1894_v31, %v1708_v32 }
  0x5e   : > { %1854 = vmatmul.msk.bf16.gmra.mxu3 %vm868_vm0, %v2254_v42  ;;  %v1719_v30 = vor.u32 %v1896_v26, %v1716_v27  ;;  %v1787_v39 = vor.u32 %v1915_v36, %v1786_v35  ;;  %v1778_v40 = vld [vmem:[%s2172_s5 + $0x90] sm:$0xf]  ;;  %v1913_v41 = vld [vmem:[%s2172_s5 + $0x94] sm:$0xf0]  ;;  %v1881_v45 = vld [vmem:[%s2632_s0 + $0x58] sm:$0xf0] }
  0x5f   : > { %1044 = vmatpush.bf16.msrb.mxu3 %v1735_v6  ;;  %v1654_v44 = vld [vmem:[%s2632_s0 + $0x50] sm:$0xf]  ;;  %v1772_v46 = vld [vmem:[%s2172_s5 + $0x88] sm:$0xf0]  ;;  %v1779_v47 = vor.u32 %v1913_v41, %v1778_v40  ;;  %v1911_v50 = vld [vmem:[%s2172_s5 + $0x84] sm:$0xf0] }
  0x60   : > { %900 = vmatpush.bf16.msra.mxu0 %v1707_v43  ;;  %v1877_v55 = vld [vmem:[%s2632_s0 + $0x38] sm:$0xf0]  ;;  %v1682_v56 = vld [vmem:[%s2632_s0 + $0x90] sm:$0xf]  ;;  %v1666_v62 = vld [vmem:[%s2632_s0 + $0x68] sm:$0xf] }
  0x61   : > { %1094 = vmatpush.bf16.msrb.mxu2 %v1791_v53  ;;  %1938 = vmatpush.bf16.msra.mxu1 %v1707_v43  ;;  %v1910_v43 = vld [vmem:[%s2172_s5 + $0x84] sm:$0xf]  ;;  %v1634_v53 = vld [vmem:[%s2632_s0 + $0x30] sm:$0xf]  ;;  %v1884_v63 = vld [vmem:[%s2632_s0 + $0x70] sm:$0xf0] }
  0x62   : > { %v1775_v48 = vor.u32 %v1910_v43, %v1772_v46  ;;  %v1635_v60 = vor.u32 %v1877_v55, %v1634_v53  ;;  %v1667_v0 = vor.u32 %v1884_v63, %v1666_v62  ;;  %v1646_v1 = vld [vmem:[%s2632_s0 + $0x48] sm:$0xf]  ;;  %v1892_v3 = vld [vmem:[%s2632_s0 + $0xb0] sm:$0xf0]  ;;  %v1612_v8 = vld [vmem:[%s2632_s0 + $0xc] sm:$0xf0] }
  0x63   : > { %901 = vmatmul.bf16.vlgmr.msra.gmra.mxu0 %v2268_v54  ;;  %1045 = vmatpush.bf16.msrb.mxu3 %v1727_v18  ;;  %v1694_v2 = vld [vmem:[%s2632_s0 + $0xa8] sm:$0xf]  ;;  %v1873_v10 = vld [vmem:[%s2632_s0 + $0x1c] sm:$0xf]  ;;  %v1648_v16 = vld [vmem:[%s2632_s0 + $0x54] sm:$0xf0] }
  0x64   : > { %1144 = vmatpush.bf16.msrb.mxu0 %v1847_v49  ;;  %921 = vmatmul.bf16.vlgmr.msra.gmra.mxu1 %v2274_v58  ;;  %v1770_v49 = vld [vmem:[%s2172_s5 + $0x80] sm:$0xf]  ;;  %v1695_v6 = vor.u32 %v1892_v3, %v1694_v2  ;;  %v1624_v11 = vld [vmem:[%s2632_s0 + $0x24] sm:$0xf0]  ;;  %v1885_v28 = vld [vmem:[%s2632_s0 + $0x7c] sm:$0xf] }
  0x65   : > { %942 = vmatpush.bf16.msrb.mxu1 %v1827_v51  ;;  %1095 = vmatpush.bf16.msrb.mxu2 %v1783_v13  ;;  %v1655_v51 = vor.u32 %v1881_v45, %v1654_v44  ;;  %v1771_v52 = vor.u32 %v1911_v50, %v1770_v49  ;;  %v1627_v12 = vor.u32 %v1873_v10, %v1624_v11  ;;  %v1636_v13 = vld [vmem:[%s2632_s0 + $0x3c] sm:$0xf0]  ;;  %v1888_v40 = vld [vmem:[%s2632_s0 + $0x94] sm:$0xf]  ;;  %s1930_s12 = sshll.u32 (%p2078_p6), %s2013_s14, 3 }
  0x66   : > { %v1684_v41 = vld [vmem:[%s2632_s0 + $0x9c] sm:$0xf0]  ;;  %s1400_s29 = scalar_lea.vmem (%p2078_p6), %s2635_s3, %s1930_s12 }
  0x67   : > { %1046 = vmatpush.bf16.msrb.mxu3 %v1719_v30  ;;  %v1672_v30 = vld [vmem:[%s2632_s0 + $0x84] sm:$0xf0]  ;;  %v1687_v45 = vor.u32 %v1888_v40, %v1684_v41  ;;  %v1286_v2 = vld [vmem:[%s427_s25] sm:$0x3] }
  0x68   : > { %1145 = vmatpush.bf16.msrb.mxu0 %v1839_v7  ;;  %v1870_v7 = vld [vmem:[%s2632_s0 + $0x4] sm:$0xf]  ;;  %v2510_v10 = vperm.slane %v1286_v2, 0 }
  0x69   : > { %943 = vmatpush.bf16.msrb.mxu1 %v1819_v59  ;;  %1096 = vmatpush.bf16.msrb.mxu2 %v1775_v48  ;;  %v1889_v59 = vld [vmem:[%s2632_s0 + $0x98] sm:$0xf0]  ;;  %v1615_v9 = vor.u32 %v1870_v7, %v1612_v8 }
  0x6a   : > { %v1683_v61 = vor.u32 %v1889_v59, %v1682_v56 }
  0x6b   : > { %1047 = vmatpush.bf16.msrb.mxu3 %v1711_v38 }
  0x6c   : > { %1850 = vmatmul.msk.bf16.gmra.mxu2 %vm868_vm0, %v2296_v15 }
  0x6d   : > { %944 = vmatpush.bf16.msrb.mxu1 %v1811_v4 }
  0x6e   : > { %1855 = vmatmul.msk.bf16.gmra.mxu3 %vm868_vm0, %v2312_v24 }
  0x71   : > { %945 = vmatpush.bf16.msrb.mxu1 %v1803_v20 }
  0x73   : > { %906 = vmatmul.bf16.gmra.mxu0 %v1623_v34 }
  0x74   : > { %926 = vmatmul.bf16.gmra.mxu1 %v2330_v37 }
  0x75   : > { %946 = vmatpush.bf16.msrb.mxu1 %v1795_v33  ;;  %v1675_v33 = vor.u32 %v1885_v28, %v1672_v30 }
  0x79   : > { %947 = vmatpush.bf16.msrb.mxu1 %v1787_v39 }
  0x7c   : > { %1851 = vmatmul.msk.bf16.gmra.mxu2 %vm868_vm0, %v1655_v51 }
  0x7d   : > { %948 = vmatpush.bf16.msrb.mxu1 %v1779_v47 }
  0x7e   : > { %1048 = vmatmul.bf16.vlgmr.msrb.gmra.mxu3 %v2268_v54  ;;  %v1880_v54 = vld [vmem:[%s2632_s0 + $0x50] sm:$0xf0] }
  0x7f   : > { %v1647_v4 = vor.u32 %v1880_v54, %v1646_v1 }
  0x81   : > { %949 = vmatpush.bf16.msrb.mxu1 %v1771_v52  ;;  %v1696_v52 = vld [vmem:[%s2632_s0 + $0xb4] sm:$0xf0] }
  0x83   : > { %911 = vmatmul.bf16.gmra.mxu0 %v1635_v60 }
  0x84   : > { %931 = vmatmul.bf16.gmra.mxu1 %v1683_v61 }
  0x8c   : > { %1852 = vmatmul.msk.bf16.gmra.mxu2 %vm868_vm0, %v1667_v0 }
  0x8e   : > { %1053 = vmatmul.bf16.gmra.mxu3 %v1623_v34 }
  0x93   : > { %916 = vmatmul.bf16.gmra.mxu0 %v1647_v4 }
  0x94   : > { %936 = vmatmul.bf16.gmra.mxu1 %v1695_v6 }
  0x9c   : > { %1097 = vmatmul.bf16.vlgmr.msrb.gmra.mxu2 %v1615_v9 }
  0x9e   : > { %1058 = vmatmul.bf16.gmra.mxu3 %v1635_v60 }
  0xa3   : > { %1856 = vmatmul.msk.bf16.vlgmr.msrb.gmra.mxu0 %vm868_vm0, %v2194_v57  ;;  %v1876_v57 = vld [vmem:[%s2632_s0 + $0x34] sm:$0xf] }
  0xa4   : > { %950 = vmatmul.bf16.vlgmr.msrb.gmra.mxu1 %v1615_v9  ;;  %v1639_v14 = vor.u32 %v1876_v57, %v1636_v13 }
  0xac   : > { %1102 = vmatmul.bf16.gmra.mxu2 %v1627_v12 }
  0xae   : > { %1063 = vmatmul.bf16.gmra.mxu3 %v1647_v4 }
  0xb3   : > { %1857 = vmatmul.msk.bf16.gmra.mxu0 %vm868_vm0, %v2234_v29  ;;  %v1879_v29 = vld [vmem:[%s2632_s0 + $0x4c] sm:$0xf] }
  0xb4   : > { %955 = vmatmul.bf16.gmra.mxu1 %v1627_v12  ;;  %v1651_v17 = vor.u32 %v1879_v29, %v1648_v16 }
  0xbc   : > { %1107 = vmatmul.bf16.gmra.mxu2 %v1639_v14 }
  0xbe   : > { %1068 = vmatmul.bf16.gmra.mxu3 %v2274_v58  ;;  %v1882_v58 = vld [vmem:[%s2632_s0 + $0x64] sm:$0xf] }
  0xc3   : > { %1858 = vmatmul.msk.bf16.gmra.mxu0 %vm868_vm0, %v2296_v15  ;;  %v1660_v15 = vld [vmem:[%s2632_s0 + $0x6c] sm:$0xf0] }
  0xc4   : > { %960 = vmatmul.bf16.gmra.mxu1 %v1639_v14  ;;  %v1663_v21 = vor.u32 %v1882_v58, %v1660_v15 }
  0xcc   : > { %1112 = vmatmul.bf16.gmra.mxu2 %v1651_v17 }
  0xce   : > { %1073 = vmatmul.bf16.gmra.mxu3 %v2330_v37 }
  0xcf   : > { %v2409_v18 = vpop.f32.mrf.mxu2 }
  0xd1   : > { %v2412_v19 = vpop.f32.mrf.mxu3 }
  0xd3   : > { %1859 = vmatmul.msk.bf16.gmra.mxu0 %vm868_vm0, %v1655_v51  ;;  %v1891_v51 = vld [vmem:[%s2632_s0 + $0xac] sm:$0xf] }
  0xd4   : > { %965 = vmatmul.bf16.gmra.mxu1 %v1651_v17  ;;  %v1699_v56 = vor.u32 %v1891_v51, %v1696_v52 }
  0xd7   : > { %v2421_v20 = vpop.f32.mrf.mxu2 }
  0xd9   : > { %v2423_v22 = vpop.f32.mrf.mxu3 }
  0xdc   : > { %1117 = vmatmul.bf16.gmra.mxu2 %v1663_v21 }
  0xde   : > { %1078 = vmatmul.bf16.gmra.mxu3 %v1683_v61 }
  0xdf   : > { %v2425_v23 = vpop.f32.mrf.mxu2 }
  0xe0   : > { %v902_v25 = vpop.f32.mrf.mxu0 }
  0xe1   : > { %v2427_v26 = vpop.f32.mrf.mxu1  ;;  %v2429_v27 = vpop.f32.mrf.mxu3 }
  0xe3   : > { %1860 = vmatmul.msk.bf16.gmra.mxu0 %vm868_vm0, %v1667_v0 }
  0xe4   : > { %970 = vmatmul.bf16.gmra.mxu1 %v1663_v21 }
  0xe7   : > { %v2438_v31 = vpop.f32.mrf.mxu2 }
  0xe8   : > { %v2440_v32 = vpop.f32.mrf.mxu0 }
  0xe9   : > { %v2442_v34 = vpop.f32.mrf.mxu1  ;;  %v2444_v35 = vpop.f32.mrf.mxu3 }
  0xec   : > { %1122 = vmatmul.bf16.gmra.mxu2 %v1675_v33 }
  0xee   : > { %1083 = vmatmul.bf16.gmra.mxu3 %v1695_v6 }
  0xef   : > { %v2446_v36 = vpop.f32.mrf.mxu2 }
  0xf0   : > { %v2448_v37 = vpop.f32.mrf.mxu0 }
  0xf1   : > { %v2450_v38 = vpop.f32.mrf.mxu1  ;;  %v2452_v39 = vpop.f32.mrf.mxu3 }
  0xf3   : > { %1861 = vmatmul.msk.bf16.gmra.mxu0 %vm868_vm0, %v2210_v5 }
  0xf4   : > { %975 = vmatmul.bf16.gmra.mxu1 %v1675_v33 }
  0xf7   : > { %v2462_v43 = vpop.f32.mrf.mxu2 }
  0xf8   : > { %v2464_v44 = vpop.f32.mrf.mxu0 }
  0xf9   : > { %v2466_v46 = vpop.f32.mrf.mxu1  ;;  %v2468_v47 = vpop.f32.mrf.mxu3 }
  0xfc   : > { %1127 = vmatmul.bf16.gmra.mxu2 %v1687_v45 }
  0xff   : > { %v2470_v5 = vpop.f32.mrf.mxu2 }
 0x100   : > { %v2472_v48 = vpop.f32.mrf.mxu0 }
 0x101   : > { %v2474_v49 = vpop.f32.mrf.mxu1  ;;  %v1049_v50 = vpop.f32.mrf.mxu3 }
 0x103   : > { %1862 = vmatmul.msk.bf16.gmra.mxu0 %vm868_vm0, %v2254_v42 }
 0x104   : > { %980 = vmatmul.bf16.gmra.mxu1 %v1687_v45 }
 0x107   : > { %v2484_v53 = vpop.f32.mrf.mxu2 }
 0x108   : > { %v2486_v55 = vpop.f32.mrf.mxu0 }
 0x109   : > { %v2488_v59 = vpop.f32.mrf.mxu1  ;;  %v1051_v60 = vpop.f32.mrf.mxu3 }
 0x10c   : > { %1132 = vmatmul.bf16.gmra.mxu2 %v1699_v56 }
 0x10f   : > { %v2490_v61 = vpop.f32.mrf.mxu2 }
 0x110   : > { %v2493_v42 = vpop.f32.mrf.mxu0 }
 0x111   : > { %v2495_v62 = vpop.f32.mrf.mxu1  ;;  %v1054_v63 = vpop.f32.mrf.mxu3 }
 0x113   : > { %1863 = vmatmul.msk.bf16.gmra.mxu0 %vm868_vm0, %v2312_v24  ;;  %v2508_v24 = vperm.slane %v1286_v2, 1 }
 0x114   : > { %985 = vmatmul.bf16.gmra.mxu1 %v1699_v56 }
 0x117   : > { %v2499_v0 = vpop.f32.mrf.mxu2 }
 0x118   : > { %v2501_v1 = vpop.f32.mrf.mxu0 }
 0x119   : > { %v2503_v54 = vpop.f32.mrf.mxu1  ;;  %v1056_v4 = vpop.f32.mrf.mxu3 }
 0x11f   : > { %v1098_v3 = vpop.f32.mrf.mxu2 }
 0x120   : > { %v1099_v6 = vadd.f32 %v1098_v3, %v1049_v50  ;;  %v1147_v7 = vpop.f32.mrf.mxu0 }
 0x121   : > { %v951_v8 = vpop.f32.mrf.mxu1  ;;  %v1059_v21 = vpop.f32.mrf.mxu3 }
 0x122   : > { %v952_v9 = vadd.f32 %v951_v8, %v902_v25  ;;  %v1148_v11 = vadd.f32 %v1147_v7, %v1099_v6 }
 0x124   : > { %v1001_v12 = vadd.f32 %v2409_v18, %v952_v9  ;;  %v1293_v57 = vadd.f32 %v2508_v24, %v1148_v11 }
 0x126   : > { %v1292_v13 = vadd.f32 %v2510_v10, %v1001_v12  ;;  %v1325_v14 = vmax.f32 %v1293_v57, 0.0 }
 0x127   : > { %v1100_v29 = vpop.f32.mrf.mxu2 }
 0x128   : > { %v1324_v16 = vmax.f32 %v1292_v13, 0.0  ;;  %v1101_v17 = vadd.f32 %v1100_v29, %v1051_v60  ;;  %v1149_v58 = vpop.f32.mrf.mxu0 }
 0x129   : > { %v953_v15 = vpop.f32.mrf.mxu1  ;;  %v1061_v3 = vpop.f32.mrf.mxu3 }
 0x12a   : > { %v1356_v28 = vpack.c.bf16 %v1325_v14, %v1324_v16  ;;  %v954_v25 = vadd.f32 %v953_v15, %v2440_v32  ;;  %v1150_v30 = vadd.f32 %v1149_v58, %v1101_v17 }
 0x12c   : > { %1372 = vst [vmem:[%s2518_s27] sm:$0xff] %v1356_v28  ;;  %v1003_v18 = vadd.f32 %v2421_v20, %v954_v25  ;;  %v1295_v33 = vadd.f32 %v2508_v24, %v1150_v30 }
 0x12e   : > { %v1294_v40 = vadd.f32 %v2510_v10, %v1003_v18  ;;  %v1327_v50 = vmax.f32 %v1295_v33, 0.0 }
 0x12f   : > { %v1103_v41 = vpop.f32.mrf.mxu2 }
 0x130   : > { %v1326_v45 = vmax.f32 %v1294_v40, 0.0  ;;  %v1104_v51 = vadd.f32 %v1103_v41, %v1054_v63  ;;  %v1152_v52 = vpop.f32.mrf.mxu0 }
 0x131   : > { %v956_v56 = vpop.f32.mrf.mxu1  ;;  %v1064_v16 = vpop.f32.mrf.mxu3 }
 0x132   : > { %v1357_v60 = vpack.c.bf16 %v1327_v50, %v1326_v45  ;;  %v957_v32 = vadd.f32 %v956_v56, %v2448_v37  ;;  %v1153_v2 = vadd.f32 %v1152_v52, %v1104_v51 }
 0x134   : > { %1373 = vst [vmem:[%s2518_s27 + $0x8] sm:$0xff] %v1357_v60  ;;  %v1006_v6 = vadd.f32 %v2425_v23, %v957_v32  ;;  %v1297_v20 = vadd.f32 %v2508_v24, %v1153_v2 }
 0x136   : > { %v1296_v7 = vadd.f32 %v2510_v10, %v1006_v6  ;;  %v1329_v8 = vmax.f32 %v1297_v20, 0.0 }
 0x137   : > { %v1105_v9 = vpop.f32.mrf.mxu2 }
 0x138   : > { %v1328_v11 = vmax.f32 %v1296_v7, 0.0  ;;  %v1106_v12 = vadd.f32 %v1105_v9, %v1056_v4  ;;  %v1154_v63 = vpop.f32.mrf.mxu0 }
 0x139   : > { %v958_v57 = vpop.f32.mrf.mxu1  ;;  %v1066_v51 = vpop.f32.mrf.mxu3 }
 0x13a   : > { %v1358_v13 = vpack.c.bf16 %v1329_v8, %v1328_v11  ;;  %v959_v14 = vadd.f32 %v958_v57, %v2464_v44  ;;  %v1155_v37 = vadd.f32 %v1154_v63, %v1106_v12 }
 0x13c   : > { %1374 = vst [vmem:[%s2518_s27 + $0x10] sm:$0xff] %v1358_v13  ;;  %v1008_v29 = vadd.f32 %v2438_v31, %v959_v14  ;;  %v1299_v23 = vadd.f32 %v2508_v24, %v1155_v37 }
 0x13e   : > { %v1298_v17 = vadd.f32 %v2510_v10, %v1008_v29  ;;  %v1331_v28 = vmax.f32 %v1299_v23, 0.0 }
 0x13f   : > { %v1108_v58 = vpop.f32.mrf.mxu2 }
 0x140   : > { %v1330_v15 = vmax.f32 %v1298_v17, 0.0  ;;  %v1109_v25 = vadd.f32 %v1108_v58, %v1059_v21  ;;  %v1157_v4 = vpop.f32.mrf.mxu0 }
 0x141   : > { %v961_v30 = vpop.f32.mrf.mxu1  ;;  %v1069_v63 = vpop.f32.mrf.mxu3 }
 0x142   : > { %v1359_v18 = vpack.c.bf16 %v1331_v28, %v1330_v15  ;;  %v962_v33 = vadd.f32 %v961_v30, %v2472_v48  ;;  %v1158_v44 = vadd.f32 %v1157_v4, %v1109_v25 }
 0x144   : > { %1375 = vst [vmem:[%s2518_s27 + $0x18] sm:$0xff] %v1359_v18  ;;  %v1011_v40 = vadd.f32 %v2446_v36, %v962_v33  ;;  %v1301_v31 = vadd.f32 %v2508_v24, %v1158_v44 }
 0x146   : > { %v1300_v41 = vadd.f32 %v2510_v10, %v1011_v40  ;;  %v1333_v45 = vmax.f32 %v1301_v31, 0.0 }
 0x147   : > { %v1110_v50 = vpop.f32.mrf.mxu2 }
 0x148   : > { %v1332_v52 = vmax.f32 %v1300_v41, 0.0  ;;  %v1111_v56 = vadd.f32 %v1110_v50, %v1061_v3  ;;  %v1159_v21 = vpop.f32.mrf.mxu0 }
 0x149   : > { %v963_v60 = vpop.f32.mrf.mxu1  ;;  %v1071_v4 = vpop.f32.mrf.mxu3 }
 0x14a   : > { %v1360_v32 = vpack.c.bf16 %v1333_v45, %v1332_v52  ;;  %v964_v2 = vadd.f32 %v963_v60, %v2486_v55  ;;  %v1160_v48 = vadd.f32 %v1159_v21, %v1111_v56 }
 0x14c   : > { %1376 = vst [vmem:[%s2518_s27 + $0x20] sm:$0xff] %v1360_v32  ;;  %v1013_v6 = vadd.f32 %v2462_v43, %v964_v2  ;;  %v1303_v36 = vadd.f32 %v2508_v24, %v1160_v48 }
 0x14e   : > { %v1302_v20 = vadd.f32 %v2510_v10, %v1013_v6  ;;  %v1335_v9 = vmax.f32 %v1303_v36, 0.0 }
 0x14f   : > { %v1113_v7 = vpop.f32.mrf.mxu2 }
 0x150   : > { %v1334_v8 = vmax.f32 %v1302_v20, 0.0  ;;  %v1114_v11 = vadd.f32 %v1113_v7, %v1064_v16  ;;  %v1162_v12 = vpop.f32.mrf.mxu0 }
 0x151   : > { %v966_v3 = vpop.f32.mrf.mxu1  ;;  %v1074_v56 = vpop.f32.mrf.mxu3 }
 0x152   : > { %v1361_v57 = vpack.c.bf16 %v1335_v9, %v1334_v8  ;;  %v967_v13 = vadd.f32 %v966_v3, %v2493_v42  ;;  %v1163_v55 = vadd.f32 %v1162_v12, %v1114_v11 }
 0x154   : > { %1377 = vst [vmem:[%s2518_s27 + $0x28] sm:$0xff] %v1361_v57  ;;  %v1016_v14 = vadd.f32 %v2470_v5, %v967_v13  ;;  %v1305_v43 = vadd.f32 %v2508_v24, %v1163_v55 }
 0x156   : > { %v1304_v37 = vadd.f32 %v2510_v10, %v1016_v14  ;;  %v1337_v29 = vmax.f32 %v1305_v43, 0.0 }
 0x157   : > { %v1115_v23 = vpop.f32.mrf.mxu2 }
 0x158   : > { %v1336_v17 = vmax.f32 %v1304_v37, 0.0  ;;  %v1116_v58 = vadd.f32 %v1115_v23, %v1066_v51  ;;  %v1164_v16 = vpop.f32.mrf.mxu0 }
 0x159   : > { %v968_v15 = vpop.f32.mrf.mxu1  ;;  %v1076_v12 = vpop.f32.mrf.mxu3 }
 0x15a   : > { %v1362_v28 = vpack.c.bf16 %v1337_v29, %v1336_v17  ;;  %v969_v25 = vadd.f32 %v968_v15, %v2501_v1  ;;  %v1165_v42 = vadd.f32 %v1164_v16, %v1116_v58 }
 0x15c   : > { %1378 = vst [vmem:[%s2518_s27 + $0x30] sm:$0xff] %v1362_v28  ;;  %v1018_v30 = vadd.f32 %v2484_v53, %v969_v25  ;;  %v1307_v5 = vadd.f32 %v2508_v24, %v1165_v42 }
 0x15e   : > { %v1306_v18 = vadd.f32 %v2510_v10, %v1018_v30  ;;  %v1339_v40 = vmax.f32 %v1307_v5, 0.0 }
 0x15f   : > { %v1118_v33 = vpop.f32.mrf.mxu2 }
 0x160   : > { %v1338_v44 = vmax.f32 %v1306_v18, 0.0  ;;  %v1119_v31 = vadd.f32 %v1118_v33, %v1069_v63  ;;  %v1167_v41 = vpop.f32.mrf.mxu0 }
 0x161   : > { %v971_v45 = vpop.f32.mrf.mxu1  ;;  %v1079_v25 = vpop.f32.mrf.mxu3 }
 0x162   : > { %v1363_v50 = vpack.c.bf16 %v1339_v40, %v1338_v44  ;;  %v972_v51 = vadd.f32 %v971_v45, %v2427_v26  ;;  %v1168_v1 = vadd.f32 %v1167_v41, %v1119_v31 }
 0x164   : > { %1379 = vst [vmem:[%s2518_s27 + $0x38] sm:$0xff] %v1363_v50  ;;  %v1021_v52 = vadd.f32 %v2490_v61, %v972_v51  ;;  %v1309_v53 = vadd.f32 %v2508_v24, %v1168_v1 }
 0x166   : > { %v1308_v21 = vadd.f32 %v2510_v10, %v1021_v52  ;;  %v1341_v60 = vmax.f32 %v1309_v53, 0.0 }
 0x167   : > { %v1120_v32 = vpop.f32.mrf.mxu2 }
 0x168   : > { %v1340_v2 = vmax.f32 %v1308_v21, 0.0  ;;  %v1121_v48 = vadd.f32 %v1120_v32, %v1071_v4  ;;  %v1169_v6 = vpop.f32.mrf.mxu0 }
 0x169   : > { %v973_v36 = vpop.f32.mrf.mxu1  ;;  %v1081_v51 = vpop.f32.mrf.mxu3 }
 0x16a   : > { %v1364_v20 = vpack.c.bf16 %v1341_v60, %v1340_v2  ;;  %v974_v7 = vadd.f32 %v973_v36, %v2442_v34  ;;  %v1170_v26 = vadd.f32 %v1169_v6, %v1121_v48 }
 0x16c   : > { %1380 = vst [vmem:[%s2518_s27 + $0x40] sm:$0xff] %v1364_v20  ;;  %v1023_v8 = vadd.f32 %v2499_v0, %v974_v7  ;;  %v1311_v61 = vadd.f32 %v2508_v24, %v1170_v26 }
 0x16e   : > { %v1310_v9 = vadd.f32 %v2510_v10, %v1023_v8  ;;  %v1343_v63 = vmax.f32 %v1311_v61, 0.0 }
 0x16f   : > { %v1123_v11 = vpop.f32.mrf.mxu2 }
 0x170   : > { %v1342_v3 = vmax.f32 %v1310_v9, 0.0  ;;  %v1124_v57 = vadd.f32 %v1123_v11, %v1074_v56  ;;  %v1172_v13 = vpop.f32.mrf.mxu0 }
 0x171   : > { %v976_v55 = vpop.f32.mrf.mxu1  ;;  %v1084_v20 = vpop.f32.mrf.mxu3 }
 0x172   : > { %v1365_v14 = vpack.c.bf16 %v1343_v63, %v1342_v3  ;;  %v977_v43 = vadd.f32 %v976_v55, %v2450_v38  ;;  %v1173_v34 = vadd.f32 %v1172_v13, %v1124_v57 }
 0x174   : > { %1381 = vst [vmem:[%s2518_s27 + $0x48] sm:$0xff] %v1365_v14  ;;  %v1026_v37 = vadd.f32 %v2412_v19, %v977_v43  ;;  %v1313_v0 = vadd.f32 %v2508_v24, %v1173_v34 }
 0x176   : > { %v1312_v29 = vadd.f32 %v2510_v10, %v1026_v37  ;;  %v1345_v23 = vmax.f32 %v1313_v0, 0.0 }
 0x177   : > { %v1125_v17 = vpop.f32.mrf.mxu2 }
 0x178   : > { %v1344_v58 = vmax.f32 %v1312_v29, 0.0  ;;  %v1126_v16 = vadd.f32 %v1125_v17, %v1076_v12  ;;  %v1174_v15 = vpop.f32.mrf.mxu0 }
 0x179   : > { %v978_v28 = vpop.f32.mrf.mxu1  ;;  %v1086_v14 = vpop.f32.mrf.mxu3 }
 0x17a   : > { %v1366_v42 = vpack.c.bf16 %v1345_v23, %v1344_v58  ;;  %v979_v4 = vadd.f32 %v978_v28, %v2466_v46  ;;  %v1175_v38 = vadd.f32 %v1174_v15, %v1126_v16 }
 0x17c   : > { %1382 = vst [vmem:[%s2518_s27 + $0x50] sm:$0xff] %v1366_v42  ;;  %v1028_v30 = vadd.f32 %v2423_v22, %v979_v4  ;;  %v1315_v19 = vadd.f32 %v2508_v24, %v1175_v38  ;;  %v1467_v42 = vld [vmem:[%s2518_s27 + $0x20] sm:$0xff] (%p2078_p6)  ;;  %v1469_v4 = vld [vmem:[%s2518_s27 + $0x28] sm:$0xff] (%p2078_p6)  ;;  %v1471_v38 = vld [vmem:[%s2518_s27 + $0x30] sm:$0xff] (%p2078_p6) }
 0x17d   : > { %1468 = vst [vmem:[%s1400_s29 + $0x40] sm:$0xff] (%p2078_p6), %v1467_v42 }
 0x17e   : > { %v1314_v5 = vadd.f32 %v2510_v10, %v1028_v30  ;;  %v1347_v44 = vmax.f32 %v1315_v19, 0.0  ;;  %v1473_v30 = vld [vmem:[%s2518_s27 + $0x38] sm:$0xff] (%p2078_p6)  ;;  %1470 = vst [vmem:[%s1400_s29 + $0x50] sm:$0xff] (%p2078_p6), %v1469_v4  ;;  %v1475_v19 = vld [vmem:[%s2518_s27 + $0x40] sm:$0xff] (%p2078_p6) }
 0x17f   : > { %v1128_v18 = vpop.f32.mrf.mxu2  ;;  %1472 = vst [vmem:[%s1400_s29 + $0x60] sm:$0xff] (%p2078_p6), %v1471_v38 }
 0x180   : > { %v1346_v33 = vmax.f32 %v1314_v5, 0.0  ;;  %v1129_v40 = vadd.f32 %v1128_v18, %v1079_v25  ;;  %v1177_v31 = vpop.f32.mrf.mxu0  ;;  %v1477_v5 = vld [vmem:[%s2518_s27 + $0x48] sm:$0xff] (%p2078_p6)  ;;  %1474 = vst [vmem:[%s1400_s29 + $0x70] sm:$0xff] (%p2078_p6), %v1473_v30 }
 0x181   : > { %v981_v41 = vpop.f32.mrf.mxu1  ;;  %1476 = vst [vmem:[%s1400_s29 + $0x80] sm:$0xff] (%p2078_p6), %v1475_v19 }
 0x182   : > { %v1367_v45 = vpack.c.bf16 %v1347_v44, %v1346_v33  ;;  %v982_v50 = vadd.f32 %v981_v41, %v2474_v49  ;;  %v1178_v46 = vadd.f32 %v1177_v31, %v1129_v40  ;;  %1478 = vst [vmem:[%s1400_s29 + $0x90] sm:$0xff] (%p2078_p6), %v1477_v5 }
 0x183   : > { %v1479_v18 = vld [vmem:[%s2518_s27 + $0x50] sm:$0xff] (%p2078_p6) }
 0x184   : > { %1383 = vst [vmem:[%s2518_s27 + $0x58] sm:$0xff] %v1367_v45  ;;  %v1031_v1 = vadd.f32 %v2429_v27, %v982_v50  ;;  %v1317_v22 = vadd.f32 %v2508_v24, %v1178_v46 }
 0x185   : > { %1480 = vst [vmem:[%s1400_s29 + $0xa0] sm:$0xff] (%p2078_p6), %v1479_v18 }
 0x186   : > { %v1316_v52 = vadd.f32 %v2510_v10, %v1031_v1  ;;  %v1349_v53 = vmax.f32 %v1317_v22, 0.0 }
 0x187   : > { %v1130_v56 = vpop.f32.mrf.mxu2 }
 0x188   : > { %v1348_v21 = vmax.f32 %v1316_v52, 0.0  ;;  %v1131_v60 = vadd.f32 %v1130_v56, %v1081_v51  ;;  %v1179_v32 = vpop.f32.mrf.mxu0 }
 0x189   : > { %v983_v2 = vpop.f32.mrf.mxu1 }
 0x18a   : > { %v1368_v48 = vpack.c.bf16 %v1349_v53, %v1348_v21  ;;  %v984_v6 = vadd.f32 %v983_v2, %v2488_v59  ;;  %v1180_v49 = vadd.f32 %v1179_v32, %v1131_v60 }
 0x18b   : > { %v1481_v33 = vld [vmem:[%s2518_s27 + $0x58] sm:$0xff] (%p2078_p6) }
 0x18c   : > { %1384 = vst [vmem:[%s2518_s27 + $0x60] sm:$0xff] %v1368_v48  ;;  %v1033_v36 = vadd.f32 %v2444_v35, %v984_v6  ;;  %v1319_v27 = vadd.f32 %v2508_v24, %v1180_v49 }
 0x18d   : > { %1482 = vst [vmem:[%s1400_s29 + $0xb0] sm:$0xff] (%p2078_p6), %v1481_v33 }
 0x18e   : > { %v1318_v7 = vadd.f32 %v2510_v10, %v1033_v36  ;;  %v1351_v61 = vmax.f32 %v1319_v27, 0.0 }
 0x18f   : > { %v1133_v26 = vpop.f32.mrf.mxu2 }
 0x190   : > { %v1350_v8 = vmax.f32 %v1318_v7, 0.0  ;;  %v1134_v9 = vadd.f32 %v1133_v26, %v1084_v20  ;;  %v1182_v11 = vpop.f32.mrf.mxu0 }
 0x191   : > { %v986_v12 = vpop.f32.mrf.mxu1 }
 0x192   : > { %v1369_v3 = vpack.c.bf16 %v1351_v61, %v1350_v8  ;;  %v987_v63 = vadd.f32 %v986_v12, %v2495_v62  ;;  %v1183_v59 = vadd.f32 %v1182_v11, %v1134_v9 }
 0x193   : > { %v1483_v44 = vld [vmem:[%s2518_s27 + $0x60] sm:$0xff] (%p2078_p6) }
 0x194   : > { %1385 = vst [vmem:[%s2518_s27 + $0x68] sm:$0xff] %v1369_v3  ;;  %v1036_v57 = vadd.f32 %v2452_v39, %v987_v63  ;;  %v1321_v35 = vadd.f32 %v2508_v24, %v1183_v59 }
 0x195   : > { %1484 = vst [vmem:[%s1400_s29 + $0xc0] sm:$0xff] (%p2078_p6), %v1483_v44 }
 0x196   : > { %v1320_v13 = vadd.f32 %v2510_v10, %v1036_v57  ;;  %v1353_v55 = vmax.f32 %v1321_v35, 0.0 }
 0x197   : > { %v1135_v43 = vpop.f32.mrf.mxu2 }
 0x198   : > { %v1352_v34 = vmax.f32 %v1320_v13, 0.0  ;;  %v1136_v37 = vadd.f32 %v1135_v43, %v1086_v14  ;;  %v1184_v0 = vpop.f32.mrf.mxu0 }
 0x199   : > { %v988_v29 = vpop.f32.mrf.mxu1 }
 0x19a   : > { %v1370_v23 = vpack.c.bf16 %v1353_v55, %v1352_v34  ;;  %v989_v62 = vadd.f32 %v988_v29, %v2503_v54  ;;  %v1185_v17 = vadd.f32 %v1184_v0, %v1136_v37  ;;  %v1461_v54 = vld [vmem:[%s2518_s27 + $0x8] sm:$0xff] (%p2078_p6) }
 0x19b   : > { %1462 = vst [vmem:[%s1400_s29 + $0x10] sm:$0xff] (%p2078_p6), %v1461_v54  ;;  %v1485_v40 = vld [vmem:[%s2518_s27 + $0x68] sm:$0xff] (%p2078_p6) }
 0x19c   : > { %1386 = vst [vmem:[%s2518_s27 + $0x70] sm:$0xff] %v1370_v23  ;;  %v1038_v58 = vadd.f32 %v2468_v47, %v989_v62  ;;  %v1323_v39 = vadd.f32 %v2508_v24, %v1185_v17  ;;  %v1459_v47 = vld [vmem:[%s2518_s27] sm:$0xff] (%p2078_p6)  ;;  %v1463_v24 = vld [vmem:[%s2518_s27 + $0x10] sm:$0xff] (%p2078_p6) }
 0x19d   : > { %1460 = vst [vmem:[%s1400_s29] sm:$0xff] (%p2078_p6), %v1459_v47 }
 0x19e   : > { %v1322_v16 = vadd.f32 %v2510_v10, %v1038_v58  ;;  %v1355_v28 = vmax.f32 %v1323_v39, 0.0  ;;  %v1465_v10 = vld [vmem:[%s2518_s27 + $0x18] sm:$0xff] (%p2078_p6)  ;;  %1464 = vst [vmem:[%s1400_s29 + $0x20] sm:$0xff] (%p2078_p6), %v1463_v24 }
 0x19f   : > { %1466 = vst [vmem:[%s1400_s29 + $0x30] sm:$0xff] (%p2078_p6), %v1465_v10 }
 0x1a0   : > { %v1354_v15 = vmax.f32 %v1322_v16, 0.0  ;;  %1394 = sbr.rel (!%p2078_p6) target bundleno = 429 (0x1ad), region = 82  ;;  %1486 = vst [vmem:[%s1400_s29 + $0xd0] sm:$0xff] (%p2078_p6), %v1485_v40 }
 0x1a2   : > { %v1371_v25 = vpack.c.bf16 %v1355_v28, %v1354_v15 }
 0x1a3   : > { %v1487_v31 = vld [vmem:[%s2518_s27 + $0x70] sm:$0xff] (%p2078_p6) }
 0x1a4   : > { %1387 = vst [vmem:[%s2518_s27 + $0x78] sm:$0xff] %v1371_v25 }
 0x1a5   : > { %1488 = vst [vmem:[%s1400_s29 + $0xe0] sm:$0xff] %v1487_v31 }
 0x1ab   : > { %v1489_v41 = vld [vmem:[%s2518_s27 + $0x78] sm:$0xff] }
 0x1ac   : > { %1490 = vst [vmem:[%s1400_s29 + $0xf0] sm:$0xff] %v1489_v41 }
 0x1ad PF: > { %s13_s16 = sadd.s32 1, %s2021_s16   ;;  %s2637_s12 = smov %s2009_s13 }
 0x1ae   : > { %p10_p12 = scmp.ge.s32.totalorder %s13_s16, 4   ;;  %s2638_s13 = smov %s2083_s22 }
 0x1af   : > { %s2639_s14 = smov %s2017_s15  ;;  %s2640_s15 = smov %s2642_s17 }
 0x1b0   :  { %12 = sbr.rel (!%p10_p12) target bundleno = 3 (0x3), region = 157 }

// kernel: ssd_detector_forward.12
= control target key start
LH: loop header
LB: loop body
LE: loop exit
PB: predicated region body
PF: predicated region fallthrough
CT: control target
= control target key end

     0   :  { %s2364_s12 = smov 0   ;;  %s2366_s13 = smov 0   ;;  %s2745_s0 = inlined_call_operand.vmem [shape: bf16[8,4608], index: 0, kind: input, shape index: {}]   ;;  %s2746_s1 = inlined_call_operand.vmem [shape: bf16[4608,152], index: 1, kind: input, shape index: {}]   ;;  %s2747_s2 = inlined_call_operand.vmem [shape: f32[1,152], index: 2, kind: input, shape index: {}]   ;;  %s2748_s3 = inlined_call_operand.vmem [shape: f32[8,152], index: 3, kind: output, shape index: {}]  }
   0x1   :  { %s2368_s14 = smov 0  }
   0x2 LB: > { %s25_s15 = sadd.s32 1, %s2337_s13  ;;  %p1563_p0 = scmp.ge.s32.totalorder %s2341_s14, 1  ;;  %s2341_s14 = sphi %s2368_s14, %s13_s14   ;;  %s2337_s13 = sphi %s2366_s13, %s2750_s13   ;;  %s2333_s12 = sphi %s2364_s12, %s2749_s12  }
   0x3   : > { %p26_p1 = scmp.ge.s32.totalorder %s25_s15, 4  ;;  %p194_p2 = scmp.lt.s32.totalorder %s2341_s14, 5 }
   0x5   : > { %s2752_s15 = smov (%p26_p1, %s25_s15), 0  ;;  %p195_p3 = pnand %p1563_p0, %p194_p2 }
   0x6   : > { %s240_s16 = smul.u32 (!%p195_p3), 9, %s2333_s12  ;;  %p1567_p6 = scmp.ne.s32.totalorder (!%p195_p3), %s2333_s12, 0 }
   0x7   : > { %198 = sbr.rel (%p195_p3) target bundleno = 328 (0x148), region = 32 }
   0x8   : > { %s250_s17 = smul.u32 (!%p195_p3), 144, %s2333_s12  ;;  %p243_p4 = scmp.lt.s32.totalorder (!%p195_p3), %s240_s16, 35 }
   0xa   : > { %p252_p5 = scmp.lt.s32.totalorder (!%p195_p3), %s250_s17, 575 }
   0xc   : > { %s2754_s16 = smov (!%p243_p4, %s240_s16), 35  ;;  %s2756_s17 = smov (!%p252_p5, %s250_s17), 575 }
   0xd   : > { %s1564_s18 = sshll.u32 %s2754_s16, 2  ;;  %s2149_s22 = sshll.u32 %s2756_s17, 3 }
   0xe   : > { %s2389_s21 = scalar_lea.vmem %s2745_s0, %s1564_s18  ;;  %s2394_s25 = scalar_lea.vmem %s2746_s1, %s2149_s22 }
   0xf   : > { %280 = sbr.rel (%p1567_p6) target bundleno = 23 (0x17), region = 36 }
  0x14   : > { %vm282_vm0 = vcmask 195584   ;;  %v2343_v0 = vmov 0.0  }
  0x15   : > { %281 = vst [vmem:[#allocation2] sm:$0xff] %v2343_v0 }
  0x16   : > { %283 = vst.msk [vmem:[#allocation2 + $0x8] sm:$0xff] %vm282_vm0, %v2343_v0 }
  0x17 PF: > { %v1626_v1 = vld [vmem:[%s2394_s25 + $0x70] sm:$0xf]  ;;  %v2165_v2 = vld [vmem:[%s2394_s25 + $0x74] sm:$0xf0]  ;;  %v1618_v12 = vld [vmem:[%s2394_s25 + $0x60] sm:$0xf] }
  0x18   : > { %v1690_v3 = vld [vmem:[%s2394_s25 + $0xf0] sm:$0xf]  ;;  %v1627_v4 = vor.u32 %v2165_v2, %v1626_v1  ;;  %v2181_v5 = vld [vmem:[%s2394_s25 + $0xf4] sm:$0xf0]  ;;  %v2163_v14 = vld [vmem:[%s2394_s25 + $0x64] sm:$0xf0] }
  0x19   : > { %v1754_v6 = vld [vmem:[%s2394_s25 + $0x170] sm:$0xf]  ;;  %v2197_v7 = vld [vmem:[%s2394_s25 + $0x174] sm:$0xf0]  ;;  %v1691_v8 = vor.u32 %v2181_v5, %v1690_v3  ;;  %v1682_v15 = vld [vmem:[%s2394_s25 + $0xe0] sm:$0xf]  ;;  %v1619_v17 = vor.u32 %v2163_v14, %v1618_v12 }
  0x1a   : > { %v1755_v9 = vor.u32 %v2197_v7, %v1754_v6  ;;  %v1818_v10 = vld [vmem:[%s2394_s25 + $0x1f0] sm:$0xf]  ;;  %v2213_v11 = vld [vmem:[%s2394_s25 + $0x1f4] sm:$0xf0]  ;;  %1187 = vmatpush.bf16.msra.mxu0 %v1627_v4  ;;  %v2179_v16 = vld [vmem:[%s2394_s25 + $0xe4] sm:$0xf0] }
  0x1b   : > { %v1819_v13 = vor.u32 %v2213_v11, %v1818_v10  ;;  %1200 = vmatpush.bf16.msra.mxu1 %v1691_v8  ;;  %v1683_v18 = vor.u32 %v2179_v16, %v1682_v15  ;;  %v1746_v19 = vld [vmem:[%s2394_s25 + $0x160] sm:$0xf]  ;;  %v2195_v20 = vld [vmem:[%s2394_s25 + $0x164] sm:$0xf0]  ;;  %v1610_v24 = vld [vmem:[%s2394_s25 + $0x50] sm:$0xf] }
  0x1c   : > { %1213 = vmatpush.bf16.msra.mxu2 %v1755_v9  ;;  %v1810_v21 = vld [vmem:[%s2394_s25 + $0x1e0] sm:$0xf]  ;;  %v1747_v22 = vor.u32 %v2195_v20, %v1746_v19  ;;  %v2211_v23 = vld [vmem:[%s2394_s25 + $0x1e4] sm:$0xf0]  ;;  %v2161_v25 = vld [vmem:[%s2394_s25 + $0x54] sm:$0xf0] }
  0x1d   : > { %1226 = vmatpush.bf16.msra.mxu3 %v1819_v13  ;;  %v1811_v26 = vor.u32 %v2211_v23, %v1810_v21  ;;  %v1674_v27 = vld [vmem:[%s2394_s25 + $0xd0] sm:$0xf]  ;;  %v2177_v28 = vld [vmem:[%s2394_s25 + $0xd4] sm:$0xf0]  ;;  %v1611_v30 = vor.u32 %v2161_v25, %v1610_v24  ;;  %v1602_v36 = vld [vmem:[%s2394_s25 + $0x40] sm:$0xf] }
  0x1e   : > { %v1738_v29 = vld [vmem:[%s2394_s25 + $0x150] sm:$0xf]  ;;  %1188 = vmatpush.bf16.msra.mxu0 %v1619_v17  ;;  %v2193_v31 = vld [vmem:[%s2394_s25 + $0x154] sm:$0xf0]  ;;  %v1675_v34 = vor.u32 %v2177_v28, %v1674_v27  ;;  %v2159_v37 = vld [vmem:[%s2394_s25 + $0x44] sm:$0xf0] }
  0x1f   : > { %v1802_v32 = vld [vmem:[%s2394_s25 + $0x1d0] sm:$0xf]  ;;  %v2209_v33 = vld [vmem:[%s2394_s25 + $0x1d4] sm:$0xf0]  ;;  %1201 = vmatpush.bf16.msra.mxu1 %v1683_v18  ;;  %v1739_v35 = vor.u32 %v2193_v31, %v1738_v29  ;;  %v1666_v38 = vld [vmem:[%s2394_s25 + $0xc0] sm:$0xf]  ;;  %v1603_v45 = vor.u32 %v2159_v37, %v1602_v36 }
  0x20   : > { %1214 = vmatpush.bf16.msra.mxu2 %v1747_v22  ;;  %v1803_v39 = vor.u32 %v2209_v33, %v1802_v32  ;;  %v2175_v40 = vld [vmem:[%s2394_s25 + $0xc4] sm:$0xf0]  ;;  %v1730_v41 = vld [vmem:[%s2394_s25 + $0x140] sm:$0xf]  ;;  %v1594_v48 = vld [vmem:[%s2394_s25 + $0x30] sm:$0xf] }
  0x21   : > { %1227 = vmatpush.bf16.msra.mxu3 %v1811_v26  ;;  %v2191_v42 = vld [vmem:[%s2394_s25 + $0x144] sm:$0xf0]  ;;  %v1794_v43 = vld [vmem:[%s2394_s25 + $0x1c0] sm:$0xf]  ;;  %v1667_v46 = vor.u32 %v2175_v40, %v1666_v38  ;;  %v2157_v49 = vld [vmem:[%s2394_s25 + $0x34] sm:$0xf0] }
  0x22   : > { %v2207_v44 = vld [vmem:[%s2394_s25 + $0x1c4] sm:$0xf0]  ;;  %1189 = vmatpush.bf16.msra.mxu0 %v1611_v30  ;;  %v1731_v47 = vor.u32 %v2191_v42, %v1730_v41  ;;  %v1658_v50 = vld [vmem:[%s2394_s25 + $0xb0] sm:$0xf]  ;;  %v2173_v52 = vld [vmem:[%s2394_s25 + $0xb4] sm:$0xf0]  ;;  %v1595_v57 = vor.u32 %v2157_v49, %v1594_v48 }
  0x23   : > { %1202 = vmatpush.bf16.msra.mxu1 %v1675_v34  ;;  %v1795_v51 = vor.u32 %v2207_v44, %v1794_v43  ;;  %v1722_v53 = vld [vmem:[%s2394_s25 + $0x130] sm:$0xf]  ;;  %v2189_v54 = vld [vmem:[%s2394_s25 + $0x134] sm:$0xf0]  ;;  %v1659_v58 = vor.u32 %v2173_v52, %v1658_v50  ;;  %v1586_v60 = vld [vmem:[%s2394_s25 + $0x20] sm:$0xf] }
  0x24   : > { %1215 = vmatpush.bf16.msra.mxu2 %v1739_v35  ;;  %v1786_v55 = vld [vmem:[%s2394_s25 + $0x1b0] sm:$0xf]  ;;  %v2205_v56 = vld [vmem:[%s2394_s25 + $0x1b4] sm:$0xf0]  ;;  %v1723_v59 = vor.u32 %v2189_v54, %v1722_v53  ;;  %v2155_v61 = vld [vmem:[%s2394_s25 + $0x24] sm:$0xf0] }
  0x25   : > { %1228 = vmatpush.bf16.msra.mxu3 %v1803_v39  ;;  %v1650_v62 = vld [vmem:[%s2394_s25 + $0xa0] sm:$0xf]  ;;  %v1787_v63 = vor.u32 %v2205_v56, %v1786_v55  ;;  %v2171_v0 = vld [vmem:[%s2394_s25 + $0xa4] sm:$0xf0]  ;;  %v1587_v5 = vor.u32 %v2155_v61, %v1586_v60  ;;  %v1578_v8 = vld [vmem:[%s2394_s25 + $0x10] sm:$0xf] }
  0x26   : > { %1190 = vmatpush.bf16.msra.mxu0 %v1603_v45  ;;  %v1714_v1 = vld [vmem:[%s2394_s25 + $0x120] sm:$0xf]  ;;  %v2187_v2 = vld [vmem:[%s2394_s25 + $0x124] sm:$0xf0]  ;;  %v1651_v6 = vor.u32 %v2171_v0, %v1650_v62  ;;  %v2153_v9 = vld [vmem:[%s2394_s25 + $0x14] sm:$0xf0] }
  0x27   : > { %1203 = vmatpush.bf16.msra.mxu1 %v1667_v46  ;;  %v1778_v3 = vld [vmem:[%s2394_s25 + $0x1a0] sm:$0xf]  ;;  %v2203_v4 = vld [vmem:[%s2394_s25 + $0x1a4] sm:$0xf0]  ;;  %v1715_v7 = vor.u32 %v2187_v2, %v1714_v1  ;;  %v1642_v10 = vld [vmem:[%s2394_s25 + $0x90] sm:$0xf]  ;;  %v1579_v17 = vor.u32 %v2153_v9, %v1578_v8 }
  0x28   : > { %1216 = vmatpush.bf16.msra.mxu2 %v1731_v47  ;;  %v1779_v11 = vor.u32 %v2203_v4, %v1778_v3  ;;  %v2169_v12 = vld [vmem:[%s2394_s25 + $0x94] sm:$0xf0]  ;;  %v1706_v13 = vld [vmem:[%s2394_s25 + $0x110] sm:$0xf]  ;;  %v1570_v18 = vld [vmem:[%s2394_s25] sm:$0xf] }
  0x29   : > { %1229 = vmatpush.bf16.msra.mxu3 %v1795_v51  ;;  %v2185_v14 = vld [vmem:[%s2394_s25 + $0x114] sm:$0xf0]  ;;  %v1770_v15 = vld [vmem:[%s2394_s25 + $0x190] sm:$0xf]  ;;  %v2151_v19 = vld [vmem:[%s2394_s25 + $0x4] sm:$0xf0]  ;;  %v1643_v20 = vor.u32 %v2169_v12, %v1642_v10 }
  0x2a   : > { %1191 = vmatpush.bf16.msra.mxu0 %v1595_v57  ;;  %v2201_v16 = vld [vmem:[%s2394_s25 + $0x194] sm:$0xf0]  ;;  %v1707_v21 = vor.u32 %v2185_v14, %v1706_v13  ;;  %v1634_v22 = vld [vmem:[%s2394_s25 + $0x80] sm:$0xf]  ;;  %v2167_v23 = vld [vmem:[%s2394_s25 + $0x84] sm:$0xf0]  ;;  %v1571_v32 = vor.u32 %v2151_v19, %v1570_v18 }
  0x2b   : > { %1204 = vmatpush.bf16.msra.mxu1 %v1659_v58  ;;  %v1698_v24 = vld [vmem:[%s2394_s25 + $0x100] sm:$0xf]  ;;  %v1771_v25 = vor.u32 %v2201_v16, %v1770_v15  ;;  %v2183_v26 = vld [vmem:[%s2394_s25 + $0x104] sm:$0xf0]  ;;  %v1882_v27 = vld [vmem:[%s2394_s25 + $0x270] sm:$0xf]  ;;  %v1635_v36 = vor.u32 %v2167_v23, %v1634_v22 }
  0x2c   : > { %1217 = vmatpush.bf16.msra.mxu2 %v1723_v59  ;;  %v2229_v28 = vld [vmem:[%s2394_s25 + $0x274] sm:$0xf0]  ;;  %v1946_v29 = vld [vmem:[%s2394_s25 + $0x2f0] sm:$0xf]  ;;  %v1762_v34 = vld [vmem:[%s2394_s25 + $0x180] sm:$0xf]  ;;  %v1699_v37 = vor.u32 %v2183_v26, %v1698_v24 }
  0x2d   : > { %1230 = vmatpush.bf16.msra.mxu3 %v1787_v63  ;;  %v2245_v30 = vld [vmem:[%s2394_s25 + $0x2f4] sm:$0xf0]  ;;  %v2010_v31 = vld [vmem:[%s2394_s25 + $0x370] sm:$0xf]  ;;  %v2199_v35 = vld [vmem:[%s2394_s25 + $0x184] sm:$0xf0]  ;;  %v1883_v40 = vor.u32 %v2229_v28, %v1882_v27 }
  0x2e   : > { %1192 = vmatpush.bf16.msra.mxu0 %v1587_v5  ;;  %v2261_v33 = vld [vmem:[%s2394_s25 + $0x374] sm:$0xf0]  ;;  %v2074_v38 = vld [vmem:[%s2394_s25 + $0x3f0] sm:$0xf]  ;;  %v1947_v41 = vor.u32 %v2245_v30, %v1946_v29  ;;  %v1874_v42 = vld [vmem:[%s2394_s25 + $0x260] sm:$0xf]  ;;  %v1763_v44 = vor.u32 %v2199_v35, %v1762_v34 }
  0x2f   : > { %1205 = vmatpush.bf16.msra.mxu1 %v1651_v6  ;;  %v2277_v39 = vld [vmem:[%s2394_s25 + $0x3f4] sm:$0xf0]  ;;  %v2011_v43 = vor.u32 %v2261_v33, %v2010_v31  ;;  %v2227_v45 = vld [vmem:[%s2394_s25 + $0x264] sm:$0xf0]  ;;  %v1938_v46 = vld [vmem:[%s2394_s25 + $0x2e0] sm:$0xf] }
  0x30   : > { %1218 = vmatpush.bf16.msra.mxu2 %v1715_v7  ;;  %v2243_v47 = vld [vmem:[%s2394_s25 + $0x2e4] sm:$0xf0]  ;;  %v2075_v48 = vor.u32 %v2277_v39, %v2074_v38  ;;  %v2002_v49 = vld [vmem:[%s2394_s25 + $0x360] sm:$0xf]  ;;  %v1875_v53 = vor.u32 %v2227_v45, %v1874_v42  ;;  %v1866_v55 = vld [vmem:[%s2394_s25 + $0x250] sm:$0xf] }
  0x31   : > { %1231 = vmatpush.bf16.msra.mxu3 %v1779_v11  ;;  %v2259_v50 = vld [vmem:[%s2394_s25 + $0x364] sm:$0xf0]  ;;  %v2066_v51 = vld [vmem:[%s2394_s25 + $0x3e0] sm:$0xf]  ;;  %v1939_v54 = vor.u32 %v2243_v47, %v1938_v46  ;;  %v2225_v56 = vld [vmem:[%s2394_s25 + $0x254] sm:$0xf0] }
  0x32   : > { %1193 = vmatpush.bf16.msra.mxu0 %v1579_v17  ;;  %v2275_v52 = vld [vmem:[%s2394_s25 + $0x3e4] sm:$0xf0]  ;;  %v2003_v57 = vor.u32 %v2259_v50, %v2002_v49  ;;  %v1930_v58 = vld [vmem:[%s2394_s25 + $0x2d0] sm:$0xf]  ;;  %v2241_v59 = vld [vmem:[%s2394_s25 + $0x2d4] sm:$0xf0]  ;;  %v1867_v3 = vor.u32 %v2225_v56, %v1866_v55 }
  0x33   : > { %1206 = vmatpush.bf16.msra.mxu1 %v1643_v20  ;;  %v287_v60 = vld [vmem:[%s2389_s21 + $0x8] sm:$0xff]  ;;  %v2067_v61 = vor.u32 %v2275_v52, %v2066_v51  ;;  %v1994_v62 = vld [vmem:[%s2394_s25 + $0x350] sm:$0xf]  ;;  %v2257_v63 = vld [vmem:[%s2394_s25 + $0x354] sm:$0xf0]  ;;  %v1931_v8 = vor.u32 %v2241_v59, %v1930_v58  ;;  %vm1424_vm1 = vcmask 195584  }
  0x34   : > { %1219 = vmatpush.bf16.msra.mxu2 %v1707_v21  ;;  %v442_v0 = vunpack.c.l.b16 %v287_v60  ;;  %v286_v1 = vld [vmem:[%s2389_s21] sm:$0xff]  ;;  %v443_v2 = vunpack.c.h.b16 %v287_v60  ;;  %v2058_v4 = vld [vmem:[%s2394_s25 + $0x3d0] sm:$0xf]  ;;  %v2273_v5 = vld [vmem:[%s2394_s25 + $0x3d4] sm:$0xf0]  ;;  %v1995_v12 = vor.u32 %v2257_v63, %v1994_v62  ;;  %p2144_p7 = scmp.ne.s32.totalorder %s2333_s12, 3 }
  0x35   : > { %1232 = vmatpush.bf16.msra.mxu3 %v1771_v25  ;;  %v440_v6 = vunpack.c.l.b16 %v286_v1  ;;  %v441_v7 = vunpack.c.h.b16 %v286_v1  ;;  %v1858_v9 = vld [vmem:[%s2394_s25 + $0x240] sm:$0xf]  ;;  %v2223_v13 = vld [vmem:[%s2394_s25 + $0x244] sm:$0xf0]  ;;  %v2059_v18 = vor.u32 %v2273_v5, %v2058_v4  ;;  %v1850_v25 = vld [vmem:[%s2394_s25 + $0x230] sm:$0xf] }
  0x36   : > { %1194 = vmatpush.bf16.msra.mxu0 %v1571_v32  ;;  %v2488_v10 = vpack.c.b16 %v442_v0, %v442_v0  ;;  %v2490_v11 = vpack.c.b16 %v443_v2, %v443_v2  ;;  %v1922_v14 = vld [vmem:[%s2394_s25 + $0x2c0] sm:$0xf]  ;;  %v2239_v15 = vld [vmem:[%s2394_s25 + $0x2c4] sm:$0xf0]  ;;  %v1859_v23 = vor.u32 %v2223_v13, %v1858_v9  ;;  %v2221_v27 = vld [vmem:[%s2394_s25 + $0x234] sm:$0xf0] }
  0x37   : > { %1207 = vmatpush.bf16.msra.mxu1 %v1635_v36  ;;  %v2495_v16 = vpack.c.b16 %v440_v6, %v440_v6  ;;  %v2497_v17 = vpack.c.b16 %v441_v7, %v441_v7  ;;  %v1986_v19 = vld [vmem:[%s2394_s25 + $0x340] sm:$0xf]  ;;  %v2255_v20 = vld [vmem:[%s2394_s25 + $0x344] sm:$0xf0]  ;;  %v1923_v24 = vor.u32 %v2239_v15, %v1922_v14  ;;  %v1914_v28 = vld [vmem:[%s2394_s25 + $0x2b0] sm:$0xf]  ;;  %v1851_v35 = vor.u32 %v2221_v27, %v1850_v25 }
  0x38   : > { %1220 = vmatpush.bf16.msra.mxu2 %v1699_v37  ;;  %v2050_v21 = vld [vmem:[%s2394_s25 + $0x3c0] sm:$0xf]  ;;  %v2271_v22 = vld [vmem:[%s2394_s25 + $0x3c4] sm:$0xf0]  ;;  %v1987_v26 = vor.u32 %v2255_v20, %v1986_v19  ;;  %v2237_v29 = vld [vmem:[%s2394_s25 + $0x2b4] sm:$0xf0] }
  0x39   : > { %1233 = vmatpush.bf16.msra.mxu3 %v1763_v44  ;;  %1195 = vmatmul.bf16.vlgmr.msra.gmra.mxu0 %v2495_v16  ;;  %v2051_v30 = vor.u32 %v2271_v22, %v2050_v21  ;;  %v1978_v31 = vld [vmem:[%s2394_s25 + $0x330] sm:$0xf]  ;;  %v2253_v32 = vld [vmem:[%s2394_s25 + $0x334] sm:$0xf0]  ;;  %v1915_v36 = vor.u32 %v2237_v29, %v1914_v28  ;;  %v1842_v37 = vld [vmem:[%s2394_s25 + $0x220] sm:$0xf] }
  0x3a   : > { %1239 = vmatpush.bf16.msrb.mxu0 %v1883_v40  ;;  %1208 = vmatmul.bf16.vlgmr.msra.gmra.mxu1 %v2497_v17  ;;  %v2042_v33 = vld [vmem:[%s2394_s25 + $0x3b0] sm:$0xf]  ;;  %v2269_v34 = vld [vmem:[%s2394_s25 + $0x3b4] sm:$0xf0]  ;;  %v1979_v38 = vor.u32 %v2253_v32, %v1978_v31  ;;  %v2219_v39 = vld [vmem:[%s2394_s25 + $0x224] sm:$0xf0] }
  0x3b   : > { %1252 = vmatpush.bf16.msrb.mxu1 %v1947_v41  ;;  %1221 = vmatmul.bf16.vlgmr.msra.gmra.mxu2 %v2488_v10  ;;  %v1906_v40 = vld [vmem:[%s2394_s25 + $0x2a0] sm:$0xf]  ;;  %v2235_v41 = vld [vmem:[%s2394_s25 + $0x2a4] sm:$0xf0]  ;;  %v2043_v42 = vor.u32 %v2269_v34, %v2042_v33  ;;  %v1843_v47 = vor.u32 %v2219_v39, %v1842_v37  ;;  %v1834_v49 = vld [vmem:[%s2394_s25 + $0x210] sm:$0xf] }
  0x3c   : > { %1265 = vmatpush.bf16.msrb.mxu2 %v2011_v43  ;;  %1234 = vmatmul.bf16.vlgmr.msra.gmra.mxu3 %v2490_v11  ;;  %v1970_v43 = vld [vmem:[%s2394_s25 + $0x320] sm:$0xf]  ;;  %v2251_v44 = vld [vmem:[%s2394_s25 + $0x324] sm:$0xf0]  ;;  %v2217_v51 = vld [vmem:[%s2394_s25 + $0x214] sm:$0xf0] }
  0x3d   : > { %1278 = vmatpush.bf16.msrb.mxu3 %v2075_v48  ;;  %v2034_v45 = vld [vmem:[%s2394_s25 + $0x3a0] sm:$0xf]  ;;  %v2267_v46 = vld [vmem:[%s2394_s25 + $0x3a4] sm:$0xf0]  ;;  %v1907_v48 = vor.u32 %v2235_v41, %v1906_v40  ;;  %v1971_v50 = vor.u32 %v2251_v44, %v1970_v43  ;;  %v1898_v52 = vld [vmem:[%s2394_s25 + $0x290] sm:$0xf] }
  0x3e   : > { %1240 = vmatpush.bf16.msrb.mxu0 %v1875_v53  ;;  %v2233_v53 = vld [vmem:[%s2394_s25 + $0x294] sm:$0xf0]  ;;  %v1962_v55 = vld [vmem:[%s2394_s25 + $0x310] sm:$0xf]  ;;  %v1826_v59 = vld [vmem:[%s2394_s25 + $0x200] sm:$0xf] }
  0x3f   : > { %1253 = vmatpush.bf16.msrb.mxu1 %v1939_v54  ;;  %v2035_v54 = vor.u32 %v2267_v46, %v2034_v45  ;;  %v2249_v56 = vld [vmem:[%s2394_s25 + $0x314] sm:$0xf0]  ;;  %v2215_v60 = vld [vmem:[%s2394_s25 + $0x204] sm:$0xf0]  ;;  %v1899_v62 = vor.u32 %v2233_v53, %v1898_v52  ;;  %v1890_v63 = vld [vmem:[%s2394_s25 + $0x280] sm:$0xf] }
  0x40   : > { %1266 = vmatpush.bf16.msrb.mxu2 %v2003_v57  ;;  %v2026_v57 = vld [vmem:[%s2394_s25 + $0x390] sm:$0xf]  ;;  %v2265_v58 = vld [vmem:[%s2394_s25 + $0x394] sm:$0xf0]  ;;  %v2231_v0 = vld [vmem:[%s2394_s25 + $0x284] sm:$0xf0]  ;;  %v1963_v2 = vor.u32 %v2249_v56, %v1962_v55 }
  0x41   : > { %1279 = vmatpush.bf16.msrb.mxu3 %v2067_v61  ;;  %v1835_v61 = vor.u32 %v2217_v51, %v1834_v49  ;;  %v288_v1 = vld [vmem:[%s2389_s21 + $0x10] sm:$0xff]  ;;  %v2247_v4 = vld [vmem:[%s2394_s25 + $0x304] sm:$0xf0]  ;;  %v289_v5 = vld [vmem:[%s2389_s21 + $0x18] sm:$0xff]  ;;  %v2027_v6 = vor.u32 %v2265_v58, %v2026_v57  ;;  %v1891_v19 = vor.u32 %v2231_v0, %v1890_v63 }
  0x42   : > { %1241 = vmatpush.bf16.msrb.mxu0 %v1867_v3  ;;  %v1954_v3 = vld [vmem:[%s2394_s25 + $0x300] sm:$0xf]  ;;  %v2138_v7 = vld [vmem:[%s2394_s25 + $0x470] sm:$0xf]  ;;  %v2164_v9 = vld [vmem:[%s2394_s25 + $0x74] sm:$0xf]  ;;  %v444_v15 = vunpack.c.l.b16 %v288_v1  ;;  %v446_v22 = vunpack.c.l.b16 %v289_v5  ;;  %v445_v27 = vunpack.c.h.b16 %v288_v1 }
  0x43   : > { %1254 = vmatpush.bf16.msrb.mxu1 %v1931_v8  ;;  %v2293_v8 = vld [vmem:[%s2394_s25 + $0x474] sm:$0xf0]  ;;  %v2180_v13 = vld [vmem:[%s2394_s25 + $0xf4] sm:$0xf]  ;;  %v1692_v14 = vld [vmem:[%s2394_s25 + $0xf8] sm:$0xf0] }
  0x44   : > { %1267 = vmatpush.bf16.msrb.mxu2 %v1995_v12  ;;  %v1628_v12 = vld [vmem:[%s2394_s25 + $0x78] sm:$0xf0]  ;;  %v2018_v20 = vld [vmem:[%s2394_s25 + $0x380] sm:$0xf]  ;;  %v2263_v21 = vld [vmem:[%s2394_s25 + $0x384] sm:$0xf0]  ;;  %v1695_v29 = vor.u32 %v2180_v13, %v1692_v14  ;;  %v2555_v37 = vpack.c.b16 %v444_v15, %v444_v15  ;;  %v2557_v40 = vpack.c.b16 %v446_v22, %v446_v22  ;;  %v2561_v44 = vpack.c.b16 %v445_v27, %v445_v27 }
  0x45   : > { %1280 = vmatpush.bf16.msrb.mxu3 %v2059_v18  ;;  %v1827_v18 = vor.u32 %v2215_v60, %v1826_v59  ;;  %v2196_v25 = vld [vmem:[%s2394_s25 + $0x174] sm:$0xf]  ;;  %v1631_v28 = vor.u32 %v2164_v9, %v1628_v12  ;;  %v2291_v31 = vld [vmem:[%s2394_s25 + $0x464] sm:$0xf0]  ;;  %v2162_v32 = vld [vmem:[%s2394_s25 + $0x64] sm:$0xf]  ;;  %v2019_v33 = vor.u32 %v2263_v21, %v2018_v20 }
  0x46   : > { %1242 = vmatpush.bf16.msrb.mxu0 %v1859_v23  ;;  %v1955_v23 = vor.u32 %v2247_v4, %v1954_v3  ;;  %v1620_v34 = vld [vmem:[%s2394_s25 + $0x68] sm:$0xf0]  ;;  %v2160_v49 = vld [vmem:[%s2394_s25 + $0x54] sm:$0xf]  ;;  %v1612_v51 = vld [vmem:[%s2394_s25 + $0x58] sm:$0xf0] }
  0x47   : > { %1255 = vmatpush.bf16.msrb.mxu1 %v1923_v24  ;;  %v2139_v24 = vor.u32 %v2293_v8, %v2138_v7  ;;  %v1748_v43 = vld [vmem:[%s2394_s25 + $0x168] sm:$0xf0]  ;;  %v1623_v45 = vor.u32 %v2162_v32, %v1620_v34  ;;  %v2176_v52 = vld [vmem:[%s2394_s25 + $0xd4] sm:$0xf]  ;;  %v1676_v53 = vld [vmem:[%s2394_s25 + $0xd8] sm:$0xf0]  ;;  %v1615_v58 = vor.u32 %v2160_v49, %v1612_v51 }
  0x48   : > { %1268 = vmatpush.bf16.msrb.mxu2 %v1987_v26  ;;  %v1756_v26 = vld [vmem:[%s2394_s25 + $0x178] sm:$0xf0]  ;;  %v2192_v56 = vld [vmem:[%s2394_s25 + $0x154] sm:$0xf]  ;;  %v1679_v59 = vor.u32 %v2176_v52, %v1676_v53  ;;  %v2114_v60 = vld [vmem:[%s2394_s25 + $0x440] sm:$0xf] }
  0x49   : > { %1281 = vmatpush.bf16.msrb.mxu3 %v2051_v30  ;;  %v2130_v30 = vld [vmem:[%s2394_s25 + $0x460] sm:$0xf]  ;;  %v1759_v39 = vor.u32 %v2196_v25, %v1756_v26  ;;  %v1740_v57 = vld [vmem:[%s2394_s25 + $0x158] sm:$0xf0]  ;;  %v1604_v63 = vld [vmem:[%s2394_s25 + $0x48] sm:$0xf0] }
  0x4a   : > { %1243 = vmatpush.bf16.msrb.mxu0 %v1851_v35  ;;  %v2178_v35 = vld [vmem:[%s2394_s25 + $0xe4] sm:$0xf]  ;;  %v2131_v41 = vor.u32 %v2291_v31, %v2130_v30  ;;  %v1668_v1 = vld [vmem:[%s2394_s25 + $0xc8] sm:$0xf0]  ;;  %v2106_v8 = vld [vmem:[%s2394_s25 + $0x430] sm:$0xf] }
  0x4b   : > { %1256 = vmatpush.bf16.msrb.mxu1 %v1915_v36  ;;  %v1684_v36 = vld [vmem:[%s2394_s25 + $0xe8] sm:$0xf0]  ;;  %v2174_v0 = vld [vmem:[%s2394_s25 + $0xc4] sm:$0xf]  ;;  %v2285_v9 = vld [vmem:[%s2394_s25 + $0x434] sm:$0xf0] }
  0x4c   : > { %1269 = vmatpush.bf16.msrb.mxu2 %v1979_v38  ;;  %v447_v38 = vunpack.c.h.b16 %v289_v5  ;;  %v1687_v46 = vor.u32 %v2178_v35, %v1684_v36  ;;  %v2190_v4 = vld [vmem:[%s2394_s25 + $0x144] sm:$0xf]  ;;  %v1732_v5 = vld [vmem:[%s2394_s25 + $0x148] sm:$0xf0]  ;;  %v1671_v7 = vor.u32 %v2174_v0, %v1668_v1  ;;  %v2156_v12 = vld [vmem:[%s2394_s25 + $0x34] sm:$0xf] }
  0x4d   : > { %1282 = vmatpush.bf16.msrb.mxu3 %v2043_v42  ;;  %v2194_v42 = vld [vmem:[%s2394_s25 + $0x164] sm:$0xf]  ;;  %v1596_v13 = vld [vmem:[%s2394_s25 + $0x38] sm:$0xf0]  ;;  %v2172_v14 = vld [vmem:[%s2394_s25 + $0xb4] sm:$0xf] }
  0x4e   : > { %1244 = vmatpush.bf16.msrb.mxu0 %v1843_v47  ;;  %v2122_v47 = vld [vmem:[%s2394_s25 + $0x450] sm:$0xf]  ;;  %v1660_v15 = vld [vmem:[%s2394_s25 + $0xb8] sm:$0xf0]  ;;  %v2188_v20 = vld [vmem:[%s2394_s25 + $0x134] sm:$0xf]  ;;  %v1599_v22 = vor.u32 %v2156_v12, %v1596_v13 }
  0x4f   : > { %1257 = vmatpush.bf16.msrb.mxu1 %v1907_v48  ;;  %v2289_v48 = vld [vmem:[%s2394_s25 + $0x454] sm:$0xf0]  ;;  %v1724_v21 = vld [vmem:[%s2394_s25 + $0x138] sm:$0xf0]  ;;  %v2283_v25 = vld [vmem:[%s2394_s25 + $0x424] sm:$0xf0] }
  0x50   : > { %1270 = vmatpush.bf16.msrb.mxu2 %v1971_v50  ;;  %v2567_v50 = vpack.c.b16 %v447_v38, %v447_v38  ;;  %v2123_v55 = vor.u32 %v2289_v48, %v2122_v47  ;;  %v2154_v26 = vld [vmem:[%s2394_s25 + $0x24] sm:$0xf]  ;;  %v1588_v27 = vld [vmem:[%s2394_s25 + $0x28] sm:$0xf0]  ;;  %v1727_v30 = vor.u32 %v2188_v20, %v1724_v21  ;;  %v2090_v36 = vld [vmem:[%s2394_s25 + $0x410] sm:$0xf] }
  0x51   : > { %1283 = vmatpush.bf16.msrb.mxu3 %v2035_v54  ;;  %v1751_v54 = vor.u32 %v2194_v42, %v1748_v43  ;;  %v2186_v32 = vld [vmem:[%s2394_s25 + $0x124] sm:$0xf]  ;;  %v1591_v34 = vor.u32 %v2154_v26, %v1588_v27  ;;  %v2281_v38 = vld [vmem:[%s2394_s25 + $0x414] sm:$0xf0]  ;;  %v2168_v42 = vld [vmem:[%s2394_s25 + $0x94] sm:$0xf] }
  0x52   : > { %1245 = vmatpush.bf16.msrb.mxu0 %v1835_v61  ;;  %v2287_v61 = vld [vmem:[%s2394_s25 + $0x444] sm:$0xf0]  ;;  %v1644_v43 = vld [vmem:[%s2394_s25 + $0x98] sm:$0xf0]  ;;  %v2091_v48 = vor.u32 %v2281_v38, %v2090_v36  ;;  %v2082_v49 = vld [vmem:[%s2394_s25 + $0x400] sm:$0xf] }
  0x53   : > { %1258 = vmatpush.bf16.msrb.mxu1 %v1899_v62  ;;  %v2158_v62 = vld [vmem:[%s2394_s25 + $0x44] sm:$0xf]  ;;  %v2115_v3 = vor.u32 %v2287_v61, %v2114_v60  ;;  %v1708_v47 = vld [vmem:[%s2394_s25 + $0x118] sm:$0xf0]  ;;  %v2279_v51 = vld [vmem:[%s2394_s25 + $0x404] sm:$0xf0] }
  0x54   : > { %1271 = vmatpush.bf16.msrb.mxu2 %v1963_v2  ;;  %v1743_v2 = vor.u32 %v2192_v56, %v1740_v57  ;;  %v2150_v52 = vld [vmem:[%s2394_s25 + $0x4] sm:$0xf]  ;;  %v290_v57 = vld [vmem:[%s2389_s21 + $0x20] sm:$0xf]  ;;  %v1820_v60 = vld [vmem:[%s2394_s25 + $0x1f8] sm:$0xf0]  ;;  %v2083_v1 = vor.u32 %v2279_v51, %v2082_v49 }
  0x55   : > { %1284 = vmatpush.bf16.msrb.mxu3 %v2027_v6  ;;  %v1607_v6 = vor.u32 %v2158_v62, %v1604_v63  ;;  %v2166_v56 = vld [vmem:[%s2394_s25 + $0x84] sm:$0xf]  ;;  %v2228_v62 = vld [vmem:[%s2394_s25 + $0x274] sm:$0xf]  ;;  %v1884_v63 = vld [vmem:[%s2394_s25 + $0x278] sm:$0xf0] }
  0x56   : > { %1246 = vmatpush.bf16.msrb.mxu0 %v1827_v18  ;;  %v1735_v18 = vor.u32 %v2190_v4, %v1732_v5  ;;  %v2244_v0 = vld [vmem:[%s2394_s25 + $0x2f4] sm:$0xf]  ;;  %v1700_v4 = vld [vmem:[%s2394_s25 + $0x108] sm:$0xf0]  ;;  %v448_v5 = vunpack.c.l.b16 %v290_v57  ;;  %v1887_v13 = vor.u32 %v2228_v62, %v1884_v63  ;;  %v2226_v20 = vld [vmem:[%s2394_s25 + $0x264] sm:$0xf] }
  0x57   : > { %1259 = vmatpush.bf16.msrb.mxu1 %v1891_v19  ;;  %v2107_v19 = vor.u32 %v2285_v9, %v2106_v8  ;;  %v2260_v8 = vld [vmem:[%s2394_s25 + $0x374] sm:$0xf]  ;;  %v2012_v9 = vld [vmem:[%s2394_s25 + $0x378] sm:$0xf0]  ;;  %v1876_v21 = vld [vmem:[%s2394_s25 + $0x268] sm:$0xf0] }
  0x58   : > { %1272 = vmatpush.bf16.msrb.mxu2 %v1955_v23  ;;  %v1663_v23 = vor.u32 %v2172_v14, %v1660_v15  ;;  %v2210_v14 = vld [vmem:[%s2394_s25 + $0x1e4] sm:$0xf]  ;;  %v2004_v27 = vld [vmem:[%s2394_s25 + $0x368] sm:$0xf0]  ;;  %v2240_v36 = vld [vmem:[%s2394_s25 + $0x2d4] sm:$0xf] }
  0x59   : > { %1285 = vmatpush.bf16.msrb.mxu3 %v2019_v33  ;;  %1247 = vmatmul.bf16.vlgmr.msrb.gmra.mxu0 %v2555_v37  ;;  %v1716_v33 = vld [vmem:[%s2394_s25 + $0x128] sm:$0xf0]  ;;  %v2258_v26 = vld [vmem:[%s2394_s25 + $0x364] sm:$0xf]  ;;  %v1932_v38 = vld [vmem:[%s2394_s25 + $0x2d8] sm:$0xf0] }
  0x5a   : > { %1291 = vmatpush.bf16.msra.mxu0 %v2139_v24  ;;  %1260 = vmatmul.bf16.vlgmr.msrb.gmra.mxu1 %v2561_v44  ;;  %v2098_v24 = vld [vmem:[%s2394_s25 + $0x420] sm:$0xf]  ;;  %v1860_v49 = vld [vmem:[%s2394_s25 + $0x248] sm:$0xf0]  ;;  %v1916_v62 = vld [vmem:[%s2394_s25 + $0x2b8] sm:$0xf0] }
  0x5b   : > { %1304 = vmatpush.bf16.msra.mxu1 %v1631_v28  ;;  %1273 = vmatmul.bf16.vlgmr.msrb.gmra.mxu2 %v2557_v40  ;;  %v2170_v28 = vld [vmem:[%s2394_s25 + $0xa4] sm:$0xf]  ;;  %v2099_v31 = vor.u32 %v2283_v25, %v2098_v24  ;;  %v1940_v25 = vld [vmem:[%s2394_s25 + $0x2e8] sm:$0xf0]  ;;  %v2252_v63 = vld [vmem:[%s2394_s25 + $0x334] sm:$0xf] }
  0x5c   : > { %1317 = vmatpush.bf16.msra.mxu2 %v1695_v29  ;;  %1286 = vmatmul.bf16.vlgmr.msrb.gmra.mxu3 %v2567_v50  ;;  %v1652_v29 = vld [vmem:[%s2394_s25 + $0xa8] sm:$0xf0]  ;;  %v2242_v24 = vld [vmem:[%s2394_s25 + $0x2e4] sm:$0xf] }
  0x5d   : > { %1330 = vmatpush.bf16.msra.mxu3 %v1759_v39  ;;  %v1655_v35 = vor.u32 %v2170_v28, %v1652_v29  ;;  %v2152_v39 = vld [vmem:[%s2394_s25 + $0x14] sm:$0xf]  ;;  %v1879_v29 = vor.u32 %v2226_v20, %v1876_v21  ;;  %v1924_v51 = vld [vmem:[%s2394_s25 + $0x2c8] sm:$0xf0]  ;;  %v1772_v21 = vld [vmem:[%s2394_s25 + $0x198] sm:$0xf0] }
  0x5e   : > { %1292 = vmatpush.bf16.msra.mxu0 %v2131_v41  ;;  %v1580_v41 = vld [vmem:[%s2394_s25 + $0x18] sm:$0xf0] }
  0x5f   : > { %1305 = vmatpush.bf16.msra.mxu1 %v1623_v45  ;;  %v1719_v45 = vor.u32 %v2186_v32, %v1716_v33  ;;  %v1583_v53 = vor.u32 %v2152_v39, %v1580_v41  ;;  %v1804_v32 = vld [vmem:[%s2394_s25 + $0x1d8] sm:$0xf0]  ;;  %v2224_v33 = vld [vmem:[%s2394_s25 + $0x254] sm:$0xf] }
  0x60   : > { %1318 = vmatpush.bf16.msra.mxu2 %v1687_v46  ;;  %v2184_v46 = vld [vmem:[%s2394_s25 + $0x114] sm:$0xf]  ;;  %v1996_v41 = vld [vmem:[%s2394_s25 + $0x358] sm:$0xf0] }
  0x61   : > { %1331 = vmatpush.bf16.msra.mxu3 %v1751_v54  ;;  %v1647_v54 = vor.u32 %v2168_v42, %v1644_v43  ;;  %v1711_v61 = vor.u32 %v2184_v46, %v1708_v47  ;;  %v2256_v39 = vld [vmem:[%s2394_s25 + $0x354] sm:$0xf]  ;;  %v1935_v46 = vor.u32 %v2240_v36, %v1932_v38  ;;  %v1796_v47 = vld [vmem:[%s2394_s25 + $0x1c8] sm:$0xf0]  ;;  %v2230_v38 = vld [vmem:[%s2394_s25 + $0x284] sm:$0xf] }
  0x62   : > { %1293 = vmatpush.bf16.msra.mxu0 %v2123_v55  ;;  %v1572_v55 = vld [vmem:[%s2394_s25 + $0x8] sm:$0xf0] }
  0x63   : > { %1306 = vmatpush.bf16.msra.mxu1 %v1615_v58  ;;  %v1636_v58 = vld [vmem:[%s2394_s25 + $0x88] sm:$0xf0] }
  0x64   : > { %1319 = vmatpush.bf16.msra.mxu2 %v1679_v59  ;;  %v2212_v59 = vld [vmem:[%s2394_s25 + $0x1f4] sm:$0xf]  ;;  %v1828_v36 = vld [vmem:[%s2394_s25 + $0x208] sm:$0xf0] }
  0x65   : > { %1332 = vmatpush.bf16.msra.mxu3 %v1743_v2  ;;  %v1948_v2 = vld [vmem:[%s2394_s25 + $0x2f8] sm:$0xf0]  ;;  %v1823_v12 = vor.u32 %v2212_v59, %v1820_v60 }
  0x66   : > { %1294 = vmatpush.bf16.msra.mxu0 %v2115_v3  ;;  %v2182_v3 = vld [vmem:[%s2394_s25 + $0x104] sm:$0xf]  ;;  %v1951_v15 = vor.u32 %v2244_v0, %v1948_v2  ;;  %v1852_v59 = vld [vmem:[%s2394_s25 + $0x238] sm:$0xf0] }
  0x67   : > { %1307 = vmatpush.bf16.msra.mxu1 %v1607_v6  ;;  %v1575_v6 = vor.u32 %v2150_v52, %v1572_v55  ;;  %v2254_v52 = vld [vmem:[%s2394_s25 + $0x344] sm:$0xf]  ;;  %v1980_v0 = vld [vmem:[%s2394_s25 + $0x338] sm:$0xf0] }
  0x68   : > { %1320 = vmatpush.bf16.msra.mxu2 %v1671_v7  ;;  %v1639_v7 = vor.u32 %v2166_v56, %v1636_v58  ;;  %v2204_v56 = vld [vmem:[%s2394_s25 + $0x1b4] sm:$0xf] }
  0x69   : > { %1333 = vmatpush.bf16.msra.mxu3 %v1735_v18  ;;  %v1703_v18 = vor.u32 %v2182_v3, %v1700_v4  ;;  %v2220_v58 = vld [vmem:[%s2394_s25 + $0x234] sm:$0xf]  ;;  %v2202_v3 = vld [vmem:[%s2394_s25 + $0x1a4] sm:$0xf] }
  0x6a   : > { %1295 = vmatpush.bf16.msra.mxu0 %v2107_v19  ;;  %v1812_v19 = vld [vmem:[%s2394_s25 + $0x1e8] sm:$0xf0]  ;;  %v1855_v2 = vor.u32 %v2220_v58, %v1852_v59  ;;  %v2272_v59 = vld [vmem:[%s2394_s25 + $0x3d4] sm:$0xf] }
  0x6b   : > { %1308 = vmatpush.bf16.msra.mxu1 %v1599_v22  ;;  %v2630_v22 = vpack.c.b16 %v448_v5, %v448_v5  ;;  %v1815_v28 = vor.u32 %v2210_v14, %v1812_v19  ;;  %v1780_v5 = vld [vmem:[%s2394_s25 + $0x1a8] sm:$0xf0]  ;;  %v2200_v19 = vld [vmem:[%s2394_s25 + $0x194] sm:$0xf] }
  0x6c   : > { %1321 = vmatpush.bf16.msra.mxu2 %v1663_v23  ;;  %v2015_v23 = vor.u32 %v2260_v8, %v2012_v9  ;;  %v1983_v8 = vor.u32 %v2252_v63, %v1980_v0  ;;  %v2234_v9 = vld [vmem:[%s2394_s25 + $0x2a4] sm:$0xf]  ;;  %v1972_v14 = vld [vmem:[%s2394_s25 + $0x328] sm:$0xf0] }
  0x6d   : > { %1334 = vmatpush.bf16.msra.mxu3 %v1727_v30  ;;  %v2208_v30 = vld [vmem:[%s2394_s25 + $0x1d4] sm:$0xf] }
  0x6e   : > { %1296 = vmatpush.bf16.msra.mxu0 %v2099_v31  ;;  %v1943_v31 = vor.u32 %v2242_v24, %v1940_v25  ;;  %v1807_v42 = vor.u32 %v2208_v30, %v1804_v32  ;;  %v1836_v24 = vld [vmem:[%s2394_s25 + $0x218] sm:$0xf0]  ;;  %v1775_v30 = vor.u32 %v2200_v19, %v1772_v21  ;;  %v2198_v32 = vld [vmem:[%s2394_s25 + $0x184] sm:$0xf]  ;;  %v2264_v19 = vld [vmem:[%s2394_s25 + $0x394] sm:$0xf] }
  0x6f   : > { %1309 = vmatpush.bf16.msra.mxu1 %v1591_v34  ;;  %v1868_v34 = vld [vmem:[%s2394_s25 + $0x258] sm:$0xf0]  ;;  %v2280_v21 = vld [vmem:[%s2394_s25 + $0x414] sm:$0xf] }
  0x70   : > { %1322 = vmatpush.bf16.msra.mxu2 %v1655_v35  ;;  %v2007_v35 = vor.u32 %v2258_v26, %v2004_v27  ;;  %v1871_v43 = vor.u32 %v2224_v33, %v1868_v34  ;;  %v2232_v26 = vld [vmem:[%s2394_s25 + $0x294] sm:$0xf]  ;;  %v1900_v27 = vld [vmem:[%s2394_s25 + $0x298] sm:$0xf0]  ;;  %v1764_v33 = vld [vmem:[%s2394_s25 + $0x188] sm:$0xf0] }
  0x71   : > { %1335 = vmatpush.bf16.msra.mxu3 %v1719_v45  ;;  %v2206_v45 = vld [vmem:[%s2394_s25 + $0x1c4] sm:$0xf] }
  0x72   : > { %1297 = vmatpush.bf16.msra.mxu0 %v2091_v48  ;;  %v2222_v48 = vld [vmem:[%s2394_s25 + $0x244] sm:$0xf] }
  0x73   : > { %1310 = vmatpush.bf16.msra.mxu1 %v1583_v53  ;;  %v1988_v53 = vld [vmem:[%s2394_s25 + $0x348] sm:$0xf0]  ;;  %v1863_v55 = vor.u32 %v2222_v48, %v1860_v49  ;;  %v2214_v34 = vld [vmem:[%s2394_s25 + $0x204] sm:$0xf]  ;;  %v1767_v49 = vor.u32 %v2198_v32, %v1764_v33 }
  0x74   : > { %1323 = vmatpush.bf16.msra.mxu2 %v1647_v54  ;;  %v1799_v54 = vor.u32 %v2206_v45, %v1796_v47  ;;  %v1991_v60 = vor.u32 %v2254_v52, %v1988_v53  ;;  %v2292_v45 = vld [vmem:[%s2394_s25 + $0x474] sm:$0xf]  ;;  %v2246_v47 = vld [vmem:[%s2394_s25 + $0x304] sm:$0xf]  ;;  %v1956_v48 = vld [vmem:[%s2394_s25 + $0x308] sm:$0xf0] }
  0x75   : > { %1336 = vmatpush.bf16.msra.mxu3 %v1711_v61  ;;  %v2236_v61 = vld [vmem:[%s2394_s25 + $0x2b4] sm:$0xf]  ;;  %v1959_v53 = vor.u32 %v2246_v47, %v1956_v48 }
  0x76   : > { %1298 = vmatpush.bf16.msra.mxu0 %v2083_v1  ;;  %v1919_v4 = vor.u32 %v2236_v61, %v1916_v62  ;;  %v2288_v61 = vld [vmem:[%s2394_s25 + $0x454] sm:$0xf]  ;;  %v2124_v62 = vld [vmem:[%s2394_s25 + $0x458] sm:$0xf0] }
  0x77   : > { %1311 = vmatpush.bf16.msra.mxu1 %v1575_v6  ;;  %v2218_v6 = vld [vmem:[%s2394_s25 + $0x224] sm:$0xf]  ;;  %v2127_v0 = vor.u32 %v2288_v61, %v2124_v62 }
  0x78   : > { %1324 = vmatpush.bf16.msra.mxu2 %v1639_v7  ;;  %v1844_v7 = vld [vmem:[%s2394_s25 + $0x228] sm:$0xf0] }
  0x79   : > { %1337 = vmatpush.bf16.msra.mxu3 %v1703_v18  ;;  %1299 = vmatmul.bf16.vlgmr.msra.gmra.mxu0 %v2630_v22  ;;  %v1847_v18 = vor.u32 %v2218_v6, %v1844_v7  ;;  %v2108_v6 = vld [vmem:[%s2394_s25 + $0x438] sm:$0xf0] }
  0x7a   : > { %1343 = vmatpush.bf16.msrb.mxu0 %v1823_v12  ;;  %1312 = vmatmul.bf16.vlgmr.msra.gmra.mxu1 %v2495_v16  ;;  %v1999_v16 = vor.u32 %v2256_v39, %v1996_v41  ;;  %v1908_v12 = vld [vmem:[%s2394_s25 + $0x2a8] sm:$0xf0] }
  0x7b   : > { %1356 = vmatpush.bf16.msrb.mxu1 %v1887_v13  ;;  %1325 = vmatmul.bf16.vlgmr.msra.gmra.mxu2 %v2497_v17  ;;  %v2238_v17 = vld [vmem:[%s2394_s25 + $0x2c4] sm:$0xf]  ;;  %v1911_v20 = vor.u32 %v2234_v9, %v1908_v12  ;;  %v1892_v39 = vld [vmem:[%s2394_s25 + $0x288] sm:$0xf0] }
  0x7c   : > { %1369 = vmatpush.bf16.msrb.mxu2 %v1951_v15  ;;  %1338 = vmatmul.bf16.vlgmr.msra.gmra.mxu3 %v2488_v10  ;;  %v1927_v57 = vor.u32 %v2238_v17, %v1924_v51  ;;  %v1788_v10 = vld [vmem:[%s2394_s25 + $0x1b8] sm:$0xf0]  ;;  %v2250_v13 = vld [vmem:[%s2394_s25 + $0x324] sm:$0xf]  ;;  %v1783_v15 = vor.u32 %v2202_v3, %v1780_v5  ;;  %v1895_v17 = vor.u32 %v2230_v38, %v1892_v39  ;;  %v2284_v5 = vld [vmem:[%s2394_s25 + $0x434] sm:$0xf] }
  0x7d   : > { %1382 = vmatpush.bf16.msrb.mxu3 %v2015_v23  ;;  %v1791_v1 = vor.u32 %v2204_v56, %v1788_v10  ;;  %v2216_v23 = vld [vmem:[%s2394_s25 + $0x214] sm:$0xf]  ;;  %v1975_v25 = vor.u32 %v2250_v13, %v1972_v14  ;;  %v2290_v56 = vld [vmem:[%s2394_s25 + $0x464] sm:$0xf]  ;;  %v2036_v12 = vld [vmem:[%s2394_s25 + $0x3a8] sm:$0xf0] }
  0x7e   : > { %1344 = vmatpush.bf16.msrb.mxu0 %v1815_v28  ;;  %v2248_v28 = vld [vmem:[%s2394_s25 + $0x314] sm:$0xf]  ;;  %v2266_v9 = vld [vmem:[%s2394_s25 + $0x3a4] sm:$0xf]  ;;  %v2100_v14 = vld [vmem:[%s2394_s25 + $0x428] sm:$0xf0] }
  0x7f   : > { %1357 = vmatpush.bf16.msrb.mxu1 %v1879_v29  ;;  %v1964_v29 = vld [vmem:[%s2394_s25 + $0x318] sm:$0xf0]  ;;  %v2282_v13 = vld [vmem:[%s2394_s25 + $0x424] sm:$0xf] }
  0x80   : > { %1370 = vmatpush.bf16.msrb.mxu2 %v1943_v31  ;;  %v1839_v31 = vor.u32 %v2216_v23, %v1836_v24  ;;  %v1967_v41 = vor.u32 %v2248_v28, %v1964_v29  ;;  %v2092_v23 = vld [vmem:[%s2394_s25 + $0x418] sm:$0xf0]  ;;  %v2278_v28 = vld [vmem:[%s2394_s25 + $0x404] sm:$0xf]  ;;  %v2084_v29 = vld [vmem:[%s2394_s25 + $0x408] sm:$0xf0] }
  0x81   : > { %1383 = vmatpush.bf16.msrb.mxu3 %v2007_v35  ;;  %v1903_v35 = vor.u32 %v2232_v26, %v1900_v27  ;;  %v2262_v26 = vld [vmem:[%s2394_s25 + $0x384] sm:$0xf]  ;;  %v2020_v27 = vld [vmem:[%s2394_s25 + $0x388] sm:$0xf0] }
  0x82   : > { %1345 = vmatpush.bf16.msrb.mxu0 %v1807_v42  ;;  %v2276_v42 = vld [vmem:[%s2394_s25 + $0x3f4] sm:$0xf] }
  0x83   : > { %1358 = vmatpush.bf16.msrb.mxu1 %v1871_v43  ;;  %v2076_v43 = vld [vmem:[%s2394_s25 + $0x3f8] sm:$0xf0] }
  0x84   : > { %1371 = vmatpush.bf16.msrb.mxu2 %v1935_v46  ;;  %v2140_v46 = vld [vmem:[%s2394_s25 + $0x478] sm:$0xf0]  ;;  %v2079_v51 = vor.u32 %v2276_v42, %v2076_v43 }
  0x85   : > { %1384 = vmatpush.bf16.msrb.mxu3 %v1999_v16  ;;  %v1831_v16 = vor.u32 %v2214_v34, %v1828_v36  ;;  %v2143_v52 = vor.u32 %v2292_v45, %v2140_v46 }
  0x86   : > { %1346 = vmatpush.bf16.msrb.mxu0 %v1799_v54  ;;  %v2274_v54 = vld [vmem:[%s2394_s25 + $0x3e4] sm:$0xf] }
  0x87   : > { %1359 = vmatpush.bf16.msrb.mxu1 %v1863_v55  ;;  %v2068_v55 = vld [vmem:[%s2394_s25 + $0x3e8] sm:$0xf0] }
  0x88   : > { %1372 = vmatpush.bf16.msrb.mxu2 %v1927_v57  ;;  %v2132_v57 = vld [vmem:[%s2394_s25 + $0x468] sm:$0xf0]  ;;  %v2071_v10 = vor.u32 %v2274_v54, %v2068_v55  ;;  %v284_v55 = vld [vmem:[#allocation2] sm:$0xff] }
  0x89   : > { %1385 = vmatpush.bf16.msrb.mxu3 %v1991_v60  ;;  %v2135_v58 = vor.u32 %v2290_v56, %v2132_v57  ;;  %v2060_v60 = vld [vmem:[%s2394_s25 + $0x3d8] sm:$0xf0] }
  0x8a   : > { %1347 = vmatpush.bf16.msrb.mxu0 %v1791_v1  ;;  %v2063_v63 = vor.u32 %v2272_v59, %v2060_v60  ;;  %v2270_v1 = vld [vmem:[%s2394_s25 + $0x3c4] sm:$0xf] }
  0x8b   : > { %1360 = vmatpush.bf16.msrb.mxu1 %v1855_v2  ;;  %v2052_v2 = vld [vmem:[%s2394_s25 + $0x3c8] sm:$0xf0] }
  0x8c   : > { %1373 = vmatpush.bf16.msrb.mxu2 %v1919_v4  ;;  %v2055_v3 = vor.u32 %v2270_v1, %v2052_v2  ;;  %v2268_v4 = vld [vmem:[%s2394_s25 + $0x3b4] sm:$0xf] }
  0x8d   : > { %1386 = vmatpush.bf16.msrb.mxu3 %v1983_v8  ;;  %v2111_v8 = vor.u32 %v2284_v5, %v2108_v6 }
  0x8e   : > { %1348 = vmatpush.bf16.msrb.mxu0 %v1783_v15  ;;  %v2039_v15 = vor.u32 %v2266_v9, %v2036_v12 }
  0x8f   : > { %1361 = vmatpush.bf16.msrb.mxu1 %v1847_v18  ;;  %v2103_v18 = vor.u32 %v2282_v13, %v2100_v14 }
  0x90   : > { %1374 = vmatpush.bf16.msrb.mxu2 %v1911_v20  ;;  %v2028_v20 = vld [vmem:[%s2394_s25 + $0x398] sm:$0xf0] }
  0x91   : > { %1387 = vmatpush.bf16.msrb.mxu3 %v1975_v25  ;;  %v2031_v24 = vor.u32 %v2264_v19, %v2028_v20  ;;  %v2095_v25 = vor.u32 %v2280_v21, %v2092_v23 }
  0x92   : > { %1349 = vmatpush.bf16.msrb.mxu0 %v1775_v30  ;;  %v2023_v30 = vor.u32 %v2262_v26, %v2020_v27 }
  0x93   : > { %1362 = vmatpush.bf16.msrb.mxu1 %v1839_v31  ;;  %v2087_v31 = vor.u32 %v2278_v28, %v2084_v29 }
  0x94   : > { %1375 = vmatpush.bf16.msrb.mxu2 %v1903_v35 }
  0x95   : > { %1388 = vmatpush.bf16.msrb.mxu3 %v1967_v41 }
  0x96   : > { %1350 = vmatpush.bf16.msrb.mxu0 %v1767_v49 }
  0x97   : > { %1363 = vmatpush.bf16.msrb.mxu1 %v1831_v16 }
  0x98   : > { %1376 = vmatpush.bf16.msrb.mxu2 %v1895_v17 }
  0x99   : > { %1389 = vmatpush.bf16.msrb.mxu3 %v1959_v53  ;;  %1351 = vmatmul.bf16.vlgmr.msrb.gmra.mxu0 %v2490_v11  ;;  %v2286_v11 = vld [vmem:[%s2394_s25 + $0x444] sm:$0xf] }
  0x9a   : > { %1395 = vmatpush.bf16.msra.mxu0 %v2079_v51  ;;  %1364 = vmatmul.bf16.vlgmr.msrb.gmra.mxu1 %v2555_v37  ;;  %v2116_v37 = vld [vmem:[%s2394_s25 + $0x448] sm:$0xf0] }
  0x9b   : > { %1408 = vmatpush.bf16.msra.mxu1 %v2143_v52  ;;  %1377 = vmatmul.bf16.vlgmr.msrb.gmra.mxu2 %v2561_v44  ;;  %v2119_v44 = vor.u32 %v2286_v11, %v2116_v37 }
  0x9c   : > { %1390 = vmatmul.bf16.vlgmr.msrb.gmra.mxu3 %v2557_v40  ;;  %v2044_v40 = vld [vmem:[%s2394_s25 + $0x3b8] sm:$0xf0] }
  0x9d   : > { %v2047_v7 = vor.u32 %v2268_v4, %v2044_v40 }
  0x9e   : > { %1396 = vmatpush.bf16.msra.mxu0 %v2071_v10 }
  0x9f   : > { %1409 = vmatpush.bf16.msra.mxu1 %v2135_v58 }
  0xa2   : > { %1397 = vmatpush.bf16.msra.mxu0 %v2063_v63 }
  0xa3   : > { %1410 = vmatpush.bf16.msra.mxu1 %v2127_v0 }
  0xa6   : > { %1398 = vmatpush.bf16.msra.mxu0 %v2055_v3 }
  0xa7   : > { %1411 = vmatpush.bf16.msra.mxu1 %v2119_v44 }
  0xaa   : > { %1399 = vmatpush.bf16.msra.mxu0 %v2047_v7 }
  0xab   : > { %1412 = vmatpush.bf16.msra.mxu1 %v2111_v8 }
  0xae   : > { %1400 = vmatpush.bf16.msra.mxu0 %v2039_v15 }
  0xaf   : > { %1413 = vmatpush.bf16.msra.mxu1 %v2103_v18  ;;  %v285_v18 = vld [vmem:[#allocation2 + $0x8] sm:$0xff] }
  0xb2   : > { %1401 = vmatpush.bf16.msra.mxu0 %v2031_v24 }
  0xb3   : > { %1414 = vmatpush.bf16.msra.mxu1 %v2095_v25 }
  0xb6   : > { %1402 = vmatpush.bf16.msra.mxu0 %v2023_v30  ;;  %v1196_v32 = vpop.f32.mrf.mxu0 }
  0xb7   : > { %1415 = vmatpush.bf16.msra.mxu1 %v2087_v31  ;;  %v1209_v33 = vpop.f32.mrf.mxu1 }
  0xb8   : > { %v1210_v45 = vadd.f32 %v1209_v33, %v1196_v32 }
  0xb9   : > { %1403 = vmatmul.bf16.vlgmr.msra.gmra.mxu0 %v2567_v50 }
  0xba   : > { %1416 = vmatmul.bf16.vlgmr.msra.gmra.mxu1 %v2630_v22 }
  0xbe   : > { %v1222_v34 = vpop.f32.mrf.mxu2  ;;  %v1198_v36 = vpop.f32.mrf.mxu0 }
  0xbf   : > { %v1235_v35 = vpop.f32.mrf.mxu3  ;;  %v1211_v38 = vpop.f32.mrf.mxu1  ;;  %v1223_v48 = vadd.f32 %v1222_v34, %v1210_v45 }
  0xc1   : > { %v1236_v17 = vadd.f32 %v1235_v35, %v1223_v48 }
  0xc6   : > { %v1224_v39 = vpop.f32.mrf.mxu2 }
  0xc7   : > { %v1237_v41 = vpop.f32.mrf.mxu3 }
  0xd6   : > { %v1248_v42 = vpop.f32.mrf.mxu0 }
  0xd7   : > { %v1261_v43 = vpop.f32.mrf.mxu1  ;;  %v1249_v51 = vadd.f32 %v1248_v42, %v1236_v17 }
  0xd9   : > { %v1262_v52 = vadd.f32 %v1261_v43, %v1249_v51 }
  0xde   : > { %v1274_v46 = vpop.f32.mrf.mxu2  ;;  %v1250_v47 = vpop.f32.mrf.mxu0 }
  0xdf   : > { %v1287_v49 = vpop.f32.mrf.mxu3  ;;  %v1263_v16 = vpop.f32.mrf.mxu1  ;;  %v1275_v53 = vadd.f32 %v1274_v46, %v1262_v52 }
  0xe1   : > { %v1288_v54 = vadd.f32 %v1287_v49, %v1275_v53 }
  0xe6   : > { %v1276_v50 = vpop.f32.mrf.mxu2 }
  0xe7   : > { %v1289_v22 = vpop.f32.mrf.mxu3 }
  0xf6   : > { %v1300_v56 = vpop.f32.mrf.mxu0 }
  0xf7   : > { %v1301_v57 = vadd.f32 %v1300_v56, %v1288_v54  ;;  %v1313_v10 = vpop.f32.mrf.mxu1 }
  0xf9   : > { %v1421_v58 = vadd.f32 %v1301_v57, %v284_v55 }
  0xfb   : > { %1423 = vst [vmem:[#allocation2] sm:$0xff] %v1421_v58 }
  0xfe   : > { %v1326_v59 = vpop.f32.mrf.mxu2  ;;  %v1302_v60 = vpop.f32.mrf.mxu0 }
  0xff   : > { %v1339_v61 = vpop.f32.mrf.mxu3  ;;  %v1315_v62 = vpop.f32.mrf.mxu1  ;;  %v1327_v37 = vadd.f32 %v1326_v59, %v1313_v10 }
 0x101   : > { %v1340_v40 = vadd.f32 %v1339_v61, %v1327_v37 }
 0x106   : > { %v1328_v63 = vpop.f32.mrf.mxu2 }
 0x107   : > { %v1341_v0 = vpop.f32.mrf.mxu3 }
 0x116   : > { %v1352_v1 = vpop.f32.mrf.mxu0 }
 0x117   : > { %v1365_v2 = vpop.f32.mrf.mxu1  ;;  %v1353_v6 = vadd.f32 %v1352_v1, %v1340_v40 }
 0x119   : > { %v1366_v8 = vadd.f32 %v1365_v2, %v1353_v6 }
 0x11e   : > { %v1378_v11 = vpop.f32.mrf.mxu2  ;;  %v1354_v44 = vpop.f32.mrf.mxu0 }
 0x11f   : > { %v1391_v3 = vpop.f32.mrf.mxu3  ;;  %v1367_v4 = vpop.f32.mrf.mxu1  ;;  %v1379_v9 = vadd.f32 %v1378_v11, %v1366_v8 }
 0x121   : > { %v1392_v12 = vadd.f32 %v1391_v3, %v1379_v9 }
 0x126   : > { %v1380_v5 = vpop.f32.mrf.mxu2 }
 0x127   : > { %v1393_v7 = vpop.f32.mrf.mxu3 }
 0x136   : > { %v1404_v13 = vpop.f32.mrf.mxu0 }
 0x137   : > { %v1405_v14 = vadd.f32 %v1404_v13, %v1392_v12  ;;  %v1417_v15 = vpop.f32.mrf.mxu1 }
 0x139   : > { %v1418_v19 = vadd.f32 %v1417_v15, %v1405_v14 }
 0x13b   : > { %v1422_v20 = vadd.f32 %v1418_v19, %v285_v18  ;;  %1429 = sbr.rel (%p2144_p7) target bundleno = 328 (0x148), region = 40 }
 0x13d   : > { %1425 = vst.msk [vmem:[#allocation2 + $0x8] sm:$0xff] %vm1424_vm1, %v1422_v20 }
 0x13e   : > { %v1406_v21 = vpop.f32.mrf.mxu0 }
 0x13f   : > { %v1419_v23 = vpop.f32.mrf.mxu1 }
 0x140   : > { %v1430_v24 = vld [vmem:[#allocation2] sm:$0xff] }
 0x141   : > { %v1432_v25 = vld [vmem:[%s2747_s2] sm:$0x3] }
 0x142   : > { %v1434_v27 = vperm.slane %v1432_v25, 0  ;;  %v1435_v28 = vperm.slane %v1432_v25, 1 }
 0x144   : > { %v1431_v26 = vld [vmem:[#allocation2 + $0x8] sm:$0xff]  ;;  %v1438_v29 = vadd.f32 %v1434_v27, %v1430_v24 }
 0x145   : > { %v1439_v30 = vadd.f32 %v1435_v28, %v1431_v26 }
 0x146   : > { %1440 = vst [vmem:[%s2748_s3] sm:$0xff] %v1438_v29 }
 0x147   : > { %1441 = vst.msk [vmem:[%s2748_s3 + $0x8] sm:$0xff] %vm1424_vm1, %v1439_v30 }
 0x148 PF: > { %s13_s14 = sadd.s32 1, %s2341_s14   ;;  %s2749_s12 = smov %s2337_s13 }
 0x149   : > { %p10_p8 = scmp.ge.s32.totalorder %s13_s14, 6   ;;  %s2750_s13 = smov %s2752_s15 }
 0x14b   :  { %12 = sbr.rel (!%p10_p8) target bundleno = 2 (0x2), region = 76 }

// kernel: ssd_detector_forward.10
= control target key start
LH: loop header
LB: loop body
LE: loop exit
PB: predicated region body
PF: predicated region fallthrough
CT: control target
= control target key end

     0   :  { %s3042_s12 = smov 0   ;;  %s3044_s13 = smov 0   ;;  %s3676_s0 = inlined_call_operand.vmem [shape: bf16[128,4608], index: 0, kind: input, shape index: {}]   ;;  %s3677_s1 = inlined_call_operand.vmem [shape: bf16[4608,104], index: 1, kind: input, shape index: {}]   ;;  %s3678_s2 = inlined_call_operand.vmem [shape: f32[1,104], index: 2, kind: input, shape index: {}]   ;;  %s3679_s3 = inlined_call_operand.vmem [shape: f32[128,104], index: 3, kind: output, shape index: {}]  }
   0x1   :  { %s3046_s14 = smov 0   ;;  %s3048_s15 = smov 0  }
   0x2   :  { %s3050_s16 = smov 0  }
   0x3 LB: > { %s25_s17 = sadd.s32 1, %s3015_s15  ;;  %p48_p1 = scmp.ne.s32.totalorder %s3007_s13, %s3003_s12  ;;  %s3019_s16 = sphi %s3050_s16, %s13_s16   ;;  %s3015_s15 = sphi %s3048_s15, %s3683_s15   ;;  %s3011_s14 = sphi %s3046_s14, %s3682_s14   ;;  %s3007_s13 = sphi %s3044_s13, %s3681_s13   ;;  %s3003_s12 = sphi %s3042_s12, %s3680_s12  }
   0x4   : > { %p26_p0 = scmp.ge.s32.totalorder %s25_s17, 4  ;;  %p49_p2 = scmp.eq.s32.totalorder %s3019_s16, 0 }
   0x5   : > { %s41_s19 = sadd.s32 1, %s3007_s13  ;;  %p2150_p5 = scmp.ge.s32.totalorder %s3019_s16, 4 }
   0x6   : > { %s3685_s17 = smov (%p26_p0, %s25_s17), 0  ;;  %p50_p3 = por %p49_p2, %p48_p1 }
   0x7   : > { %s37_s18 = ssub.s32 %s3015_s15, %s3685_s17  ;;  %162 = sbr.rel (%p2150_p5) target bundleno = 97 (0x61), region = 20 }
   0x8   : > { %p39_p4 = scmp.eq.s32.totalorder %s37_s18, 0 }
   0xa   : > { %s3077_s20 = scalar_select %p39_p4, %s3007_s13, %s41_s19  }
   0xc   : > { %165 = sbr.rel (!%p50_p3) target bundleno = 97 (0x61), region = 24  ;;  %s167_s21 = sand.u32 (%p50_p3), 1, %s3007_s13  }
   0xd   : > { %s2768_s22 = smul.u32 (%p50_p3), 36, %s3015_s15 }
   0xe   : > { %s2937_s23 = smul.u32 (%p50_p3), 576, %s167_s21 }
   0xf   : > { %s3085_s26 = scalar_lea.vmem (%p50_p3), %s3676_s0, %s2768_s22 }
  0x10   : > { %v190_v0 = vld [vmem:[%s3085_s26] sm:$0xff] (%p50_p3)  ;;  %v192_v1 = vld [vmem:[%s3085_s26 + $0x8] sm:$0xff] (%p50_p3)  ;;  %v194_v2 = vld [vmem:[%s3085_s26 + $0x10] sm:$0xff] (%p50_p3)  ;;  %s3090_s27 = scalar_lea.vmem (%p50_p3), [#allocation3], %s2937_s23 }
  0x11   : > { %191 = vst [vmem:[%s3090_s27] sm:$0xff] %v190_v0  ;;  %v196_v3 = vld [vmem:[%s3085_s26 + $0x18] sm:$0xff]  ;;  %v198_v4 = vld [vmem:[%s3085_s26 + $0x90] sm:$0xff]  ;;  %v202_v6 = vld [vmem:[%s3085_s26 + $0xa0] sm:$0xff] }
  0x12   : > { %193 = vst [vmem:[%s3090_s27 + $0x8] sm:$0xff] %v192_v1  ;;  %v200_v5 = vld [vmem:[%s3085_s26 + $0x98] sm:$0xff]  ;;  %v204_v7 = vld [vmem:[%s3085_s26 + $0xa8] sm:$0xff]  ;;  %v206_v8 = vld [vmem:[%s3085_s26 + $0x120] sm:$0xff] }
  0x13   : > { %195 = vst [vmem:[%s3090_s27 + $0x10] sm:$0xff] %v194_v2  ;;  %v208_v9 = vld [vmem:[%s3085_s26 + $0x128] sm:$0xff]  ;;  %v210_v10 = vld [vmem:[%s3085_s26 + $0x130] sm:$0xff]  ;;  %v212_v11 = vld [vmem:[%s3085_s26 + $0x138] sm:$0xff] }
  0x14   : > { %197 = vst [vmem:[%s3090_s27 + $0x18] sm:$0xff] %v196_v3  ;;  %v214_v12 = vld [vmem:[%s3085_s26 + $0x1b0] sm:$0xff]  ;;  %v216_v13 = vld [vmem:[%s3085_s26 + $0x1b8] sm:$0xff]  ;;  %v218_v14 = vld [vmem:[%s3085_s26 + $0x1c0] sm:$0xff] }
  0x15   : > { %199 = vst [vmem:[%s3090_s27 + $0x24] sm:$0xff] %v198_v4  ;;  %v220_v15 = vld [vmem:[%s3085_s26 + $0x1c8] sm:$0xff]  ;;  %v222_v16 = vld [vmem:[%s3085_s26 + $0x240] sm:$0xff]  ;;  %v226_v18 = vld [vmem:[%s3085_s26 + $0x250] sm:$0xff] }
  0x16   : > { %201 = vst [vmem:[%s3090_s27 + $0x2c] sm:$0xff] %v200_v5  ;;  %v224_v17 = vld [vmem:[%s3085_s26 + $0x248] sm:$0xff]  ;;  %v228_v19 = vld [vmem:[%s3085_s26 + $0x258] sm:$0xff]  ;;  %v230_v20 = vld [vmem:[%s3085_s26 + $0x2d0] sm:$0xff] }
  0x17   : > { %203 = vst [vmem:[%s3090_s27 + $0x34] sm:$0xff] %v202_v6  ;;  %v232_v21 = vld [vmem:[%s3085_s26 + $0x2d8] sm:$0xff]  ;;  %v234_v22 = vld [vmem:[%s3085_s26 + $0x2e0] sm:$0xff]  ;;  %v236_v23 = vld [vmem:[%s3085_s26 + $0x2e8] sm:$0xff] }
  0x18   : > { %205 = vst [vmem:[%s3090_s27 + $0x3c] sm:$0xff] %v204_v7  ;;  %v238_v24 = vld [vmem:[%s3085_s26 + $0x360] sm:$0xff]  ;;  %v240_v25 = vld [vmem:[%s3085_s26 + $0x368] sm:$0xff]  ;;  %v242_v26 = vld [vmem:[%s3085_s26 + $0x370] sm:$0xff] }
  0x19   : > { %207 = vst [vmem:[%s3090_s27 + $0x48] sm:$0xff] %v206_v8  ;;  %v244_v27 = vld [vmem:[%s3085_s26 + $0x378] sm:$0xff]  ;;  %v246_v28 = vld [vmem:[%s3085_s26 + $0x3f0] sm:$0xff]  ;;  %v250_v30 = vld [vmem:[%s3085_s26 + $0x400] sm:$0xff] }
  0x1a   : > { %209 = vst [vmem:[%s3090_s27 + $0x50] sm:$0xff] %v208_v9  ;;  %v248_v29 = vld [vmem:[%s3085_s26 + $0x3f8] sm:$0xff]  ;;  %v252_v31 = vld [vmem:[%s3085_s26 + $0x408] sm:$0xff]  ;;  %v254_v32 = vld [vmem:[%s3085_s26 + $0x480] sm:$0xff] }
  0x1b   : > { %211 = vst [vmem:[%s3090_s27 + $0x58] sm:$0xff] %v210_v10  ;;  %v256_v33 = vld [vmem:[%s3085_s26 + $0x488] sm:$0xff]  ;;  %v258_v34 = vld [vmem:[%s3085_s26 + $0x490] sm:$0xff]  ;;  %v260_v35 = vld [vmem:[%s3085_s26 + $0x498] sm:$0xff] }
  0x1c   : > { %213 = vst [vmem:[%s3090_s27 + $0x60] sm:$0xff] %v212_v11  ;;  %v262_v36 = vld [vmem:[%s3085_s26 + $0x510] sm:$0xff]  ;;  %v264_v37 = vld [vmem:[%s3085_s26 + $0x518] sm:$0xff]  ;;  %v266_v38 = vld [vmem:[%s3085_s26 + $0x520] sm:$0xff] }
  0x1d   : > { %215 = vst [vmem:[%s3090_s27 + $0x6c] sm:$0xff] %v214_v12  ;;  %v268_v39 = vld [vmem:[%s3085_s26 + $0x528] sm:$0xff]  ;;  %v270_v40 = vld [vmem:[%s3085_s26 + $0x5a0] sm:$0xff]  ;;  %v274_v42 = vld [vmem:[%s3085_s26 + $0x5b0] sm:$0xff] }
  0x1e   : > { %217 = vst [vmem:[%s3090_s27 + $0x74] sm:$0xff] %v216_v13  ;;  %v272_v41 = vld [vmem:[%s3085_s26 + $0x5a8] sm:$0xff]  ;;  %v276_v43 = vld [vmem:[%s3085_s26 + $0x5b8] sm:$0xff]  ;;  %v278_v44 = vld [vmem:[%s3085_s26 + $0x630] sm:$0xff] }
  0x1f   : > { %219 = vst [vmem:[%s3090_s27 + $0x7c] sm:$0xff] %v218_v14  ;;  %v280_v45 = vld [vmem:[%s3085_s26 + $0x638] sm:$0xff]  ;;  %v282_v46 = vld [vmem:[%s3085_s26 + $0x640] sm:$0xff]  ;;  %v284_v47 = vld [vmem:[%s3085_s26 + $0x648] sm:$0xff] }
  0x20   : > { %221 = vst [vmem:[%s3090_s27 + $0x84] sm:$0xff] %v220_v15  ;;  %v286_v48 = vld [vmem:[%s3085_s26 + $0x6c0] sm:$0xff]  ;;  %v288_v49 = vld [vmem:[%s3085_s26 + $0x6c8] sm:$0xff]  ;;  %v290_v50 = vld [vmem:[%s3085_s26 + $0x6d0] sm:$0xff] }
  0x21   : > { %223 = vst [vmem:[%s3090_s27 + $0x90] sm:$0xff] %v222_v16  ;;  %v292_v51 = vld [vmem:[%s3085_s26 + $0x6d8] sm:$0xff]  ;;  %v294_v52 = vld [vmem:[%s3085_s26 + $0x750] sm:$0xff]  ;;  %v298_v54 = vld [vmem:[%s3085_s26 + $0x760] sm:$0xff] }
  0x22   : > { %225 = vst [vmem:[%s3090_s27 + $0x98] sm:$0xff] %v224_v17  ;;  %v296_v53 = vld [vmem:[%s3085_s26 + $0x758] sm:$0xff]  ;;  %v300_v55 = vld [vmem:[%s3085_s26 + $0x768] sm:$0xff]  ;;  %v302_v56 = vld [vmem:[%s3085_s26 + $0x7e0] sm:$0xff] }
  0x23   : > { %227 = vst [vmem:[%s3090_s27 + $0xa0] sm:$0xff] %v226_v18  ;;  %v304_v57 = vld [vmem:[%s3085_s26 + $0x7e8] sm:$0xff]  ;;  %v306_v58 = vld [vmem:[%s3085_s26 + $0x7f0] sm:$0xff]  ;;  %v308_v59 = vld [vmem:[%s3085_s26 + $0x7f8] sm:$0xff] }
  0x24   : > { %229 = vst [vmem:[%s3090_s27 + $0xa8] sm:$0xff] %v228_v19  ;;  %v310_v60 = vld [vmem:[%s3085_s26 + $0x870] sm:$0xff]  ;;  %v312_v61 = vld [vmem:[%s3085_s26 + $0x878] sm:$0xff]  ;;  %v314_v62 = vld [vmem:[%s3085_s26 + $0x880] sm:$0xff] }
  0x25   : > { %231 = vst [vmem:[%s3090_s27 + $0xb4] sm:$0xff] %v230_v20  ;;  %v316_v63 = vld [vmem:[%s3085_s26 + $0x888] sm:$0xff]  ;;  %v2152_v0 = vld [vmem:[%s3085_s26 + $0x20] sm:$0xf]  ;;  %v2154_v1 = vld [vmem:[%s3085_s26 + $0xb0] sm:$0xf] }
  0x26   : > { %233 = vst [vmem:[%s3090_s27 + $0xbc] sm:$0xff] %v232_v21  ;;  %v2156_v2 = vld [vmem:[%s3085_s26 + $0x140] sm:$0xf]  ;;  %v2158_v3 = vld [vmem:[%s3085_s26 + $0x1d0] sm:$0xf] }
  0x27   : > { %235 = vst [vmem:[%s3090_s27 + $0xc4] sm:$0xff] %v234_v22  ;;  %v2160_v4 = vld [vmem:[%s3085_s26 + $0x260] sm:$0xf]  ;;  %v2162_v5 = vld [vmem:[%s3085_s26 + $0x2f0] sm:$0xf] }
  0x28   : > { %237 = vst [vmem:[%s3090_s27 + $0xcc] sm:$0xff] %v236_v23  ;;  %v2164_v6 = vld [vmem:[%s3085_s26 + $0x380] sm:$0xf]  ;;  %v2166_v7 = vld [vmem:[%s3085_s26 + $0x410] sm:$0xf] }
  0x29   : > { %239 = vst [vmem:[%s3090_s27 + $0xd8] sm:$0xff] %v238_v24  ;;  %v2168_v8 = vld [vmem:[%s3085_s26 + $0x4a0] sm:$0xf]  ;;  %v2170_v9 = vld [vmem:[%s3085_s26 + $0x530] sm:$0xf] }
  0x2a   : > { %241 = vst [vmem:[%s3090_s27 + $0xe0] sm:$0xff] %v240_v25  ;;  %v2172_v10 = vld [vmem:[%s3085_s26 + $0x5c0] sm:$0xf]  ;;  %v2174_v11 = vld [vmem:[%s3085_s26 + $0x650] sm:$0xf] }
  0x2b   : > { %243 = vst [vmem:[%s3090_s27 + $0xe8] sm:$0xff] %v242_v26  ;;  %v2176_v12 = vld [vmem:[%s3085_s26 + $0x6e0] sm:$0xf]  ;;  %v2178_v13 = vld [vmem:[%s3085_s26 + $0x770] sm:$0xf] }
  0x2c   : > { %245 = vst [vmem:[%s3090_s27 + $0xf0] sm:$0xff] %v244_v27  ;;  %v2180_v14 = vld [vmem:[%s3085_s26 + $0x800] sm:$0xf]  ;;  %v2182_v15 = vld [vmem:[%s3085_s26 + $0x890] sm:$0xf] }
  0x2d   : > { %247 = vst [vmem:[%s3090_s27 + $0xfc] sm:$0xff] %v246_v28 }
  0x2e   : > { %249 = vst [vmem:[%s3090_s27 + $0x104] sm:$0xff] %v248_v29 }
  0x2f   : > { %251 = vst [vmem:[%s3090_s27 + $0x10c] sm:$0xff] %v250_v30 }
  0x30   : > { %253 = vst [vmem:[%s3090_s27 + $0x114] sm:$0xff] %v252_v31 }
  0x31   : > { %255 = vst [vmem:[%s3090_s27 + $0x120] sm:$0xff] %v254_v32 }
  0x32   : > { %257 = vst [vmem:[%s3090_s27 + $0x128] sm:$0xff] %v256_v33 }
  0x33   : > { %259 = vst [vmem:[%s3090_s27 + $0x130] sm:$0xff] %v258_v34 }
  0x34   : > { %261 = vst [vmem:[%s3090_s27 + $0x138] sm:$0xff] %v260_v35 }
  0x35   : > { %263 = vst [vmem:[%s3090_s27 + $0x144] sm:$0xff] %v262_v36 }
  0x36   : > { %265 = vst [vmem:[%s3090_s27 + $0x14c] sm:$0xff] %v264_v37 }
  0x37   : > { %267 = vst [vmem:[%s3090_s27 + $0x154] sm:$0xff] %v266_v38 }
  0x38   : > { %269 = vst [vmem:[%s3090_s27 + $0x15c] sm:$0xff] %v268_v39 }
  0x39   : > { %271 = vst [vmem:[%s3090_s27 + $0x168] sm:$0xff] %v270_v40 }
  0x3a   : > { %273 = vst [vmem:[%s3090_s27 + $0x170] sm:$0xff] %v272_v41 }
  0x3b   : > { %275 = vst [vmem:[%s3090_s27 + $0x178] sm:$0xff] %v274_v42 }
  0x3c   : > { %277 = vst [vmem:[%s3090_s27 + $0x180] sm:$0xff] %v276_v43 }
  0x3d   : > { %279 = vst [vmem:[%s3090_s27 + $0x18c] sm:$0xff] %v278_v44 }
  0x3e   : > { %281 = vst [vmem:[%s3090_s27 + $0x194] sm:$0xff] %v280_v45 }
  0x3f   : > { %283 = vst [vmem:[%s3090_s27 + $0x19c] sm:$0xff] %v282_v46 }
  0x40   : > { %285 = vst [vmem:[%s3090_s27 + $0x1a4] sm:$0xff] %v284_v47 }
  0x41   : > { %287 = vst [vmem:[%s3090_s27 + $0x1b0] sm:$0xff] %v286_v48 }
  0x42   : > { %289 = vst [vmem:[%s3090_s27 + $0x1b8] sm:$0xff] %v288_v49 }
  0x43   : > { %291 = vst [vmem:[%s3090_s27 + $0x1c0] sm:$0xff] %v290_v50 }
  0x44   : > { %293 = vst [vmem:[%s3090_s27 + $0x1c8] sm:$0xff] %v292_v51 }
  0x45   : > { %295 = vst [vmem:[%s3090_s27 + $0x1d4] sm:$0xff] %v294_v52 }
  0x46   : > { %297 = vst [vmem:[%s3090_s27 + $0x1dc] sm:$0xff] %v296_v53 }
  0x47   : > { %299 = vst [vmem:[%s3090_s27 + $0x1e4] sm:$0xff] %v298_v54 }
  0x48   : > { %301 = vst [vmem:[%s3090_s27 + $0x1ec] sm:$0xff] %v300_v55 }
  0x49   : > { %303 = vst [vmem:[%s3090_s27 + $0x1f8] sm:$0xff] %v302_v56 }
  0x4a   : > { %305 = vst [vmem:[%s3090_s27 + $0x200] sm:$0xff] %v304_v57 }
  0x4b   : > { %307 = vst [vmem:[%s3090_s27 + $0x208] sm:$0xff] %v306_v58 }
  0x4c   : > { %309 = vst [vmem:[%s3090_s27 + $0x210] sm:$0xff] %v308_v59 }
  0x4d   : > { %311 = vst [vmem:[%s3090_s27 + $0x21c] sm:$0xff] %v310_v60 }
  0x4e   : > { %313 = vst [vmem:[%s3090_s27 + $0x224] sm:$0xff] %v312_v61 }
  0x4f   : > { %315 = vst [vmem:[%s3090_s27 + $0x22c] sm:$0xff] %v314_v62 }
  0x50   : > { %317 = vst [vmem:[%s3090_s27 + $0x234] sm:$0xff] %v316_v63 }
  0x51   : > { %2153 = vst [vmem:[%s3090_s27 + $0x20] sm:$0xf] %v2152_v0 }
  0x52   : > { %2155 = vst [vmem:[%s3090_s27 + $0x44] sm:$0xf] %v2154_v1 }
  0x53   : > { %2157 = vst [vmem:[%s3090_s27 + $0x68] sm:$0xf] %v2156_v2 }
  0x54   : > { %2159 = vst [vmem:[%s3090_s27 + $0x8c] sm:$0xf] %v2158_v3 }
  0x55   : > { %2161 = vst [vmem:[%s3090_s27 + $0xb0] sm:$0xf] %v2160_v4 }
  0x56   : > { %2163 = vst [vmem:[%s3090_s27 + $0xd4] sm:$0xf] %v2162_v5 }
  0x57   : > { %2165 = vst [vmem:[%s3090_s27 + $0xf8] sm:$0xf] %v2164_v6 }
  0x58   : > { %2167 = vst [vmem:[%s3090_s27 + $0x11c] sm:$0xf] %v2166_v7 }
  0x59   : > { %2169 = vst [vmem:[%s3090_s27 + $0x140] sm:$0xf] %v2168_v8 }
  0x5a   : > { %2171 = vst [vmem:[%s3090_s27 + $0x164] sm:$0xf] %v2170_v9 }
  0x5b   : > { %2173 = vst [vmem:[%s3090_s27 + $0x188] sm:$0xf] %v2172_v10 }
  0x5c   : > { %2175 = vst [vmem:[%s3090_s27 + $0x1ac] sm:$0xf] %v2174_v11 }
  0x5d   : > { %2177 = vst [vmem:[%s3090_s27 + $0x1d0] sm:$0xf] %v2176_v12 }
  0x5e   : > { %2179 = vst [vmem:[%s3090_s27 + $0x1f4] sm:$0xf] %v2178_v13 }
  0x5f   : > { %2181 = vst [vmem:[%s3090_s27 + $0x218] sm:$0xf] %v2180_v14 }
  0x60   : > { %2183 = vst [vmem:[%s3090_s27 + $0x23c] sm:$0xf] %v2182_v15 }
  0x61 PF: > { %p2184_p6 = scmp.ge.s32.totalorder %s3019_s16, 1  ;;  %p374_p7 = scmp.lt.s32.totalorder %s3019_s16, 5 }
  0x63   : > { %p375_p8 = pnand %p2184_p6, %p374_p7 }
  0x64   : > { %s381_s28 = sand.u32 (!%p375_p8), 1, %s3003_s12   ;;  %s420_s29 = smul.u32 (!%p375_p8), 144, %s3011_s14 }
  0x65   : > { %378 = sbr.rel (%p375_p8) target bundleno = 601 (0x259), region = 54  ;;  %p2186_p10 = scmp.ne.s32.totalorder (!%p375_p8), %s3011_s14, 0 }
  0x66   : > { %s2938_s30 = smul.u32 (!%p375_p8), 576, %s381_s28  ;;  %p421_p9 = scmp.lt.s32.totalorder (!%p375_p8), %s420_s29, 575 }
  0x68   : > { %s3258_s8 = scalar_lea.vmem (!%p375_p8), [#allocation3], %s2938_s30 }
  0x6a   : > { %s3687_s29 = smov (!%p421_p9, %s420_s29), 575  ;;  %444 = sbr.rel (%p2186_p10) target bundleno = 128 (0x80), region = 62 }
  0x6b   : > { %s2185_s4 = sshll.u32 %s3687_s29, 2 }
  0x6c   : > { %s3256_s7 = scalar_lea.vmem %s3677_s1, %s2185_s4 }
  0x6f   : > { %vm445_vm0 = vcmask 850944   ;;  %v3021_v16 = vmov 0.0  }
  0x70   : > { %446 = vst.msk [vmem:[#allocation2] sm:$0xff] %vm445_vm0, %v3021_v16 }
  0x71   : > { %447 = vst.msk [vmem:[#allocation2 + $0x8] sm:$0xff] %vm445_vm0, %v3021_v16 }
  0x72   : > { %448 = vst.msk [vmem:[#allocation2 + $0x10] sm:$0xff] %vm445_vm0, %v3021_v16 }
  0x73   : > { %449 = vst.msk [vmem:[#allocation2 + $0x18] sm:$0xff] %vm445_vm0, %v3021_v16 }
  0x74   : > { %450 = vst.msk [vmem:[#allocation2 + $0x20] sm:$0xff] %vm445_vm0, %v3021_v16 }
  0x75   : > { %451 = vst.msk [vmem:[#allocation2 + $0x28] sm:$0xff] %vm445_vm0, %v3021_v16 }
  0x76   : > { %452 = vst.msk [vmem:[#allocation2 + $0x30] sm:$0xff] %vm445_vm0, %v3021_v16 }
  0x77   : > { %453 = vst.msk [vmem:[#allocation2 + $0x38] sm:$0xff] %vm445_vm0, %v3021_v16 }
  0x78   : > { %454 = vst.msk [vmem:[#allocation2 + $0x40] sm:$0xff] %vm445_vm0, %v3021_v16 }
  0x79   : > { %455 = vst.msk [vmem:[#allocation2 + $0x48] sm:$0xff] %vm445_vm0, %v3021_v16 }
  0x7a   : > { %456 = vst.msk [vmem:[#allocation2 + $0x50] sm:$0xff] %vm445_vm0, %v3021_v16 }
  0x7b   : > { %457 = vst.msk [vmem:[#allocation2 + $0x58] sm:$0xff] %vm445_vm0, %v3021_v16 }
  0x7c   : > { %458 = vst.msk [vmem:[#allocation2 + $0x60] sm:$0xff] %vm445_vm0, %v3021_v16 }
  0x7d   : > { %459 = vst.msk [vmem:[#allocation2 + $0x68] sm:$0xff] %vm445_vm0, %v3021_v16 }
  0x7e   : > { %460 = vst.msk [vmem:[#allocation2 + $0x70] sm:$0xff] %vm445_vm0, %v3021_v16 }
  0x7f   : > { %461 = vst.msk [vmem:[#allocation2 + $0x78] sm:$0xff] %vm445_vm0, %v3021_v16 }
  0x80 PF: > { %v2848_v17 = vld [vmem:[%s3256_s7 + $0x38] sm:$0xff]  ;;  %v2847_v18 = vld [vmem:[%s3256_s7 + $0x30] sm:$0xff]  ;;  %v2846_v19 = vld [vmem:[%s3256_s7 + $0x28] sm:$0xff]  ;;  %vm1959_vm1 = vcmask 850944   ;;  %p2763_p11 = scmp.ne.s32.totalorder %s3011_s14, 3 }
  0x81   : > { %2913 = vmatpush.bf16.msra.mxu1 %v2848_v17  ;;  %2914 = vmatpush.bf16.msra.mxu2 %v2848_v17  ;;  %v2845_v20 = vld [vmem:[%s3256_s7 + $0x20] sm:$0xff]  ;;  %v2844_v21 = vld [vmem:[%s3256_s7 + $0x18] sm:$0xff]  ;;  %v2843_v22 = vld [vmem:[%s3256_s7 + $0x10] sm:$0xff] }
  0x82   : > { %2915 = vmatpush.bf16.msra.mxu3 %v2848_v17  ;;  %1502 = vmatpush.bf16.msra.mxu0 %v2848_v17  ;;  %v2842_v23 = vld [vmem:[%s3256_s7 + $0x8] sm:$0xff]  ;;  %v2841_v24 = vld [vmem:[%s3256_s7] sm:$0xff]  ;;  %v2261_v25 = vld [vmem:[%s3258_s8 + $0x90] sm:$0xf] }
  0x83   : > { %v2791_v26 = vld [vmem:[%s3258_s8 + $0xb0] sm:$0xf0]  ;;  %v2333_v27 = vld [vmem:[%s3258_s8 + $0x120] sm:$0xf]  ;;  %v2809_v28 = vld [vmem:[%s3258_s8 + $0x140] sm:$0xf0] }
  0x84   : > { %v2405_v29 = vld [vmem:[%s3258_s8 + $0x1b0] sm:$0xf]  ;;  %v2827_v30 = vld [vmem:[%s3258_s8 + $0x1d0] sm:$0xf0]  ;;  %v2189_v31 = vld [vmem:[%s3258_s8] sm:$0xf]  ;;  %v2262_v35 = vor.u32 %v2791_v26, %v2261_v25  ;;  %v2334_v36 = vor.u32 %v2809_v28, %v2333_v27 }
  0x85   : > { %2916 = vmatpush.bf16.msra.mxu1 %v2847_v18  ;;  %2917 = vmatpush.bf16.msra.mxu2 %v2847_v18  ;;  %v2773_v32 = vld [vmem:[%s3258_s8 + $0x20] sm:$0xf0]  ;;  %v2864_v33 = vld [vmem:[%s3256_s7 + $0xb8] sm:$0xff]  ;;  %v2406_v37 = vor.u32 %v2827_v30, %v2405_v29  ;;  %v2863_v41 = vld [vmem:[%s3256_s7 + $0xb0] sm:$0xff] }
  0x86   : > { %2918 = vmatpush.bf16.msra.mxu3 %v2847_v18  ;;  %1503 = vmatpush.bf16.msra.mxu0 %v2847_v18  ;;  %v2856_v34 = vld [vmem:[%s3256_s7 + $0x78] sm:$0xff]  ;;  %v2190_v38 = vor.u32 %v2773_v32, %v2189_v31  ;;  %v2855_v42 = vld [vmem:[%s3256_s7 + $0x70] sm:$0xff]  ;;  %v2862_v45 = vld [vmem:[%s3256_s7 + $0xa8] sm:$0xff] }
  0x87   : > { %v2872_v39 = vld [vmem:[%s3256_s7 + $0xf8] sm:$0xff]  ;;  %v2871_v43 = vld [vmem:[%s3256_s7 + $0xf0] sm:$0xff]  ;;  %v2854_v46 = vld [vmem:[%s3256_s7 + $0x68] sm:$0xff] }
  0x88   : > { %v2880_v40 = vld [vmem:[%s3256_s7 + $0x138] sm:$0xff]  ;;  %v2879_v44 = vld [vmem:[%s3256_s7 + $0x130] sm:$0xff]  ;;  %v2870_v47 = vld [vmem:[%s3256_s7 + $0xe8] sm:$0xff] }
  0x89   : > { %2919 = vmatpush.bf16.msra.mxu1 %v2846_v19  ;;  %2920 = vmatpush.bf16.msra.mxu2 %v2846_v19  ;;  %v2878_v48 = vld [vmem:[%s3256_s7 + $0x128] sm:$0xff]  ;;  %v2861_v49 = vld [vmem:[%s3256_s7 + $0xa0] sm:$0xff]  ;;  %v2297_v53 = vld [vmem:[%s3258_s8 + $0xd8] sm:$0xf] }
  0x8a   : > { %2921 = vmatpush.bf16.msra.mxu3 %v2846_v19  ;;  %1504 = vmatpush.bf16.msra.mxu0 %v2846_v19  ;;  %v2853_v50 = vld [vmem:[%s3256_s7 + $0x60] sm:$0xff]  ;;  %v2800_v54 = vld [vmem:[%s3258_s8 + $0xf8] sm:$0xf0]  ;;  %v2369_v55 = vld [vmem:[%s3258_s8 + $0x168] sm:$0xf] }
  0x8b   : > { %v2869_v51 = vld [vmem:[%s3256_s7 + $0xe0] sm:$0xff]  ;;  %v2818_v56 = vld [vmem:[%s3258_s8 + $0x188] sm:$0xf0]  ;;  %v2441_v57 = vld [vmem:[%s3258_s8 + $0x1f8] sm:$0xf]  ;;  %v2298_v63 = vor.u32 %v2800_v54, %v2297_v53 }
  0x8c   : > { %v2877_v52 = vld [vmem:[%s3256_s7 + $0x120] sm:$0xff]  ;;  %v2836_v58 = vld [vmem:[%s3258_s8 + $0x218] sm:$0xf0]  ;;  %v2225_v59 = vld [vmem:[%s3258_s8 + $0x48] sm:$0xf]  ;;  %v2370_v0 = vor.u32 %v2818_v56, %v2369_v55 }
  0x8d   : > { %2922 = vmatpush.bf16.msra.mxu1 %v2845_v20  ;;  %2923 = vmatpush.bf16.msra.mxu2 %v2845_v20  ;;  %v2782_v60 = vld [vmem:[%s3258_s8 + $0x68] sm:$0xf0]  ;;  %v2860_v61 = vld [vmem:[%s3256_s7 + $0x98] sm:$0xff]  ;;  %v2442_v1 = vor.u32 %v2836_v58, %v2441_v57  ;;  %v2859_v5 = vld [vmem:[%s3256_s7 + $0x90] sm:$0xff] }
  0x8e   : > { %2924 = vmatpush.bf16.msra.mxu3 %v2845_v20  ;;  %1505 = vmatpush.bf16.msra.mxu0 %v2845_v20  ;;  %v2852_v62 = vld [vmem:[%s3256_s7 + $0x58] sm:$0xff]  ;;  %v2226_v2 = vor.u32 %v2782_v60, %v2225_v59  ;;  %v2851_v6 = vld [vmem:[%s3256_s7 + $0x50] sm:$0xff]  ;;  %v2858_v9 = vld [vmem:[%s3256_s7 + $0x88] sm:$0xff] }
  0x8f   : > { %v2868_v3 = vld [vmem:[%s3256_s7 + $0xd8] sm:$0xff]  ;;  %v2867_v7 = vld [vmem:[%s3256_s7 + $0xd0] sm:$0xff]  ;;  %v2850_v10 = vld [vmem:[%s3256_s7 + $0x48] sm:$0xff] }
  0x90   : > { %v2876_v4 = vld [vmem:[%s3256_s7 + $0x118] sm:$0xff]  ;;  %v2875_v8 = vld [vmem:[%s3256_s7 + $0x110] sm:$0xff]  ;;  %v2866_v11 = vld [vmem:[%s3256_s7 + $0xc8] sm:$0xff] }
  0x91   : > { %2925 = vmatpush.bf16.msra.mxu1 %v2844_v21  ;;  %2926 = vmatpush.bf16.msra.mxu2 %v2844_v21  ;;  %v2874_v12 = vld [vmem:[%s3256_s7 + $0x108] sm:$0xff]  ;;  %v2857_v13 = vld [vmem:[%s3256_s7 + $0x80] sm:$0xff]  ;;  %v2896_v19 = vld [vmem:[%s3256_s7 + $0x1b8] sm:$0xff] }
  0x92   : > { %2927 = vmatpush.bf16.msra.mxu3 %v2844_v21  ;;  %1506 = vmatpush.bf16.msra.mxu0 %v2844_v21  ;;  %v2849_v14 = vld [vmem:[%s3256_s7 + $0x40] sm:$0xff]  ;;  %v2191_v18 = vld [vmem:[%s3258_s8 + $0x24] sm:$0xf0]  ;;  %v2888_v20 = vld [vmem:[%s3256_s7 + $0x178] sm:$0xff] }
  0x93   : > { %v2769_v15 = vld [vmem:[%s3258_s8 + $0x4] sm:$0xf]  ;;  %v2197_v21 = vld [vmem:[%s3258_s8 + $0x8] sm:$0xf]  ;;  %v2205_v25 = vld [vmem:[%s3258_s8 + $0x10] sm:$0xf] }
  0x94   : > { %v2865_v16 = vld [vmem:[%s3256_s7 + $0xc0] sm:$0xff]  ;;  %v2775_v26 = vld [vmem:[%s3258_s8 + $0x30] sm:$0xf0]  ;;  %v2904_v27 = vld [vmem:[%s3256_s7 + $0x1f8] sm:$0xff]  ;;  %v2194_v29 = vor.u32 %v2769_v15, %v2191_v18 }
  0x95   : > { %2928 = vmatpush.bf16.msra.mxu1 %v2843_v22  ;;  %2929 = vmatpush.bf16.msra.mxu2 %v2843_v22  ;;  %v2873_v17 = vld [vmem:[%s3256_s7 + $0x100] sm:$0xff]  ;;  %v2912_v28 = vld [vmem:[%s3256_s7 + $0x238] sm:$0xff]  ;;  %v2206_v32 = vor.u32 %v2775_v26, %v2205_v25  ;;  %v2787_v57 = vld [vmem:[%s3258_s8 + $0x94] sm:$0xf] }
  0x96   : > { %2930 = vmatpush.bf16.msra.mxu3 %v2843_v22  ;;  %1507 = vmatpush.bf16.msra.mxu0 %v2843_v22  ;;  %v2774_v22 = vld [vmem:[%s3258_s8 + $0x28] sm:$0xf0]  ;;  %v2893_v53 = vld [vmem:[%s3256_s7 + $0x1a0] sm:$0xff]  ;;  %v2263_v58 = vld [vmem:[%s3258_s8 + $0xb4] sm:$0xf0] }
  0x97   : > { %v2198_v30 = vor.u32 %v2774_v22, %v2197_v21  ;;  %v2901_v54 = vld [vmem:[%s3256_s7 + $0x1e0] sm:$0xff]  ;;  %v2269_v59 = vld [vmem:[%s3258_s8 + $0x98] sm:$0xf]  ;;  %v2792_v60 = vld [vmem:[%s3258_s8 + $0xb8] sm:$0xf0] }
  0x98   : > { %v2885_v55 = vld [vmem:[%s3256_s7 + $0x160] sm:$0xff]  ;;  %v2313_v15 = vld [vmem:[%s3258_s8 + $0xe8] sm:$0xf]  ;;  %v2891_v21 = vld [vmem:[%s3256_s7 + $0x190] sm:$0xff] }
  0x99   : > { %2931 = vmatpush.bf16.msra.mxu1 %v2842_v23  ;;  %2932 = vmatpush.bf16.msra.mxu2 %v2842_v23  ;;  %v2909_v56 = vld [vmem:[%s3256_s7 + $0x220] sm:$0xff]  ;;  %v2899_v22 = vld [vmem:[%s3256_s7 + $0x1d0] sm:$0xff]  ;;  %v2335_v26 = vld [vmem:[%s3258_s8 + $0x144] sm:$0xf0] }
  0x9a   : > { %2933 = vmatpush.bf16.msra.mxu3 %v2842_v23  ;;  %1508 = vmatpush.bf16.msra.mxu0 %v2842_v23  ;;  %v2770_v23 = vld [vmem:[%s3258_s8 + $0xc] sm:$0xf]  ;;  %v2805_v25 = vld [vmem:[%s3258_s8 + $0x124] sm:$0xf] }
  0x9d   : > { %2934 = vmatpush.bf16.msra.mxu1 %v2841_v24  ;;  %2935 = vmatpush.bf16.msra.mxu2 %v2841_v24 }
  0x9e   : > { %2936 = vmatpush.bf16.msra.mxu3 %v2841_v24  ;;  %1509 = vmatpush.bf16.msra.mxu0 %v2841_v24  ;;  %v2199_v24 = vld [vmem:[%s3258_s8 + $0x2c] sm:$0xf0] }
  0x9f   : > { %v2202_v31 = vor.u32 %v2770_v23, %v2199_v24  ;;  %v2883_v23 = vld [vmem:[%s3256_s7 + $0x150] sm:$0xff] }
  0xa0   : > { %1520 = vmatmul.bf16.vlgmr.msra.gmra.mxu1 %v2262_v35  ;;  %1530 = vmatmul.bf16.vlgmr.msra.gmra.mxu2 %v2334_v36  ;;  %v2903_v35 = vld [vmem:[%s3256_s7 + $0x1f0] sm:$0xff] }
  0xa1   : > { %1600 = vmatpush.bf16.msrb.mxu2 %v2864_v33  ;;  %1551 = vmatpush.bf16.msrb.mxu1 %v2856_v34  ;;  %v2895_v33 = vld [vmem:[%s3256_s7 + $0x1b0] sm:$0xff] }
  0xa2   : > { %1540 = vmatmul.bf16.vlgmr.msra.gmra.mxu3 %v2406_v37  ;;  %1510 = vmatmul.bf16.vlgmr.msra.gmra.mxu0 %v2190_v38  ;;  %v2887_v34 = vld [vmem:[%s3256_s7 + $0x170] sm:$0xff]  ;;  %v2894_v37 = vld [vmem:[%s3256_s7 + $0x1a8] sm:$0xff] }
  0xa3   : > { %1649 = vmatpush.bf16.msrb.mxu3 %v2872_v39  ;;  %1698 = vmatpush.bf16.msrb.mxu0 %v2880_v40  ;;  %v2911_v36 = vld [vmem:[%s3256_s7 + $0x230] sm:$0xff]  ;;  %v2886_v38 = vld [vmem:[%s3256_s7 + $0x168] sm:$0xff] }
  0xa4   : > { %v2902_v39 = vld [vmem:[%s3256_s7 + $0x1e8] sm:$0xff]  ;;  %v2907_v24 = vld [vmem:[%s3256_s7 + $0x210] sm:$0xff] }
  0xa5   : > { %1601 = vmatpush.bf16.msrb.mxu2 %v2863_v41  ;;  %1552 = vmatpush.bf16.msrb.mxu1 %v2855_v42  ;;  %v2910_v40 = vld [vmem:[%s3256_s7 + $0x228] sm:$0xff]  ;;  %v2227_v42 = vld [vmem:[%s3258_s8 + $0x6c] sm:$0xf0] }
  0xa6   : > { %v2778_v41 = vld [vmem:[%s3258_s8 + $0x4c] sm:$0xf] }
  0xa7   : > { %1650 = vmatpush.bf16.msrb.mxu3 %v2871_v43  ;;  %1699 = vmatpush.bf16.msrb.mxu0 %v2879_v44  ;;  %v2233_v43 = vld [vmem:[%s3258_s8 + $0x50] sm:$0xf]  ;;  %v2783_v44 = vld [vmem:[%s3258_s8 + $0x70] sm:$0xf0] }
  0xa9   : > { %1602 = vmatpush.bf16.msrb.mxu2 %v2862_v45  ;;  %1553 = vmatpush.bf16.msrb.mxu1 %v2854_v46  ;;  %v2779_v45 = vld [vmem:[%s3258_s8 + $0x54] sm:$0xf]  ;;  %v2235_v46 = vld [vmem:[%s3258_s8 + $0x74] sm:$0xf0] }
  0xab   : > { %1651 = vmatpush.bf16.msrb.mxu3 %v2870_v47  ;;  %1700 = vmatpush.bf16.msrb.mxu0 %v2878_v48  ;;  %v2241_v47 = vld [vmem:[%s3258_s8 + $0x58] sm:$0xf]  ;;  %v2784_v48 = vld [vmem:[%s3258_s8 + $0x78] sm:$0xf0] }
  0xad   : > { %1603 = vmatpush.bf16.msrb.mxu2 %v2861_v49  ;;  %1554 = vmatpush.bf16.msrb.mxu1 %v2853_v50  ;;  %v2230_v49 = vor.u32 %v2778_v41, %v2227_v42  ;;  %v2234_v50 = vor.u32 %v2783_v44, %v2233_v43  ;;  %v2814_v41 = vld [vmem:[%s3258_s8 + $0x16c] sm:$0xf]  ;;  %v2371_v42 = vld [vmem:[%s3258_s8 + $0x18c] sm:$0xf0]  ;;  %v2819_v44 = vld [vmem:[%s3258_s8 + $0x190] sm:$0xf0] }
  0xae   : > { %v2377_v43 = vld [vmem:[%s3258_s8 + $0x170] sm:$0xf] }
  0xaf   : > { %1652 = vmatpush.bf16.msrb.mxu3 %v2869_v51  ;;  %1701 = vmatpush.bf16.msrb.mxu0 %v2877_v52  ;;  %v2238_v51 = vor.u32 %v2779_v45, %v2235_v46  ;;  %v2242_v52 = vor.u32 %v2784_v48, %v2241_v47  ;;  %v2815_v45 = vld [vmem:[%s3258_s8 + $0x174] sm:$0xf]  ;;  %v2379_v46 = vld [vmem:[%s3258_s8 + $0x194] sm:$0xf0]  ;;  %v2820_v48 = vld [vmem:[%s3258_s8 + $0x198] sm:$0xf0] }
  0xb0   : > { %1525 = vmatmul.bf16.gmra.mxu1 %v2298_v63  ;;  %1535 = vmatmul.bf16.gmra.mxu2 %v2370_v0  ;;  %v2277_v63 = vld [vmem:[%s3258_s8 + $0xa0] sm:$0xf]  ;;  %v2793_v0 = vld [vmem:[%s3258_s8 + $0xc0] sm:$0xf0]  ;;  %v2385_v47 = vld [vmem:[%s3258_s8 + $0x178] sm:$0xf] }
  0xb1   : > { %1604 = vmatpush.bf16.msrb.mxu2 %v2860_v61  ;;  %1555 = vmatpush.bf16.msrb.mxu1 %v2852_v62  ;;  %v2788_v61 = vld [vmem:[%s3258_s8 + $0x9c] sm:$0xf]  ;;  %v2271_v62 = vld [vmem:[%s3258_s8 + $0xbc] sm:$0xf0] }
  0xb2   : > { %1545 = vmatmul.bf16.gmra.mxu3 %v2442_v1  ;;  %1515 = vmatmul.bf16.gmra.mxu0 %v2226_v2  ;;  %v2266_v1 = vor.u32 %v2787_v57, %v2263_v58  ;;  %v2270_v2 = vor.u32 %v2792_v60, %v2269_v59  ;;  %v2823_v57 = vld [vmem:[%s3258_s8 + $0x1b4] sm:$0xf]  ;;  %v2407_v58 = vld [vmem:[%s3258_s8 + $0x1d4] sm:$0xf0]  ;;  %v2828_v60 = vld [vmem:[%s3258_s8 + $0x1d8] sm:$0xf0] }
  0xb3   : > { %1653 = vmatpush.bf16.msrb.mxu3 %v2868_v3  ;;  %1702 = vmatpush.bf16.msrb.mxu0 %v2876_v4  ;;  %v2274_v3 = vor.u32 %v2788_v61, %v2271_v62  ;;  %v2278_v4 = vor.u32 %v2793_v0, %v2277_v63  ;;  %v2413_v59 = vld [vmem:[%s3258_s8 + $0x1b8] sm:$0xf]  ;;  %v2824_v61 = vld [vmem:[%s3258_s8 + $0x1bc] sm:$0xf]  ;;  %v2415_v62 = vld [vmem:[%s3258_s8 + $0x1dc] sm:$0xf0] }
  0xb4   : > { %v2421_v63 = vld [vmem:[%s3258_s8 + $0x1c0] sm:$0xf]  ;;  %v2829_v0 = vld [vmem:[%s3258_s8 + $0x1e0] sm:$0xf0] }
  0xb5   : > { %1605 = vmatpush.bf16.msrb.mxu2 %v2859_v5  ;;  %1556 = vmatpush.bf16.msrb.mxu1 %v2851_v6  ;;  %v2892_v5 = vld [vmem:[%s3256_s7 + $0x198] sm:$0xff] }
  0xb6   : > { %v2900_v6 = vld [vmem:[%s3256_s7 + $0x1d8] sm:$0xff] }
  0xb7   : > { %1654 = vmatpush.bf16.msrb.mxu3 %v2867_v7  ;;  %1703 = vmatpush.bf16.msrb.mxu0 %v2875_v8  ;;  %v2884_v7 = vld [vmem:[%s3256_s7 + $0x158] sm:$0xff] }
  0xb8   : > { %v2908_v8 = vld [vmem:[%s3256_s7 + $0x218] sm:$0xff] }
  0xb9   : > { %1606 = vmatpush.bf16.msrb.mxu2 %v2858_v9  ;;  %1557 = vmatpush.bf16.msrb.mxu1 %v2850_v10  ;;  %v2796_v9 = vld [vmem:[%s3258_s8 + $0xdc] sm:$0xf]  ;;  %v2299_v10 = vld [vmem:[%s3258_s8 + $0xfc] sm:$0xf0] }
  0xbb   : > { %1655 = vmatpush.bf16.msrb.mxu3 %v2866_v11  ;;  %1704 = vmatpush.bf16.msrb.mxu0 %v2874_v12  ;;  %v2305_v11 = vld [vmem:[%s3258_s8 + $0xe0] sm:$0xf]  ;;  %v2801_v12 = vld [vmem:[%s3258_s8 + $0x100] sm:$0xf0] }
  0xbc   : > { %v2306_v18 = vor.u32 %v2801_v12, %v2305_v11  ;;  %v2832_v11 = vld [vmem:[%s3258_s8 + $0x1fc] sm:$0xf]  ;;  %v2443_v12 = vld [vmem:[%s3258_s8 + $0x21c] sm:$0xf0] }
  0xbd   : > { %1607 = vmatpush.bf16.msrb.mxu2 %v2857_v13  ;;  %1558 = vmatpush.bf16.msrb.mxu1 %v2849_v14  ;;  %v2797_v13 = vld [vmem:[%s3258_s8 + $0xe4] sm:$0xf]  ;;  %v2307_v14 = vld [vmem:[%s3258_s8 + $0x104] sm:$0xf0] }
  0xbf   : > { %1656 = vmatpush.bf16.msrb.mxu3 %v2865_v16  ;;  %1705 = vmatpush.bf16.msrb.mxu0 %v2873_v17  ;;  %v2802_v16 = vld [vmem:[%s3258_s8 + $0x108] sm:$0xf0]  ;;  %v2302_v17 = vor.u32 %v2796_v9, %v2299_v10 }
  0xc0   : > { %1559 = vmatmul.bf16.vlgmr.msrb.gmra.mxu1 %v2194_v29  ;;  %1608 = vmatmul.bf16.vlgmr.msrb.gmra.mxu2 %v2198_v30  ;;  %v2806_v29 = vld [vmem:[%s3258_s8 + $0x12c] sm:$0xf]  ;;  %v2343_v30 = vld [vmem:[%s3258_s8 + $0x14c] sm:$0xf0] }
  0xc1   : > { %1796 = vmatpush.bf16.msra.mxu2 %v2896_v19  ;;  %1747 = vmatpush.bf16.msra.mxu1 %v2888_v20  ;;  %v2310_v19 = vor.u32 %v2797_v13, %v2307_v14  ;;  %v2314_v20 = vor.u32 %v2802_v16, %v2313_v15  ;;  %v2449_v13 = vld [vmem:[%s3258_s8 + $0x200] sm:$0xf]  ;;  %v2837_v14 = vld [vmem:[%s3258_s8 + $0x220] sm:$0xf0]  ;;  %v2451_v16 = vld [vmem:[%s3258_s8 + $0x224] sm:$0xf0] }
  0xc2   : > { %1657 = vmatmul.bf16.vlgmr.msrb.gmra.mxu3 %v2202_v31  ;;  %1706 = vmatmul.bf16.vlgmr.msrb.gmra.mxu0 %v2206_v32  ;;  %v2349_v31 = vld [vmem:[%s3258_s8 + $0x130] sm:$0xf]  ;;  %v2811_v32 = vld [vmem:[%s3258_s8 + $0x150] sm:$0xf0]  ;;  %v2833_v15 = vld [vmem:[%s3258_s8 + $0x204] sm:$0xf] }
  0xc3   : > { %1845 = vmatpush.bf16.msra.mxu3 %v2904_v27  ;;  %1894 = vmatpush.bf16.msra.mxu0 %v2912_v28  ;;  %v2341_v27 = vld [vmem:[%s3258_s8 + $0x128] sm:$0xf]  ;;  %v2810_v28 = vld [vmem:[%s3258_s8 + $0x148] sm:$0xf0] }
  0xc5   : > { %1797 = vmatpush.bf16.msra.mxu2 %v2895_v33  ;;  %1748 = vmatpush.bf16.msra.mxu1 %v2887_v34  ;;  %v2338_v33 = vor.u32 %v2805_v25, %v2335_v26  ;;  %v2342_v34 = vor.u32 %v2810_v28, %v2341_v27 }
  0xc7   : > { %1846 = vmatpush.bf16.msra.mxu3 %v2903_v35  ;;  %1895 = vmatpush.bf16.msra.mxu0 %v2911_v36  ;;  %v2346_v35 = vor.u32 %v2806_v29, %v2343_v30  ;;  %v2350_v36 = vor.u32 %v2811_v32, %v2349_v31  ;;  %v2771_v31 = vld [vmem:[%s3258_s8 + $0x14] sm:$0xf]  ;;  %v2207_v32 = vld [vmem:[%s3258_s8 + $0x34] sm:$0xf0] }
  0xc9   : > { %1798 = vmatpush.bf16.msra.mxu2 %v2894_v37  ;;  %1749 = vmatpush.bf16.msra.mxu1 %v2886_v38  ;;  %v2890_v37 = vld [vmem:[%s3256_s7 + $0x188] sm:$0xff] }
  0xca   : > { %v2898_v38 = vld [vmem:[%s3256_s7 + $0x1c8] sm:$0xff] }
  0xcb   : > { %1847 = vmatpush.bf16.msra.mxu3 %v2902_v39  ;;  %1896 = vmatpush.bf16.msra.mxu0 %v2910_v40  ;;  %v2882_v39 = vld [vmem:[%s3256_s7 + $0x148] sm:$0xff] }
  0xcc   : > { %v2906_v40 = vld [vmem:[%s3256_s7 + $0x208] sm:$0xff] }
  0xcd   : > { %1799 = vmatpush.bf16.msra.mxu2 %v2893_v53  ;;  %1750 = vmatpush.bf16.msra.mxu1 %v2885_v55  ;;  %v2889_v53 = vld [vmem:[%s3256_s7 + $0x180] sm:$0xff] }
  0xce   : > { %v2881_v55 = vld [vmem:[%s3256_s7 + $0x140] sm:$0xff] }
  0xcf   : > { %1848 = vmatpush.bf16.msra.mxu3 %v2901_v54  ;;  %1897 = vmatpush.bf16.msra.mxu0 %v2909_v56  ;;  %v2897_v54 = vld [vmem:[%s3256_s7 + $0x1c0] sm:$0xff] }
  0xd0   : > { %1564 = vmatmul.bf16.gmra.mxu1 %v2230_v49  ;;  %1613 = vmatmul.bf16.gmra.mxu2 %v2234_v50  ;;  %v2374_v49 = vor.u32 %v2814_v41, %v2371_v42  ;;  %v2378_v50 = vor.u32 %v2819_v44, %v2377_v43  ;;  %v2905_v56 = vld [vmem:[%s3256_s7 + $0x200] sm:$0xff]  ;;  %v2210_v41 = vor.u32 %v2771_v31, %v2207_v32  ;;  %v2279_v31 = vld [vmem:[%s3258_s8 + $0xc4] sm:$0xf0] }
  0xd1   : > { %1800 = vmatpush.bf16.msra.mxu2 %v2892_v5  ;;  %1751 = vmatpush.bf16.msra.mxu1 %v2884_v7  ;;  %v2422_v5 = vor.u32 %v2829_v0, %v2421_v63  ;;  %v2786_v63 = vld [vmem:[%s3258_s8 + $0x88] sm:$0xf0] }
  0xd2   : > { %1662 = vmatmul.bf16.gmra.mxu3 %v2238_v51  ;;  %1711 = vmatmul.bf16.gmra.mxu0 %v2242_v52  ;;  %v2382_v51 = vor.u32 %v2815_v45, %v2379_v46  ;;  %v2386_v52 = vor.u32 %v2820_v48, %v2385_v47 }
  0xd3   : > { %1849 = vmatpush.bf16.msra.mxu3 %v2900_v6  ;;  %1898 = vmatpush.bf16.msra.mxu0 %v2908_v8 }
  0xd5   : > { %1801 = vmatpush.bf16.msra.mxu2 %v2891_v21  ;;  %1752 = vmatpush.bf16.msra.mxu1 %v2883_v23  ;;  %v2446_v21 = vor.u32 %v2832_v11, %v2443_v12 }
  0xd7   : > { %1850 = vmatpush.bf16.msra.mxu3 %v2899_v22  ;;  %1899 = vmatpush.bf16.msra.mxu0 %v2907_v24  ;;  %v2450_v22 = vor.u32 %v2837_v14, %v2449_v13  ;;  %v2454_v24 = vor.u32 %v2833_v15, %v2451_v16 }
  0xd9   : > { %1802 = vmatpush.bf16.msra.mxu2 %v2890_v37  ;;  %1753 = vmatpush.bf16.msra.mxu1 %v2882_v39  ;;  %v2221_v37 = vld [vmem:[%s3258_s8 + $0x20] sm:$0xf] }
  0xdb   : > { %1851 = vmatpush.bf16.msra.mxu3 %v2898_v38  ;;  %1900 = vmatpush.bf16.msra.mxu0 %v2906_v40  ;;  %v2777_v38 = vld [vmem:[%s3258_s8 + $0x40] sm:$0xf0] }
  0xdc   : > { %v2222_v45 = vor.u32 %v2777_v38, %v2221_v37  ;;  %v2293_v37 = vld [vmem:[%s3258_s8 + $0xb0] sm:$0xf]  ;;  %v2795_v38 = vld [vmem:[%s3258_s8 + $0xd0] sm:$0xf0] }
  0xdd   : > { %1803 = vmatpush.bf16.msra.mxu2 %v2889_v53  ;;  %1754 = vmatpush.bf16.msra.mxu1 %v2881_v55  ;;  %v2780_v55 = vld [vmem:[%s3258_s8 + $0x5c] sm:$0xf] }
  0xdf   : > { %1852 = vmatpush.bf16.msra.mxu3 %v2897_v54  ;;  %1901 = vmatpush.bf16.msra.mxu0 %v2905_v56  ;;  %v2243_v56 = vld [vmem:[%s3258_s8 + $0x7c] sm:$0xf0] }
  0xe0   : > { %1569 = vmatmul.bf16.gmra.mxu1 %v2266_v1  ;;  %1618 = vmatmul.bf16.gmra.mxu2 %v2270_v2  ;;  %v2410_v1 = vor.u32 %v2823_v57, %v2407_v58  ;;  %v2414_v2 = vor.u32 %v2828_v60, %v2413_v59  ;;  %v2249_v58 = vld [vmem:[%s3258_s8 + $0x60] sm:$0xf]  ;;  %v2785_v59 = vld [vmem:[%s3258_s8 + $0x80] sm:$0xf0] }
  0xe1   : > { %v2781_v60 = vld [vmem:[%s3258_s8 + $0x64] sm:$0xf] }
  0xe2   : > { %1667 = vmatmul.bf16.gmra.mxu3 %v2274_v3  ;;  %1716 = vmatmul.bf16.gmra.mxu0 %v2278_v4  ;;  %v2418_v4 = vor.u32 %v2824_v61, %v2415_v62  ;;  %v2251_v61 = vld [vmem:[%s3258_s8 + $0x84] sm:$0xf0] }
  0xe3   : > { %v2257_v62 = vld [vmem:[%s3258_s8 + $0x68] sm:$0xf]  ;;  %v2254_v11 = vor.u32 %v2781_v60, %v2251_v61  ;;  %v2315_v60 = vld [vmem:[%s3258_s8 + $0x10c] sm:$0xf0] }
  0xe4   : > { %v2258_v12 = vor.u32 %v2786_v63, %v2257_v62  ;;  %v2321_v62 = vld [vmem:[%s3258_s8 + $0xf0] sm:$0xf]  ;;  %v2803_v63 = vld [vmem:[%s3258_s8 + $0x110] sm:$0xf0] }
  0xf0   : > { %1574 = vmatmul.bf16.gmra.mxu1 %v2302_v17  ;;  %1623 = vmatmul.bf16.gmra.mxu2 %v2306_v18  ;;  %v2457_v17 = vld [vmem:[%s3258_s8 + $0x208] sm:$0xf]  ;;  %v2838_v18 = vld [vmem:[%s3258_s8 + $0x228] sm:$0xf0] }
  0xf1   : > { %v2458_v25 = vor.u32 %v2838_v18, %v2457_v17 }
  0xf2   : > { %1672 = vmatmul.bf16.gmra.mxu3 %v2310_v19  ;;  %1721 = vmatmul.bf16.gmra.mxu0 %v2314_v20 }
 0x100   : > { %1579 = vmatmul.bf16.gmra.mxu1 %v2338_v33  ;;  %1628 = vmatmul.bf16.gmra.mxu2 %v2342_v34  ;;  %v2213_v33 = vld [vmem:[%s3258_s8 + $0x18] sm:$0xf]  ;;  %v2776_v34 = vld [vmem:[%s3258_s8 + $0x38] sm:$0xf0] }
 0x101   : > { %v2214_v42 = vor.u32 %v2776_v34, %v2213_v33  ;;  %v2285_v33 = vld [vmem:[%s3258_s8 + $0xa8] sm:$0xf]  ;;  %v2794_v34 = vld [vmem:[%s3258_s8 + $0xc8] sm:$0xf0] }
 0x102   : > { %1677 = vmatmul.bf16.gmra.mxu3 %v2346_v35  ;;  %1726 = vmatmul.bf16.gmra.mxu0 %v2350_v36  ;;  %v2772_v35 = vld [vmem:[%s3258_s8 + $0x1c] sm:$0xf]  ;;  %v2215_v36 = vld [vmem:[%s3258_s8 + $0x3c] sm:$0xf0] }
 0x103   : > { %v2218_v44 = vor.u32 %v2772_v35, %v2215_v36  ;;  %v2790_v35 = vld [vmem:[%s3258_s8 + $0xac] sm:$0xf]  ;;  %v2287_v36 = vld [vmem:[%s3258_s8 + $0xcc] sm:$0xf0] }
 0x110   : > { %1584 = vmatmul.bf16.gmra.mxu1 %v2374_v49  ;;  %1633 = vmatmul.bf16.gmra.mxu2 %v2378_v50 }
 0x112   : > { %1682 = vmatmul.bf16.gmra.mxu3 %v2382_v51  ;;  %1731 = vmatmul.bf16.gmra.mxu0 %v2386_v52 }
 0x11d   : > { %v3421_v3 = vpop.f32.mrf.mxu1 }
 0x11f   : > { %v1511_v6 = vpop.f32.mrf.mxu0 }
 0x120   : > { %1589 = vmatmul.bf16.gmra.mxu1 %v2410_v1  ;;  %1638 = vmatmul.bf16.gmra.mxu2 %v2414_v2 }
 0x122   : > { %1687 = vmatmul.bf16.gmra.mxu3 %v2418_v4  ;;  %1736 = vmatmul.bf16.gmra.mxu0 %v2422_v5  ;;  %v2246_v4 = vor.u32 %v2780_v55, %v2243_v56  ;;  %v2250_v5 = vor.u32 %v2785_v59, %v2249_v58  ;;  %v2798_v59 = vld [vmem:[%s3258_s8 + $0xec] sm:$0xf] }
 0x123   : > { %v3423_v7 = vpop.f32.mrf.mxu2 }
 0x125   : > { %v3425_v8 = vpop.f32.mrf.mxu3  ;;  %v3427_v9 = vpop.f32.mrf.mxu1 }
 0x127   : > { %v1513_v10 = vpop.f32.mrf.mxu0 }
 0x12b   : > { %v3437_v19 = vpop.f32.mrf.mxu2 }
 0x12d   : > { %v3439_v20 = vpop.f32.mrf.mxu3  ;;  %v3441_v23 = vpop.f32.mrf.mxu1 }
 0x12f   : > { %v1516_v26 = vpop.f32.mrf.mxu0 }
 0x130   : > { %1594 = vmatmul.bf16.gmra.mxu1 %v2446_v21  ;;  %1643 = vmatmul.bf16.gmra.mxu2 %v2450_v22 }
 0x132   : > { %1692 = vmatmul.bf16.gmra.mxu3 %v2454_v24  ;;  %1741 = vmatmul.bf16.gmra.mxu0 %v2458_v25 }
 0x133   : > { %v3443_v27 = vpop.f32.mrf.mxu2 }
 0x135   : > { %v3445_v28 = vpop.f32.mrf.mxu3  ;;  %v3447_v29 = vpop.f32.mrf.mxu1 }
 0x137   : > { %v1518_v30 = vpop.f32.mrf.mxu0 }
 0x13b   : > { %v3457_v39 = vpop.f32.mrf.mxu2 }
 0x13d   : > { %v3459_v40 = vpop.f32.mrf.mxu3  ;;  %v1560_v43 = vpop.f32.mrf.mxu1 }
 0x13e   : > { %v1561_v46 = vadd.f32 %v1560_v43, %v1511_v6 }
 0x13f   : > { %v1707_v47 = vpop.f32.mrf.mxu0 }
 0x140   : > { %1755 = vmatmul.bf16.vlgmr.msra.gmra.mxu1 %v2210_v41  ;;  %1804 = vmatmul.bf16.vlgmr.msra.gmra.mxu2 %v2214_v42 }
 0x142   : > { %1853 = vmatmul.bf16.vlgmr.msra.gmra.mxu3 %v2218_v44  ;;  %1902 = vmatmul.bf16.vlgmr.msra.gmra.mxu0 %v2222_v45  ;;  %v2286_v45 = vor.u32 %v2794_v34, %v2285_v33  ;;  %v2807_v34 = vld [vmem:[%s3258_s8 + $0x134] sm:$0xf] }
 0x143   : > { %v1609_v48 = vpop.f32.mrf.mxu2 }
 0x144   : > { %v1610_v49 = vadd.f32 %v1609_v48, %v1561_v46  ;;  %v2294_v48 = vor.u32 %v2795_v38, %v2293_v37  ;;  %v2357_v37 = vld [vmem:[%s3258_s8 + $0x138] sm:$0xf]  ;;  %v2812_v38 = vld [vmem:[%s3258_s8 + $0x158] sm:$0xf0] }
 0x145   : > { %v1658_v50 = vpop.f32.mrf.mxu3  ;;  %v1562_v51 = vpop.f32.mrf.mxu1 }
 0x146   : > { %v1659_v52 = vadd.f32 %v1658_v50, %v1610_v49  ;;  %v1563_v53 = vadd.f32 %v1562_v51, %v1513_v10 }
 0x147   : > { %v1709_v54 = vpop.f32.mrf.mxu0 }
 0x148   : > { %v3463_v57 = vadd.f32 %v1707_v47, %v1659_v52  ;;  %v2290_v47 = vor.u32 %v2790_v35, %v2287_v36  ;;  %v2351_v35 = vld [vmem:[%s3258_s8 + $0x154] sm:$0xf0] }
 0x14b   : > { %v1611_v0 = vpop.f32.mrf.mxu2 }
 0x14c   : > { %v1612_v1 = vadd.f32 %v1611_v0, %v1563_v53  ;;  %v2799_v0 = vld [vmem:[%s3258_s8 + $0xf4] sm:$0xf] }
 0x14d   : > { %v1660_v2 = vpop.f32.mrf.mxu3  ;;  %v1565_v6 = vpop.f32.mrf.mxu1 }
 0x14e   : > { %v1661_v10 = vadd.f32 %v1660_v2, %v1612_v1  ;;  %v1566_v13 = vadd.f32 %v1565_v6, %v1516_v26  ;;  %v2789_v26 = vld [vmem:[%s3258_s8 + $0xa4] sm:$0xf]  ;;  %v2323_v1 = vld [vmem:[%s3258_s8 + $0x114] sm:$0xf0] }
 0x14f   : > { %v1712_v14 = vpop.f32.mrf.mxu0  ;;  %v2282_v44 = vor.u32 %v2789_v26, %v2279_v31  ;;  %v2329_v2 = vld [vmem:[%s3258_s8 + $0xf8] sm:$0xf] }
 0x150   : > { %1760 = vmatmul.bf16.gmra.mxu1 %v2246_v4  ;;  %1809 = vmatmul.bf16.gmra.mxu2 %v2250_v5  ;;  %v3471_v15 = vadd.f32 %v1709_v54, %v1661_v10  ;;  %v2804_v4 = vld [vmem:[%s3258_s8 + $0x118] sm:$0xf0]  ;;  %v2322_v10 = vor.u32 %v2803_v63, %v2321_v62 }
 0x151   : > { %v2816_v63 = vld [vmem:[%s3258_s8 + $0x17c] sm:$0xf] }
 0x152   : > { %1858 = vmatmul.bf16.gmra.mxu3 %v2254_v11  ;;  %1907 = vmatmul.bf16.gmra.mxu0 %v2258_v12  ;;  %v2318_v12 = vor.u32 %v2798_v59, %v2315_v60 }
 0x153   : > { %v1614_v16 = vpop.f32.mrf.mxu2 }
 0x154   : > { %v1615_v17 = vadd.f32 %v1614_v16, %v1566_v13  ;;  %v2330_v16 = vor.u32 %v2804_v4, %v2329_v2  ;;  %v2393_v2 = vld [vmem:[%s3258_s8 + $0x180] sm:$0xf]  ;;  %v2821_v4 = vld [vmem:[%s3258_s8 + $0x1a0] sm:$0xf0] }
 0x155   : > { %v1663_v18 = vpop.f32.mrf.mxu3  ;;  %v1567_v21 = vpop.f32.mrf.mxu1 }
 0x156   : > { %v1664_v22 = vadd.f32 %v1663_v18, %v1615_v17  ;;  %v1568_v24 = vadd.f32 %v1567_v21, %v1518_v30 }
 0x157   : > { %v1714_v25 = vpop.f32.mrf.mxu0 }
 0x158   : > { %v3475_v32 = vadd.f32 %v1712_v14, %v1664_v22  ;;  %v2326_v14 = vor.u32 %v2799_v0, %v2323_v1  ;;  %v2387_v0 = vld [vmem:[%s3258_s8 + $0x19c] sm:$0xf0] }
 0x15b   : > { %v1616_v41 = vpop.f32.mrf.mxu2 }
 0x15c   : > { %v1617_v42 = vadd.f32 %v1616_v41, %v1568_v24  ;;  %v2808_v41 = vld [vmem:[%s3258_s8 + $0x13c] sm:$0xf] }
 0x15d   : > { %v1665_v43 = vpop.f32.mrf.mxu3  ;;  %v1570_v46 = vpop.f32.mrf.mxu1 }
 0x15e   : > { %v1666_v30 = vadd.f32 %v1665_v43, %v1617_v42  ;;  %v1571_v49 = vadd.f32 %v1570_v46, %v3421_v3  ;;  %v2359_v42 = vld [vmem:[%s3258_s8 + $0x15c] sm:$0xf0] }
 0x15f   : > { %v1717_v50 = vpop.f32.mrf.mxu0  ;;  %v2365_v43 = vld [vmem:[%s3258_s8 + $0x140] sm:$0xf] }
 0x160   : > { %1765 = vmatmul.bf16.gmra.mxu1 %v2282_v44  ;;  %1814 = vmatmul.bf16.gmra.mxu2 %v2286_v45  ;;  %v3484_v51 = vadd.f32 %v1714_v25, %v1666_v30  ;;  %v2813_v44 = vld [vmem:[%s3258_s8 + $0x160] sm:$0xf0]  ;;  %v2358_v30 = vor.u32 %v2812_v38, %v2357_v37 }
 0x161   : > { %v2825_v38 = vld [vmem:[%s3258_s8 + $0x1c4] sm:$0xf] }
 0x162   : > { %1863 = vmatmul.bf16.gmra.mxu3 %v2290_v47  ;;  %1912 = vmatmul.bf16.gmra.mxu0 %v2294_v48  ;;  %v2354_v48 = vor.u32 %v2807_v34, %v2351_v35 }
 0x163   : > { %v1619_v52 = vpop.f32.mrf.mxu2 }
 0x164   : > { %v1620_v53 = vadd.f32 %v1619_v52, %v1571_v49 }
 0x165   : > { %v1668_v54 = vpop.f32.mrf.mxu3  ;;  %v1572_v55 = vpop.f32.mrf.mxu1 }
 0x166   : > { %v1669_v56 = vadd.f32 %v1668_v54, %v1620_v53  ;;  %v1573_v3 = vadd.f32 %v1572_v55, %v3427_v9 }
 0x167   : > { %v1719_v58 = vpop.f32.mrf.mxu0 }
 0x168   : > { %v3489_v61 = vadd.f32 %v1717_v50, %v1669_v56  ;;  %v2362_v50 = vor.u32 %v2808_v41, %v2359_v42  ;;  %v2423_v41 = vld [vmem:[%s3258_s8 + $0x1e4] sm:$0xf0] }
 0x16b   : > { %v1621_v5 = vpop.f32.mrf.mxu2 }
 0x16c   : > { %v1622_v6 = vadd.f32 %v1621_v5, %v1573_v3  ;;  %v2817_v5 = vld [vmem:[%s3258_s8 + $0x184] sm:$0xf] }
 0x16d   : > { %v1670_v11 = vpop.f32.mrf.mxu3  ;;  %v1575_v13 = vpop.f32.mrf.mxu1 }
 0x16e   : > { %v1671_v9 = vadd.f32 %v1670_v11, %v1622_v6  ;;  %v1576_v17 = vadd.f32 %v1575_v13, %v3441_v23  ;;  %v2395_v11 = vld [vmem:[%s3258_s8 + $0x1a4] sm:$0xf0] }
 0x16f   : > { %v1722_v18 = vpop.f32.mrf.mxu0 }
 0x170   : > { %1770 = vmatmul.bf16.gmra.mxu1 %v2318_v12  ;;  %1819 = vmatmul.bf16.gmra.mxu2 %v2322_v10  ;;  %v3498_v21 = vadd.f32 %v1719_v58, %v1671_v9  ;;  %v2401_v12 = vld [vmem:[%s3258_s8 + $0x188] sm:$0xf]  ;;  %v2822_v10 = vld [vmem:[%s3258_s8 + $0x1a8] sm:$0xf0]  ;;  %v2394_v9 = vor.u32 %v2821_v4, %v2393_v2 }
 0x172   : > { %1868 = vmatmul.bf16.gmra.mxu3 %v2326_v14  ;;  %1917 = vmatmul.bf16.gmra.mxu0 %v2330_v16  ;;  %v2390_v16 = vor.u32 %v2816_v63, %v2387_v0 }
 0x173   : > { %v1624_v22 = vpop.f32.mrf.mxu2 }
 0x174   : > { %v1625_v24 = vadd.f32 %v1624_v22, %v1576_v17  ;;  %v2402_v22 = vor.u32 %v2822_v10, %v2401_v12  ;;  %v2465_v12 = vld [vmem:[%s3258_s8 + $0x210] sm:$0xf]  ;;  %v2839_v10 = vld [vmem:[%s3258_s8 + $0x230] sm:$0xf0] }
 0x175   : > { %v1673_v25 = vpop.f32.mrf.mxu3  ;;  %v1577_v26 = vpop.f32.mrf.mxu1 }
 0x176   : > { %v1674_v31 = vadd.f32 %v1673_v25, %v1625_v24  ;;  %v1578_v23 = vadd.f32 %v1577_v26, %v3447_v29  ;;  %v2366_v29 = vor.u32 %v2813_v44, %v2365_v43  ;;  %v2429_v43 = vld [vmem:[%s3258_s8 + $0x1c8] sm:$0xf]  ;;  %v2830_v44 = vld [vmem:[%s3258_s8 + $0x1e8] sm:$0xf0] }
 0x177   : > { %v1724_v33 = vpop.f32.mrf.mxu0 }
 0x178   : > { %v3503_v36 = vadd.f32 %v1722_v18, %v1674_v31  ;;  %v2398_v18 = vor.u32 %v2817_v5, %v2395_v11  ;;  %v2834_v5 = vld [vmem:[%s3258_s8 + $0x20c] sm:$0xf] }
 0x17b   : > { %v1626_v45 = vpop.f32.mrf.mxu2 }
 0x17c   : > { %v1627_v46 = vadd.f32 %v1626_v45, %v1578_v23  ;;  %v2826_v45 = vld [vmem:[%s3258_s8 + $0x1cc] sm:$0xf] }
 0x17d   : > { %v1675_v47 = vpop.f32.mrf.mxu3  ;;  %v1580_v49 = vpop.f32.mrf.mxu1 }
 0x17e   : > { %v1676_v52 = vadd.f32 %v1675_v47, %v1627_v46  ;;  %v1581_v55 = vadd.f32 %v1580_v49, %v3423_v7  ;;  %v2431_v47 = vld [vmem:[%s3258_s8 + $0x1ec] sm:$0xf0] }
 0x17f   : > { %v1727_v53 = vpop.f32.mrf.mxu0 }
 0x180   : > { %1775 = vmatmul.bf16.gmra.mxu1 %v2354_v48  ;;  %1824 = vmatmul.bf16.gmra.mxu2 %v2358_v30  ;;  %v3511_v54 = vadd.f32 %v1724_v33, %v1676_v52  ;;  %v2437_v48 = vld [vmem:[%s3258_s8 + $0x1d0] sm:$0xf]  ;;  %v2831_v30 = vld [vmem:[%s3258_s8 + $0x1f0] sm:$0xf0]  ;;  %v2430_v52 = vor.u32 %v2830_v44, %v2429_v43 }
 0x182   : > { %1873 = vmatmul.bf16.gmra.mxu3 %v2362_v50  ;;  %1922 = vmatmul.bf16.gmra.mxu0 %v2366_v29  ;;  %v2426_v29 = vor.u32 %v2825_v38, %v2423_v41 }
 0x183   : > { %v1629_v56 = vpop.f32.mrf.mxu2 }
 0x184   : > { %v1630_v3 = vadd.f32 %v1629_v56, %v1581_v55  ;;  %v2434_v55 = vor.u32 %v2826_v45, %v2431_v47  ;;  %v2438_v56 = vor.u32 %v2831_v30, %v2437_v48 }
 0x185   : > { %v1678_v58 = vpop.f32.mrf.mxu3  ;;  %v1582_v59 = vpop.f32.mrf.mxu1 }
 0x186   : > { %v1679_v60 = vadd.f32 %v1678_v58, %v1630_v3  ;;  %v1583_v6 = vadd.f32 %v1582_v59, %v3437_v19 }
 0x187   : > { %v1729_v62 = vpop.f32.mrf.mxu0 }
 0x188   : > { %v3516_v1 = vadd.f32 %v1727_v53, %v1679_v60 }
 0x18b   : > { %v1631_v7 = vpop.f32.mrf.mxu2 }
 0x18c   : > { %v1632_v13 = vadd.f32 %v1631_v7, %v1583_v6  ;;  %v2459_v6 = vld [vmem:[%s3258_s8 + $0x22c] sm:$0xf0]  ;;  %v2835_v7 = vld [vmem:[%s3258_s8 + $0x214] sm:$0xf] }
 0x18d   : > { %v1680_v14 = vpop.f32.mrf.mxu3  ;;  %v1585_v17 = vpop.f32.mrf.mxu1 }
 0x18e   : > { %v1681_v24 = vadd.f32 %v1680_v14, %v1632_v13  ;;  %v1586_v26 = vadd.f32 %v1585_v17, %v3443_v27  ;;  %v2467_v14 = vld [vmem:[%s3258_s8 + $0x234] sm:$0xf0] }
 0x18f   : > { %v1732_v25 = vpop.f32.mrf.mxu0 }
 0x190   : > { %1780 = vmatmul.bf16.gmra.mxu1 %v2390_v16  ;;  %1829 = vmatmul.bf16.gmra.mxu2 %v2394_v9  ;;  %v3525_v19 = vadd.f32 %v1729_v62, %v1681_v24  ;;  %v2473_v16 = vld [vmem:[%s3258_s8 + $0x218] sm:$0xf]  ;;  %v2840_v9 = vld [vmem:[%s3258_s8 + $0x238] sm:$0xf0]  ;;  %v2466_v24 = vor.u32 %v2839_v10, %v2465_v12 }
 0x192   : > { %1878 = vmatmul.bf16.gmra.mxu3 %v2398_v18  ;;  %1927 = vmatmul.bf16.gmra.mxu0 %v2402_v22  ;;  %v2462_v22 = vor.u32 %v2834_v5, %v2459_v6  ;;  %v463_v6 = vld [vmem:[#allocation2 + $0x8] sm:$0xff] }
 0x193   : > { %v1634_v31 = vpop.f32.mrf.mxu2 }
 0x194   : > { %v1635_v23 = vadd.f32 %v1634_v31, %v1586_v26  ;;  %v2470_v26 = vor.u32 %v2835_v7, %v2467_v14  ;;  %v2474_v31 = vor.u32 %v2840_v9, %v2473_v16 }
 0x195   : > { %v1683_v33 = vpop.f32.mrf.mxu3  ;;  %v1587_v34 = vpop.f32.mrf.mxu1 }
 0x196   : > { %v1684_v35 = vadd.f32 %v1683_v33, %v1635_v23  ;;  %v1588_v46 = vadd.f32 %v1587_v34, %v3457_v39 }
 0x197   : > { %v1734_v37 = vpop.f32.mrf.mxu0 }
 0x198   : > { %v3530_v42 = vadd.f32 %v1732_v25, %v1684_v35 }
 0x19b   : > { %v1636_v27 = vpop.f32.mrf.mxu2 }
 0x19c   : > { %v1637_v49 = vadd.f32 %v1636_v27, %v1588_v46 }
 0x19d   : > { %v1685_v50 = vpop.f32.mrf.mxu3  ;;  %v1590_v53 = vpop.f32.mrf.mxu1 }
 0x19e   : > { %v1686_v3 = vadd.f32 %v1685_v50, %v1637_v49  ;;  %v1591_v59 = vadd.f32 %v1590_v53, %v3425_v8 }
 0x19f   : > { %v1737_v58 = vpop.f32.mrf.mxu0 }
 0x1a0   : > { %1785 = vmatmul.bf16.gmra.mxu1 %v2426_v29  ;;  %1834 = vmatmul.bf16.gmra.mxu2 %v2430_v52  ;;  %v3539_v39 = vadd.f32 %v1734_v37, %v1686_v3 }
 0x1a2   : > { %1883 = vmatmul.bf16.gmra.mxu3 %v2434_v55  ;;  %1932 = vmatmul.bf16.gmra.mxu0 %v2438_v56 }
 0x1a3   : > { %v1639_v60 = vpop.f32.mrf.mxu2 }
 0x1a4   : > { %v1640_v62 = vadd.f32 %v1639_v60, %v1591_v59  ;;  %v462_v59 = vld [vmem:[#allocation2] sm:$0xff] }
 0x1a5   : > { %v1688_v63 = vpop.f32.mrf.mxu3  ;;  %v1592_v0 = vpop.f32.mrf.mxu1 }
 0x1a6   : > { %v1689_v2 = vadd.f32 %v1688_v63, %v1640_v62  ;;  %v1593_v13 = vadd.f32 %v1592_v0, %v3439_v20 }
 0x1a7   : > { %v1739_v4 = vpop.f32.mrf.mxu0 }
 0x1a8   : > { %v3544_v11 = vadd.f32 %v1737_v58, %v1689_v2 }
 0x1ab   : > { %v1641_v8 = vpop.f32.mrf.mxu2 }
 0x1ac   : > { %v1642_v17 = vadd.f32 %v1641_v8, %v1593_v13 }
 0x1ad   : > { %v1690_v18 = vpop.f32.mrf.mxu3  ;;  %v1595_v25 = vpop.f32.mrf.mxu1 }
 0x1ae   : > { %v1691_v23 = vadd.f32 %v1690_v18, %v1642_v17  ;;  %v1596_v20 = vadd.f32 %v1595_v25, %v3445_v28  ;;  %v464_v17 = vld [vmem:[#allocation2 + $0x10] sm:$0xff] }
 0x1af   : > { %v1742_v33 = vpop.f32.mrf.mxu0 }
 0x1b0   : > { %1790 = vmatmul.bf16.gmra.mxu1 %v2462_v22  ;;  %1839 = vmatmul.bf16.gmra.mxu2 %v2466_v24  ;;  %v3553_v34 = vadd.f32 %v1739_v4, %v1691_v23 }
 0x1b2   : > { %1888 = vmatmul.bf16.gmra.mxu3 %v2470_v26  ;;  %1937 = vmatmul.bf16.gmra.mxu0 %v2474_v31 }
 0x1b3   : > { %v1644_v35 = vpop.f32.mrf.mxu2 }
 0x1b4   : > { %v1645_v37 = vadd.f32 %v1644_v35, %v1596_v20  ;;  %v465_v20 = vld [vmem:[#allocation2 + $0x18] sm:$0xff] }
 0x1b5   : > { %v1693_v38 = vpop.f32.mrf.mxu3  ;;  %v1597_v41 = vpop.f32.mrf.mxu1 }
 0x1b6   : > { %v1694_v43 = vadd.f32 %v1693_v38, %v1645_v37  ;;  %v1598_v46 = vadd.f32 %v1597_v41, %v3459_v40 }
 0x1b7   : > { %v1744_v44 = vpop.f32.mrf.mxu0 }
 0x1b8   : > { %v3556_v45 = vadd.f32 %v1742_v33, %v1694_v43 }
 0x1bb   : > { %v1646_v47 = vpop.f32.mrf.mxu2 }
 0x1bc   : > { %v1647_v48 = vadd.f32 %v1646_v47, %v1598_v46 }
 0x1bd   : > { %v1695_v30 = vpop.f32.mrf.mxu3  ;;  %v1756_v27 = vpop.f32.mrf.mxu1 }
 0x1be   : > { %v1696_v49 = vadd.f32 %v1695_v30, %v1647_v48  ;;  %v1757_v28 = vadd.f32 %v1756_v27, %v3463_v57  ;;  %v466_v48 = vld [vmem:[#allocation2 + $0x20] sm:$0xff] }
 0x1bf   : > { %v1903_v50 = vpop.f32.mrf.mxu0 }
 0x1c0   : > { %v3559_v29 = vadd.f32 %v1744_v44, %v1696_v49 }
 0x1c3   : > { %v1805_v52 = vpop.f32.mrf.mxu2 }
 0x1c4   : > { %v1806_v53 = vadd.f32 %v1805_v52, %v1757_v28 }
 0x1c5   : > { %v1854_v55 = vpop.f32.mrf.mxu3  ;;  %v1758_v56 = vpop.f32.mrf.mxu1 }
 0x1c6   : > { %v1855_v3 = vadd.f32 %v1854_v55, %v1806_v53  ;;  %v1759_v62 = vadd.f32 %v1758_v56, %v3471_v15  ;;  %v467_v56 = vld [vmem:[#allocation2 + $0x28] sm:$0xff] }
 0x1c7   : > { %v1905_v58 = vpop.f32.mrf.mxu0 }
 0x1c8   : > { %v1904_v60 = vadd.f32 %v1903_v50, %v1855_v3 }
 0x1ca   : > { %v1943_v40 = vadd.f32 %v1904_v60, %v462_v59 }
 0x1cb   : > { %v1807_v63 = vpop.f32.mrf.mxu2 }
 0x1cc   : > { %1960 = vst.msk [vmem:[#allocation2] sm:$0xff] %vm1959_vm1, %v1943_v40  ;;  %v1808_v0 = vadd.f32 %v1807_v63, %v1759_v62 }
 0x1cd   : > { %v1856_v2 = vpop.f32.mrf.mxu3  ;;  %v1761_v4 = vpop.f32.mrf.mxu1 }
 0x1ce   : > { %v1857_v5 = vadd.f32 %v1856_v2, %v1808_v0  ;;  %v1762_v7 = vadd.f32 %v1761_v4, %v3475_v32  ;;  %v468_v2 = vld [vmem:[#allocation2 + $0x30] sm:$0xff] }
 0x1cf   : > { %v1908_v57 = vpop.f32.mrf.mxu0 }
 0x1d0   : > { %v1906_v12 = vadd.f32 %v1905_v58, %v1857_v5 }
 0x1d2   : > { %v1944_v10 = vadd.f32 %v1906_v12, %v463_v6 }
 0x1d3   : > { %v1810_v13 = vpop.f32.mrf.mxu2 }
 0x1d4   : > { %1961 = vst.msk [vmem:[#allocation2 + $0x8] sm:$0xff] %vm1959_vm1, %v1944_v10  ;;  %v1811_v14 = vadd.f32 %v1810_v13, %v1762_v7 }
 0x1d5   : > { %v1859_v16 = vpop.f32.mrf.mxu3  ;;  %v1763_v9 = vpop.f32.mrf.mxu1 }
 0x1d6   : > { %v1860_v15 = vadd.f32 %v1859_v16, %v1811_v14  ;;  %v1764_v24 = vadd.f32 %v1763_v9, %v3484_v51  ;;  %v469_v14 = vld [vmem:[#allocation2 + $0x38] sm:$0xff] }
 0x1d7   : > { %v1910_v8 = vpop.f32.mrf.mxu0 }
 0x1d8   : > { %v1909_v18 = vadd.f32 %v1908_v57, %v1860_v15 }
 0x1da   : > { %v1945_v22 = vadd.f32 %v1909_v18, %v464_v17 }
 0x1db   : > { %v1812_v25 = vpop.f32.mrf.mxu2 }
 0x1dc   : > { %1962 = vst.msk [vmem:[#allocation2 + $0x10] sm:$0xff] %vm1959_vm1, %v1945_v22  ;;  %v1813_v26 = vadd.f32 %v1812_v25, %v1764_v24  ;;  %v470_v25 = vld [vmem:[#allocation2 + $0x40] sm:$0xff] }
 0x1dd   : > { %v1861_v31 = vpop.f32.mrf.mxu3  ;;  %v1766_v23 = vpop.f32.mrf.mxu1 }
 0x1de   : > { %v1862_v32 = vadd.f32 %v1861_v31, %v1813_v26  ;;  %v1767_v38 = vadd.f32 %v1766_v23, %v3489_v61 }
 0x1df   : > { %v1913_v33 = vpop.f32.mrf.mxu0 }
 0x1e0   : > { %v1911_v35 = vadd.f32 %v1910_v8, %v1862_v32 }
 0x1e2   : > { %v1946_v37 = vadd.f32 %v1911_v35, %v465_v20 }
 0x1e3   : > { %v1815_v41 = vpop.f32.mrf.mxu2 }
 0x1e4   : > { %1963 = vst.msk [vmem:[#allocation2 + $0x18] sm:$0xff] %vm1959_vm1, %v1946_v37  ;;  %v1816_v43 = vadd.f32 %v1815_v41, %v1767_v38  ;;  %v471_v38 = vld [vmem:[#allocation2 + $0x48] sm:$0xff] }
 0x1e5   : > { %v1864_v44 = vpop.f32.mrf.mxu3  ;;  %v1768_v46 = vpop.f32.mrf.mxu1 }
 0x1e6   : > { %v1865_v51 = vadd.f32 %v1864_v44, %v1816_v43  ;;  %v1769_v49 = vadd.f32 %v1768_v46, %v3498_v21 }
 0x1e7   : > { %v1915_v47 = vpop.f32.mrf.mxu0 }
 0x1e8   : > { %v1914_v30 = vadd.f32 %v1913_v33, %v1865_v51 }
 0x1ea   : > { %v1947_v27 = vadd.f32 %v1914_v30, %v466_v48  ;;  %v472_v30 = vld [vmem:[#allocation2 + $0x50] sm:$0xff] }
 0x1eb   : > { %v1817_v50 = vpop.f32.mrf.mxu2 }
 0x1ec   : > { %1964 = vst.msk [vmem:[#allocation2 + $0x20] sm:$0xff] %vm1959_vm1, %v1947_v27  ;;  %v1818_v28 = vadd.f32 %v1817_v50, %v1769_v49 }
 0x1ed   : > { %v1866_v52 = vpop.f32.mrf.mxu3  ;;  %v1771_v53 = vpop.f32.mrf.mxu1 }
 0x1ee   : > { %v1867_v61 = vadd.f32 %v1866_v52, %v1818_v28  ;;  %v1772_v59 = vadd.f32 %v1771_v53, %v3503_v36 }
 0x1ef   : > { %v1918_v55 = vpop.f32.mrf.mxu0 }
 0x1f0   : > { %v1916_v3 = vadd.f32 %v1915_v47, %v1867_v61 }
 0x1f2   : > { %v1948_v58 = vadd.f32 %v1916_v3, %v467_v56  ;;  %v473_v56 = vld [vmem:[#allocation2 + $0x58] sm:$0xff] }
 0x1f3   : > { %v1820_v60 = vpop.f32.mrf.mxu2 }
 0x1f4   : > { %1965 = vst.msk [vmem:[#allocation2 + $0x28] sm:$0xff] %vm1959_vm1, %v1948_v58  ;;  %v1821_v40 = vadd.f32 %v1820_v60, %v1772_v59 }
 0x1f5   : > { %v1869_v62 = vpop.f32.mrf.mxu3  ;;  %v1773_v63 = vpop.f32.mrf.mxu1 }
 0x1f6   : > { %v1870_v21 = vadd.f32 %v1869_v62, %v1821_v40  ;;  %v1774_v57 = vadd.f32 %v1773_v63, %v3511_v54 }
 0x1f7   : > { %v1920_v0 = vpop.f32.mrf.mxu0 }
 0x1f8   : > { %v1919_v4 = vadd.f32 %v1918_v55, %v1870_v21 }
 0x1fa   : > { %v1949_v5 = vadd.f32 %v1919_v4, %v468_v2 }
 0x1fb   : > { %v1822_v6 = vpop.f32.mrf.mxu2 }
 0x1fc   : > { %1966 = vst.msk [vmem:[#allocation2 + $0x30] sm:$0xff] %vm1959_vm1, %v1949_v5  ;;  %v1823_v12 = vadd.f32 %v1822_v6, %v1774_v57 }
 0x1fd   : > { %v1871_v10 = vpop.f32.mrf.mxu3  ;;  %v1776_v7 = vpop.f32.mrf.mxu1 }
 0x1fe   : > { %v1872_v36 = vadd.f32 %v1871_v10, %v1823_v12  ;;  %v1777_v15 = vadd.f32 %v1776_v7, %v3516_v1 }
 0x1ff   : > { %v1923_v13 = vpop.f32.mrf.mxu0 }
 0x200   : > { %v1921_v16 = vadd.f32 %v1920_v0, %v1872_v36  ;;  %v474_v0 = vld [vmem:[#allocation2 + $0x60] sm:$0xff]  ;;  %v475_v36 = vld [vmem:[#allocation2 + $0x68] sm:$0xff] }
 0x202   : > { %v1950_v9 = vadd.f32 %v1921_v16, %v469_v14 }
 0x203   : > { %v1825_v8 = vpop.f32.mrf.mxu2 }
 0x204   : > { %1967 = vst.msk [vmem:[#allocation2 + $0x38] sm:$0xff] %vm1959_vm1, %v1950_v9  ;;  %v1826_v17 = vadd.f32 %v1825_v8, %v1777_v15 }
 0x205   : > { %v1874_v18 = vpop.f32.mrf.mxu3  ;;  %v1778_v22 = vpop.f32.mrf.mxu1 }
 0x206   : > { %v1875_v54 = vadd.f32 %v1874_v18, %v1826_v17  ;;  %v1779_v23 = vadd.f32 %v1778_v22, %v3525_v19  ;;  %v476_v18 = vld [vmem:[#allocation2 + $0x70] sm:$0xff] }
 0x207   : > { %v1925_v24 = vpop.f32.mrf.mxu0 }
 0x208   : > { %v1924_v26 = vadd.f32 %v1923_v13, %v1875_v54 }
 0x20a   : > { %v1951_v31 = vadd.f32 %v1924_v26, %v470_v25 }
 0x20b   : > { %v1827_v32 = vpop.f32.mrf.mxu2 }
 0x20c   : > { %1968 = vst.msk [vmem:[#allocation2 + $0x40] sm:$0xff] %vm1959_vm1, %v1951_v31  ;;  %v1828_v33 = vadd.f32 %v1827_v32, %v1779_v23 }
 0x20d   : > { %v1876_v20 = vpop.f32.mrf.mxu3  ;;  %v1781_v35 = vpop.f32.mrf.mxu1 }
 0x20e   : > { %v1877_v1 = vadd.f32 %v1876_v20, %v1828_v33  ;;  %v1782_v44 = vadd.f32 %v1781_v35, %v3530_v42  ;;  %v477_v33 = vld [vmem:[#allocation2 + $0x78] sm:$0xff] }
 0x20f   : > { %v1928_v37 = vpop.f32.mrf.mxu0 }
 0x210   : > { %v1926_v41 = vadd.f32 %v1925_v24, %v1877_v1 }
 0x212   : > { %v1952_v43 = vadd.f32 %v1926_v41, %v471_v38 }
 0x213   : > { %v1830_v46 = vpop.f32.mrf.mxu2 }
 0x214   : > { %1969 = vst.msk [vmem:[#allocation2 + $0x48] sm:$0xff] %vm1959_vm1, %v1952_v43  ;;  %v1831_v51 = vadd.f32 %v1830_v46, %v1782_v44 }
 0x215   : > { %v1879_v47 = vpop.f32.mrf.mxu3  ;;  %v1783_v48 = vpop.f32.mrf.mxu1 }
 0x216   : > { %v1880_v19 = vadd.f32 %v1879_v47, %v1831_v51  ;;  %v1784_v28 = vadd.f32 %v1783_v48, %v3539_v39 }
 0x217   : > { %v1930_v27 = vpop.f32.mrf.mxu0 }
 0x218   : > { %v1929_v49 = vadd.f32 %v1928_v37, %v1880_v19 }
 0x21a   : > { %v1953_v50 = vadd.f32 %v1929_v49, %v472_v30 }
 0x21b   : > { %v1832_v52 = vpop.f32.mrf.mxu2 }
 0x21c   : > { %1970 = vst.msk [vmem:[#allocation2 + $0x50] sm:$0xff] %vm1959_vm1, %v1953_v50  ;;  %v1833_v53 = vadd.f32 %v1832_v52, %v1784_v28 }
 0x21d   : > { %v1881_v61 = vpop.f32.mrf.mxu3  ;;  %v1786_v55 = vpop.f32.mrf.mxu1 }
 0x21e   : > { %v1882_v42 = vadd.f32 %v1881_v61, %v1833_v53  ;;  %v1787_v60 = vadd.f32 %v1786_v55, %v3544_v11 }
 0x21f   : > { %v1933_v58 = vpop.f32.mrf.mxu0 }
 0x220   : > { %v1931_v3 = vadd.f32 %v1930_v27, %v1882_v42 }
 0x222   : > { %v1954_v59 = vadd.f32 %v1931_v3, %v473_v56 }
 0x223   : > { %v1835_v40 = vpop.f32.mrf.mxu2 }
 0x224   : > { %1971 = vst.msk [vmem:[#allocation2 + $0x58] sm:$0xff] %vm1959_vm1, %v1954_v59  ;;  %v1836_v62 = vadd.f32 %v1835_v40, %v1787_v60 }
 0x225   : > { %v1884_v63 = vpop.f32.mrf.mxu3  ;;  %v1788_v21 = vpop.f32.mrf.mxu1 }
 0x226   : > { %v1885_v39 = vadd.f32 %v1884_v63, %v1836_v62  ;;  %v1789_v5 = vadd.f32 %v1788_v21, %v3553_v34 }
 0x227   : > { %v1935_v57 = vpop.f32.mrf.mxu0 }
 0x228   : > { %v1934_v2 = vadd.f32 %v1933_v58, %v1885_v39 }
 0x22a   : > { %v1955_v4 = vadd.f32 %v1934_v2, %v474_v0 }
 0x22b   : > { %v1837_v6 = vpop.f32.mrf.mxu2 }
 0x22c   : > { %1972 = vst.msk [vmem:[#allocation2 + $0x60] sm:$0xff] %vm1959_vm1, %v1955_v4  ;;  %v1838_v12 = vadd.f32 %v1837_v6, %v1789_v5 }
 0x22d   : > { %v1886_v10 = vpop.f32.mrf.mxu3  ;;  %v1791_v7 = vpop.f32.mrf.mxu1 }
 0x22e   : > { %v1887_v11 = vadd.f32 %v1886_v10, %v1838_v12  ;;  %v1792_v16 = vadd.f32 %v1791_v7, %v3556_v45 }
 0x22f   : > { %v1938_v17 = vpop.f32.mrf.mxu0 }
 0x230   : > { %v1936_v13 = vadd.f32 %v1935_v57, %v1887_v11 }
 0x232   : > { %v1956_v14 = vadd.f32 %v1936_v13, %v475_v36 }
 0x233   : > { %v1840_v9 = vpop.f32.mrf.mxu2 }
 0x234   : > { %1973 = vst.msk [vmem:[#allocation2 + $0x68] sm:$0xff] %vm1959_vm1, %v1956_v14  ;;  %v1841_v15 = vadd.f32 %v1840_v9, %v1792_v16 }
 0x235   : > { %v1889_v8 = vpop.f32.mrf.mxu3  ;;  %v1793_v22 = vpop.f32.mrf.mxu1 }
 0x236   : > { %v1890_v34 = vadd.f32 %v1889_v8, %v1841_v15  ;;  %v1794_v25 = vadd.f32 %v1793_v22, %v3559_v29 }
 0x237   : > { %v1940_v45 = vpop.f32.mrf.mxu0 }
 0x238   : > { %v1939_v54 = vadd.f32 %v1938_v17, %v1890_v34 }
 0x23a   : > { %v1957_v24 = vadd.f32 %v1939_v54, %v476_v18 }
 0x23b   : > { %v1842_v26 = vpop.f32.mrf.mxu2 }
 0x23c   : > { %1974 = vst.msk [vmem:[#allocation2 + $0x70] sm:$0xff] %vm1959_vm1, %v1957_v24  ;;  %v1843_v31 = vadd.f32 %v1842_v26, %v1794_v25 }
 0x23d   : > { %v1891_v23 = vpop.f32.mrf.mxu3 }
 0x23e   : > { %v1892_v32 = vadd.f32 %v1891_v23, %v1843_v31 }
 0x240   : > { %v1941_v20 = vadd.f32 %v1940_v45, %v1892_v32  ;;  %1979 = sbr.rel (%p2763_p11) target bundleno = 601 (0x259), region = 66 }
 0x242   : > { %v1958_v35 = vadd.f32 %v1941_v20, %v477_v33 }
 0x244   : > { %1975 = vst.msk [vmem:[#allocation2 + $0x78] sm:$0xff] %vm1959_vm1, %v1958_v35 }
 0x245   : > { %v1980_v1 = vld [vmem:[#allocation2] sm:$0xff]  ;;  %v1981_v37 = vld [vmem:[#allocation2 + $0x8] sm:$0xff]  ;;  %v1982_v38 = vld [vmem:[#allocation2 + $0x10] sm:$0xff] }
 0x246   : > { %v2980_v29 = vld [vmem:[%s3678_s2] ss:$0 sm:$0xff]  ;;  %v1983_v41 = vld [vmem:[#allocation2 + $0x18] sm:$0xff]  ;;  %v1985_v47 = vld [vmem:[#allocation2 + $0x28] sm:$0xff] }
 0x247   : > { %v2000_v43 = vadd.f32 %v2980_v29, %v1980_v1  ;;  %v2001_v44 = vadd.f32 %v2980_v29, %v1981_v37  ;;  %v2002_v46 = vadd.f32 %v2980_v29, %v1982_v38  ;;  %v1984_v51 = vld [vmem:[#allocation2 + $0x20] sm:$0xff]  ;;  %v2003_v48 = vadd.f32 %v2980_v29, %v1983_v41  ;;  %v1986_v19 = vld [vmem:[#allocation2 + $0x30] sm:$0xff]  ;;  %v1987_v27 = vld [vmem:[#allocation2 + $0x38] sm:$0xff] }
 0x248   : > { %v2004_v30 = vadd.f32 %v2980_v29, %v1984_v51  ;;  %v2005_v49 = vadd.f32 %v2980_v29, %v1985_v47  ;;  %v1988_v50 = vld [vmem:[#allocation2 + $0x40] sm:$0xff]  ;;  %v2006_v28 = vadd.f32 %v2980_v29, %v1986_v19  ;;  %v1989_v52 = vld [vmem:[#allocation2 + $0x48] sm:$0xff]  ;;  %v2007_v53 = vadd.f32 %v2980_v29, %v1987_v27  ;;  %v1990_v61 = vld [vmem:[#allocation2 + $0x50] sm:$0xff] }
 0x249   : > { %2016 = vst.msk [vmem:[%s3679_s3] sm:$0xff] %vm1959_vm1, %v2000_v43  ;;  %v2008_v55 = vadd.f32 %v2980_v29, %v1988_v50  ;;  %v1991_v42 = vld [vmem:[#allocation2 + $0x58] sm:$0xff]  ;;  %v2009_v56 = vadd.f32 %v2980_v29, %v1989_v52  ;;  %v1992_v3 = vld [vmem:[#allocation2 + $0x60] sm:$0xff]  ;;  %v2010_v58 = vadd.f32 %v2980_v29, %v1990_v61  ;;  %v1993_v59 = vld [vmem:[#allocation2 + $0x68] sm:$0xff] }
 0x24a   : > { %2017 = vst.msk [vmem:[%s3679_s3 + $0x8] sm:$0xff] %vm1959_vm1, %v2001_v44  ;;  %v2011_v60 = vadd.f32 %v2980_v29, %v1991_v42  ;;  %v1994_v40 = vld [vmem:[#allocation2 + $0x70] sm:$0xff]  ;;  %v2012_v62 = vadd.f32 %v2980_v29, %v1992_v3  ;;  %v2013_v21 = vadd.f32 %v2980_v29, %v1993_v59 }
 0x24b   : > { %2018 = vst.msk [vmem:[%s3679_s3 + $0x10] sm:$0xff] %vm1959_vm1, %v2002_v46  ;;  %v1995_v63 = vld [vmem:[#allocation2 + $0x78] sm:$0xff]  ;;  %v2014_v39 = vadd.f32 %v2980_v29, %v1994_v40 }
 0x24c   : > { %2019 = vst.msk [vmem:[%s3679_s3 + $0x18] sm:$0xff] %vm1959_vm1, %v2003_v48  ;;  %v2015_v0 = vadd.f32 %v2980_v29, %v1995_v63 }
 0x24d   : > { %2020 = vst.msk [vmem:[%s3679_s3 + $0x20] sm:$0xff] %vm1959_vm1, %v2004_v30 }
 0x24e   : > { %2021 = vst.msk [vmem:[%s3679_s3 + $0x28] sm:$0xff] %vm1959_vm1, %v2005_v49 }
 0x24f   : > { %2022 = vst.msk [vmem:[%s3679_s3 + $0x30] sm:$0xff] %vm1959_vm1, %v2006_v28 }
 0x250   : > { %2023 = vst.msk [vmem:[%s3679_s3 + $0x38] sm:$0xff] %vm1959_vm1, %v2007_v53 }
 0x251   : > { %2024 = vst.msk [vmem:[%s3679_s3 + $0x40] sm:$0xff] %vm1959_vm1, %v2008_v55 }
 0x252   : > { %2025 = vst.msk [vmem:[%s3679_s3 + $0x48] sm:$0xff] %vm1959_vm1, %v2009_v56 }
 0x253   : > { %2026 = vst.msk [vmem:[%s3679_s3 + $0x50] sm:$0xff] %vm1959_vm1, %v2010_v58 }
 0x254   : > { %2027 = vst.msk [vmem:[%s3679_s3 + $0x58] sm:$0xff] %vm1959_vm1, %v2011_v60 }
 0x255   : > { %2028 = vst.msk [vmem:[%s3679_s3 + $0x60] sm:$0xff] %vm1959_vm1, %v2012_v62 }
 0x256   : > { %2029 = vst.msk [vmem:[%s3679_s3 + $0x68] sm:$0xff] %vm1959_vm1, %v2013_v21 }
 0x257   : > { %2030 = vst.msk [vmem:[%s3679_s3 + $0x70] sm:$0xff] %vm1959_vm1, %v2014_v39 }
 0x258   : > { %2031 = vst.msk [vmem:[%s3679_s3 + $0x78] sm:$0xff] %vm1959_vm1, %v2015_v0 }
 0x259 PF: > { %s13_s16 = sadd.s32 1, %s3019_s16   ;;  %s3680_s12 = smov %s3007_s13 }
 0x25a   : > { %p10_p12 = scmp.ge.s32.totalorder %s13_s16, 6   ;;  %s3681_s13 = smov %s3077_s20 }
 0x25b   : > { %s3682_s14 = smov %s3015_s15  ;;  %s3683_s15 = smov %s3685_s17 }
 0x25c   :  { %12 = sbr.rel (!%p10_p12) target bundleno = 3 (0x3), region = 113 }

// kernel: ssd_detector_forward.11
= control target key start
LH: loop header
LB: loop body
LE: loop exit
PB: predicated region body
PF: predicated region fallthrough
CT: control target
= control target key end

     0   :  { %s2810_s12 = smov 0   ;;  %s2812_s13 = smov 0   ;;  %s3356_s0 = inlined_call_operand.vmem [shape: bf16[32,9216], index: 0, kind: input, shape index: {}]   ;;  %s3357_s1 = inlined_call_operand.vmem [shape: bf16[9216,152], index: 1, kind: input, shape index: {}]   ;;  %s3358_s2 = inlined_call_operand.vmem [shape: f32[1,152], index: 2, kind: input, shape index: {}]   ;;  %s3359_s3 = inlined_call_operand.vmem [shape: f32[32,152], index: 3, kind: output, shape index: {}]  }
   0x1   :  { %s2814_s14 = smov 0   ;;  %s2816_s15 = smov 0  }
   0x2   :  { %s2818_s16 = smov 0  }
   0x3 LB: > { %s25_s17 = sadd.s32 1, %s2783_s15  ;;  %p48_p1 = scmp.ne.s32.totalorder %s2775_s13, %s2771_s12  ;;  %s2787_s16 = sphi %s2818_s16, %s13_s16   ;;  %s2783_s15 = sphi %s2816_s15, %s3363_s15   ;;  %s2779_s14 = sphi %s2814_s14, %s3362_s14   ;;  %s2775_s13 = sphi %s2812_s13, %s3361_s13   ;;  %s2771_s12 = sphi %s2810_s12, %s3360_s12  }
   0x4   : > { %p26_p0 = scmp.ge.s32.totalorder %s25_s17, 8  ;;  %p49_p2 = scmp.eq.s32.totalorder %s2787_s16, 0 }
   0x5   : > { %s41_s19 = sadd.s32 1, %s2775_s13  ;;  %p1859_p5 = scmp.ge.s32.totalorder %s2787_s16, 8 }
   0x6   : > { %s3365_s17 = smov (%p26_p0, %s25_s17), 0  ;;  %p50_p3 = por %p49_p2, %p48_p1 }
   0x7   : > { %s37_s18 = ssub.s32 %s2783_s15, %s3365_s17  ;;  %164 = sbr.rel (%p1859_p5) target bundleno = 37 (0x25), region = 20 }
   0x8   : > { %p39_p4 = scmp.eq.s32.totalorder %s37_s18, 0 }
   0xa   : > { %s2845_s20 = scalar_select %p39_p4, %s2775_s13, %s41_s19  }
   0xc   : > { %167 = sbr.rel (!%p50_p3) target bundleno = 37 (0x25), region = 24  ;;  %s169_s21 = sand.u32 (%p50_p3), 1, %s2775_s13  }
   0xd   : > { %s2526_s22 = smul.u32 (%p50_p3), 36, %s2783_s15 }
   0xe   : > { %s2706_s23 = smul.u32 (%p50_p3), 144, %s169_s21 }
   0xf   : > { %s2853_s26 = scalar_lea.vmem (%p50_p3), %s3356_s0, %s2526_s22 }
  0x10   : > { %v192_v0 = vld [vmem:[%s2853_s26] sm:$0xff] (%p50_p3)  ;;  %v194_v1 = vld [vmem:[%s2853_s26 + $0x8] sm:$0xff] (%p50_p3)  ;;  %v196_v2 = vld [vmem:[%s2853_s26 + $0x10] sm:$0xff] (%p50_p3)  ;;  %s2858_s27 = scalar_lea.vmem (%p50_p3), [#allocation3], %s2706_s23 }
  0x11   : > { %193 = vst [vmem:[%s2858_s27] sm:$0xff] %v192_v0  ;;  %v198_v3 = vld [vmem:[%s2853_s26 + $0x18] sm:$0xff]  ;;  %v200_v4 = vld [vmem:[%s2853_s26 + $0x120] sm:$0xff]  ;;  %v202_v5 = vld [vmem:[%s2853_s26 + $0x128] sm:$0xff] }
  0x12   : > { %195 = vst [vmem:[%s2858_s27 + $0x8] sm:$0xff] %v194_v1  ;;  %v204_v6 = vld [vmem:[%s2853_s26 + $0x130] sm:$0xff]  ;;  %v206_v7 = vld [vmem:[%s2853_s26 + $0x138] sm:$0xff]  ;;  %v208_v8 = vld [vmem:[%s2853_s26 + $0x240] sm:$0xff] }
  0x13   : > { %197 = vst [vmem:[%s2858_s27 + $0x10] sm:$0xff] %v196_v2  ;;  %v210_v9 = vld [vmem:[%s2853_s26 + $0x248] sm:$0xff]  ;;  %v212_v10 = vld [vmem:[%s2853_s26 + $0x250] sm:$0xff]  ;;  %v214_v11 = vld [vmem:[%s2853_s26 + $0x258] sm:$0xff] }
  0x14   : > { %199 = vst [vmem:[%s2858_s27 + $0x18] sm:$0xff] %v198_v3  ;;  %v216_v12 = vld [vmem:[%s2853_s26 + $0x360] sm:$0xff]  ;;  %v218_v13 = vld [vmem:[%s2853_s26 + $0x368] sm:$0xff]  ;;  %v220_v14 = vld [vmem:[%s2853_s26 + $0x370] sm:$0xff] }
  0x15   : > { %201 = vst [vmem:[%s2858_s27 + $0x24] sm:$0xff] %v200_v4  ;;  %v222_v15 = vld [vmem:[%s2853_s26 + $0x378] sm:$0xff]  ;;  %v1861_v16 = vld [vmem:[%s2853_s26 + $0x20] sm:$0xf] }
  0x16   : > { %203 = vst [vmem:[%s2858_s27 + $0x2c] sm:$0xff] %v202_v5  ;;  %v1863_v17 = vld [vmem:[%s2853_s26 + $0x140] sm:$0xf] }
  0x17   : > { %205 = vst [vmem:[%s2858_s27 + $0x34] sm:$0xff] %v204_v6  ;;  %v1865_v18 = vld [vmem:[%s2853_s26 + $0x260] sm:$0xf] }
  0x18   : > { %207 = vst [vmem:[%s2858_s27 + $0x3c] sm:$0xff] %v206_v7  ;;  %v1867_v19 = vld [vmem:[%s2853_s26 + $0x380] sm:$0xf] }
  0x19   : > { %209 = vst [vmem:[%s2858_s27 + $0x48] sm:$0xff] %v208_v8 }
  0x1a   : > { %211 = vst [vmem:[%s2858_s27 + $0x50] sm:$0xff] %v210_v9 }
  0x1b   : > { %213 = vst [vmem:[%s2858_s27 + $0x58] sm:$0xff] %v212_v10 }
  0x1c   : > { %215 = vst [vmem:[%s2858_s27 + $0x60] sm:$0xff] %v214_v11 }
  0x1d   : > { %217 = vst [vmem:[%s2858_s27 + $0x6c] sm:$0xff] %v216_v12 }
  0x1e   : > { %219 = vst [vmem:[%s2858_s27 + $0x74] sm:$0xff] %v218_v13 }
  0x1f   : > { %221 = vst [vmem:[%s2858_s27 + $0x7c] sm:$0xff] %v220_v14 }
  0x20   : > { %223 = vst [vmem:[%s2858_s27 + $0x84] sm:$0xff] %v222_v15 }
  0x21   : > { %1862 = vst [vmem:[%s2858_s27 + $0x20] sm:$0xf] %v1861_v16 }
  0x22   : > { %1864 = vst [vmem:[%s2858_s27 + $0x44] sm:$0xf] %v1863_v17 }
  0x23   : > { %1866 = vst [vmem:[%s2858_s27 + $0x68] sm:$0xf] %v1865_v18 }
  0x24   : > { %1868 = vst [vmem:[%s2858_s27 + $0x8c] sm:$0xf] %v1867_v19 }
  0x25 PF: > { %p1869_p6 = scmp.ge.s32.totalorder %s2787_s16, 1  ;;  %p259_p7 = scmp.lt.s32.totalorder %s2787_s16, 9 }
  0x27   : > { %p260_p8 = pnand %p1869_p6, %p259_p7 }
  0x28   : > { %s266_s28 = sand.u32 (!%p260_p8), 1, %s2771_s12   ;;  %s310_s29 = smul.u32 (!%p260_p8), 144, %s2779_s14 }
  0x29   : > { %263 = sbr.rel (%p260_p8) target bundleno = 385 (0x181), region = 54  ;;  %p1872_p10 = scmp.ne.s32.totalorder (!%p260_p8), %s2779_s14, 0 }
  0x2a   : > { %s2707_s30 = smul.u32 (!%p260_p8), 144, %s266_s28  ;;  %p312_p9 = scmp.lt.s32.totalorder (!%p260_p8), %s310_s29, 1151 }
  0x2c   : > { %s2906_s8 = scalar_lea.vmem (!%p260_p8), [#allocation3], %s2707_s30 }
  0x2e   : > { %s3367_s29 = smov (!%p312_p9, %s310_s29), 1151  ;;  %342 = sbr.rel (%p1872_p10) target bundleno = 60 (0x3c), region = 62 }
  0x2f   : > { %s2527_s4 = sshll.u32 %s3367_s29, 3 }
  0x30   : > { %s2904_s7 = scalar_lea.vmem %s3357_s1, %s2527_s4 }
  0x33   : > { %v2789_v20 = vmov 0.0   ;;  %vm344_vm0 = vcmask 195584  }
  0x34   : > { %343 = vst [vmem:[#allocation2] sm:$0xff] %v2789_v20 }
  0x35   : > { %346 = vst [vmem:[#allocation2 + $0x10] sm:$0xff] %v2789_v20 }
  0x36   : > { %348 = vst [vmem:[#allocation2 + $0x20] sm:$0xff] %v2789_v20 }
  0x37   : > { %350 = vst [vmem:[#allocation2 + $0x30] sm:$0xff] %v2789_v20 }
  0x38   : > { %345 = vst.msk [vmem:[#allocation2 + $0x8] sm:$0xff] %vm344_vm0, %v2789_v20 }
  0x39   : > { %347 = vst.msk [vmem:[#allocation2 + $0x18] sm:$0xff] %vm344_vm0, %v2789_v20 }
  0x3a   : > { %349 = vst.msk [vmem:[#allocation2 + $0x28] sm:$0xff] %vm344_vm0, %v2789_v20 }
  0x3b   : > { %351 = vst.msk [vmem:[#allocation2 + $0x38] sm:$0xff] %vm344_vm0, %v2789_v20 }
  0x3c PF: > { %v2003_v21 = vld [vmem:[%s2904_s7 + $0x70] sm:$0xf]  ;;  %v2561_v22 = vld [vmem:[%s2904_s7 + $0x74] sm:$0xf0]  ;;  %v1995_v32 = vld [vmem:[%s2904_s7 + $0x60] sm:$0xf] }
  0x3d   : > { %v2067_v23 = vld [vmem:[%s2904_s7 + $0xf0] sm:$0xf]  ;;  %v2004_v24 = vor.u32 %v2561_v22, %v2003_v21  ;;  %v2577_v25 = vld [vmem:[%s2904_s7 + $0xf4] sm:$0xf0]  ;;  %v2559_v34 = vld [vmem:[%s2904_s7 + $0x64] sm:$0xf0] }
  0x3e   : > { %v2131_v26 = vld [vmem:[%s2904_s7 + $0x170] sm:$0xf]  ;;  %v2593_v27 = vld [vmem:[%s2904_s7 + $0x174] sm:$0xf0]  ;;  %v2068_v28 = vor.u32 %v2577_v25, %v2067_v23  ;;  %v2059_v35 = vld [vmem:[%s2904_s7 + $0xe0] sm:$0xf]  ;;  %v1996_v37 = vor.u32 %v2559_v34, %v1995_v32 }
  0x3f   : > { %v2132_v29 = vor.u32 %v2593_v27, %v2131_v26  ;;  %v2195_v30 = vld [vmem:[%s2904_s7 + $0x1f0] sm:$0xf]  ;;  %v2609_v31 = vld [vmem:[%s2904_s7 + $0x1f4] sm:$0xf0]  ;;  %1336 = vmatpush.bf16.msra.mxu0 %v2004_v24  ;;  %v2575_v36 = vld [vmem:[%s2904_s7 + $0xe4] sm:$0xf0] }
  0x40   : > { %v2196_v33 = vor.u32 %v2609_v31, %v2195_v30  ;;  %1355 = vmatpush.bf16.msra.mxu1 %v2068_v28  ;;  %v2060_v38 = vor.u32 %v2575_v36, %v2059_v35  ;;  %v2123_v39 = vld [vmem:[%s2904_s7 + $0x160] sm:$0xf]  ;;  %v2591_v40 = vld [vmem:[%s2904_s7 + $0x164] sm:$0xf0]  ;;  %v1987_v44 = vld [vmem:[%s2904_s7 + $0x50] sm:$0xf] }
  0x41   : > { %1374 = vmatpush.bf16.msra.mxu2 %v2132_v29  ;;  %v2187_v41 = vld [vmem:[%s2904_s7 + $0x1e0] sm:$0xf]  ;;  %v2124_v42 = vor.u32 %v2591_v40, %v2123_v39  ;;  %v2607_v43 = vld [vmem:[%s2904_s7 + $0x1e4] sm:$0xf0]  ;;  %v2557_v45 = vld [vmem:[%s2904_s7 + $0x54] sm:$0xf0] }
  0x42   : > { %1393 = vmatpush.bf16.msra.mxu3 %v2196_v33  ;;  %v2188_v46 = vor.u32 %v2607_v43, %v2187_v41  ;;  %v2051_v47 = vld [vmem:[%s2904_s7 + $0xd0] sm:$0xf]  ;;  %v2573_v48 = vld [vmem:[%s2904_s7 + $0xd4] sm:$0xf0]  ;;  %v1988_v50 = vor.u32 %v2557_v45, %v1987_v44  ;;  %v1979_v56 = vld [vmem:[%s2904_s7 + $0x40] sm:$0xf] }
  0x43   : > { %v2115_v49 = vld [vmem:[%s2904_s7 + $0x150] sm:$0xf]  ;;  %1337 = vmatpush.bf16.msra.mxu0 %v1996_v37  ;;  %v2589_v51 = vld [vmem:[%s2904_s7 + $0x154] sm:$0xf0]  ;;  %v2052_v54 = vor.u32 %v2573_v48, %v2051_v47  ;;  %v2555_v57 = vld [vmem:[%s2904_s7 + $0x44] sm:$0xf0] }
  0x44   : > { %v2179_v52 = vld [vmem:[%s2904_s7 + $0x1d0] sm:$0xf]  ;;  %v2605_v53 = vld [vmem:[%s2904_s7 + $0x1d4] sm:$0xf0]  ;;  %1356 = vmatpush.bf16.msra.mxu1 %v2060_v38  ;;  %v2116_v55 = vor.u32 %v2589_v51, %v2115_v49  ;;  %v2043_v58 = vld [vmem:[%s2904_s7 + $0xc0] sm:$0xf]  ;;  %v1980_v1 = vor.u32 %v2555_v57, %v1979_v56 }
  0x45   : > { %1375 = vmatpush.bf16.msra.mxu2 %v2124_v42  ;;  %v2180_v59 = vor.u32 %v2605_v53, %v2179_v52  ;;  %v2571_v60 = vld [vmem:[%s2904_s7 + $0xc4] sm:$0xf0]  ;;  %v2107_v61 = vld [vmem:[%s2904_s7 + $0x140] sm:$0xf]  ;;  %v1971_v4 = vld [vmem:[%s2904_s7 + $0x30] sm:$0xf] }
  0x46   : > { %1394 = vmatpush.bf16.msra.mxu3 %v2188_v46  ;;  %v2587_v62 = vld [vmem:[%s2904_s7 + $0x144] sm:$0xf0]  ;;  %v2171_v63 = vld [vmem:[%s2904_s7 + $0x1c0] sm:$0xf]  ;;  %v2044_v2 = vor.u32 %v2571_v60, %v2043_v58  ;;  %v2553_v5 = vld [vmem:[%s2904_s7 + $0x34] sm:$0xf0] }
  0x47   : > { %v2603_v0 = vld [vmem:[%s2904_s7 + $0x1c4] sm:$0xf0]  ;;  %1338 = vmatpush.bf16.msra.mxu0 %v1988_v50  ;;  %v2108_v3 = vor.u32 %v2587_v62, %v2107_v61  ;;  %v2035_v6 = vld [vmem:[%s2904_s7 + $0xb0] sm:$0xf]  ;;  %v2569_v8 = vld [vmem:[%s2904_s7 + $0xb4] sm:$0xf0]  ;;  %v1972_v13 = vor.u32 %v2553_v5, %v1971_v4 }
  0x48   : > { %1357 = vmatpush.bf16.msra.mxu1 %v2052_v54  ;;  %v2172_v7 = vor.u32 %v2603_v0, %v2171_v63  ;;  %v2099_v9 = vld [vmem:[%s2904_s7 + $0x130] sm:$0xf]  ;;  %v2585_v10 = vld [vmem:[%s2904_s7 + $0x134] sm:$0xf0]  ;;  %v2036_v14 = vor.u32 %v2569_v8, %v2035_v6  ;;  %v1963_v16 = vld [vmem:[%s2904_s7 + $0x20] sm:$0xf] }
  0x49   : > { %1376 = vmatpush.bf16.msra.mxu2 %v2116_v55  ;;  %v2163_v11 = vld [vmem:[%s2904_s7 + $0x1b0] sm:$0xf]  ;;  %v2601_v12 = vld [vmem:[%s2904_s7 + $0x1b4] sm:$0xf0]  ;;  %v2100_v15 = vor.u32 %v2585_v10, %v2099_v9  ;;  %v2551_v17 = vld [vmem:[%s2904_s7 + $0x24] sm:$0xf0] }
  0x4a   : > { %1395 = vmatpush.bf16.msra.mxu3 %v2180_v59  ;;  %v2027_v18 = vld [vmem:[%s2904_s7 + $0xa0] sm:$0xf]  ;;  %v2164_v19 = vor.u32 %v2601_v12, %v2163_v11  ;;  %v2567_v20 = vld [vmem:[%s2904_s7 + $0xa4] sm:$0xf0]  ;;  %v1964_v25 = vor.u32 %v2551_v17, %v1963_v16  ;;  %v1955_v28 = vld [vmem:[%s2904_s7 + $0x10] sm:$0xf] }
  0x4b   : > { %1339 = vmatpush.bf16.msra.mxu0 %v1980_v1  ;;  %v2091_v21 = vld [vmem:[%s2904_s7 + $0x120] sm:$0xf]  ;;  %v2583_v22 = vld [vmem:[%s2904_s7 + $0x124] sm:$0xf0]  ;;  %v2028_v26 = vor.u32 %v2567_v20, %v2027_v18  ;;  %v2549_v29 = vld [vmem:[%s2904_s7 + $0x14] sm:$0xf0] }
  0x4c   : > { %1358 = vmatpush.bf16.msra.mxu1 %v2044_v2  ;;  %v2155_v23 = vld [vmem:[%s2904_s7 + $0x1a0] sm:$0xf]  ;;  %v2599_v24 = vld [vmem:[%s2904_s7 + $0x1a4] sm:$0xf0]  ;;  %v2092_v27 = vor.u32 %v2583_v22, %v2091_v21  ;;  %v2019_v30 = vld [vmem:[%s2904_s7 + $0x90] sm:$0xf]  ;;  %v1956_v38 = vor.u32 %v2549_v29, %v1955_v28 }
  0x4d   : > { %1377 = vmatpush.bf16.msra.mxu2 %v2108_v3  ;;  %v2156_v31 = vor.u32 %v2599_v24, %v2155_v23  ;;  %v2565_v32 = vld [vmem:[%s2904_s7 + $0x94] sm:$0xf0]  ;;  %v2083_v33 = vld [vmem:[%s2904_s7 + $0x110] sm:$0xf]  ;;  %v1947_v37 = vld [vmem:[%s2904_s7] sm:$0xf] }
  0x4e   : > { %1396 = vmatpush.bf16.msra.mxu3 %v2172_v7  ;;  %v2581_v34 = vld [vmem:[%s2904_s7 + $0x114] sm:$0xf0]  ;;  %v2147_v35 = vld [vmem:[%s2904_s7 + $0x190] sm:$0xf]  ;;  %v2547_v39 = vld [vmem:[%s2904_s7 + $0x4] sm:$0xf0]  ;;  %v2020_v42 = vor.u32 %v2565_v32, %v2019_v30 }
  0x4f   : > { %1340 = vmatpush.bf16.msra.mxu0 %v1972_v13  ;;  %v2597_v36 = vld [vmem:[%s2904_s7 + $0x194] sm:$0xf0]  ;;  %v2011_v40 = vld [vmem:[%s2904_s7 + $0x80] sm:$0xf]  ;;  %v2563_v41 = vld [vmem:[%s2904_s7 + $0x84] sm:$0xf0]  ;;  %v2084_v43 = vor.u32 %v2581_v34, %v2083_v33  ;;  %v1948_v55 = vor.u32 %v2547_v39, %v1947_v37 }
  0x50   : > { %1359 = vmatpush.bf16.msra.mxu1 %v2036_v14  ;;  %v2075_v44 = vld [vmem:[%s2904_s7 + $0x100] sm:$0xf]  ;;  %v2579_v45 = vld [vmem:[%s2904_s7 + $0x104] sm:$0xf0]  ;;  %v2148_v47 = vor.u32 %v2597_v36, %v2147_v35  ;;  %v2532_v50 = vld [vmem:[%s2906_s8 + $0x20] sm:$0xf0]  ;;  %v2012_v59 = vor.u32 %v2563_v41, %v2011_v40 }
  0x51   : > { %1378 = vmatpush.bf16.msra.mxu2 %v2100_v15  ;;  %v2139_v46 = vld [vmem:[%s2904_s7 + $0x180] sm:$0xf]  ;;  %v2595_v48 = vld [vmem:[%s2904_s7 + $0x184] sm:$0xf0]  ;;  %v2528_v51 = vld [vmem:[%s2906_s8 + $0x4] sm:$0xf]  ;;  %v2076_v60 = vor.u32 %v2579_v45, %v2075_v44 }
  0x52   : > { %1397 = vmatpush.bf16.msra.mxu3 %v2164_v19  ;;  %v1875_v49 = vld [vmem:[%s2906_s8] sm:$0xf]  ;;  %v1877_v52 = vld [vmem:[%s2906_s8 + $0x24] sm:$0xf0]  ;;  %v2533_v61 = vld [vmem:[%s2906_s8 + $0x28] sm:$0xf0]  ;;  %v2140_v0 = vor.u32 %v2595_v48, %v2139_v46 }
  0x53   : > { %1341 = vmatpush.bf16.msra.mxu0 %v1964_v25  ;;  %v2387_v53 = vld [vmem:[%s2904_s7 + $0x370] sm:$0xf]  ;;  %v2657_v54 = vld [vmem:[%s2904_s7 + $0x374] sm:$0xf0]  ;;  %v2529_v62 = vld [vmem:[%s2906_s8 + $0xc] sm:$0xf]  ;;  %v2988_v5 = vor.u32 %v2532_v50, %v1875_v49  ;;  %v2993_v10 = vor.u32 %v2528_v51, %v1877_v52 }
  0x54   : > { %1360 = vmatpush.bf16.msra.mxu1 %v2028_v26  ;;  %v1883_v56 = vld [vmem:[%s2906_s8 + $0x8] sm:$0xf]  ;;  %v2323_v57 = vld [vmem:[%s2904_s7 + $0x2f0] sm:$0xf]  ;;  %v2388_v1 = vor.u32 %v2657_v54, %v2387_v53  ;;  %v2379_v8 = vld [vmem:[%s2904_s7 + $0x360] sm:$0xf] }
  0x55   : > { %1379 = vmatpush.bf16.msra.mxu2 %v2092_v27  ;;  %v2641_v58 = vld [vmem:[%s2904_s7 + $0x2f4] sm:$0xf0]  ;;  %v1885_v63 = vld [vmem:[%s2906_s8 + $0x2c] sm:$0xf0]  ;;  %v2655_v9 = vld [vmem:[%s2904_s7 + $0x364] sm:$0xf0]  ;;  %v2995_v11 = vor.u32 %v2533_v61, %v1883_v56 }
  0x56   : > { %1398 = vmatpush.bf16.msra.mxu3 %v2156_v31  ;;  %v2259_v2 = vld [vmem:[%s2904_s7 + $0x270] sm:$0xf]  ;;  %v2625_v3 = vld [vmem:[%s2904_s7 + $0x274] sm:$0xf0]  ;;  %v2324_v6 = vor.u32 %v2641_v58, %v2323_v57  ;;  %v2315_v12 = vld [vmem:[%s2904_s7 + $0x2e0] sm:$0xf]  ;;  %v2999_v14 = vor.u32 %v2529_v62, %v1885_v63  ;;  %v2380_v17 = vor.u32 %v2655_v9, %v2379_v8 }
  0x57   : > { %1342 = vmatpush.bf16.msra.mxu0 %v1956_v38  ;;  %v2451_v4 = vld [vmem:[%s2904_s7 + $0x3f0] sm:$0xf]  ;;  %v2673_v7 = vld [vmem:[%s2904_s7 + $0x3f4] sm:$0xf0]  ;;  %v2639_v13 = vld [vmem:[%s2904_s7 + $0x2e4] sm:$0xf0]  ;;  %v2260_v15 = vor.u32 %v2625_v3, %v2259_v2 }
  0x58   : > { %1361 = vmatpush.bf16.msra.mxu1 %v2020_v42  ;;  %v2452_v16 = vor.u32 %v2673_v7, %v2451_v4  ;;  %v2251_v18 = vld [vmem:[%s2904_s7 + $0x260] sm:$0xf]  ;;  %v2623_v19 = vld [vmem:[%s2904_s7 + $0x264] sm:$0xf0]  ;;  %v2316_v21 = vor.u32 %v2639_v13, %v2315_v12  ;;  %v2371_v23 = vld [vmem:[%s2904_s7 + $0x350] sm:$0xf] }
  0x59   : > { %1380 = vmatpush.bf16.msra.mxu2 %v2084_v43  ;;  %v2443_v20 = vld [vmem:[%s2904_s7 + $0x3e0] sm:$0xf]  ;;  %v2671_v22 = vld [vmem:[%s2904_s7 + $0x3e4] sm:$0xf0]  ;;  %v2653_v24 = vld [vmem:[%s2904_s7 + $0x354] sm:$0xf0]  ;;  %v2252_v27 = vor.u32 %v2623_v19, %v2251_v18 }
  0x5a   : > { %1399 = vmatpush.bf16.msra.mxu3 %v2148_v47  ;;  %v2307_v25 = vld [vmem:[%s2904_s7 + $0x2d0] sm:$0xf]  ;;  %v2637_v26 = vld [vmem:[%s2904_s7 + $0x2d4] sm:$0xf0]  ;;  %v2444_v28 = vor.u32 %v2671_v22, %v2443_v20  ;;  %v2372_v29 = vor.u32 %v2653_v24, %v2371_v23  ;;  %v2363_v35 = vld [vmem:[%s2904_s7 + $0x340] sm:$0xf] }
  0x5b   : > { %1343 = vmatpush.bf16.msra.mxu0 %v1948_v55  ;;  %v2243_v30 = vld [vmem:[%s2904_s7 + $0x250] sm:$0xf]  ;;  %v2621_v31 = vld [vmem:[%s2904_s7 + $0x254] sm:$0xf0]  ;;  %v2308_v33 = vor.u32 %v2637_v26, %v2307_v25  ;;  %v2651_v36 = vld [vmem:[%s2904_s7 + $0x344] sm:$0xf0] }
  0x5c   : > { %1362 = vmatpush.bf16.msra.mxu1 %v2012_v59  ;;  %v2435_v32 = vld [vmem:[%s2904_s7 + $0x3d0] sm:$0xf]  ;;  %v2669_v34 = vld [vmem:[%s2904_s7 + $0x3d4] sm:$0xf0]  ;;  %v2299_v37 = vld [vmem:[%s2904_s7 + $0x2c0] sm:$0xf]  ;;  %v2244_v39 = vor.u32 %v2621_v31, %v2243_v30  ;;  %v2364_v44 = vor.u32 %v2651_v36, %v2363_v35 }
  0x5d   : > { %1381 = vmatpush.bf16.msra.mxu2 %v2076_v60  ;;  %v2635_v38 = vld [vmem:[%s2904_s7 + $0x2c4] sm:$0xf0]  ;;  %v2235_v40 = vld [vmem:[%s2904_s7 + $0x240] sm:$0xf]  ;;  %v2436_v43 = vor.u32 %v2669_v34, %v2435_v32  ;;  %v2541_v47 = vld [vmem:[%s2906_s8 + $0x68] sm:$0xf0] }
  0x5e   : > { %1400 = vmatpush.bf16.msra.mxu3 %v2140_v0  ;;  %1344 = vmatmul.bf16.vlgmr.msra.gmra.mxu0 %v2988_v5  ;;  %v2619_v41 = vld [vmem:[%s2904_s7 + $0x244] sm:$0xf0]  ;;  %v2427_v42 = vld [vmem:[%s2904_s7 + $0x3c0] sm:$0xf]  ;;  %v2300_v48 = vor.u32 %v2635_v38, %v2299_v37  ;;  %v2537_v49 = vld [vmem:[%s2906_s8 + $0x4c] sm:$0xf] }
  0x5f   : > { %1363 = vmatmul.bf16.vlgmr.msra.gmra.mxu1 %v2993_v10  ;;  %1412 = vmatpush.bf16.msrb.mxu0 %v2260_v15  ;;  %v2667_v45 = vld [vmem:[%s2904_s7 + $0x3c4] sm:$0xf0]  ;;  %v1913_v50 = vld [vmem:[%s2906_s8 + $0x6c] sm:$0xf0]  ;;  %v2649_v52 = vld [vmem:[%s2904_s7 + $0x334] sm:$0xf0]  ;;  %v2236_v56 = vor.u32 %v2619_v41, %v2235_v40 }
  0x60   : > { %1431 = vmatpush.bf16.msrb.mxu1 %v2324_v6  ;;  %1382 = vmatmul.bf16.vlgmr.msra.gmra.mxu2 %v2995_v11  ;;  %v1911_v46 = vld [vmem:[%s2906_s8 + $0x48] sm:$0xf]  ;;  %v2355_v51 = vld [vmem:[%s2904_s7 + $0x330] sm:$0xf]  ;;  %v2542_v57 = vld [vmem:[%s2906_s8 + $0x70] sm:$0xf0]  ;;  %v2428_v60 = vor.u32 %v2667_v45, %v2427_v42  ;;  %v3045_v7 = vor.u32 %v2537_v49, %v1913_v50 }
  0x61   : > { %1450 = vmatpush.bf16.msrb.mxu2 %v2388_v1  ;;  %1401 = vmatmul.bf16.vlgmr.msra.gmra.mxu3 %v2999_v14  ;;  %v1919_v53 = vld [vmem:[%s2906_s8 + $0x50] sm:$0xf]  ;;  %v2633_v55 = vld [vmem:[%s2904_s7 + $0x2b4] sm:$0xf0]  ;;  %v2538_v58 = vld [vmem:[%s2906_s8 + $0x54] sm:$0xf]  ;;  %v2356_v61 = vor.u32 %v2649_v52, %v2355_v51  ;;  %v3040_v1 = vor.u32 %v2541_v47, %v1911_v46 }
  0x62   : > { %1469 = vmatpush.bf16.msrb.mxu3 %v2452_v16  ;;  %v2291_v54 = vld [vmem:[%s2904_s7 + $0x2b0] sm:$0xf]  ;;  %v1921_v59 = vld [vmem:[%s2906_s8 + $0x74] sm:$0xf0]  ;;  %v2347_v4 = vld [vmem:[%s2904_s7 + $0x320] sm:$0xf]  ;;  %v3047_v8 = vor.u32 %v2542_v57, %v1919_v53 }
  0x63   : > { %1413 = vmatpush.bf16.msrb.mxu0 %v2252_v27  ;;  %v2227_v62 = vld [vmem:[%s2904_s7 + $0x230] sm:$0xf]  ;;  %v2617_v63 = vld [vmem:[%s2904_s7 + $0x234] sm:$0xf0]  ;;  %v2292_v2 = vor.u32 %v2633_v55, %v2291_v54  ;;  %v2647_v6 = vld [vmem:[%s2904_s7 + $0x324] sm:$0xf0]  ;;  %v3051_v13 = vor.u32 %v2538_v58, %v1921_v59 }
  0x64   : > { %1432 = vmatpush.bf16.msrb.mxu1 %v2316_v21  ;;  %v2419_v0 = vld [vmem:[%s2904_s7 + $0x3b0] sm:$0xf]  ;;  %v2665_v3 = vld [vmem:[%s2904_s7 + $0x3b4] sm:$0xf0]  ;;  %v2283_v9 = vld [vmem:[%s2904_s7 + $0x2a0] sm:$0xf]  ;;  %v2228_v15 = vor.u32 %v2617_v63, %v2227_v62 }
  0x65   : > { %1451 = vmatpush.bf16.msrb.mxu2 %v2380_v17  ;;  %v2631_v12 = vld [vmem:[%s2904_s7 + $0x2a4] sm:$0xf0]  ;;  %v2420_v16 = vor.u32 %v2665_v3, %v2419_v0  ;;  %v2348_v17 = vor.u32 %v2647_v6, %v2347_v4  ;;  %v2219_v18 = vld [vmem:[%s2904_s7 + $0x220] sm:$0xf]  ;;  %v2339_v23 = vld [vmem:[%s2904_s7 + $0x310] sm:$0xf] }
  0x66   : > { %1470 = vmatpush.bf16.msrb.mxu3 %v2444_v28  ;;  %v2615_v19 = vld [vmem:[%s2904_s7 + $0x224] sm:$0xf0]  ;;  %v2411_v20 = vld [vmem:[%s2904_s7 + $0x3a0] sm:$0xf]  ;;  %v2284_v21 = vor.u32 %v2631_v12, %v2283_v9  ;;  %v2645_v24 = vld [vmem:[%s2904_s7 + $0x314] sm:$0xf0] }
  0x67   : > { %1414 = vmatpush.bf16.msrb.mxu0 %v2244_v39  ;;  %v2663_v22 = vld [vmem:[%s2904_s7 + $0x3a4] sm:$0xf0]  ;;  %v2275_v25 = vld [vmem:[%s2904_s7 + $0x290] sm:$0xf]  ;;  %v2629_v26 = vld [vmem:[%s2904_s7 + $0x294] sm:$0xf0]  ;;  %v2220_v27 = vor.u32 %v2615_v19, %v2219_v18  ;;  %v2340_v30 = vor.u32 %v2645_v24, %v2339_v23 }
  0x68   : > { %1433 = vmatpush.bf16.msrb.mxu1 %v2308_v33  ;;  %v2211_v28 = vld [vmem:[%s2904_s7 + $0x210] sm:$0xf]  ;;  %v2613_v31 = vld [vmem:[%s2904_s7 + $0x214] sm:$0xf0]  ;;  %v2276_v34 = vor.u32 %v2629_v26, %v2275_v25  ;;  %v2331_v35 = vld [vmem:[%s2904_s7 + $0x300] sm:$0xf] }
  0x69   : > { %1452 = vmatpush.bf16.msrb.mxu2 %v2372_v29  ;;  %v2412_v29 = vor.u32 %v2663_v22, %v2411_v20  ;;  %v2403_v32 = vld [vmem:[%s2904_s7 + $0x390] sm:$0xf]  ;;  %v2661_v33 = vld [vmem:[%s2904_s7 + $0x394] sm:$0xf0]  ;;  %v2643_v36 = vld [vmem:[%s2904_s7 + $0x304] sm:$0xf0]  ;;  %v2212_v41 = vor.u32 %v2613_v31, %v2211_v28 }
  0x6a   : > { %1471 = vmatpush.bf16.msrb.mxu3 %v2436_v43  ;;  %v2267_v37 = vld [vmem:[%s2904_s7 + $0x280] sm:$0xf]  ;;  %v2627_v38 = vld [vmem:[%s2904_s7 + $0x284] sm:$0xf0]  ;;  %v2576_v39 = vld [vmem:[%s2904_s7 + $0xf4] sm:$0xf]  ;;  %v2404_v45 = vor.u32 %v2661_v33, %v2403_v32  ;;  %v2332_v46 = vor.u32 %v2643_v36, %v2331_v35 }
  0x6b   : > { %1415 = vmatpush.bf16.msrb.mxu0 %v2236_v56  ;;  %v2069_v40 = vld [vmem:[%s2904_s7 + $0xf8] sm:$0xf0]  ;;  %v2203_v42 = vld [vmem:[%s2904_s7 + $0x200] sm:$0xf]  ;;  %v2560_v43 = vld [vmem:[%s2904_s7 + $0x74] sm:$0xf]  ;;  %v2268_v50 = vor.u32 %v2627_v38, %v2267_v37 }
  0x6c   : > { %1434 = vmatpush.bf16.msrb.mxu1 %v2300_v48  ;;  %v2611_v47 = vld [vmem:[%s2904_s7 + $0x204] sm:$0xf0]  ;;  %v2395_v48 = vld [vmem:[%s2904_s7 + $0x380] sm:$0xf]  ;;  %v2534_v52 = vld [vmem:[%s2906_s8 + $0x30] sm:$0xf0]  ;;  %v2072_v55 = vor.u32 %v2576_v39, %v2069_v40 }
  0x6d   : > { %1453 = vmatpush.bf16.msrb.mxu2 %v2364_v44  ;;  %v2005_v44 = vld [vmem:[%s2904_s7 + $0x78] sm:$0xf0]  ;;  %v2659_v49 = vld [vmem:[%s2904_s7 + $0x384] sm:$0xf0]  ;;  %v1891_v51 = vld [vmem:[%s2906_s8 + $0x10] sm:$0xf]  ;;  %v2204_v63 = vor.u32 %v2611_v47, %v2203_v42 }
  0x6e   : > { %1472 = vmatpush.bf16.msrb.mxu3 %v2428_v60  ;;  %1349 = vmatmul.bf16.gmra.mxu0 %v3040_v1  ;;  %v2530_v53 = vld [vmem:[%s2906_s8 + $0x14] sm:$0xf]  ;;  %v1893_v54 = vld [vmem:[%s2906_s8 + $0x34] sm:$0xf0]  ;;  %v2515_v56 = vld [vmem:[%s2904_s7 + $0x470] sm:$0xf]  ;;  %v2008_v59 = vor.u32 %v2560_v43, %v2005_v44  ;;  %v2396_v4 = vor.u32 %v2659_v49, %v2395_v48 }
  0x6f   : > { %1368 = vmatmul.bf16.gmra.mxu1 %v3045_v7  ;;  %1416 = vmatpush.bf16.msrb.mxu0 %v2228_v15  ;;  %v2689_v57 = vld [vmem:[%s2904_s7 + $0x474] sm:$0xf0]  ;;  %v2592_v58 = vld [vmem:[%s2904_s7 + $0x174] sm:$0xf]  ;;  %v2133_v60 = vld [vmem:[%s2904_s7 + $0x178] sm:$0xf0]  ;;  %v3102_v22 = vor.u32 %v2530_v53, %v1893_v54 }
  0x70   : > { %1435 = vmatpush.bf16.msrb.mxu1 %v2292_v2  ;;  %1387 = vmatmul.bf16.gmra.mxu2 %v3047_v8  ;;  %v2061_v62 = vld [vmem:[%s2904_s7 + $0xe8] sm:$0xf0]  ;;  %v1899_v0 = vld [vmem:[%s2906_s8 + $0x18] sm:$0xf]  ;;  %v1901_v6 = vld [vmem:[%s2906_s8 + $0x3c] sm:$0xf0]  ;;  %v2516_v9 = vor.u32 %v2689_v57, %v2515_v56 }
  0x71   : > { %1454 = vmatpush.bf16.msrb.mxu2 %v2356_v61  ;;  %1406 = vmatmul.bf16.gmra.mxu3 %v3051_v13  ;;  %v2574_v61 = vld [vmem:[%s2904_s7 + $0xe4] sm:$0xf]  ;;  %v2535_v2 = vld [vmem:[%s2906_s8 + $0x38] sm:$0xf0]  ;;  %v2507_v12 = vld [vmem:[%s2904_s7 + $0x460] sm:$0xf] }
  0x72   : > { %1473 = vmatpush.bf16.msrb.mxu3 %v2420_v16  ;;  %v2531_v3 = vld [vmem:[%s2906_s8 + $0x1c] sm:$0xf]  ;;  %v2687_v15 = vld [vmem:[%s2904_s7 + $0x464] sm:$0xf0]  ;;  %v2136_v16 = vor.u32 %v2592_v58, %v2133_v60  ;;  %v2558_v18 = vld [vmem:[%s2904_s7 + $0x64] sm:$0xf]  ;;  %v3107_v26 = vor.u32 %v2535_v2, %v1899_v0 }
  0x73   : > { %1417 = vmatpush.bf16.msrb.mxu0 %v2220_v27  ;;  %v1997_v19 = vld [vmem:[%s2904_s7 + $0x68] sm:$0xf0]  ;;  %v2590_v20 = vld [vmem:[%s2904_s7 + $0x164] sm:$0xf]  ;;  %v2572_v24 = vld [vmem:[%s2904_s7 + $0xd4] sm:$0xf]  ;;  %v3109_v27 = vor.u32 %v2531_v3, %v1901_v6  ;;  %v2508_v28 = vor.u32 %v2687_v15, %v2507_v12 }
  0x74   : > { %1436 = vmatpush.bf16.msrb.mxu1 %v2284_v21  ;;  %v3100_v21 = vor.u32 %v2534_v52, %v1891_v51  ;;  %v2125_v23 = vld [vmem:[%s2904_s7 + $0x168] sm:$0xf0]  ;;  %v2053_v25 = vld [vmem:[%s2904_s7 + $0xd8] sm:$0xf0]  ;;  %v2685_v31 = vld [vmem:[%s2904_s7 + $0x454] sm:$0xf0] }
  0x75   : > { %1455 = vmatpush.bf16.msrb.mxu2 %v2348_v17  ;;  %v2064_v17 = vor.u32 %v2574_v61, %v2061_v62  ;;  %v2128_v32 = vor.u32 %v2590_v20, %v2125_v23  ;;  %v2056_v33 = vor.u32 %v2572_v24, %v2053_v25  ;;  %v1989_v35 = vld [vmem:[%s2904_s7 + $0x58] sm:$0xf0]  ;;  %v2588_v36 = vld [vmem:[%s2904_s7 + $0x154] sm:$0xf]  ;;  %v2570_v38 = vld [vmem:[%s2904_s7 + $0xc4] sm:$0xf] }
  0x76   : > { %1474 = vmatpush.bf16.msrb.mxu3 %v2412_v29  ;;  %v2000_v29 = vor.u32 %v2558_v18, %v1997_v19  ;;  %v2117_v37 = vld [vmem:[%s2904_s7 + $0x158] sm:$0xf0]  ;;  %v2045_v39 = vld [vmem:[%s2904_s7 + $0xc8] sm:$0xf0]  ;;  %v2491_v42 = vld [vmem:[%s2904_s7 + $0x440] sm:$0xf] }
  0x77   : > { %1418 = vmatpush.bf16.msrb.mxu0 %v2212_v41  ;;  %v2683_v43 = vld [vmem:[%s2904_s7 + $0x444] sm:$0xf0]  ;;  %v2120_v44 = vor.u32 %v2588_v36, %v2117_v37  ;;  %v1981_v47 = vld [vmem:[%s2904_s7 + $0x48] sm:$0xf0]  ;;  %v2586_v48 = vld [vmem:[%s2904_s7 + $0x144] sm:$0xf] }
  0x78   : > { %1437 = vmatpush.bf16.msrb.mxu1 %v2276_v34  ;;  %v2556_v34 = vld [vmem:[%s2904_s7 + $0x54] sm:$0xf]  ;;  %v2109_v49 = vld [vmem:[%s2904_s7 + $0x148] sm:$0xf0]  ;;  %v2037_v51 = vld [vmem:[%s2904_s7 + $0xb8] sm:$0xf0]  ;;  %v2492_v52 = vor.u32 %v2683_v43, %v2491_v42 }
  0x79   : > { %1456 = vmatpush.bf16.msrb.mxu2 %v2340_v30  ;;  %v2499_v30 = vld [vmem:[%s2904_s7 + $0x450] sm:$0xf]  ;;  %v1992_v41 = vor.u32 %v2556_v34, %v1989_v35  ;;  %v2112_v56 = vor.u32 %v2586_v48, %v2109_v49  ;;  %v1927_v57 = vld [vmem:[%s2906_s8 + $0x58] sm:$0xf]  ;;  %v2543_v58 = vld [vmem:[%s2906_s8 + $0x78] sm:$0xf0] }
  0x7a   : > { %1475 = vmatpush.bf16.msrb.mxu3 %v2404_v45  ;;  %v2500_v40 = vor.u32 %v2685_v31, %v2499_v30  ;;  %v2048_v45 = vor.u32 %v2570_v38, %v2045_v39  ;;  %v2483_v54 = vld [vmem:[%s2904_s7 + $0x430] sm:$0xf]  ;;  %v2552_v62 = vld [vmem:[%s2904_s7 + $0x34] sm:$0xf]  ;;  %v2101_v2 = vld [vmem:[%s2904_s7 + $0x138] sm:$0xf0] }
  0x7b   : > { %1419 = vmatpush.bf16.msrb.mxu0 %v2204_v63  ;;  %v1929_v60 = vld [vmem:[%s2906_s8 + $0x7c] sm:$0xf0]  ;;  %v1973_v63 = vld [vmem:[%s2904_s7 + $0x38] sm:$0xf0]  ;;  %v2584_v0 = vld [vmem:[%s2904_s7 + $0x134] sm:$0xf] }
  0x7c   : > { %1438 = vmatpush.bf16.msrb.mxu1 %v2268_v50  ;;  %v2568_v50 = vld [vmem:[%s2904_s7 + $0xb4] sm:$0xf]  ;;  %v2566_v3 = vld [vmem:[%s2904_s7 + $0xa4] sm:$0xf]  ;;  %v1935_v6 = vld [vmem:[%s2906_s8 + $0x60] sm:$0xf]  ;;  %v2104_v20 = vor.u32 %v2584_v0, %v2101_v2 }
  0x7d   : > { %1457 = vmatpush.bf16.msrb.mxu2 %v2332_v46  ;;  %v2554_v46 = vld [vmem:[%s2904_s7 + $0x44] sm:$0xf]  ;;  %v2040_v61 = vor.u32 %v2568_v50, %v2037_v51  ;;  %v1937_v15 = vld [vmem:[%s2906_s8 + $0x84] sm:$0xf0]  ;;  %v2475_v18 = vld [vmem:[%s2904_s7 + $0x420] sm:$0xf] }
  0x7e   : > { %1476 = vmatpush.bf16.msrb.mxu3 %v2396_v4  ;;  %1420 = vmatmul.bf16.vlgmr.msrb.gmra.mxu0 %v3100_v21  ;;  %v1984_v53 = vor.u32 %v2554_v46, %v1981_v47  ;;  %v2029_v4 = vld [vmem:[%s2904_s7 + $0xa8] sm:$0xf0]  ;;  %v2540_v12 = vld [vmem:[%s2906_s8 + $0x64] sm:$0xf]  ;;  %v2679_v19 = vld [vmem:[%s2904_s7 + $0x424] sm:$0xf0] }
  0x7f   : > { %1488 = vmatpush.bf16.msra.mxu0 %v2516_v9  ;;  %1439 = vmatmul.bf16.vlgmr.msrb.gmra.mxu1 %v3102_v22  ;;  %v2544_v9 = vld [vmem:[%s2906_s8 + $0x80] sm:$0xf0]  ;;  %v2032_v23 = vor.u32 %v2566_v3, %v2029_v4  ;;  %v1965_v25 = vld [vmem:[%s2904_s7 + $0x28] sm:$0xf0]  ;;  %v3161_v35 = vor.u32 %v2540_v12, %v1937_v15  ;;  %v2476_v36 = vor.u32 %v2679_v19, %v2475_v18  ;;  %v2467_v38 = vld [vmem:[%s2904_s7 + $0x410] sm:$0xf] }
  0x80   : > { %1507 = vmatpush.bf16.msra.mxu1 %v2008_v59  ;;  %1458 = vmatmul.bf16.vlgmr.msrb.gmra.mxu2 %v3107_v26  ;;  %v2539_v59 = vld [vmem:[%s2906_s8 + $0x5c] sm:$0xf]  ;;  %v2550_v24 = vld [vmem:[%s2904_s7 + $0x24] sm:$0xf]  ;;  %v3159_v34 = vor.u32 %v2544_v9, %v1935_v6  ;;  %v2677_v39 = vld [vmem:[%s2904_s7 + $0x414] sm:$0xf0] }
  0x81   : > { %1526 = vmatpush.bf16.msra.mxu2 %v2072_v55  ;;  %1477 = vmatmul.bf16.vlgmr.msrb.gmra.mxu3 %v3109_v27  ;;  %v2681_v55 = vld [vmem:[%s2904_s7 + $0x434] sm:$0xf0]  ;;  %v3154_v30 = vor.u32 %v2539_v59, %v1929_v60  ;;  %v2093_v31 = vld [vmem:[%s2904_s7 + $0x128] sm:$0xf0]  ;;  %v1968_v37 = vor.u32 %v2550_v24, %v1965_v25  ;;  %v2548_v42 = vld [vmem:[%s2904_s7 + $0x14] sm:$0xf]  ;;  %v2468_v50 = vor.u32 %v2677_v39, %v2467_v38 }
  0x82   : > { %1545 = vmatpush.bf16.msra.mxu3 %v2136_v16  ;;  %v2484_v16 = vor.u32 %v2681_v55, %v2483_v54  ;;  %v1957_v43 = vld [vmem:[%s2904_s7 + $0x18] sm:$0xf0]  ;;  %v2562_v46 = vld [vmem:[%s2904_s7 + $0x84] sm:$0xf]  ;;  %v2013_v47 = vld [vmem:[%s2904_s7 + $0x88] sm:$0xf0] }
  0x83   : > { %1489 = vmatpush.bf16.msra.mxu0 %v2508_v28  ;;  %v2582_v28 = vld [vmem:[%s2904_s7 + $0x124] sm:$0xf]  ;;  %v2640_v48 = vld [vmem:[%s2904_s7 + $0x2f4] sm:$0xf]  ;;  %v2325_v49 = vld [vmem:[%s2904_s7 + $0x2f8] sm:$0xf0]  ;;  %v1960_v51 = vor.u32 %v2548_v42, %v1957_v43 }
  0x84   : > { %1508 = vmatpush.bf16.msra.mxu1 %v2000_v29  ;;  %v3152_v29 = vor.u32 %v2543_v58, %v1927_v57  ;;  %v2546_v54 = vld [vmem:[%s2904_s7 + $0x4] sm:$0xf]  ;;  %v1949_v57 = vld [vmem:[%s2904_s7 + $0x8] sm:$0xf0]  ;;  %v2328_v60 = vor.u32 %v2640_v48, %v2325_v49  ;;  %v2261_v0 = vld [vmem:[%s2904_s7 + $0x278] sm:$0xf0] }
  0x85   : > { %1527 = vmatpush.bf16.msra.mxu2 %v2064_v17  ;;  %v1976_v17 = vor.u32 %v2552_v62, %v1973_v63  ;;  %v2578_v58 = vld [vmem:[%s2904_s7 + $0x104] sm:$0xf]  ;;  %v2077_v59 = vld [vmem:[%s2904_s7 + $0x108] sm:$0xf0]  ;;  %v2197_v62 = vld [vmem:[%s2904_s7 + $0x1f8] sm:$0xf0]  ;;  %v1952_v6 = vor.u32 %v2546_v54, %v1949_v57 }
  0x86   : > { %1546 = vmatpush.bf16.msra.mxu3 %v2128_v32  ;;  %v2564_v32 = vld [vmem:[%s2904_s7 + $0x94] sm:$0xf]  ;;  %v2389_v3 = vld [vmem:[%s2904_s7 + $0x378] sm:$0xf0]  ;;  %v2638_v9 = vld [vmem:[%s2904_s7 + $0x2e4] sm:$0xf]  ;;  %v2080_v15 = vor.u32 %v2578_v58, %v2077_v59 }
  0x87   : > { %1490 = vmatpush.bf16.msra.mxu0 %v2500_v40  ;;  %v2096_v40 = vor.u32 %v2582_v28, %v2093_v31  ;;  %v2624_v63 = vld [vmem:[%s2904_s7 + $0x274] sm:$0xf]  ;;  %v2317_v12 = vld [vmem:[%s2904_s7 + $0x2e8] sm:$0xf0]  ;;  %v2606_v19 = vld [vmem:[%s2904_s7 + $0x1e4] sm:$0xf] }
  0x88   : > { %1509 = vmatpush.bf16.msra.mxu1 %v1992_v41  ;;  %v2656_v2 = vld [vmem:[%s2904_s7 + $0x374] sm:$0xf]  ;;  %v2320_v25 = vor.u32 %v2638_v9, %v2317_v12  ;;  %v2622_v28 = vld [vmem:[%s2904_s7 + $0x264] sm:$0xf]  ;;  %v2253_v31 = vld [vmem:[%s2904_s7 + $0x268] sm:$0xf0] }
  0x89   : > { %1528 = vmatpush.bf16.msra.mxu2 %v2056_v33  ;;  %v2021_v33 = vld [vmem:[%s2904_s7 + $0x98] sm:$0xf0]  ;;  %v2392_v18 = vor.u32 %v2656_v2, %v2389_v3  ;;  %v2536_v24 = vld [vmem:[%s2906_s8 + $0x40] sm:$0xf0]  ;;  %v2256_v42 = vor.u32 %v2622_v28, %v2253_v31  ;;  %v2221_v28 = vld [vmem:[%s2904_s7 + $0x228] sm:$0xf0] }
  0x8a   : > { %1547 = vmatpush.bf16.msra.mxu3 %v2120_v44  ;;  %v2024_v41 = vor.u32 %v2564_v32, %v2021_v33  ;;  %v2580_v44 = vld [vmem:[%s2904_s7 + $0x114] sm:$0xf]  ;;  %v2654_v33 = vld [vmem:[%s2904_s7 + $0x364] sm:$0xf]  ;;  %v2309_v39 = vld [vmem:[%s2904_s7 + $0x2d8] sm:$0xf0] }
  0x8b   : > { %1491 = vmatpush.bf16.msra.mxu0 %v2492_v52  ;;  %v2459_v52 = vld [vmem:[%s2904_s7 + $0x400] sm:$0xf]  ;;  %v2652_v48 = vld [vmem:[%s2904_s7 + $0x354] sm:$0xf]  ;;  %v2373_v49 = vld [vmem:[%s2904_s7 + $0x358] sm:$0xf0] }
  0x8c   : > { %1510 = vmatpush.bf16.msra.mxu1 %v1984_v53  ;;  %v2675_v53 = vld [vmem:[%s2904_s7 + $0x404] sm:$0xf0]  ;;  %v2650_v59 = vld [vmem:[%s2904_s7 + $0x344] sm:$0xf]  ;;  %v2616_v2 = vld [vmem:[%s2904_s7 + $0x234] sm:$0xf] }
  0x8d   : > { %1529 = vmatpush.bf16.msra.mxu2 %v2048_v45  ;;  %v2085_v45 = vld [vmem:[%s2904_s7 + $0x118] sm:$0xf0]  ;;  %v2460_v4 = vor.u32 %v2675_v53, %v2459_v52  ;;  %v2602_v52 = vld [vmem:[%s2904_s7 + $0x1c4] sm:$0xf]  ;;  %v2173_v53 = vld [vmem:[%s2904_s7 + $0x1c8] sm:$0xf0] }
  0x8e   : > { %1548 = vmatpush.bf16.msra.mxu3 %v2112_v56  ;;  %1425 = vmatmul.bf16.gmra.mxu0 %v3152_v29  ;;  %v2088_v55 = vor.u32 %v2580_v44, %v2085_v45  ;;  %v2016_v56 = vor.u32 %v2562_v46, %v2013_v47  ;;  %v2620_v44 = vld [vmem:[%s2904_s7 + $0x254] sm:$0xf]  ;;  %v2245_v45 = vld [vmem:[%s2904_s7 + $0x258] sm:$0xf0]  ;;  %v2176_v58 = vor.u32 %v2602_v52, %v2173_v53  ;;  %v2269_v52 = vld [vmem:[%s2904_s7 + $0x288] sm:$0xf0] }
  0x8f   : > { %1492 = vmatpush.bf16.msra.mxu0 %v2484_v16  ;;  %1444 = vmatmul.bf16.gmra.mxu1 %v3154_v30  ;;  %v2248_v54 = vor.u32 %v2620_v44, %v2245_v45  ;;  %v2229_v3 = vld [vmem:[%s2904_s7 + $0x238] sm:$0xf0]  ;;  %v2648_v9 = vld [vmem:[%s2904_s7 + $0x334] sm:$0xf]  ;;  %v2594_v53 = vld [vmem:[%s2904_s7 + $0x184] sm:$0xf] }
  0x90   : > { %1511 = vmatpush.bf16.msra.mxu1 %v1976_v17  ;;  %1463 = vmatmul.bf16.gmra.mxu2 %v3159_v34  ;;  %v2264_v17 = vor.u32 %v2624_v63, %v2261_v0  ;;  %v2357_v12 = vld [vmem:[%s2904_s7 + $0x338] sm:$0xf0]  ;;  %v2612_v45 = vld [vmem:[%s2904_s7 + $0x214] sm:$0xf]  ;;  %vm1687_vm1 = vcmask 195584   ;;  %p2521_p11 = scmp.ne.s32.totalorder %s2779_s14, 7 }
  0x91   : > { %1530 = vmatpush.bf16.msra.mxu2 %v2040_v61  ;;  %1482 = vmatmul.bf16.gmra.mxu3 %v3161_v35  ;;  %v2608_v61 = vld [vmem:[%s2904_s7 + $0x1f4] sm:$0xf] }
  0x92   : > { %1549 = vmatpush.bf16.msra.mxu3 %v2104_v20  ;;  %v2200_v16 = vor.u32 %v2608_v61, %v2197_v62  ;;  %v2189_v20 = vld [vmem:[%s2904_s7 + $0x1e8] sm:$0xf0]  ;;  %v2600_v61 = vld [vmem:[%s2904_s7 + $0x1b4] sm:$0xf]  ;;  %v2165_v62 = vld [vmem:[%s2904_s7 + $0x1b8] sm:$0xf0] }
  0x93   : > { %1493 = vmatpush.bf16.msra.mxu0 %v2476_v36  ;;  %v2192_v32 = vor.u32 %v2606_v19, %v2189_v20  ;;  %v2381_v36 = vld [vmem:[%s2904_s7 + $0x368] sm:$0xf0]  ;;  %v1943_v19 = vld [vmem:[%s2906_s8 + $0x68] sm:$0xf] }
  0x94   : > { %1512 = vmatpush.bf16.msra.mxu1 %v1968_v37  ;;  %v2636_v37 = vld [vmem:[%s2904_s7 + $0x2d4] sm:$0xf]  ;;  %v2384_v43 = vor.u32 %v2654_v33, %v2381_v36  ;;  %v2545_v20 = vld [vmem:[%s2906_s8 + $0x88] sm:$0xf0]  ;;  %v2646_v33 = vld [vmem:[%s2904_s7 + $0x324] sm:$0xf] }
  0x95   : > { %1531 = vmatpush.bf16.msra.mxu2 %v2032_v23  ;;  %v1907_v23 = vld [vmem:[%s2906_s8 + $0x20] sm:$0xf]  ;;  %v2312_v46 = vor.u32 %v2636_v37, %v2309_v39  ;;  %v2349_v36 = vld [vmem:[%s2904_s7 + $0x328] sm:$0xf0]  ;;  %v2628_v37 = vld [vmem:[%s2904_s7 + $0x294] sm:$0xf]  ;;  %v3240_v39 = vor.u32 %v2545_v20, %v1943_v19 }
  0x96   : > { %1550 = vmatpush.bf16.msra.mxu3 %v2096_v40  ;;  %v3200_v38 = vor.u32 %v2536_v24, %v1907_v23  ;;  %v2604_v40 = vld [vmem:[%s2904_s7 + $0x1d4] sm:$0xf]  ;;  %v2232_v23 = vor.u32 %v2616_v2, %v2229_v3  ;;  %v2360_v24 = vor.u32 %v2648_v9, %v2357_v12  ;;  %v2352_v44 = vor.u32 %v2646_v33, %v2349_v36  ;;  %v2509_v9 = vld [vmem:[%s2904_s7 + $0x468] sm:$0xf0] }
  0x97   : > { %1494 = vmatpush.bf16.msra.mxu0 %v2468_v50  ;;  %v2634_v50 = vld [vmem:[%s2904_s7 + $0x2c4] sm:$0xf]  ;;  %v2664_v33 = vld [vmem:[%s2904_s7 + $0x3b4] sm:$0xf] }
  0x98   : > { %1513 = vmatpush.bf16.msra.mxu1 %v1960_v51  ;;  %v2301_v51 = vld [vmem:[%s2904_s7 + $0x2c8] sm:$0xf0]  ;;  %v2680_v36 = vld [vmem:[%s2904_s7 + $0x434] sm:$0xf] }
  0x99   : > { %1532 = vmatpush.bf16.msra.mxu2 %v2024_v41  ;;  %v2181_v41 = vld [vmem:[%s2904_s7 + $0x1d8] sm:$0xf0]  ;;  %v2304_v57 = vor.u32 %v2634_v50, %v2301_v51  ;;  %v2626_v51 = vld [vmem:[%s2904_s7 + $0x284] sm:$0xf] }
  0x9a   : > { %1551 = vmatpush.bf16.msra.mxu3 %v2088_v55  ;;  %v2184_v47 = vor.u32 %v2604_v40, %v2181_v41  ;;  %v2376_v55 = vor.u32 %v2652_v48, %v2373_v49  ;;  %v2277_v40 = vld [vmem:[%s2904_s7 + $0x298] sm:$0xf0]  ;;  %v2596_v41 = vld [vmem:[%s2904_s7 + $0x194] sm:$0xf] }
  0x9b   : > { %1495 = vmatpush.bf16.msra.mxu0 %v2460_v4  ;;  %v2644_v49 = vld [vmem:[%s2904_s7 + $0x314] sm:$0xf]  ;;  %v2341_v50 = vld [vmem:[%s2904_s7 + $0x318] sm:$0xf0] }
  0x9c   : > { %1514 = vmatpush.bf16.msra.mxu1 %v1952_v6  ;;  %v2168_v6 = vor.u32 %v2600_v61, %v2165_v62  ;;  %v2517_v61 = vld [vmem:[%s2904_s7 + $0x478] sm:$0xf0]  ;;  %v2670_v62 = vld [vmem:[%s2904_s7 + $0x3e4] sm:$0xf] }
  0x9d   : > { %1533 = vmatpush.bf16.msra.mxu2 %v2016_v56  ;;  %v2618_v56 = vld [vmem:[%s2904_s7 + $0x244] sm:$0xf] }
  0x9e   : > { %1552 = vmatpush.bf16.msra.mxu3 %v2080_v15  ;;  %1496 = vmatmul.bf16.vlgmr.msra.gmra.mxu0 %v3200_v38  ;;  %v2630_v15 = vld [vmem:[%s2904_s7 + $0x2a4] sm:$0xf] }
  0x9f   : > { %1564 = vmatpush.bf16.msrb.mxu0 %v2200_v16  ;;  %1515 = vmatmul.bf16.vlgmr.msra.gmra.mxu1 %v2988_v5  ;;  %v2237_v5 = vld [vmem:[%s2904_s7 + $0x248] sm:$0xf0] }
  0xa0   : > { %1583 = vmatpush.bf16.msrb.mxu1 %v2264_v17  ;;  %1534 = vmatmul.bf16.vlgmr.msra.gmra.mxu2 %v2993_v10  ;;  %v2632_v10 = vld [vmem:[%s2904_s7 + $0x2b4] sm:$0xf]  ;;  %v2240_v63 = vor.u32 %v2618_v56, %v2237_v5  ;;  %v2285_v16 = vld [vmem:[%s2904_s7 + $0x2a8] sm:$0xf0]  ;;  %v2598_v17 = vld [vmem:[%s2904_s7 + $0x1a4] sm:$0xf] }
  0xa1   : > { %1602 = vmatpush.bf16.msrb.mxu2 %v2328_v60  ;;  %1553 = vmatmul.bf16.vlgmr.msra.gmra.mxu3 %v2995_v11  ;;  %v2365_v60 = vld [vmem:[%s2904_s7 + $0x348] sm:$0xf0]  ;;  %v2293_v11 = vld [vmem:[%s2904_s7 + $0x2b8] sm:$0xf0]  ;;  %v2288_v31 = vor.u32 %v2630_v15, %v2285_v16  ;;  %v2668_v15 = vld [vmem:[%s2904_s7 + $0x3d4] sm:$0xf] }
  0xa2   : > { %1621 = vmatpush.bf16.msrb.mxu3 %v2392_v18  ;;  %v2368_v0 = vor.u32 %v2650_v59, %v2365_v60  ;;  %v2296_v4 = vor.u32 %v2632_v10, %v2293_v11  ;;  %v2157_v18 = vld [vmem:[%s2904_s7 + $0x1a8] sm:$0xf0]  ;;  %v2453_v56 = vld [vmem:[%s2904_s7 + $0x3f8] sm:$0xf0]  ;;  %v2642_v10 = vld [vmem:[%s2904_s7 + $0x304] sm:$0xf] }
  0xa3   : > { %1565 = vmatpush.bf16.msrb.mxu0 %v2192_v32  ;;  %v2160_v32 = vor.u32 %v2598_v17, %v2157_v18  ;;  %v2205_v60 = vld [vmem:[%s2904_s7 + $0x208] sm:$0xf0]  ;;  %v2688_v11 = vld [vmem:[%s2904_s7 + $0x474] sm:$0xf]  ;;  %v2437_v16 = vld [vmem:[%s2904_s7 + $0x3d8] sm:$0xf0] }
  0xa4   : > { %1584 = vmatpush.bf16.msrb.mxu1 %v2256_v42  ;;  %v2149_v42 = vld [vmem:[%s2904_s7 + $0x198] sm:$0xf0]  ;;  %v2520_v3 = vor.u32 %v2688_v11, %v2517_v61  ;;  %v2684_v17 = vld [vmem:[%s2904_s7 + $0x454] sm:$0xf]  ;;  %v2440_v19 = vor.u32 %v2668_v15, %v2437_v16 }
  0xa5   : > { %1603 = vmatpush.bf16.msrb.mxu2 %v2320_v25  ;;  %v2614_v25 = vld [vmem:[%s2904_s7 + $0x224] sm:$0xf]  ;;  %v2152_v48 = vor.u32 %v2596_v41, %v2149_v42  ;;  %v2501_v18 = vld [vmem:[%s2904_s7 + $0x458] sm:$0xf0]  ;;  %v2477_v42 = vld [vmem:[%s2904_s7 + $0x428] sm:$0xf0] }
  0xa6   : > { %1622 = vmatpush.bf16.msrb.mxu3 %v2384_v43  ;;  %v2224_v43 = vor.u32 %v2614_v25, %v2221_v28  ;;  %v2504_v20 = vor.u32 %v2684_v17, %v2501_v18  ;;  %v2682_v25 = vld [vmem:[%s2904_s7 + $0x444] sm:$0xf]  ;;  %v2493_v28 = vld [vmem:[%s2904_s7 + $0x448] sm:$0xf0] }
  0xa7   : > { %1566 = vmatpush.bf16.msrb.mxu0 %v2184_v47  ;;  %v2280_v47 = vor.u32 %v2628_v37, %v2277_v40  ;;  %v2662_v37 = vld [vmem:[%s2904_s7 + $0x3a4] sm:$0xf]  ;;  %v2413_v40 = vld [vmem:[%s2904_s7 + $0x3a8] sm:$0xf0] }
  0xa8   : > { %1585 = vmatpush.bf16.msrb.mxu1 %v2248_v54  ;;  %v2141_v54 = vld [vmem:[%s2904_s7 + $0x188] sm:$0xf0]  ;;  %v2678_v41 = vld [vmem:[%s2904_s7 + $0x424] sm:$0xf] }
  0xa9   : > { %1604 = vmatpush.bf16.msrb.mxu2 %v2312_v46  ;;  %v2213_v46 = vld [vmem:[%s2904_s7 + $0x218] sm:$0xf0]  ;;  %v2144_v59 = vor.u32 %v2594_v53, %v2141_v54  ;;  %v2674_v53 = vld [vmem:[%s2904_s7 + $0x404] sm:$0xf]  ;;  %v2461_v54 = vld [vmem:[%s2904_s7 + $0x408] sm:$0xf0] }
  0xaa   : > { %1623 = vmatpush.bf16.msrb.mxu3 %v2376_v55  ;;  %v2672_v55 = vld [vmem:[%s2904_s7 + $0x3f4] sm:$0xf]  ;;  %v2216_v5 = vor.u32 %v2612_v45, %v2213_v46  ;;  %v2405_v46 = vld [vmem:[%s2904_s7 + $0x398] sm:$0xf0] }
  0xab   : > { %1567 = vmatpush.bf16.msrb.mxu0 %v2176_v58  ;;  %v2272_v58 = vor.u32 %v2626_v51, %v2269_v52  ;;  %v2660_v45 = vld [vmem:[%s2904_s7 + $0x394] sm:$0xf]  ;;  %v2658_v51 = vld [vmem:[%s2904_s7 + $0x384] sm:$0xf]  ;;  %v2397_v52 = vld [vmem:[%s2904_s7 + $0x388] sm:$0xf0] }
  0xac   : > { %1586 = vmatpush.bf16.msrb.mxu1 %v2240_v63  ;;  %v2445_v63 = vld [vmem:[%s2904_s7 + $0x3e8] sm:$0xf0] }
  0xad   : > { %1605 = vmatpush.bf16.msrb.mxu2 %v2304_v57  ;;  %v2610_v57 = vld [vmem:[%s2904_s7 + $0x204] sm:$0xf] }
  0xae   : > { %1624 = vmatpush.bf16.msrb.mxu3 %v2368_v0  ;;  %1501 = vmatmul.bf16.gmra.mxu0 %v3240_v39  ;;  %v2208_v0 = vor.u32 %v2610_v57, %v2205_v60 }
  0xaf   : > { %1568 = vmatpush.bf16.msrb.mxu0 %v2168_v6  ;;  %1520 = vmatmul.bf16.gmra.mxu1 %v3040_v1  ;;  %v2344_v1 = vor.u32 %v2644_v49, %v2341_v50  ;;  %v2686_v6 = vld [vmem:[%s2904_s7 + $0x464] sm:$0xf]  ;;  %v2408_v49 = vor.u32 %v2660_v45, %v2405_v46 }
  0xb0   : > { %1587 = vmatpush.bf16.msrb.mxu1 %v2232_v23  ;;  %1539 = vmatmul.bf16.gmra.mxu2 %v3045_v7  ;;  %v2333_v7 = vld [vmem:[%s2904_s7 + $0x308] sm:$0xf0]  ;;  %v2512_v12 = vor.u32 %v2686_v6, %v2509_v9  ;;  %v2666_v23 = vld [vmem:[%s2904_s7 + $0x3c4] sm:$0xf] }
  0xb1   : > { %1606 = vmatpush.bf16.msrb.mxu2 %v2296_v4  ;;  %1558 = vmatmul.bf16.gmra.mxu3 %v3047_v8  ;;  %v2456_v8 = vor.u32 %v2672_v55, %v2453_v56  ;;  %v2336_v2 = vor.u32 %v2642_v10, %v2333_v7  ;;  %v2448_v4 = vor.u32 %v2670_v62, %v2445_v63 }
  0xb2   : > { %1625 = vmatpush.bf16.msrb.mxu3 %v2360_v24  ;;  %v2429_v24 = vld [vmem:[%s2904_s7 + $0x3c8] sm:$0xf0]  ;;  %v2400_v55 = vor.u32 %v2658_v51, %v2397_v52  ;;  %v2464_v56 = vor.u32 %v2674_v53, %v2461_v54  ;;  %v354_v52 = vld [vmem:[#allocation2 + $0x10] sm:$0xff] }
  0xb3   : > { %1569 = vmatpush.bf16.msrb.mxu0 %v2160_v32  ;;  %v2496_v32 = vor.u32 %v2682_v25, %v2493_v28 }
  0xb4   : > { %1588 = vmatpush.bf16.msrb.mxu1 %v2224_v43  ;;  %v2416_v43 = vor.u32 %v2662_v37, %v2413_v40 }
  0xb5   : > { %1607 = vmatpush.bf16.msrb.mxu2 %v2288_v31  ;;  %v2432_v31 = vor.u32 %v2666_v23, %v2429_v24 }
  0xb6   : > { %1626 = vmatpush.bf16.msrb.mxu3 %v2352_v44  ;;  %v2480_v44 = vor.u32 %v2678_v41, %v2477_v42 }
  0xb7   : > { %1570 = vmatpush.bf16.msrb.mxu0 %v2152_v48  ;;  %v2469_v48 = vld [vmem:[%s2904_s7 + $0x418] sm:$0xf0] }
  0xb8   : > { %1589 = vmatpush.bf16.msrb.mxu1 %v2216_v5 }
  0xb9   : > { %1608 = vmatpush.bf16.msrb.mxu2 %v2280_v47  ;;  %v2676_v47 = vld [vmem:[%s2904_s7 + $0x414] sm:$0xf] }
  0xba   : > { %1627 = vmatpush.bf16.msrb.mxu3 %v2344_v1  ;;  %v2472_v50 = vor.u32 %v2676_v47, %v2469_v48 }
  0xbb   : > { %1571 = vmatpush.bf16.msrb.mxu0 %v2144_v59 }
  0xbc   : > { %1590 = vmatpush.bf16.msrb.mxu1 %v2208_v0 }
  0xbd   : > { %1609 = vmatpush.bf16.msrb.mxu2 %v2272_v58 }
  0xbe   : > { %1628 = vmatpush.bf16.msrb.mxu3 %v2336_v2  ;;  %1572 = vmatmul.bf16.vlgmr.msrb.gmra.mxu0 %v2999_v14  ;;  %v2421_v14 = vld [vmem:[%s2904_s7 + $0x3b8] sm:$0xf0] }
  0xbf   : > { %1640 = vmatpush.bf16.msra.mxu0 %v2456_v8  ;;  %1591 = vmatmul.bf16.vlgmr.msrb.gmra.mxu1 %v3100_v21  ;;  %v2485_v21 = vld [vmem:[%s2904_s7 + $0x438] sm:$0xf0] }
  0xc0   : > { %1659 = vmatpush.bf16.msra.mxu1 %v2520_v3  ;;  %1610 = vmatmul.bf16.vlgmr.msrb.gmra.mxu2 %v3102_v22  ;;  %v2424_v22 = vor.u32 %v2664_v33, %v2421_v14 }
  0xc1   : > { %2690 = vmatpush.bf16.msra.mxu2 %v2456_v8  ;;  %1629 = vmatmul.bf16.vlgmr.msrb.gmra.mxu3 %v3107_v26  ;;  %v2488_v26 = vor.u32 %v2680_v36, %v2485_v21 }
  0xc2   : > { %2698 = vmatpush.bf16.msra.mxu3 %v2520_v3 }
  0xc3   : > { %1641 = vmatpush.bf16.msra.mxu0 %v2448_v4 }
  0xc4   : > { %1660 = vmatpush.bf16.msra.mxu1 %v2512_v12 }
  0xc5   : > { %2691 = vmatpush.bf16.msra.mxu2 %v2448_v4 }
  0xc6   : > { %2699 = vmatpush.bf16.msra.mxu3 %v2512_v12 }
  0xc7   : > { %1642 = vmatpush.bf16.msra.mxu0 %v2440_v19 }
  0xc8   : > { %1661 = vmatpush.bf16.msra.mxu1 %v2504_v20 }
  0xc9   : > { %2692 = vmatpush.bf16.msra.mxu2 %v2440_v19 }
  0xca   : > { %2700 = vmatpush.bf16.msra.mxu3 %v2504_v20 }
  0xcb   : > { %1643 = vmatpush.bf16.msra.mxu0 %v2432_v31 }
  0xcc   : > { %1662 = vmatpush.bf16.msra.mxu1 %v2496_v32 }
  0xcd   : > { %2693 = vmatpush.bf16.msra.mxu2 %v2432_v31 }
  0xce   : > { %2701 = vmatpush.bf16.msra.mxu3 %v2496_v32  ;;  %1577 = vmatmul.bf16.gmra.mxu0 %v3051_v13 }
  0xcf   : > { %1644 = vmatpush.bf16.msra.mxu0 %v2424_v22  ;;  %1596 = vmatmul.bf16.gmra.mxu1 %v3152_v29 }
  0xd0   : > { %1663 = vmatpush.bf16.msra.mxu1 %v2488_v26  ;;  %1615 = vmatmul.bf16.gmra.mxu2 %v3154_v30 }
  0xd1   : > { %2694 = vmatpush.bf16.msra.mxu2 %v2424_v22  ;;  %1634 = vmatmul.bf16.gmra.mxu3 %v3159_v34 }
  0xd2   : > { %2702 = vmatpush.bf16.msra.mxu3 %v2488_v26  ;;  %v352_v26 = vld [vmem:[#allocation2] sm:$0xff] }
  0xd3   : > { %1645 = vmatpush.bf16.msra.mxu0 %v2416_v43 }
  0xd4   : > { %1664 = vmatpush.bf16.msra.mxu1 %v2480_v44 }
  0xd5   : > { %2695 = vmatpush.bf16.msra.mxu2 %v2416_v43 }
  0xd6   : > { %2703 = vmatpush.bf16.msra.mxu3 %v2480_v44 }
  0xd7   : > { %1646 = vmatpush.bf16.msra.mxu0 %v2408_v49 }
  0xd8   : > { %1665 = vmatpush.bf16.msra.mxu1 %v2472_v50 }
  0xd9   : > { %2696 = vmatpush.bf16.msra.mxu2 %v2408_v49 }
  0xda   : > { %2704 = vmatpush.bf16.msra.mxu3 %v2472_v50 }
  0xdb   : > { %1647 = vmatpush.bf16.msra.mxu0 %v2400_v55  ;;  %v1345_v5 = vpop.f32.mrf.mxu0 }
  0xdc   : > { %1666 = vmatpush.bf16.msra.mxu1 %v2464_v56  ;;  %v1364_v13 = vpop.f32.mrf.mxu1 }
  0xdd   : > { %2697 = vmatpush.bf16.msra.mxu2 %v2400_v55  ;;  %v1365_v2 = vadd.f32 %v1364_v13, %v1345_v5 }
  0xde   : > { %2705 = vmatpush.bf16.msra.mxu3 %v2464_v56  ;;  %1648 = vmatmul.bf16.vlgmr.msra.gmra.mxu0 %v3109_v27 }
  0xdf   : > { %1667 = vmatmul.bf16.vlgmr.msra.gmra.mxu1 %v3200_v38 }
  0xe0   : > { %1653 = vmatmul.bf16.vlgmr.msra.gmra.mxu2 %v3161_v35 }
  0xe1   : > { %1672 = vmatmul.bf16.vlgmr.msra.gmra.mxu3 %v3240_v39 }
  0xe3   : > { %v1383_v29 = vpop.f32.mrf.mxu2  ;;  %v1347_v34 = vpop.f32.mrf.mxu0 }
  0xe4   : > { %v1402_v30 = vpop.f32.mrf.mxu3  ;;  %v1366_v1 = vpop.f32.mrf.mxu1  ;;  %v1384_v3 = vadd.f32 %v1383_v29, %v1365_v2 }
  0xe5   : > { %v1367_v16 = vadd.f32 %v1366_v1, %v1347_v34 }
  0xe6   : > { %v1403_v15 = vadd.f32 %v1402_v30, %v1384_v3 }
  0xeb   : > { %v1385_v57 = vpop.f32.mrf.mxu2  ;;  %v1350_v59 = vpop.f32.mrf.mxu0 }
  0xec   : > { %v1404_v58 = vpop.f32.mrf.mxu3  ;;  %v1369_v60 = vpop.f32.mrf.mxu1  ;;  %v1386_v18 = vadd.f32 %v1385_v57, %v1367_v16 }
  0xed   : > { %v1370_v31 = vadd.f32 %v1369_v60, %v1350_v59 }
  0xee   : > { %v1405_v28 = vadd.f32 %v1404_v58, %v1386_v18  ;;  %v356_v58 = vld [vmem:[#allocation2 + $0x20] sm:$0xff] }
  0xf3   : > { %v1388_v10 = vpop.f32.mrf.mxu2  ;;  %v1352_v8 = vpop.f32.mrf.mxu0 }
  0xf4   : > { %v1407_v7 = vpop.f32.mrf.mxu3  ;;  %v1371_v11 = vpop.f32.mrf.mxu1  ;;  %v1389_v14 = vadd.f32 %v1388_v10, %v1370_v31 }
  0xf5   : > { %v1372_v46 = vadd.f32 %v1371_v11, %v1352_v8 }
  0xf6   : > { %v1408_v43 = vadd.f32 %v1407_v7, %v1389_v14 }
  0xfb   : > { %v1390_v61 = vpop.f32.mrf.mxu2  ;;  %v1421_v62 = vpop.f32.mrf.mxu0 }
  0xfc   : > { %v1409_v27 = vpop.f32.mrf.mxu3  ;;  %v1440_v38 = vpop.f32.mrf.mxu1  ;;  %v1422_v17 = vadd.f32 %v1421_v62, %v1403_v15  ;;  %v1391_v48 = vadd.f32 %v1390_v61, %v1372_v46 }
  0xfe   : > { %v1441_v25 = vadd.f32 %v1440_v38, %v1422_v17  ;;  %v1410_v5 = vadd.f32 %v1409_v27, %v1391_v48 }
 0x103   : > { %v1459_v63 = vpop.f32.mrf.mxu2  ;;  %v1423_v0 = vpop.f32.mrf.mxu0 }
 0x104   : > { %v1478_v35 = vpop.f32.mrf.mxu3  ;;  %v1442_v39 = vpop.f32.mrf.mxu1  ;;  %v1460_v32 = vadd.f32 %v1459_v63, %v1441_v25  ;;  %v1424_v33 = vadd.f32 %v1423_v0, %v1405_v28  ;;  %v358_v63 = vld [vmem:[#allocation2 + $0x30] sm:$0xff] }
 0x106   : > { %v1479_v36 = vadd.f32 %v1478_v35, %v1460_v32  ;;  %v1443_v41 = vadd.f32 %v1442_v39, %v1424_v33 }
 0x10b   : > { %v1461_v4 = vpop.f32.mrf.mxu2  ;;  %v1426_v9 = vpop.f32.mrf.mxu0 }
 0x10c   : > { %v1480_v6 = vpop.f32.mrf.mxu3  ;;  %v1445_v12 = vpop.f32.mrf.mxu1  ;;  %v1462_v44 = vadd.f32 %v1461_v4, %v1443_v41  ;;  %v1427_v47 = vadd.f32 %v1426_v9, %v1408_v43 }
 0x10e   : > { %v1481_v49 = vadd.f32 %v1480_v6, %v1462_v44  ;;  %v1446_v55 = vadd.f32 %v1445_v12, %v1427_v47 }
 0x113   : > { %v1464_v19 = vpop.f32.mrf.mxu2  ;;  %v1428_v23 = vpop.f32.mrf.mxu0 }
 0x114   : > { %v1483_v20 = vpop.f32.mrf.mxu3  ;;  %v1447_v24 = vpop.f32.mrf.mxu1  ;;  %v1465_v13 = vadd.f32 %v1464_v19, %v1446_v55  ;;  %v1429_v30 = vadd.f32 %v1428_v23, %v1410_v5 }
 0x116   : > { %v1484_v34 = vadd.f32 %v1483_v20, %v1465_v13  ;;  %v1448_v10 = vadd.f32 %v1447_v24, %v1429_v30 }
 0x11b   : > { %v1466_v21 = vpop.f32.mrf.mxu2  ;;  %v1497_v37 = vpop.f32.mrf.mxu0 }
 0x11c   : > { %v1485_v22 = vpop.f32.mrf.mxu3  ;;  %v1516_v40 = vpop.f32.mrf.mxu1  ;;  %v1498_v42 = vadd.f32 %v1497_v37, %v1479_v36  ;;  %v1467_v8 = vadd.f32 %v1466_v21, %v1448_v10 }
 0x11e   : > { %v1678_v45 = vadd.f32 %v1498_v42, %v352_v26  ;;  %v1486_v61 = vadd.f32 %v1485_v22, %v1467_v8  ;;  %v355_v8 = vld [vmem:[#allocation2 + $0x18] sm:$0xff] }
 0x120   : > { %1686 = vst [vmem:[#allocation2] sm:$0xff] %v1678_v45 }
 0x123   : > { %v1535_v50 = vpop.f32.mrf.mxu2  ;;  %v1499_v53 = vpop.f32.mrf.mxu0 }
 0x124   : > { %v1554_v51 = vpop.f32.mrf.mxu3  ;;  %v1518_v54 = vpop.f32.mrf.mxu1  ;;  %v1500_v56 = vadd.f32 %v1499_v53, %v1481_v49  ;;  %v1536_v17 = vadd.f32 %v1535_v50, %v1516_v40  ;;  %v353_v53 = vld [vmem:[#allocation2 + $0x8] sm:$0xff] }
 0x126   : > { %v1680_v29 = vadd.f32 %v1500_v56, %v354_v52  ;;  %v1555_v24 = vadd.f32 %v1554_v51, %v1536_v17 }
 0x128   : > { %1689 = vst [vmem:[#allocation2 + $0x10] sm:$0xff] %v1680_v29 }
 0x12b   : > { %v1537_v1 = vpop.f32.mrf.mxu2  ;;  %v1502_v59 = vpop.f32.mrf.mxu0 }
 0x12c   : > { %v1556_v57 = vpop.f32.mrf.mxu3  ;;  %v1521_v60 = vpop.f32.mrf.mxu1  ;;  %v1503_v7 = vadd.f32 %v1502_v59, %v1484_v34  ;;  %v1538_v31 = vadd.f32 %v1537_v1, %v1518_v54  ;;  %v357_v59 = vld [vmem:[#allocation2 + $0x28] sm:$0xff] }
 0x12e   : > { %v1682_v11 = vadd.f32 %v1503_v7, %v356_v58  ;;  %v1557_v26 = vadd.f32 %v1556_v57, %v1538_v31 }
 0x130   : > { %1691 = vst [vmem:[#allocation2 + $0x20] sm:$0xff] %v1682_v11 }
 0x133   : > { %v1540_v62 = vpop.f32.mrf.mxu2  ;;  %v1504_v27 = vpop.f32.mrf.mxu0 }
 0x134   : > { %v1559_v38 = vpop.f32.mrf.mxu3  ;;  %v1523_v35 = vpop.f32.mrf.mxu1  ;;  %v1505_v0 = vadd.f32 %v1504_v27, %v1486_v61  ;;  %v1541_v28 = vadd.f32 %v1540_v62, %v1521_v60 }
 0x136   : > { %v1684_v39 = vadd.f32 %v1505_v0, %v358_v63  ;;  %v1560_v22 = vadd.f32 %v1559_v38, %v1541_v28  ;;  %v359_v0 = vld [vmem:[#allocation2 + $0x38] sm:$0xff] }
 0x138   : > { %1693 = vst [vmem:[#allocation2 + $0x30] sm:$0xff] %v1684_v39 }
 0x13b   : > { %v1542_v2 = vpop.f32.mrf.mxu2  ;;  %v1573_v4 = vpop.f32.mrf.mxu0 }
 0x13c   : > { %v1561_v3 = vpop.f32.mrf.mxu3  ;;  %v1592_v6 = vpop.f32.mrf.mxu1  ;;  %v1574_v25 = vadd.f32 %v1573_v4, %v1555_v24  ;;  %v1543_v43 = vadd.f32 %v1542_v2, %v1523_v35 }
 0x13e   : > { %v1593_v21 = vadd.f32 %v1592_v6, %v1574_v25  ;;  %v1562_v51 = vadd.f32 %v1561_v3, %v1543_v43 }
 0x143   : > { %v1611_v9 = vpop.f32.mrf.mxu2  ;;  %v1575_v15 = vpop.f32.mrf.mxu0 }
 0x144   : > { %v1630_v12 = vpop.f32.mrf.mxu3  ;;  %v1594_v16 = vpop.f32.mrf.mxu1  ;;  %v1612_v37 = vadd.f32 %v1611_v9, %v1593_v21  ;;  %v1576_v42 = vadd.f32 %v1575_v15, %v1557_v26 }
 0x146   : > { %v1631_v40 = vadd.f32 %v1630_v12, %v1612_v37  ;;  %v1595_v49 = vadd.f32 %v1594_v16, %v1576_v42 }
 0x14b   : > { %v1613_v18 = vpop.f32.mrf.mxu2  ;;  %v1578_v20 = vpop.f32.mrf.mxu0 }
 0x14c   : > { %v1632_v19 = vpop.f32.mrf.mxu3  ;;  %v1597_v23 = vpop.f32.mrf.mxu1  ;;  %v1579_v41 = vadd.f32 %v1578_v20, %v1560_v22  ;;  %v1614_v54 = vadd.f32 %v1613_v18, %v1595_v49 }
 0x14e   : > { %v1598_v46 = vadd.f32 %v1597_v23, %v1579_v41  ;;  %v1633_v29 = vadd.f32 %v1632_v19, %v1614_v54 }
 0x153   : > { %v1616_v32 = vpop.f32.mrf.mxu2  ;;  %v1580_v14 = vpop.f32.mrf.mxu0 }
 0x154   : > { %v1635_v33 = vpop.f32.mrf.mxu3  ;;  %v1599_v36 = vpop.f32.mrf.mxu1  ;;  %v1617_v52 = vadd.f32 %v1616_v32, %v1598_v46  ;;  %v1581_v56 = vadd.f32 %v1580_v14, %v1562_v51 }
 0x156   : > { %v1636_v13 = vadd.f32 %v1635_v33, %v1617_v52  ;;  %v1600_v1 = vadd.f32 %v1599_v36, %v1581_v56 }
 0x15b   : > { %v1618_v44 = vpop.f32.mrf.mxu2  ;;  %v1649_v47 = vpop.f32.mrf.mxu0 }
 0x15c   : > { %v1637_v45 = vpop.f32.mrf.mxu3  ;;  %v1668_v48 = vpop.f32.mrf.mxu1  ;;  %v1650_v50 = vadd.f32 %v1649_v47, %v1631_v40  ;;  %v1619_v10 = vadd.f32 %v1618_v44, %v1600_v1 }
 0x15e   : > { %v1669_v55 = vadd.f32 %v1668_v48, %v1650_v50  ;;  %v1638_v63 = vadd.f32 %v1637_v45, %v1619_v10 }
 0x160   : > { %v1679_v5 = vadd.f32 %v1669_v55, %v353_v53 }
 0x162   : > { %1688 = vst.msk [vmem:[#allocation2 + $0x8] sm:$0xff] %vm1687_vm1, %v1679_v5 }
 0x163   : > { %v1654_v30 = vpop.f32.mrf.mxu2  ;;  %v1651_v58 = vpop.f32.mrf.mxu0 }
 0x164   : > { %v1673_v34 = vpop.f32.mrf.mxu3  ;;  %v1655_v57 = vadd.f32 %v1654_v30, %v1636_v13  ;;  %v1652_v60 = vadd.f32 %v1651_v58, %v1633_v29  ;;  %v1670_v11 = vpop.f32.mrf.mxu1 }
 0x166   : > { %v1674_v7 = vadd.f32 %v1673_v34, %v1655_v57  ;;  %v1671_v61 = vadd.f32 %v1670_v11, %v1652_v60 }
 0x168   : > { %v1683_v62 = vadd.f32 %v1674_v7, %v357_v59  ;;  %v1681_v38 = vadd.f32 %v1671_v61, %v355_v8 }
 0x16a   : > { %1692 = vst.msk [vmem:[#allocation2 + $0x28] sm:$0xff] %vm1687_vm1, %v1683_v62 }
 0x16b   : > { %1690 = vst.msk [vmem:[#allocation2 + $0x18] sm:$0xff] %vm1687_vm1, %v1681_v38  ;;  %v1656_v27 = vpop.f32.mrf.mxu2 }
 0x16c   : > { %v1657_v35 = vadd.f32 %v1656_v27, %v1638_v63  ;;  %v1675_v39 = vpop.f32.mrf.mxu3 }
 0x16e   : > { %v1676_v2 = vadd.f32 %v1675_v39, %v1657_v35  ;;  %1698 = sbr.rel (%p2521_p11) target bundleno = 385 (0x181), region = 66 }
 0x170   : > { %v1685_v3 = vadd.f32 %v1676_v2, %v359_v0 }
 0x172   : > { %1694 = vst.msk [vmem:[#allocation2 + $0x38] sm:$0xff] %vm1687_vm1, %v1685_v3 }
 0x173   : > { %v1699_v4 = vld [vmem:[#allocation2] sm:$0xff]  ;;  %v1700_v9 = vld [vmem:[#allocation2 + $0x8] sm:$0xff]  ;;  %v1701_v16 = vld [vmem:[#allocation2 + $0x10] sm:$0xff] }
 0x174   : > { %v1707_v6 = vld [vmem:[%s3358_s2] sm:$0x3]  ;;  %v1702_v17 = vld [vmem:[#allocation2 + $0x18] sm:$0xff]  ;;  %v1704_v24 = vld [vmem:[#allocation2 + $0x28] sm:$0xff] }
 0x175   : > { %v1709_v12 = vperm.slane %v1707_v6, 0  ;;  %v1710_v15 = vperm.slane %v1707_v6, 1  ;;  %v1703_v18 = vld [vmem:[#allocation2 + $0x20] sm:$0xff]  ;;  %v1705_v28 = vld [vmem:[#allocation2 + $0x30] sm:$0xff] }
 0x177   : > { %v1713_v19 = vadd.f32 %v1709_v12, %v1699_v4  ;;  %v1714_v20 = vadd.f32 %v1710_v15, %v1700_v9  ;;  %v1715_v23 = vadd.f32 %v1709_v12, %v1701_v16  ;;  %v1716_v25 = vadd.f32 %v1710_v15, %v1702_v17 }
 0x178   : > { %v1717_v31 = vadd.f32 %v1709_v12, %v1703_v18  ;;  %v1718_v33 = vadd.f32 %v1710_v15, %v1704_v24  ;;  %v1719_v14 = vadd.f32 %v1709_v12, %v1705_v28 }
 0x179   : > { %1721 = vst [vmem:[%s3359_s3] sm:$0xff] %v1713_v19  ;;  %v1706_v32 = vld [vmem:[#allocation2 + $0x38] sm:$0xff] }
 0x17a   : > { %1722 = vst.msk [vmem:[%s3359_s3 + $0x8] sm:$0xff] %vm1687_vm1, %v1714_v20  ;;  %v1720_v36 = vadd.f32 %v1710_v15, %v1706_v32 }
 0x17b   : > { %1723 = vst [vmem:[%s3359_s3 + $0x10] sm:$0xff] %v1715_v23 }
 0x17c   : > { %1724 = vst.msk [vmem:[%s3359_s3 + $0x18] sm:$0xff] %vm1687_vm1, %v1716_v25 }
 0x17d   : > { %1725 = vst [vmem:[%s3359_s3 + $0x20] sm:$0xff] %v1717_v31 }
 0x17e   : > { %1726 = vst.msk [vmem:[%s3359_s3 + $0x28] sm:$0xff] %vm1687_vm1, %v1718_v33 }
 0x17f   : > { %1727 = vst [vmem:[%s3359_s3 + $0x30] sm:$0xff] %v1719_v14 }
 0x180   : > { %1728 = vst.msk [vmem:[%s3359_s3 + $0x38] sm:$0xff] %vm1687_vm1, %v1720_v36 }
 0x181 PF: > { %s13_s16 = sadd.s32 1, %s2787_s16   ;;  %s3360_s12 = smov %s2775_s13 }
 0x182   : > { %p10_p12 = scmp.ge.s32.totalorder %s13_s16, 10   ;;  %s3361_s13 = smov %s2845_s20 }
 0x183   : > { %s3362_s14 = smov %s2783_s15  ;;  %s3363_s15 = smov %s3365_s17 }
 0x184   :  { %12 = sbr.rel (!%p10_p12) target bundleno = 3 (0x3), region = 113 }

// kernel: ssd_detector_forward.13
= control target key start
LH: loop header
LB: loop body
LE: loop exit
PB: predicated region body
PF: predicated region fallthrough
CT: control target
= control target key end

     0   :  { %10 = vsyncpa [#allocation3], 0  ;;  %s1007_s0 = inlined_call_operand.vmem [shape: f32[2,21,512], index: 0, kind: input, shape index: {}]   ;;  %s1008_s1 = inlined_call_operand.vmem [shape: f32[2,4,512], index: 1, kind: input, shape index: {}]   ;;  %s1009_s2 = inlined_call_operand.vmem [shape: f32[4,512], index: 2, kind: input, shape index: {}]   ;;  %s1010_s3 = inlined_call_operand.vmem [shape: f32[2,21,512], index: 3, kind: output, shape index: {0}]   ;;  %s1011_s4 = inlined_call_operand.hbm [shape: f32[2,4,512], index: 4, kind: output, shape index: {1}]  }
   0x1   :  { %12 = vsyncpa [#allocation3 + $0x1], 0  ;;  %s786_s15 = smov 0   ;;  %s788_s16 = smov 0  }
   0x2   :  { %s790_s17 = smov 0   ;;  %s792_s18 = smov 0  }
   0x3 LB: > { %s807_s19 = sadd.s32 4294967295, %s759_s18   ;;  %s603_s20 = sadd.s32 4294967294, %s759_s18   ;;  %s759_s18 = sphi %s792_s18, %s1017_s18   ;;  %s755_s17 = sphi %s790_s17, %s1016_s17   ;;  %s751_s16 = sphi %s788_s16, %s1015_s16   ;;  %s747_s15 = sphi %s786_s15, %s1014_s15  }
   0x4   : > { %s811_s21 = sadd.s32 1, %s759_s18   ;;  %s124_s22 = sadd.s32 1, %s755_s17 }
   0x5   : > { %s121_s23 = ssub.s32 %s759_s18, %s811_s21  ;;  %p134_p0 = scmp.ne.s32.totalorder %s755_s17, %s751_s16 }
   0x6   : > { %p122_p1 = scmp.eq.s32.totalorder %s121_s23, 0  ;;  %p135_p2 = scmp.eq.s32.totalorder %s807_s19, 1 }
   0x7   : > { %p140_p3 = scmp.ne.s32.totalorder %s751_s16, %s747_s15  ;;  %p141_p4 = scmp.eq.s32.totalorder %s603_s20, 1 }
   0x8   : > { %s822_s24 = scalar_select %p122_p1, %s755_s17, %s124_s22  }
   0x9   : > { %p824_p5 = por %p135_p2, %p134_p0  ;;  %p828_p6 = por %p141_p4, %p140_p3 }
   0xa   : > { %p606_p7 = scmp.ge.s32.totalorder %s759_s18, 1  ;;  %p178_p8 = scmp.lt.s32.totalorder %s759_s18, 3 }
   0xc   : > { %p179_p9 = pnand %p606_p7, %p178_p8 }
   0xd   : > { %p214_p10 = scmp.lt.s32.totalorder (!%p179_p9), %s807_s19, 1  ;;  %s211_s14 = sand.u32 (!%p179_p9), 1, %s751_s16  }
   0xe   : > { %182 = sbr.rel (%p179_p9) target bundleno = 100 (0x64), region = 32  ;;  %s607_s20 = sshll.u32 (!%p179_p9), %s211_s14, 4 }
   0xf   : > { %s620_s22 = sshll.u32 (!%p179_p9), %s807_s19, 4  ;;  %s213_s30 = scalar_lea.vmem (!%p179_p9), [#allocation2], %s607_s20 }
  0x10   : > { %s504_s5 = sshll.u32 (!%p179_p9), %s213_s30, 4  ;;  %s488_s7 = scalar_lea.sflag (!%p179_p9), [#allocation3], %s211_s14  ;;  %s932_s5 = int_to_ptr.vmem [resolvable:$true] %s504_s5 }
  0x11   : > { %s717_s12 = scalar_lea.hbm (!%p179_p9), %s1011_s4, 32 }
  0x13   : > { %s836_s27 = scalar_select %p214_p10, %s807_s19, 1  ;;  %vm242_vm0 = vcmask 1044480   ;;  %v380_v26 = vld [vmem:[%s1009_s2] sm:$0xff]  ;;  %v381_v32 = vld [vmem:[%s1009_s2 + $0x8] sm:$0xff]  ;;  %vm454_vm1 = vcmask 1040384   ;;  %vm459_vm2 = vcmask 1041408  }
  0x14   : > { %v612_v31 = vrot.slane %v380_v26, 10  ;;  %v613_v36 = vrot.slane %v381_v32, 10  ;;  %vm464_vm3 = vcmask 1042432   ;;  %vm475_vm4 = vcmask 1043456  }
  0x15   : > { %s621_s28 = smul.u32 96, %s836_s27  ;;  %s619_s29 = sshll.u32 %s836_s27, 4 }
  0x16   : > { %s223_s6 = scalar_lea.vmem %s1008_s1, %s619_s29  ;;  %s502_s29 = scalar_lea.hbm %s1011_s4, %s620_s22 }
  0x17   : > { %s218_s9 = scalar_lea.vmem %s1007_s0, %s621_s28  ;;  %v378_v0 = vld [vmem:[%s223_s6] sm:$0xff]  ;;  %v379_v1 = vld [vmem:[%s223_s6 + $0x8] sm:$0xff]  ;;  %s506_s6 = sshll.u32 %s502_s29, 4  ;;  %s507_s6 = int_to_ptr.hbm [resolvable:$true] %s506_s6 }
  0x18   : > { %v396_v2 = vmul.f32 0.2, %v378_v0  ;;  %v397_v3 = vmul.f32 0.2, %v379_v1  ;;  %v848_v4 = vld [vmem:[%s218_s9] sm:$0xff]  ;;  %v856_v9 = vld [vmem:[%s218_s9 + $0x8] sm:$0xff] }
  0x19   : > { %v850_v5 = vld [vmem:[%s218_s9 + $0x20] sm:$0xff]  ;;  %v858_v10 = vld [vmem:[%s218_s9 + $0x28] sm:$0xff]  ;;  %v868_v16 = vld [vmem:[%s218_s9 + $0x10] sm:$0xff]  ;;  %v382_v30 = vmul.f32 0.1, %v378_v0  ;;  %s711_s8 = sshra.s32 %s507_s6, 4  ;;  %s712_s8 = int_to_ptr.hbm [resolvable:$true] %s711_s8 }
  0x1a   : > { %v852_v6 = vld [vmem:[%s218_s9 + $0x40] sm:$0x1f]  ;;  %v398_v7 = vmul.f32 1.442695, %v396_v2  ;;  %v241_v8 = vmax.f32 %v848_v4, %v850_v5  ;;  %v860_v11 = vld [vmem:[%s218_s9 + $0x48] sm:$0x1f]  ;;  %v251_v14 = vmax.f32 %v856_v9, %v858_v10  ;;  %p718_p0 = scmp.lt.s32.totalorder %s712_s8, %s1011_s4 }
  0x1b   : > { %v400_v12 = vmul.f32 1.442695, %v397_v3  ;;  %v243_v13 = vsel %vm242_vm0, %v852_v6, -inf  ;;  %v252_v15 = vsel %vm242_vm0, %v860_v11, -inf  ;;  %v870_v17 = vld [vmem:[%s218_s9 + $0x30] sm:$0xff]  ;;  %v874_v20 = vld [vmem:[%s218_s9 + $0x18] sm:$0xff]  ;;  %v392_v45 = vmul.f32 %v612_v31, %v382_v30 }
  0x1c   : > { %661 = vpow2.f32 %v398_v7  ;;  %v244_v18 = vmax.f32 %v241_v8, %v243_v13  ;;  %v872_v19 = vld [vmem:[%s218_s9 + $0x50] sm:$0x1f]  ;;  %v876_v21 = vld [vmem:[%s218_s9 + $0x38] sm:$0xff]  ;;  %v253_v22 = vmax.f32 %v251_v14, %v252_v15  ;;  %v260_v23 = vmax.f32 %v868_v16, %v870_v17 }
  0x1d   : > { %663 = vpow2.f32 %v400_v12  ;;  %v261_v24 = vsel %vm242_vm0, %v872_v19, -inf  ;;  %v882_v25 = vld [vmem:[%s218_s9 + $0x58] sm:$0x1f]  ;;  %v269_v28 = vmax.f32 %v874_v20, %v876_v21  ;;  %v383_v35 = vmul.f32 0.1, %v379_v1  ;;  %s713_s9 = scalar_lea.hbm %s712_s8, 16 }
  0x1e   : > { %v245_v27 = vrot.slane %v244_v18, 4  ;;  %v270_v29 = vsel %vm242_vm0, %v882_v25, -inf  ;;  %v254_v33 = vrot.slane %v253_v22, 4  ;;  %v262_v34 = vmax.f32 %v260_v23, %v261_v24  ;;  %p714_p11 = scmp.ne.s32.totalorder %s712_s8, %s713_s9  ;;  %p719_p1 = scmp.lt.s32.totalorder %s717_s12, %s713_s9 }
  0x1f   : > { %v271_v38 = vmax.f32 %v269_v28, %v270_v29  ;;  %v393_v49 = vmul.f32 %v613_v36, %v383_v35  ;;  %v394_v59 = vadd.f32 %v392_v45, %v380_v26 }
  0x20   : > { %v246_v37 = vmax.f32 %v244_v18, %v245_v27  ;;  %v255_v39 = vmax.f32 %v253_v22, %v254_v33  ;;  %v263_v40 = vrot.slane %v262_v34, 4  ;;  %p715_p12 = pnand %p714_p11, %p824_p5  ;;  %p720_p2 = por %p719_p1, %p718_p0 }
  0x21   : > { %v272_v43 = vrot.slane %v271_v38, 4  ;;  %v395_v63 = vadd.f32 %v393_v49, %v381_v32 }
  0x22   : > { %v662_v41 = vpop.eup %661  ;;  %v247_v42 = vrot.slane %v246_v37, 2  ;;  %v256_v47 = vrot.slane %v255_v39, 2  ;;  %v264_v48 = vmax.f32 %v262_v34, %v263_v40  ;;  %p716_p13 = pneg %p715_p12 }
  0x23   : > { %v664_v44 = vpop.eup %663  ;;  %v402_v46 = vmul.f32 %v662_v41, %v380_v26  ;;  %v273_v52 = vmax.f32 %v271_v38, %v272_v43 }
  0x24   : > { %v403_v50 = vmul.f32 %v664_v44, %v381_v32  ;;  %v248_v51 = vmax.f32 %v246_v37, %v247_v42  ;;  %v257_v54 = vmax.f32 %v255_v39, %v256_v47  ;;  %v265_v55 = vrot.slane %v264_v48, 2  ;;  %p721_p3 = pnand %p720_p2, %p716_p13 }
  0x25   : > { %v404_v53 = vmul.f32 0.5, %v402_v46  ;;  %v274_v58 = vrot.slane %v273_v52, 2 }
  0x26   : > { %v405_v56 = vmul.f32 0.5, %v403_v50  ;;  %v249_v57 = vrot.slane %v248_v51, 1  ;;  %v258_v61 = vrot.slane %v257_v54, 1  ;;  %v894_v62 = vmax.f32 %v264_v48, %v265_v55 }
  0x27   : > { %v408_v60 = vrot.slane %v404_v53, 6  ;;  %v899_v8 = vmax.f32 %v273_v52, %v274_v58 }
  0x28   : > { %v410_v0 = vrot.slane %v405_v56, 6  ;;  %v250_v1 = vmax.f32 %v248_v51, %v249_v57  ;;  %v896_v3 = vmax.f32 %v257_v54, %v258_v61  ;;  %v267_v7 = vrot.slane %v894_v62, 1 }
  0x29   : > { %v409_v2 = vrot.slane %v408_v60, 4  ;;  %v276_v61 = vrot.slane %v899_v8, 1 }
  0x2a   : > { %v411_v12 = vrot.slane %v410_v0, 4  ;;  %v278_v13 = vsub.f32 %v848_v4, %v250_v1  ;;  %v282_v14 = vsub.f32 %v850_v5, %v250_v1  ;;  %v286_v15 = vsub.f32 %v852_v6, %v250_v1 }
  0x2b   : > { %v414_v18 = vsub.f32 %v394_v59, %v409_v2  ;;  %v416_v22 = vadd.f32 %v409_v2, %v394_v59  ;;  %v279_v23 = vsub.f32 %v856_v9, %v896_v3  ;;  %v283_v24 = vsub.f32 %v858_v10, %v896_v3 }
  0x2c   : > { %v415_v26 = vsub.f32 %v395_v63, %v411_v12  ;;  %v417_v27 = vadd.f32 %v411_v12, %v395_v63  ;;  %v290_v28 = vmul.f32 1.442695, %v278_v13  ;;  %v298_v29 = vmul.f32 1.442695, %v282_v14 }
  0x2d   : > { %v420_v4 = vperm.slane %v414_v18, 0  ;;  %v421_v30 = vperm.slane %v414_v18, 4  ;;  %v428_v31 = vperm.slane %v414_v18, 1  ;;  %v429_v5 = vperm.slane %v414_v18, 5 }
  0x2e   : > { %v438_v6 = vperm.slane %v416_v22, 0  ;;  %v439_v32 = vperm.slane %v416_v22, 4  ;;  %v446_v33 = vperm.slane %v416_v22, 1  ;;  %v447_v34 = vperm.slane %v416_v22, 5 }
  0x2f   : > { %v455_v9 = vsel %vm454_vm1, %v420_v4, %v428_v31  ;;  %v456_v35 = vsel %vm454_vm1, %v421_v30, %v429_v5  ;;  %v422_v10 = vperm.slane %v415_v26, 0  ;;  %v423_v36 = vperm.slane %v415_v26, 4 }
  0x30   : > { %v460_v37 = vsel %vm459_vm2, %v455_v9, %v438_v6  ;;  %v461_v38 = vsel %vm459_vm2, %v456_v35, %v439_v32  ;;  %v430_v39 = vperm.slane %v415_v26, 1  ;;  %v431_v40 = vperm.slane %v415_v26, 5 }
  0x31   : > { %v465_v41 = vsel %vm464_vm3, %v460_v37, %v446_v33  ;;  %v466_v42 = vsel %vm464_vm3, %v461_v38, %v447_v34  ;;  %v440_v43 = vperm.slane %v417_v27, 0  ;;  %v441_v44 = vperm.slane %v417_v27, 4 }
  0x32   : > { %v473_v45 = vrot.slane %v466_v42, 4  ;;  %v448_v46 = vperm.slane %v417_v27, 1  ;;  %v449_v47 = vperm.slane %v417_v27, 5  ;;  %v457_v48 = vsel %vm454_vm1, %v422_v10, %v430_v39 }
  0x33   : > { %v458_v49 = vsel %vm454_vm1, %v423_v36, %v431_v40  ;;  %v462_v50 = vsel %vm459_vm2, %v457_v48, %v440_v43  ;;  %665 = vpow2.f32 %v290_v28  ;;  %v306_v51 = vmul.f32 1.442695, %v286_v15 }
  0x34   : > { %v476_v52 = vsel %vm475_vm4, %v465_v41, %v473_v45  ;;  %v463_v53 = vsel %vm459_vm2, %v458_v49, %v441_v44  ;;  %v467_v54 = vsel %vm464_vm3, %v462_v50, %v448_v46  ;;  %667 = vpow2.f32 %v298_v29 }
  0x35   : > { %480 = vst [vmem:[%s213_s30] sm:$0xff] %v476_v52  ;;  %v468_v55 = vsel %vm464_vm3, %v463_v53, %v449_v47  ;;  %669 = vpow2.f32 %v306_v51  ;;  %v287_v56 = vsub.f32 %v860_v11, %v896_v3  ;;  %v292_v57 = vmul.f32 1.442695, %v279_v23 }
  0x36   : > { %v474_v58 = vrot.slane %v468_v55, 4  ;;  %v300_v59 = vmul.f32 1.442695, %v283_v24  ;;  %v268_v60 = vmax.f32 %v894_v62, %v267_v7  ;;  %v277_v3 = vmax.f32 %v899_v8, %v276_v61 }
  0x37   : > { %671 = vpow2.f32 %v292_v57  ;;  %v308_v63 = vmul.f32 1.442695, %v287_v56 }
  0x38   : > { %v477_v0 = vsel %vm475_vm4, %v467_v54, %v474_v58  ;;  %673 = vpow2.f32 %v300_v59  ;;  %v280_v1 = vsub.f32 %v868_v16, %v268_v60  ;;  %v284_v11 = vsub.f32 %v870_v17, %v268_v60 }
  0x39   : > { %v937_v2 = vpop.eup %665  ;;  %481 = vst [vmem:[%s213_s30 + $0x8] sm:$0xff] %v477_v0  ;;  %675 = vpow2.f32 %v308_v63  ;;  %v288_v62 = vsub.f32 %v872_v19, %v268_v60 }
  0x3a   : > { %v941_v7 = vpop.eup %667  ;;  %v294_v12 = vmul.f32 1.442695, %v280_v1  ;;  %v302_v13 = vmul.f32 1.442695, %v284_v11 }
  0x3b   : > { %724 = shalt.err (!%p721_p3)
}
  0x3c   : > { %622 = dma.vmem_to_hbm [thread:$0]  (%p824_p5), %s932_s5, 256, %s507_s6, %s488_s7   ;;  %v956_v16 = vpop.eup %669  ;;  %v314_v17 = vadd.f32 %v941_v7, %v937_v2  ;;  %v310_v19 = vmul.f32 1.442695, %v288_v62  ;;  %v281_v8 = vsub.f32 %v874_v20, %v277_v3  ;;  %v285_v14 = vsub.f32 %v876_v21, %v277_v3 }
  0x3d   : > { %v315_v15 = vsel %vm242_vm0, %v956_v16, 0.0  ;;  %677 = vpow2.f32 %v294_v12  ;;  %v289_v18 = vsub.f32 %v882_v25, %v277_v3  ;;  %v672_v22 = vpop.eup %671  ;;  %s973_s22 = scalar_lea.vmem %s1010_s3, %s621_s28 }
  0x3e   : > { %v316_v23 = vadd.f32 %v315_v15, %v314_v17  ;;  %679 = vpow2.f32 %v302_v13  ;;  %v296_v24 = vmul.f32 1.442695, %v281_v8  ;;  %v304_v26 = vmul.f32 1.442695, %v285_v14  ;;  %v674_v27 = vpop.eup %673 }
  0x3f   : > { %681 = vpow2.f32 %v310_v19  ;;  %v312_v28 = vmul.f32 1.442695, %v289_v18  ;;  %v676_v29 = vpop.eup %675  ;;  %v323_v30 = vadd.f32 %v674_v27, %v672_v22 }
  0x40   : > { %v317_v4 = vrot.slane %v316_v23, 4  ;;  %683 = vpow2.f32 %v296_v24  ;;  %v324_v20 = vsel %vm242_vm0, %v676_v29, 0.0 }
  0x41   : > { %685 = vpow2.f32 %v304_v26  ;;  %v325_v31 = vadd.f32 %v324_v20, %v323_v30 }
  0x42   : > { %v318_v21 = vadd.f32 %v317_v4, %v316_v23  ;;  %687 = vpow2.f32 %v312_v28 }
  0x43   : > { %v678_v5 = vpop.eup %677  ;;  %v326_v32 = vrot.slane %v325_v31, 4 }
  0x44   : > { %v680_v25 = vpop.eup %679  ;;  %v319_v6 = vrot.slane %v318_v21, 2 }
  0x45   : > { %v682_v33 = vpop.eup %681  ;;  %v332_v34 = vadd.f32 %v680_v25, %v678_v5  ;;  %v327_v10 = vadd.f32 %v326_v32, %v325_v31 }
  0x46   : > { %v684_v9 = vpop.eup %683  ;;  %v320_v35 = vadd.f32 %v319_v6, %v318_v21  ;;  %v333_v36 = vsel %vm242_vm0, %v682_v33, 0.0 }
  0x47   : > { %v686_v37 = vpop.eup %685  ;;  %v334_v38 = vadd.f32 %v333_v36, %v332_v34  ;;  %v328_v41 = vrot.slane %v327_v10, 2 }
  0x48   : > { %v688_v39 = vpop.eup %687  ;;  %v321_v40 = vrot.slane %v320_v35, 1  ;;  %v341_v42 = vadd.f32 %v686_v37, %v684_v9 }
  0x49   : > { %v335_v43 = vrot.slane %v334_v38, 4  ;;  %v342_v44 = vsel %vm242_vm0, %v688_v39, 0.0  ;;  %v329_v46 = vadd.f32 %v328_v41, %v327_v10 }
  0x4a   : > { %v322_v45 = vadd.f32 %v321_v40, %v320_v35  ;;  %v343_v47 = vadd.f32 %v342_v44, %v341_v42 }
  0x4b   : > { %v336_v48 = vadd.f32 %v335_v43, %v334_v38  ;;  %v330_v49 = vrot.slane %v329_v46, 1 }
  0x4c   : > { %689 = vrcp.f32 %v322_v45  ;;  %v344_v50 = vrot.slane %v343_v47, 4 }
  0x4d   : > { %v337_v51 = vrot.slane %v336_v48, 2  ;;  %v331_v52 = vadd.f32 %v330_v49, %v329_v46 }
  0x4e   : > { %v345_v53 = vadd.f32 %v344_v50, %v343_v47 }
  0x4f   : > { %v338_v54 = vadd.f32 %v337_v51, %v336_v48  ;;  %691 = vrcp.f32 %v331_v52 }
  0x50   : > { %v346_v55 = vrot.slane %v345_v53, 2 }
  0x51   : > { %v339_v56 = vrot.slane %v338_v54, 1 }
  0x52   : > { %v690_v57 = vpop.eup %689  ;;  %v347_v58 = vadd.f32 %v346_v55, %v345_v53 }
  0x53   : > { %v354_v59 = vmul.f32 %v690_v57, %v937_v2  ;;  %v340_v60 = vadd.f32 %v339_v56, %v338_v54  ;;  %v358_v61 = vmul.f32 %v690_v57, %v941_v7  ;;  %v362_v63 = vmul.f32 %v690_v57, %v956_v16 }
  0x54   : > { %v348_v0 = vrot.slane %v347_v58, 1 }
  0x55   : > { %366 = vst [vmem:[%s973_s22] sm:$0xff] %v354_v59  ;;  %693 = vrcp.f32 %v340_v60  ;;  %v692_v1 = vpop.eup %691 }
  0x56   : > { %v349_v11 = vadd.f32 %v348_v0, %v347_v58  ;;  %370 = vst [vmem:[%s973_s22 + $0x20] sm:$0xff] %v358_v61  ;;  %v355_v62 = vmul.f32 %v692_v1, %v672_v22  ;;  %v359_v3 = vmul.f32 %v692_v1, %v674_v27  ;;  %v363_v2 = vmul.f32 %v692_v1, %v676_v29 }
  0x57   : > { %374 = vst [vmem:[%s973_s22 + $0x40] sm:$0x1f] %v362_v63 }
  0x58   : > { %695 = vrcp.f32 %v349_v11  ;;  %367 = vst [vmem:[%s973_s22 + $0x8] sm:$0xff] %v355_v62 }
  0x59   : > { %371 = vst [vmem:[%s973_s22 + $0x28] sm:$0xff] %v359_v3 }
  0x5a   : > { %375 = vst [vmem:[%s973_s22 + $0x48] sm:$0x1f] %v363_v2 }
  0x5b   : > { %v694_v7 = vpop.eup %693 }
  0x5c   : > { %v356_v12 = vmul.f32 %v694_v7, %v678_v5  ;;  %v360_v13 = vmul.f32 %v694_v7, %v680_v25  ;;  %v364_v16 = vmul.f32 %v694_v7, %v682_v33 }
  0x5e   : > { %v696_v17 = vpop.eup %695  ;;  %368 = vst [vmem:[%s973_s22 + $0x10] sm:$0xff] %v356_v12 }
  0x5f   : > { %v357_v19 = vmul.f32 %v696_v17, %v684_v9  ;;  %372 = vst [vmem:[%s973_s22 + $0x30] sm:$0xff] %v360_v13  ;;  %v361_v8 = vmul.f32 %v696_v17, %v686_v37  ;;  %v365_v14 = vmul.f32 %v696_v17, %v688_v39 }
  0x60   : > { %376 = vst [vmem:[%s973_s22 + $0x50] sm:$0x1f] %v364_v16 }
  0x61   : > { %369 = vst [vmem:[%s973_s22 + $0x18] sm:$0xff] %v357_v19 }
  0x62   : > { %373 = vst [vmem:[%s973_s22 + $0x38] sm:$0xff] %v361_v8 }
  0x63   : > { %377 = vst [vmem:[%s973_s22 + $0x58] sm:$0x1f] %v365_v14 }
  0x64 PF: > { %p628_p4 = scmp.ge.s32.totalorder %s759_s18, 2  ;;  %s526_s27 = sand.u32 1, %s747_s15  }
  0x65   : > { %s527_s28 = scalar_lea.sflag [#allocation3], %s526_s27 }
  0x66   : > { %p625_p5 = pnand %p628_p4, %p828_p6 }
  0x68   : > { %p626_p7 = pneg %p625_p5 }
  0x6a   : > { %742 = dma.done.wait (%p626_p7), %s527_s28, 256  }
  0x6b   : > { %744 = vsyncadd (%p626_p7), %s527_s28, 4294967040  ;;  %p15_p8 = scmp.ge.s32.totalorder %s811_s21, 4   ;;  %s1014_s15 = smov %s751_s16 }
  0x6c   : > { %s1015_s16 = smov %s755_s17  ;;  %s1016_s17 = smov %s822_s24 }
  0x6d   : > { %s1017_s18 = smov %s811_s21  ;;  %17 = sbr.rel (!%p15_p8) target bundleno = 3 (0x3), region = 82 }
  0x72   :  { %533 = vsyncpa [#allocation3], 1 }
  0x73   :  { %535 = vsyncpa [#allocation3 + $0x1], 1 }

</bundles_post_ra>
